<compile_context>
chip_gen: v7x
topology: tpu7x:2x2x1
jax: 0.10.0
libtpu: 0.0.40
codegen_flags: <defaults>
</compile_context>

<pallas_src>
import functools

import jax
import jax.numpy as jnp
from jax.experimental import pallas as pl
from jax.experimental.pallas import tpu as pltpu

LANE = 128
BN_EPS = 1e-5
EDGE_DIM_PAD = 8        # bond features padded 3 -> 8 for the small-K MXU dot

VMEM_SPEC = pl.BlockSpec(memory_space=pltpu.MemorySpace.VMEM)


def _round_up(v, m):
    return ((v + m - 1) // m) * m


def _rep_spec(shape):
    """Full-array block replicated across the grid (constant index map)."""
    nd = len(shape)
    return pl.BlockSpec(shape, lambda *_: (0,) * nd)


def _default_vmem_limit():
    """Scoped VMEM request: capacity minus 16 MiB headroom, clamped."""
    try:
        info = pltpu.get_tpu_info()
        cap = int(getattr(info, "vmem_capacity_bytes", 64 * 1024 * 1024))
    except Exception:  # pragma: no cover - conservative fallback
        cap = 64 * 1024 * 1024
    return int(max(32 * 1024 * 1024,
                   min(cap - 16 * 1024 * 1024, 112 * 1024 * 1024)))


# ---------------------------------------------------------------------------
# Fused GINConv + outer ReLU + BatchNorm1d + mean-pool kernel
# (1-D "arbitrary" reduction grid over edge tiles)
# ---------------------------------------------------------------------------
def _gin_conv_bn_kernel(x_ref, xb_ref, ea_ref, gat_ref, sct_ref,
                        pool_ref, invc_ref,
                        bw1_ref, bb1_ref, bw2_ref, bb2_ref,
                        mw1_ref, mb1_ref, mw2_ref, mb2_ref,
                        eps_ref, gamma_ref, beta_ref,
                        y_ref, yb_ref, pooled_ref, acc_ref):
    f32 = jnp.float32
    bf16 = jnp.bfloat16
    k = pl.program_id(0)

    @pl.when(k == 0)
    def _():
        acc_ref[...] = jnp.zeros_like(acc_ref)

    # ---- bond encoder layer 1 (small-K bf16 MXU dot, f32 accumulate) ------
    h = jnp.dot(ea_ref[...], bw1_ref[...],
                preferred_element_type=f32) + bb1_ref[...]
    h = jnp.maximum(h, 0.0)

    # ---- bond encoder layer 2 ----------------------------------------------
    eemb = jnp.dot(h.astype(bf16), bw2_ref[...],
                   preferred_element_type=f32) + bb2_ref[...]

    # ---- message: relu(x_j + edge_embedding); gather via bf16 one-hot ------
    # x_bf16 is a resident pre-cast input (cast hoisted out of the tile loop).
    xj = jnp.dot(gat_ref[...], xb_ref[...], preferred_element_type=f32)
    msg = jnp.maximum(xj + eemb, 0.0)

    # ---- scatter-add into the node accumulator (bf16 one-hot, f32 acc) -----
    acc_ref[...] += jnp.dot(sct_ref[...], msg.astype(bf16),
                            preferred_element_type=f32)

    # ---- last edge tile: node MLP + ReLU + BatchNorm + mean-pool, store ----
    @pl.when(k == pl.num_programs(0) - 1)
    def _():
        x = x_ref[...]                                   # fp32 residual path
        hh = (1.0 + eps_ref[...]) * x + acc_ref[...]
        z = jnp.dot(hh.astype(bf16), mw1_ref[...],
                    preferred_element_type=f32) + mb1_ref[...]
        z = jnp.maximum(z, 0.0)
        y = jnp.dot(z.astype(bf16), mw2_ref[...],
                    preferred_element_type=f32) + mb2_ref[...]
        y = jnp.maximum(y, 0.0)                          # outer F.relu
        # BatchNorm1d, training-mode batch stats (biased variance), fp32
        n = y.shape[0]
        mean = jnp.sum(y, axis=0, keepdims=True) * (1.0 / n)
        d = y - mean
        var = jnp.sum(d * d, axis=0, keepdims=True) * (1.0 / n)
        inv = jax.lax.rsqrt(var + BN_EPS)
        yn = gamma_ref[...] * (d * inv) + beta_ref[...]
        ynb = yn.astype(bf16)
        y_ref[...] = yn                                  # fp32 for next residual
        yb_ref[...] = ynb                                # bf16 for next gather
        # fused global_mean_pool for this layer: [B,N] one-hot @ [N,D2]
        pooled_ref[...] = jnp.dot(pool_ref[...], ynb,
                                  preferred_element_type=f32) * invc_ref[...]


def gin_conv_bn(x, x_bf16, edge_attr_p, gather_m, scatter_m,
                pool_oh, inv_counts, p, *, edge_tile, vmem_limit):
    """One fused GINConv + F.relu + BatchNorm1d + mean-pool.

    Returns (y_f32 [N, D2], y_bf16 [N, D2], pooled_mean [B, D2]).
    """
    N, DinP = x.shape
    E_pad, De_pad = edge_attr_p.shape
    D2 = p["mw2"].shape[1]
    B = pool_oh.shape[0]
    assert x.shape[1] == p["bw2"].shape[0]
    assert E_pad % edge_tile == 0 and N % 8 == 0
    n_tiles = E_pad // edge_tile

    flops = int(2 * E_pad * (De_pad * DinP + DinP * DinP + 2 * N * DinP)
                + 2 * N * DinP * (DinP + D2) + 2 * B * N * D2)
    bytes_accessed = int(
        x.size * 4 + x_bf16.size * 2 + edge_attr_p.size * 2
        + gather_m.size * 2 + scatter_m.size * 2 + pool_oh.size * 2
        + sum(int(v.size) * v.dtype.itemsize for v in p.values())
        + N * D2 * (4 + 2) + B * D2 * 4)

    in_specs = [
        pl.BlockSpec((N, DinP), lambda k: (0, 0)),            # x fp32 (resident)
        pl.BlockSpec((N, DinP), lambda k: (0, 0)),            # x bf16 (resident)
        pl.BlockSpec((edge_tile, De_pad), lambda k: (k, 0)),  # edge_attr tile
        pl.BlockSpec((edge_tile, N), lambda k: (k, 0)),       # gather one-hot
        pl.BlockSpec((N, edge_tile), lambda k: (0, k)),       # scatter one-hot
        _rep_spec(pool_oh.shape), _rep_spec(inv_counts.shape),
        _rep_spec(p["bw1"].shape), _rep_spec(p["bb1"].shape),
        _rep_spec(p["bw2"].shape), _rep_spec(p["bb2"].shape),
        _rep_spec(p["mw1"].shape), _rep_spec(p["mb1"].shape),
        _rep_spec(p["mw2"].shape), _rep_spec(p["mb2"].shape),
        _rep_spec(p["eps"].shape), _rep_spec(p["gamma"].shape),
        _rep_spec(p["beta"].shape),
    ]
    out_shape = (
        jax.ShapeDtypeStruct((N, D2), jnp.float32),
        jax.ShapeDtypeStruct((N, D2), jnp.bfloat16),
        jax.ShapeDtypeStruct((B, D2), jnp.float32),
    )
    out_specs = (
        pl.BlockSpec((N, D2), lambda k: (0, 0)),
        pl.BlockSpec((N, D2), lambda k: (0, 0)),
        pl.BlockSpec((B, D2), lambda k: (0, 0)),
    )

    return pl.pallas_call(
        _gin_conv_bn_kernel,
        out_shape=out_shape,
        grid=(n_tiles,),
        in_specs=in_specs,
        out_specs=out_specs,
        scratch_shapes=[pltpu.VMEM((N, DinP), jnp.float32)],
        compiler_params=pltpu.CompilerParams(
            dimension_semantics=("arbitrary",),      # reduction over edge tiles
            vmem_limit_bytes=vmem_limit),
        cost_estimate=pl.CostEstimate(flops=flops, transcendentals=0,
                                      bytes_accessed=bytes_accessed),
    )(x, x_bf16, edge_attr_p, gather_m, scatter_m, pool_oh, inv_counts,
      p["bw1"], p["bb1"], p["bw2"], p["bb2"],
      p["mw1"], p["mb1"], p["mw2"], p["mb2"],
      p["eps"], p["gamma"], p["beta"])


# ---------------------------------------------------------------------------
# Readout head: concat of four [B, dim] pooled rows + 4 FC layers
# (mean-pool itself is fused into each conv kernel above)
# ---------------------------------------------------------------------------
def _head_kernel(p1_ref, p2_ref, p3_ref, p4_ref,
                 w1_ref, b1_ref, w2_ref, b2_ref, w3_ref, b3_ref,
                 w4_ref, b4_ref, out_ref):
    f32 = jnp.float32
    bf16 = jnp.bfloat16
    pooled = jnp.concatenate(
        [p1_ref[...], p2_ref[...], p3_ref[...], p4_ref[...]], axis=-1)
    h = jnp.maximum(jnp.dot(pooled.astype(bf16), w1_ref[...],
                            preferred_element_type=f32) + b1_ref[...], 0.0)
    h = jnp.maximum(jnp.dot(h.astype(bf16), w2_ref[...],
                            preferred_element_type=f32) + b2_ref[...], 0.0)
    h = jnp.maximum(jnp.dot(h.astype(bf16), w3_ref[...],
                            preferred_element_type=f32) + b3_ref[...], 0.0)
    out_ref[...] = jnp.dot(h.astype(bf16), w4_ref[...],
                           preferred_element_type=f32) + b4_ref[...]


def head(pool1, pool2, pool3, pool4, params):
    B = pool1.shape[0]
    return pl.pallas_call(
        _head_kernel,
        out_shape=jax.ShapeDtypeStruct((B, 1), jnp.float32),
        in_specs=[VMEM_SPEC] * 12,
        out_specs=VMEM_SPEC,
    )(pool1, pool2, pool3, pool4,
      params["fc1_w"], params["fc1_b"], params["fc2_w"], params["fc2_b"],
      params["fc3_w"], params["fc3_b"], params["fc4_w"], params["fc4_b"])


# ---------------------------------------------------------------------------
# Parameters (pre-padded + pre-cast once at init) and graph preparation
# ---------------------------------------------------------------------------
def _linear(key, din, dout, scale=0.1):
    kw, kb = jax.random.split(key)
    w = jax.random.normal(kw, (din, dout), jnp.float32) * scale
    b = jax.random.normal(kb, (1, dout), jnp.float32) * scale
    return w, b


def _pad2(a, rows, cols):
    return jnp.pad(a, ((0, rows - a.shape[0]), (0, cols - a.shape[1])))


def _gin_params(key, emb_dim, emb_dim_pad, dim1, dim2, dim1_pad):
    k1, k2, k3, k4 = jax.random.split(key, 4)
    bw1, bb1 = _linear(k1, emb_dim, dim1)
    bw2, bb2 = _linear(k2, dim1, dim1)
    mw1, mb1 = _linear(k3, dim1, dim1)
    mw2, mb2 = _linear(k4, dim1, dim2)
    return dict(
        # MXU weights: padded once, stored bf16 (f32 accumulation in-kernel)
        bw1=_pad2(bw1, emb_dim_pad, dim1_pad).astype(jnp.bfloat16),
        bb1=_pad2(bb1, 1, dim1_pad),
        bw2=_pad2(bw2, dim1_pad, dim1_pad).astype(jnp.bfloat16),
        bb2=_pad2(bb2, 1, dim1_pad),
        mw1=_pad2(mw1, dim1_pad, dim1_pad).astype(jnp.bfloat16),
        mb1=_pad2(mb1, 1, dim1_pad),
        mw2=_pad2(mw2, dim1_pad, dim2).astype(jnp.bfloat16),
        mb2=mb2,
        eps=jnp.zeros((1, 1), jnp.float32),              # torch.Tensor([0])
        gamma=jnp.ones((1, dim2), jnp.float32),          # fused BatchNorm1d
        beta=jnp.zeros((1, dim2), jnp.float32),
    )


def init_params(key, dim=256, num_edge_features=3, node_dim=28):
    keys = jax.random.split(key, 8)
    node_dim_pad = _round_up(node_dim, LANE)
    params = {
        "conv1": _gin_params(keys[0], num_edge_features, EDGE_DIM_PAD,
                             node_dim, dim, node_dim_pad),
        "conv2": _gin_params(keys[1], num_edge_features, EDGE_DIM_PAD,
                             dim, dim, dim),
        "conv3": _gin_params(keys[2], num_edge_features, EDGE_DIM_PAD,
                             dim, dim, dim),
        "conv4": _gin_params(keys[3], num_edge_features, EDGE_DIM_PAD,
                             dim, dim, dim),
    }
    fc1_w, fc1_b = _linear(keys[4], 4 * dim, dim)
    fc2_w, fc2_b = _linear(keys[5], dim, dim)
    fc3_w, fc3_b = _linear(keys[6], dim, dim)
    fc4_w, fc4_b = _linear(keys[7], dim, 1)
    params.update(
        fc1_w=fc1_w.astype(jnp.bfloat16), fc1_b=fc1_b,
        fc2_w=fc2_w.astype(jnp.bfloat16), fc2_b=fc2_b,
        fc3_w=fc3_w.astype(jnp.bfloat16), fc3_b=fc3_b,
        fc4_w=fc4_w.astype(jnp.bfloat16), fc4_b=fc4_b,
    )
    return params


def prepare_graph(edge_index, edge_attr, batch, num_nodes, num_graphs,
                  edge_tile, edge_dim_pad=EDGE_DIM_PAD):
    """One-time index-structure setup (padded once, bf16 one-hot operands)."""
    E, De = edge_attr.shape
    E_pad = _round_up(E, edge_tile)
    pad = E_pad - E
    # Out-of-range padded indices -> all-zero one-hot rows/cols, so padded
    # edges contribute exactly nothing to the aggregation.
    src = jnp.concatenate(
        [edge_index[0], jnp.full((pad,), num_nodes, jnp.int32)])
    dst = jnp.concatenate(
        [edge_index[1], jnp.full((pad,), num_nodes, jnp.int32)])
    ea = jnp.pad(edge_attr, ((0, pad), (0, edge_dim_pad - De)))
    ea = ea.astype(jnp.bfloat16)                                       # [E,8]
    gather_m = jax.nn.one_hot(src, num_nodes, dtype=jnp.bfloat16)      # [E,N]
    scatter_m = jax.nn.one_hot(dst, num_nodes, dtype=jnp.bfloat16).T   # [N,E]
    oh_b = jax.nn.one_hot(batch, num_graphs, dtype=jnp.float32)        # [N,B]
    counts = jnp.sum(oh_b, axis=0)
    inv_counts = (1.0 / jnp.maximum(counts, 1.0)).reshape(num_graphs, 1)
    pool_oh = oh_b.T.astype(jnp.bfloat16)                              # [B,N]
    return ea, gather_m, scatter_m, pool_oh, inv_counts


# ---------------------------------------------------------------------------
# Forward pass (matches NetGINE.forward)
# ---------------------------------------------------------------------------
def net_gine_forward(params, x, edge_attr_p, gather_m, scatter_m,
                     pool_oh, inv_counts, *, edge_tile, vmem_limit):
    node_dim_pad = params["conv1"]["bw2"].shape[0]
    xp = jnp.pad(x, ((0, 0), (0, node_dim_pad - x.shape[1])))
    xb = xp.astype(jnp.bfloat16)
    conv = functools.partial(gin_conv_bn, edge_attr_p=edge_attr_p,
                             gather_m=gather_m, scatter_m=scatter_m,
                             pool_oh=pool_oh, inv_counts=inv_counts,
                             edge_tile=edge_tile, vmem_limit=vmem_limit)
    y1, y1b, pool1 = conv(xp, xb, p=params["conv1"])
    y2, y2b, pool2 = conv(y1, y1b, p=params["conv2"])
    y3, y3b, pool3 = conv(y2, y2b, p=params["conv3"])
    _, _, pool4 = conv(y3, y3b, p=params["conv4"])
    out = head(pool1, pool2, pool3, pool4, params)            # [B, 1]
    return out.reshape(-1)                                    # .view(-1)


if __name__ == "__main__":
    N, E, B = 64, 200, 4            # small graph batch (N % 8 == 0)
    NODE_DIM, EDGE_DIM, DIM = 28, 3, 256
    EDGE_TILE = 256                 # fills the 2x256^2 MXU rows on v6e/v7x

    key = jax.random.PRNGKey(0)
    kx, ke, ki, kp = jax.random.split(key, 4)

    x = jax.random.normal(kx, (N, NODE_DIM), jnp.float32)
    edge_attr = jax.random.normal(ke, (E, EDGE_DIM), jnp.float32)
    edge_index = jax.random.randint(ki, (2, E), 0, N, dtype=jnp.int32)
    batch = jnp.repeat(jnp.arange(B, dtype=jnp.int32), N // B)

    ea_p, gather_m, scatter_m, pool_oh, inv_counts = prepare_graph(
        edge_index, edge_attr, batch, N, B, EDGE_TILE)
    params = init_params(kp, dim=DIM, num_edge_features=EDGE_DIM,
                         node_dim=NODE_DIM)

    vmem_limit = _default_vmem_limit()
    fwd = jax.jit(functools.partial(net_gine_forward, edge_tile=EDGE_TILE,
                                    vmem_limit=vmem_limit))
    out = fwd(params, x, ea_p, gather_m, scatter_m, pool_oh, inv_counts)
    jax.block_until_ready(out)
    assert out.shape == (B,)
    print("KERNEL_OK")
</pallas_src>

<mosaic_0001>
module attributes {stable_mosaic.version = 11 : i64} {
  func.func @_gin_conv_bn_kernel(%arg0: i32, %arg1: memref<64x256xf32, #tpu.memory_space<vmem>>, %arg2: memref<64x256xbf16, #tpu.memory_space<vmem>>, %arg3: memref<256x8xbf16, #tpu.memory_space<vmem>>, %arg4: memref<256x64xbf16, #tpu.memory_space<vmem>>, %arg5: memref<64x256xbf16, #tpu.memory_space<vmem>>, %arg6: memref<4x64xbf16, #tpu.memory_space<vmem>>, %arg7: memref<4x1xf32, #tpu.memory_space<vmem>>, %arg8: memref<8x256xbf16, #tpu.memory_space<vmem>>, %arg9: memref<1x256xf32, #tpu.memory_space<vmem>>, %arg10: memref<256x256xbf16, #tpu.memory_space<vmem>>, %arg11: memref<1x256xf32, #tpu.memory_space<vmem>>, %arg12: memref<256x256xbf16, #tpu.memory_space<vmem>>, %arg13: memref<1x256xf32, #tpu.memory_space<vmem>>, %arg14: memref<256x256xbf16, #tpu.memory_space<vmem>>, %arg15: memref<1x256xf32, #tpu.memory_space<vmem>>, %arg16: memref<1x1xf32, #tpu.memory_space<vmem>>, %arg17: memref<1x256xf32, #tpu.memory_space<vmem>>, %arg18: memref<1x256xf32, #tpu.memory_space<vmem>>, %arg19: memref<64x256xf32, #tpu.memory_space<vmem>>, %arg20: memref<64x256xbf16, #tpu.memory_space<vmem>>, %arg21: memref<4x256xf32, #tpu.memory_space<vmem>>, %arg22: memref<64x256xf32, #tpu.memory_space<vmem>>) attributes {dimension_semantics = [#tpu.dimension_semantics<arbitrary>], iteration_bounds = array<i64: 1>, scalar_prefetch = 0 : i64, scratch_operands = 1 : i64, tpu.core_type = #tpu.core_type<tc>, window_params = [{pipeline_mode = #tpu.pipeline_mode<synchronous>, transform_indices = @transform_0, window_bounds = array<i64: 64, 256>}, {pipeline_mode = #tpu.pipeline_mode<synchronous>, transform_indices = @transform_1, window_bounds = array<i64: 64, 256>}, {transform_indices = @transform_2, window_bounds = array<i64: 256, 8>}, {transform_indices = @transform_3, window_bounds = array<i64: 256, 64>}, {transform_indices = @transform_4, window_bounds = array<i64: 64, 256>}, {pipeline_mode = #tpu.pipeline_mode<synchronous>, transform_indices = @transform_5, window_bounds = array<i64: 4, 64>}, {pipeline_mode = #tpu.pipeline_mode<synchronous>, transform_indices = @transform_6, window_bounds = array<i64: 4, 1>}, {pipeline_mode = #tpu.pipeline_mode<synchronous>, transform_indices = @transform_7, window_bounds = array<i64: 8, 256>}, {pipeline_mode = #tpu.pipeline_mode<synchronous>, transform_indices = @transform_8, window_bounds = array<i64: 1, 256>}, {pipeline_mode = #tpu.pipeline_mode<synchronous>, transform_indices = @transform_9, window_bounds = array<i64: 256, 256>}, {pipeline_mode = #tpu.pipeline_mode<synchronous>, transform_indices = @transform_10, window_bounds = array<i64: 1, 256>}, {pipeline_mode = #tpu.pipeline_mode<synchronous>, transform_indices = @transform_11, window_bounds = array<i64: 256, 256>}, {pipeline_mode = #tpu.pipeline_mode<synchronous>, transform_indices = @transform_12, window_bounds = array<i64: 1, 256>}, {pipeline_mode = #tpu.pipeline_mode<synchronous>, transform_indices = @transform_13, window_bounds = array<i64: 256, 256>}, {pipeline_mode = #tpu.pipeline_mode<synchronous>, transform_indices = @transform_14, window_bounds = array<i64: 1, 256>}, {pipeline_mode = #tpu.pipeline_mode<synchronous>, transform_indices = @transform_15, window_bounds = array<i64: 1, 1>}, {pipeline_mode = #tpu.pipeline_mode<synchronous>, transform_indices = @transform_16, window_bounds = array<i64: 1, 256>}, {pipeline_mode = #tpu.pipeline_mode<synchronous>, transform_indices = @transform_17, window_bounds = array<i64: 1, 256>}, {pipeline_mode = #tpu.pipeline_mode<synchronous>, transform_indices = @transform_18, window_bounds = array<i64: 64, 256>}, {pipeline_mode = #tpu.pipeline_mode<synchronous>, transform_indices = @transform_19, window_bounds = array<i64: 64, 256>}, {pipeline_mode = #tpu.pipeline_mode<synchronous>, transform_indices = @transform_20, window_bounds = array<i64: 4, 256>}]} {
    %c0_i32 = arith.constant 0 : i32
    %0 = arith.cmpi eq, %arg0, %c0_i32 : i32
    %1 = arith.extui %0 : i1 to i32
    %c0_i32_0 = arith.constant 0 : i32
    %2 = arith.cmpi ne, %1, %c0_i32_0 : i32
    scf.if %2 {
      %cst_27 = arith.constant 0.000000e+00 : f32
      %32 = vector.broadcast %cst_27 : f32 to vector<64x256xf32>
      %c0_28 = arith.constant 0 : index
      %c0_29 = arith.constant 0 : index
      %33 = vector.load %arg22[%c0_28, %c0_29] : memref<64x256xf32, #tpu.memory_space<vmem>>, vector<64x256xf32>
      tpu.vector_store %arg22[%c0_28, %c0_29], %32 {strides = array<i32>} : memref<64x256xf32, #tpu.memory_space<vmem>>, vector<64x256xf32>,
    } else {
    }
    %c0 = arith.constant 0 : index
    %c0_1 = arith.constant 0 : index
    %3 = vector.load %arg3[%c0, %c0_1] : memref<256x8xbf16, #tpu.memory_space<vmem>>, vector<256x8xbf16>
    %c0_2 = arith.constant 0 : index
    %c0_3 = arith.constant 0 : index
    %4 = vector.load %arg8[%c0_2, %c0_3] : memref<8x256xbf16, #tpu.memory_space<vmem>>, vector<8x256xbf16>
    %cst = arith.constant dense<0.000000e+00> : vector<256x256xf32>
    %5 = tpu.matmul %3, %4, %cst {dimension_numbers = #tpu.dot_dimension_numbers<[1], [0], [0], [1], [0, 0, 1, 1], [], []>} : vector<256x8xbf16>, vector<8x256xbf16>, vector<256x256xf32> -> vector<256x256xf32>
    %c0_4 = arith.constant 0 : index
    %c0_5 = arith.constant 0 : index
    %6 = vector.load %arg9[%c0_4, %c0_5] : memref<1x256xf32, #tpu.memory_space<vmem>>, vector<1x256xf32>
    %7 = vector.broadcast %6 : vector<1x256xf32> to vector<256x256xf32>
    %8 = arith.addf %5, %7 : vector<256x256xf32>
    %cst_6 = arith.constant 0.000000e+00 : f32
    %9 = vector.broadcast %cst_6 : f32 to vector<256x256xf32>
    %10 = arith.maximumf %8, %9 : vector<256x256xf32>
    %11 = arith.truncf %10 : vector<256x256xf32> to vector<256x256xbf16>
    %c0_7 = arith.constant 0 : index
    %c0_8 = arith.constant 0 : index
    %12 = vector.load %arg10[%c0_7, %c0_8] : memref<256x256xbf16, #tpu.memory_space<vmem>>, vector<256x256xbf16>
    %cst_9 = arith.constant dense<0.000000e+00> : vector<256x256xf32>
    %13 = tpu.matmul %11, %12, %cst_9 {dimension_numbers = #tpu.dot_dimension_numbers<[1], [0], [0], [1], [0, 0, 1, 1], [], []>} : vector<256x256xbf16>, vector<256x256xbf16>, vector<256x256xf32> -> vector<256x256xf32>
    %c0_10 = arith.constant 0 : index
    %c0_11 = arith.constant 0 : index
    %14 = vector.load %arg11[%c0_10, %c0_11] : memref<1x256xf32, #tpu.memory_space<vmem>>, vector<1x256xf32>
    %15 = vector.broadcast %14 : vector<1x256xf32> to vector<256x256xf32>
    %16 = arith.addf %13, %15 : vector<256x256xf32>
    %c0_12 = arith.constant 0 : index
    %c0_13 = arith.constant 0 : index
    %17 = vector.load %arg4[%c0_12, %c0_13] : memref<256x64xbf16, #tpu.memory_space<vmem>>, vector<256x64xbf16>
    %c0_14 = arith.constant 0 : index
    %c0_15 = arith.constant 0 : index
    %18 = vector.load %arg2[%c0_14, %c0_15] : memref<64x256xbf16, #tpu.memory_space<vmem>>, vector<64x256xbf16>
    %cst_16 = arith.constant dense<0.000000e+00> : vector<256x256xf32>
    %19 = tpu.matmul %17, %18, %cst_16 {dimension_numbers = #tpu.dot_dimension_numbers<[1], [0], [0], [1], [0, 0, 1, 1], [], []>} : vector<256x64xbf16>, vector<64x256xbf16>, vector<256x256xf32> -> vector<256x256xf32>
    %20 = arith.addf %19, %16 : vector<256x256xf32>
    %cst_17 = arith.constant 0.000000e+00 : f32
    %21 = vector.broadcast %cst_17 : f32 to vector<256x256xf32>
    %22 = arith.maximumf %20, %21 : vector<256x256xf32>
    %c0_18 = arith.constant 0 : index
    %c0_19 = arith.constant 0 : index
    %23 = vector.load %arg22[%c0_18, %c0_19] : memref<64x256xf32, #tpu.memory_space<vmem>>, vector<64x256xf32>
    %c0_20 = arith.constant 0 : index
    %c0_21 = arith.constant 0 : index
    %24 = vector.load %arg5[%c0_20, %c0_21] : memref<64x256xbf16, #tpu.memory_space<vmem>>, vector<64x256xbf16>
    %25 = arith.truncf %22 : vector<256x256xf32> to vector<256x256xbf16>
    %cst_22 = arith.constant dense<0.000000e+00> : vector<64x256xf32>
    %26 = tpu.matmul %24, %25, %cst_22 {dimension_numbers = #tpu.dot_dimension_numbers<[1], [0], [0], [1], [0, 0, 1, 1], [], []>} : vector<64x256xbf16>, vector<256x256xbf16>, vector<64x256xf32> -> vector<64x256xf32>
    %27 = arith.addf %23, %26 : vector<64x256xf32>
    %c0_23 = arith.constant 0 : index
    %c0_24 = arith.constant 0 : index
    %28 = vector.load %arg22[%c0_23, %c0_24] : memref<64x256xf32, #tpu.memory_space<vmem>>, vector<64x256xf32>
    tpu.vector_store %arg22[%c0_23, %c0_24], %27 {strides = array<i32>} : memref<64x256xf32, #tpu.memory_space<vmem>>, vector<64x256xf32>,
    %c0_i32_25 = arith.constant 0 : i32
    %29 = arith.cmpi eq, %arg0, %c0_i32_25 : i32
    %30 = arith.extui %29 : i1 to i32
    %c0_i32_26 = arith.constant 0 : i32
    %31 = arith.cmpi ne, %30, %c0_i32_26 : i32
    scf.if %31 {
      %c0_27 = arith.constant 0 : index
      %c0_28 = arith.constant 0 : index
      %32 = vector.load %arg1[%c0_27, %c0_28] : memref<64x256xf32, #tpu.memory_space<vmem>>, vector<64x256xf32>
      %c0_29 = arith.constant 0 : index
      %c0_30 = arith.constant 0 : index
      %33 = vector.load %arg16[%c0_29, %c0_30] : memref<1x1xf32, #tpu.memory_space<vmem>>, vector<1x1xf32>
      %cst_31 = arith.constant 1.000000e+00 : f32
      %34 = vector.broadcast %cst_31 : f32 to vector<1x1xf32>
      %35 = arith.addf %34, %33 : vector<1x1xf32>
      %36 = vector.broadcast %35 : vector<1x1xf32> to vector<64x256xf32>
      %37 = arith.mulf %36, %32 : vector<64x256xf32>
      %c0_32 = arith.constant 0 : index
      %c0_33 = arith.constant 0 : index
      %38 = vector.load %arg22[%c0_32, %c0_33] : memref<64x256xf32, #tpu.memory_space<vmem>>, vector<64x256xf32>
      %39 = arith.addf %37, %38 : vector<64x256xf32>
      %40 = arith.truncf %39 : vector<64x256xf32> to vector<64x256xbf16>
      %c0_34 = arith.constant 0 : index
      %c0_35 = arith.constant 0 : index
      %41 = vector.load %arg12[%c0_34, %c0_35] : memref<256x256xbf16, #tpu.memory_space<vmem>>, vector<256x256xbf16>
      %cst_36 = arith.constant dense<0.000000e+00> : vector<64x256xf32>
      %42 = tpu.matmul %40, %41, %cst_36 {dimension_numbers = #tpu.dot_dimension_numbers<[1], [0], [0], [1], [0, 0, 1, 1], [], []>} : vector<64x256xbf16>, vector<256x256xbf16>, vector<64x256xf32> -> vector<64x256xf32>
      %c0_37 = arith.constant 0 : index
      %c0_38 = arith.constant 0 : index
      %43 = vector.load %arg13[%c0_37, %c0_38] : memref<1x256xf32, #tpu.memory_space<vmem>>, vector<1x256xf32>
      %44 = vector.broadcast %43 : vector<1x256xf32> to vector<64x256xf32>
      %45 = arith.addf %42, %44 : vector<64x256xf32>
      %cst_39 = arith.constant 0.000000e+00 : f32
      %46 = vector.broadcast %cst_39 : f32 to vector<64x256xf32>
      %47 = arith.maximumf %45, %46 : vector<64x256xf32>
      %48 = arith.truncf %47 : vector<64x256xf32> to vector<64x256xbf16>
      %c0_40 = arith.constant 0 : index
      %c0_41 = arith.constant 0 : index
      %49 = vector.load %arg14[%c0_40, %c0_41] : memref<256x256xbf16, #tpu.memory_space<vmem>>, vector<256x256xbf16>
      %cst_42 = arith.constant dense<0.000000e+00> : vector<64x256xf32>
      %50 = tpu.matmul %48, %49, %cst_42 {dimension_numbers = #tpu.dot_dimension_numbers<[1], [0], [0], [1], [0, 0, 1, 1], [], []>} : vector<64x256xbf16>, vector<256x256xbf16>, vector<64x256xf32> -> vector<64x256xf32>
      %c0_43 = arith.constant 0 : index
      %c0_44 = arith.constant 0 : index
      %51 = vector.load %arg15[%c0_43, %c0_44] : memref<1x256xf32, #tpu.memory_space<vmem>>, vector<1x256xf32>
      %52 = vector.broadcast %51 : vector<1x256xf32> to vector<64x256xf32>
      %53 = arith.addf %50, %52 : vector<64x256xf32>
      %cst_45 = arith.constant 0.000000e+00 : f32
      %54 = vector.broadcast %cst_45 : f32 to vector<64x256xf32>
      %55 = arith.maximumf %53, %54 : vector<64x256xf32>
      %cst_46 = arith.constant dense<0.000000e+00> : vector<256xf32>
      %56 = vector.multi_reduction <add>, %55, %cst_46 [0] : vector<64x256xf32> to vector<256xf32>
      %57 = vector.shape_cast %56 : vector<256xf32> to vector<1x256xf32>
      %cst_47 = arith.constant 1.562500e-02 : f32
      %58 = vector.broadcast %cst_47 : f32 to vector<1x256xf32>
      %59 = arith.mulf %57, %58 : vector<1x256xf32>
      %60 = vector.broadcast %59 : vector<1x256xf32> to vector<64x256xf32>
      %61 = arith.subf %55, %60 : vector<64x256xf32>
      %62 = arith.mulf %61, %61 : vector<64x256xf32>
      %cst_48 = arith.constant dense<0.000000e+00> : vector<256xf32>
      %63 = vector.multi_reduction <add>, %62, %cst_48 [0] : vector<64x256xf32> to vector<256xf32>
      %64 = vector.shape_cast %63 : vector<256xf32> to vector<1x256xf32>
      %cst_49 = arith.constant 1.562500e-02 : f32
      %65 = vector.broadcast %cst_49 : f32 to vector<1x256xf32>
      %66 = arith.mulf %64, %65 : vector<1x256xf32>
      %cst_50 = arith.constant 9.99999974E-6 : f32
      %67 = vector.broadcast %cst_50 : f32 to vector<1x256xf32>
      %68 = arith.addf %66, %67 : vector<1x256xf32>
      %69 = math.rsqrt %68 : vector<1x256xf32>
      %c0_51 = arith.constant 0 : index
      %c0_52 = arith.constant 0 : index
      %70 = vector.load %arg17[%c0_51, %c0_52] : memref<1x256xf32, #tpu.memory_space<vmem>>, vector<1x256xf32>
      %71 = vector.broadcast %69 : vector<1x256xf32> to vector<64x256xf32>
      %72 = arith.mulf %61, %71 : vector<64x256xf32>
      %73 = vector.broadcast %70 : vector<1x256xf32> to vector<64x256xf32>
      %74 = arith.mulf %73, %72 : vector<64x256xf32>
      %c0_53 = arith.constant 0 : index
      %c0_54 = arith.constant 0 : index
      %75 = vector.load %arg18[%c0_53, %c0_54] : memref<1x256xf32, #tpu.memory_space<vmem>>, vector<1x256xf32>
      %76 = vector.broadcast %75 : vector<1x256xf32> to vector<64x256xf32>
      %77 = arith.addf %74, %76 : vector<64x256xf32>
      %78 = arith.truncf %77 : vector<64x256xf32> to vector<64x256xbf16>
      %c0_55 = arith.constant 0 : index
      %c0_56 = arith.constant 0 : index
      %79 = vector.load %arg19[%c0_55, %c0_56] : memref<64x256xf32, #tpu.memory_space<vmem>>, vector<64x256xf32>
      tpu.vector_store %arg19[%c0_55, %c0_56], %77 {strides = array<i32>} : memref<64x256xf32, #tpu.memory_space<vmem>>, vector<64x256xf32>,
      %c0_57 = arith.constant 0 : index
      %c0_58 = arith.constant 0 : index
      %80 = vector.load %arg20[%c0_57, %c0_58] : memref<64x256xbf16, #tpu.memory_space<vmem>>, vector<64x256xbf16>
      tpu.vector_store %arg20[%c0_57, %c0_58], %78 {strides = array<i32>} : memref<64x256xbf16, #tpu.memory_space<vmem>>, vector<64x256xbf16>,
      %c0_59 = arith.constant 0 : index
      %c0_60 = arith.constant 0 : index
      %81 = vector.load %arg6[%c0_59, %c0_60] : memref<4x64xbf16, #tpu.memory_space<vmem>>, vector<4x64xbf16>
      %cst_61 = arith.constant dense<0.000000e+00> : vector<4x256xf32>
      %82 = tpu.matmul %81, %78, %cst_61 {dimension_numbers = #tpu.dot_dimension_numbers<[1], [0], [0], [1], [0, 0, 1, 1], [], []>} : vector<4x64xbf16>, vector<64x256xbf16>, vector<4x256xf32> -> vector<4x256xf32>
      %c0_62 = arith.constant 0 : index
      %c0_63 = arith.constant 0 : index
      %83 = vector.load %arg7[%c0_62, %c0_63] : memref<4x1xf32, #tpu.memory_space<vmem>>, vector<4x1xf32>
      %84 = vector.broadcast %83 : vector<4x1xf32> to vector<4x256xf32>
      %85 = arith.mulf %82, %84 : vector<4x256xf32>
      %c0_64 = arith.constant 0 : index
      %c0_65 = arith.constant 0 : index
      %86 = vector.load %arg21[%c0_64, %c0_65] : memref<4x256xf32, #tpu.memory_space<vmem>>, vector<4x256xf32>
      tpu.vector_store %arg21[%c0_64, %c0_65], %85 {strides = array<i32>} : memref<4x256xf32, #tpu.memory_space<vmem>>, vector<4x256xf32>,
    } else {
    }
    return
  }
  func.func @transform_0(%arg0: i32) -> (i32, i32) {
    %c0_i32 = arith.constant 0 : i32
    %c0_i32_0 = arith.constant 0 : i32
    %c0_i32_1 = arith.constant 0 : i32
    return %c0_i32, %c0_i32_0 : i32, i32
  }
  func.func @transform_1(%arg0: i32) -> (i32, i32) {
    %c0_i32 = arith.constant 0 : i32
    %c0_i32_0 = arith.constant 0 : i32
    %c0_i32_1 = arith.constant 0 : i32
    return %c0_i32, %c0_i32_0 : i32, i32
  }
  func.func @transform_2(%arg0: i32) -> (i32, i32) {
    %c0_i32 = arith.constant 0 : i32
    %c0_i32_0 = arith.constant 0 : i32
    return %arg0, %c0_i32 : i32, i32
  }
  func.func @transform_3(%arg0: i32) -> (i32, i32) {
    %c0_i32 = arith.constant 0 : i32
    %c0_i32_0 = arith.constant 0 : i32
    return %arg0, %c0_i32 : i32, i32
  }
  func.func @transform_4(%arg0: i32) -> (i32, i32) {
    %c0_i32 = arith.constant 0 : i32
    %c0_i32_0 = arith.constant 0 : i32
    return %c0_i32, %arg0 : i32, i32
  }
  func.func @transform_5(%arg0: i32) -> (i32, i32) {
    %c0_i32 = arith.constant 0 : i32
    %c0_i32_0 = arith.constant 0 : i32
    %c0_i32_1 = arith.constant 0 : i32
    return %c0_i32, %c0_i32_0 : i32, i32
  }
  func.func @transform_6(%arg0: i32) -> (i32, i32) {
    %c0_i32 = arith.constant 0 : i32
    %c0_i32_0 = arith.constant 0 : i32
    %c0_i32_1 = arith.constant 0 : i32
    return %c0_i32, %c0_i32_0 : i32, i32
  }
  func.func @transform_7(%arg0: i32) -> (i32, i32) {
    %c0_i32 = arith.constant 0 : i32
    %c0_i32_0 = arith.constant 0 : i32
    %c0_i32_1 = arith.constant 0 : i32
    return %c0_i32, %c0_i32_0 : i32, i32
  }
  func.func @transform_8(%arg0: i32) -> (i32, i32) {
    %c0_i32 = arith.constant 0 : i32
    %c0_i32_0 = arith.constant 0 : i32
    %c0_i32_1 = arith.constant 0 : i32
    return %c0_i32, %c0_i32_0 : i32, i32
  }
  func.func @transform_9(%arg0: i32) -> (i32, i32) {
    %c0_i32 = arith.constant 0 : i32
    %c0_i32_0 = arith.constant 0 : i32
    %c0_i32_1 = arith.constant 0 : i32
    return %c0_i32, %c0_i32_0 : i32, i32
  }
  func.func @transform_10(%arg0: i32) -> (i32, i32) {
    %c0_i32 = arith.constant 0 : i32
    %c0_i32_0 = arith.constant 0 : i32
    %c0_i32_1 = arith.constant 0 : i32
    return %c0_i32, %c0_i32_0 : i32, i32
  }
  func.func @transform_11(%arg0: i32) -> (i32, i32) {
    %c0_i32 = arith.constant 0 : i32
    %c0_i32_0 = arith.constant 0 : i32
    %c0_i32_1 = arith.constant 0 : i32
    return %c0_i32, %c0_i32_0 : i32, i32
  }
  func.func @transform_12(%arg0: i32) -> (i32, i32) {
    %c0_i32 = arith.constant 0 : i32
    %c0_i32_0 = arith.constant 0 : i32
    %c0_i32_1 = arith.constant 0 : i32
    return %c0_i32, %c0_i32_0 : i32, i32
  }
  func.func @transform_13(%arg0: i32) -> (i32, i32) {
    %c0_i32 = arith.constant 0 : i32
    %c0_i32_0 = arith.constant 0 : i32
    %c0_i32_1 = arith.constant 0 : i32
    return %c0_i32, %c0_i32_0 : i32, i32
  }
  func.func @transform_14(%arg0: i32) -> (i32, i32) {
    %c0_i32 = arith.constant 0 : i32
    %c0_i32_0 = arith.constant 0 : i32
    %c0_i32_1 = arith.constant 0 : i32
    return %c0_i32, %c0_i32_0 : i32, i32
  }
  func.func @transform_15(%arg0: i32) -> (i32, i32) {
    %c0_i32 = arith.constant 0 : i32
    %c0_i32_0 = arith.constant 0 : i32
    %c0_i32_1 = arith.constant 0 : i32
    return %c0_i32, %c0_i32_0 : i32, i32
  }
  func.func @transform_16(%arg0: i32) -> (i32, i32) {
    %c0_i32 = arith.constant 0 : i32
    %c0_i32_0 = arith.constant 0 : i32
    %c0_i32_1 = arith.constant 0 : i32
    return %c0_i32, %c0_i32_0 : i32, i32
  }
  func.func @transform_17(%arg0: i32) -> (i32, i32) {
    %c0_i32 = arith.constant 0 : i32
    %c0_i32_0 = arith.constant 0 : i32
    %c0_i32_1 = arith.constant 0 : i32
    return %c0_i32, %c0_i32_0 : i32, i32
  }
  func.func @transform_18(%arg0: i32) -> (i32, i32) {
    %c0_i32 = arith.constant 0 : i32
    %c0_i32_0 = arith.constant 0 : i32
    %c0_i32_1 = arith.constant 0 : i32
    return %c0_i32, %c0_i32_0 : i32, i32
  }
  func.func @transform_19(%arg0: i32) -> (i32, i32) {
    %c0_i32 = arith.constant 0 : i32
    %c0_i32_0 = arith.constant 0 : i32
    %c0_i32_1 = arith.constant 0 : i32
    return %c0_i32, %c0_i32_0 : i32, i32
  }
  func.func @transform_20(%arg0: i32) -> (i32, i32) {
    %c0_i32 = arith.constant 0 : i32
    %c0_i32_0 = arith.constant 0 : i32
    %c0_i32_1 = arith.constant 0 : i32
    return %c0_i32, %c0_i32_0 : i32, i32
  }
}

module attributes {stable_mosaic.version = 11 : i64} {
  func.func @_gin_conv_bn_kernel(%arg0: i32, %arg1: memref<64x128xf32, #tpu.memory_space<vmem>>, %arg2: memref<64x128xbf16, #tpu.memory_space<vmem>>, %arg3: memref<256x8xbf16, #tpu.memory_space<vmem>>, %arg4: memref<256x64xbf16, #tpu.memory_space<vmem>>, %arg5: memref<64x256xbf16, #tpu.memory_space<vmem>>, %arg6: memref<4x64xbf16, #tpu.memory_space<vmem>>, %arg7: memref<4x1xf32, #tpu.memory_space<vmem>>, %arg8: memref<8x128xbf16, #tpu.memory_space<vmem>>, %arg9: memref<1x128xf32, #tpu.memory_space<vmem>>, %arg10: memref<128x128xbf16, #tpu.memory_space<vmem>>, %arg11: memref<1x128xf32, #tpu.memory_space<vmem>>, %arg12: memref<128x128xbf16, #tpu.memory_space<vmem>>, %arg13: memref<1x128xf32, #tpu.memory_space<vmem>>, %arg14: memref<128x256xbf16, #tpu.memory_space<vmem>>, %arg15: memref<1x256xf32, #tpu.memory_space<vmem>>, %arg16: memref<1x1xf32, #tpu.memory_space<vmem>>, %arg17: memref<1x256xf32, #tpu.memory_space<vmem>>, %arg18: memref<1x256xf32, #tpu.memory_space<vmem>>, %arg19: memref<64x256xf32, #tpu.memory_space<vmem>>, %arg20: memref<64x256xbf16, #tpu.memory_space<vmem>>, %arg21: memref<4x256xf32, #tpu.memory_space<vmem>>, %arg22: memref<64x128xf32, #tpu.memory_space<vmem>>) attributes {dimension_semantics = [#tpu.dimension_semantics<arbitrary>], iteration_bounds = array<i64: 1>, scalar_prefetch = 0 : i64, scratch_operands = 1 : i64, tpu.core_type = #tpu.core_type<tc>, window_params = [{pipeline_mode = #tpu.pipeline_mode<synchronous>, transform_indices = @transform_0, window_bounds = array<i64: 64, 128>}, {pipeline_mode = #tpu.pipeline_mode<synchronous>, transform_indices = @transform_1, window_bounds = array<i64: 64, 128>}, {transform_indices = @transform_2, window_bounds = array<i64: 256, 8>}, {transform_indices = @transform_3, window_bounds = array<i64: 256, 64>}, {transform_indices = @transform_4, window_bounds = array<i64: 64, 256>}, {pipeline_mode = #tpu.pipeline_mode<synchronous>, transform_indices = @transform_5, window_bounds = array<i64: 4, 64>}, {pipeline_mode = #tpu.pipeline_mode<synchronous>, transform_indices = @transform_6, window_bounds = array<i64: 4, 1>}, {pipeline_mode = #tpu.pipeline_mode<synchronous>, transform_indices = @transform_7, window_bounds = array<i64: 8, 128>}, {pipeline_mode = #tpu.pipeline_mode<synchronous>, transform_indices = @transform_8, window_bounds = array<i64: 1, 128>}, {pipeline_mode = #tpu.pipeline_mode<synchronous>, transform_indices = @transform_9, window_bounds = array<i64: 128, 128>}, {pipeline_mode = #tpu.pipeline_mode<synchronous>, transform_indices = @transform_10, window_bounds = array<i64: 1, 128>}, {pipeline_mode = #tpu.pipeline_mode<synchronous>, transform_indices = @transform_11, window_bounds = array<i64: 128, 128>}, {pipeline_mode = #tpu.pipeline_mode<synchronous>, transform_indices = @transform_12, window_bounds = array<i64: 1, 128>}, {pipeline_mode = #tpu.pipeline_mode<synchronous>, transform_indices = @transform_13, window_bounds = array<i64: 128, 256>}, {pipeline_mode = #tpu.pipeline_mode<synchronous>, transform_indices = @transform_14, window_bounds = array<i64: 1, 256>}, {pipeline_mode = #tpu.pipeline_mode<synchronous>, transform_indices = @transform_15, window_bounds = array<i64: 1, 1>}, {pipeline_mode = #tpu.pipeline_mode<synchronous>, transform_indices = @transform_16, window_bounds = array<i64: 1, 256>}, {pipeline_mode = #tpu.pipeline_mode<synchronous>, transform_indices = @transform_17, window_bounds = array<i64: 1, 256>}, {pipeline_mode = #tpu.pipeline_mode<synchronous>, transform_indices = @transform_18, window_bounds = array<i64: 64, 256>}, {pipeline_mode = #tpu.pipeline_mode<synchronous>, transform_indices = @transform_19, window_bounds = array<i64: 64, 256>}, {pipeline_mode = #tpu.pipeline_mode<synchronous>, transform_indices = @transform_20, window_bounds = array<i64: 4, 256>}]} {
    %c0_i32 = arith.constant 0 : i32
    %0 = arith.cmpi eq, %arg0, %c0_i32 : i32
    %1 = arith.extui %0 : i1 to i32
    %c0_i32_0 = arith.constant 0 : i32
    %2 = arith.cmpi ne, %1, %c0_i32_0 : i32
    scf.if %2 {
      %cst_27 = arith.constant 0.000000e+00 : f32
      %32 = vector.broadcast %cst_27 : f32 to vector<64x128xf32>
      %c0_28 = arith.constant 0 : index
      %c0_29 = arith.constant 0 : index
      %33 = vector.load %arg22[%c0_28, %c0_29] : memref<64x128xf32, #tpu.memory_space<vmem>>, vector<64x128xf32>
      tpu.vector_store %arg22[%c0_28, %c0_29], %32 {strides = array<i32>} : memref<64x128xf32, #tpu.memory_space<vmem>>, vector<64x128xf32>,
    } else {
    }
    %c0 = arith.constant 0 : index
    %c0_1 = arith.constant 0 : index
    %3 = vector.load %arg3[%c0, %c0_1] : memref<256x8xbf16, #tpu.memory_space<vmem>>, vector<256x8xbf16>
    %c0_2 = arith.constant 0 : index
    %c0_3 = arith.constant 0 : index
    %4 = vector.load %arg8[%c0_2, %c0_3] : memref<8x128xbf16, #tpu.memory_space<vmem>>, vector<8x128xbf16>
    %cst = arith.constant dense<0.000000e+00> : vector<256x128xf32>
    %5 = tpu.matmul %3, %4, %cst {dimension_numbers = #tpu.dot_dimension_numbers<[1], [0], [0], [1], [0, 0, 1, 1], [], []>} : vector<256x8xbf16>, vector<8x128xbf16>, vector<256x128xf32> -> vector<256x128xf32>
    %c0_4 = arith.constant 0 : index
    %c0_5 = arith.constant 0 : index
    %6 = vector.load %arg9[%c0_4, %c0_5] : memref<1x128xf32, #tpu.memory_space<vmem>>, vector<1x128xf32>
    %7 = vector.broadcast %6 : vector<1x128xf32> to vector<256x128xf32>
    %8 = arith.addf %5, %7 : vector<256x128xf32>
    %cst_6 = arith.constant 0.000000e+00 : f32
    %9 = vector.broadcast %cst_6 : f32 to vector<256x128xf32>
    %10 = arith.maximumf %8, %9 : vector<256x128xf32>
    %11 = arith.truncf %10 : vector<256x128xf32> to vector<256x128xbf16>
    %c0_7 = arith.constant 0 : index
    %c0_8 = arith.constant 0 : index
    %12 = vector.load %arg10[%c0_7, %c0_8] : memref<128x128xbf16, #tpu.memory_space<vmem>>, vector<128x128xbf16>
    %cst_9 = arith.constant dense<0.000000e+00> : vector<256x128xf32>
    %13 = tpu.matmul %11, %12, %cst_9 {dimension_numbers = #tpu.dot_dimension_numbers<[1], [0], [0], [1], [0, 0, 1, 1], [], []>} : vector<256x128xbf16>, vector<128x128xbf16>, vector<256x128xf32> -> vector<256x128xf32>
    %c0_10 = arith.constant 0 : index
    %c0_11 = arith.constant 0 : index
    %14 = vector.load %arg11[%c0_10, %c0_11] : memref<1x128xf32, #tpu.memory_space<vmem>>, vector<1x128xf32>
    %15 = vector.broadcast %14 : vector<1x128xf32> to vector<256x128xf32>
    %16 = arith.addf %13, %15 : vector<256x128xf32>
    %c0_12 = arith.constant 0 : index
    %c0_13 = arith.constant 0 : index
    %17 = vector.load %arg4[%c0_12, %c0_13] : memref<256x64xbf16, #tpu.memory_space<vmem>>, vector<256x64xbf16>
    %c0_14 = arith.constant 0 : index
    %c0_15 = arith.constant 0 : index
    %18 = vector.load %arg2[%c0_14, %c0_15] : memref<64x128xbf16, #tpu.memory_space<vmem>>, vector<64x128xbf16>
    %cst_16 = arith.constant dense<0.000000e+00> : vector<256x128xf32>
    %19 = tpu.matmul %17, %18, %cst_16 {dimension_numbers = #tpu.dot_dimension_numbers<[1], [0], [0], [1], [0, 0, 1, 1], [], []>} : vector<256x64xbf16>, vector<64x128xbf16>, vector<256x128xf32> -> vector<256x128xf32>
    %20 = arith.addf %19, %16 : vector<256x128xf32>
    %cst_17 = arith.constant 0.000000e+00 : f32
    %21 = vector.broadcast %cst_17 : f32 to vector<256x128xf32>
    %22 = arith.maximumf %20, %21 : vector<256x128xf32>
    %c0_18 = arith.constant 0 : index
    %c0_19 = arith.constant 0 : index
    %23 = vector.load %arg22[%c0_18, %c0_19] : memref<64x128xf32, #tpu.memory_space<vmem>>, vector<64x128xf32>
    %c0_20 = arith.constant 0 : index
    %c0_21 = arith.constant 0 : index
    %24 = vector.load %arg5[%c0_20, %c0_21] : memref<64x256xbf16, #tpu.memory_space<vmem>>, vector<64x256xbf16>
    %25 = arith.truncf %22 : vector<256x128xf32> to vector<256x128xbf16>
    %cst_22 = arith.constant dense<0.000000e+00> : vector<64x128xf32>
    %26 = tpu.matmul %24, %25, %cst_22 {dimension_numbers = #tpu.dot_dimension_numbers<[1], [0], [0], [1], [0, 0, 1, 1], [], []>} : vector<64x256xbf16>, vector<256x128xbf16>, vector<64x128xf32> -> vector<64x128xf32>
    %27 = arith.addf %23, %26 : vector<64x128xf32>
    %c0_23 = arith.constant 0 : index
    %c0_24 = arith.constant 0 : index
    %28 = vector.load %arg22[%c0_23, %c0_24] : memref<64x128xf32, #tpu.memory_space<vmem>>, vector<64x128xf32>
    tpu.vector_store %arg22[%c0_23, %c0_24], %27 {strides = array<i32>} : memref<64x128xf32, #tpu.memory_space<vmem>>, vector<64x128xf32>,
    %c0_i32_25 = arith.constant 0 : i32
    %29 = arith.cmpi eq, %arg0, %c0_i32_25 : i32
    %30 = arith.extui %29 : i1 to i32
    %c0_i32_26 = arith.constant 0 : i32
    %31 = arith.cmpi ne, %30, %c0_i32_26 : i32
    scf.if %31 {
      %c0_27 = arith.constant 0 : index
      %c0_28 = arith.constant 0 : index
      %32 = vector.load %arg1[%c0_27, %c0_28] : memref<64x128xf32, #tpu.memory_space<vmem>>, vector<64x128xf32>
      %c0_29 = arith.constant 0 : index
      %c0_30 = arith.constant 0 : index
      %33 = vector.load %arg16[%c0_29, %c0_30] : memref<1x1xf32, #tpu.memory_space<vmem>>, vector<1x1xf32>
      %cst_31 = arith.constant 1.000000e+00 : f32
      %34 = vector.broadcast %cst_31 : f32 to vector<1x1xf32>
      %35 = arith.addf %34, %33 : vector<1x1xf32>
      %36 = vector.broadcast %35 : vector<1x1xf32> to vector<64x128xf32>
      %37 = arith.mulf %36, %32 : vector<64x128xf32>
      %c0_32 = arith.constant 0 : index
      %c0_33 = arith.constant 0 : index
      %38 = vector.load %arg22[%c0_32, %c0_33] : memref<64x128xf32, #tpu.memory_space<vmem>>, vector<64x128xf32>
      %39 = arith.addf %37, %38 : vector<64x128xf32>
      %40 = arith.truncf %39 : vector<64x128xf32> to vector<64x128xbf16>
      %c0_34 = arith.constant 0 : index
      %c0_35 = arith.constant 0 : index
      %41 = vector.load %arg12[%c0_34, %c0_35] : memref<128x128xbf16, #tpu.memory_space<vmem>>, vector<128x128xbf16>
      %cst_36 = arith.constant dense<0.000000e+00> : vector<64x128xf32>
      %42 = tpu.matmul %40, %41, %cst_36 {dimension_numbers = #tpu.dot_dimension_numbers<[1], [0], [0], [1], [0, 0, 1, 1], [], []>} : vector<64x128xbf16>, vector<128x128xbf16>, vector<64x128xf32> -> vector<64x128xf32>
      %c0_37 = arith.constant 0 : index
      %c0_38 = arith.constant 0 : index
      %43 = vector.load %arg13[%c0_37, %c0_38] : memref<1x128xf32, #tpu.memory_space<vmem>>, vector<1x128xf32>
      %44 = vector.broadcast %43 : vector<1x128xf32> to vector<64x128xf32>
      %45 = arith.addf %42, %44 : vector<64x128xf32>
      %cst_39 = arith.constant 0.000000e+00 : f32
      %46 = vector.broadcast %cst_39 : f32 to vector<64x128xf32>
      %47 = arith.maximumf %45, %46 : vector<64x128xf32>
      %48 = arith.truncf %47 : vector<64x128xf32> to vector<64x128xbf16>
      %c0_40 = arith.constant 0 : index
      %c0_41 = arith.constant 0 : index
      %49 = vector.load %arg14[%c0_40, %c0_41] : memref<128x256xbf16, #tpu.memory_space<vmem>>, vector<128x256xbf16>
      %cst_42 = arith.constant dense<0.000000e+00> : vector<64x256xf32>
      %50 = tpu.matmul %48, %49, %cst_42 {dimension_numbers = #tpu.dot_dimension_numbers<[1], [0], [0], [1], [0, 0, 1, 1], [], []>} : vector<64x128xbf16>, vector<128x256xbf16>, vector<64x256xf32> -> vector<64x256xf32>
      %c0_43 = arith.constant 0 : index
      %c0_44 = arith.constant 0 : index
      %51 = vector.load %arg15[%c0_43, %c0_44] : memref<1x256xf32, #tpu.memory_space<vmem>>, vector<1x256xf32>
      %52 = vector.broadcast %51 : vector<1x256xf32> to vector<64x256xf32>
      %53 = arith.addf %50, %52 : vector<64x256xf32>
      %cst_45 = arith.constant 0.000000e+00 : f32
      %54 = vector.broadcast %cst_45 : f32 to vector<64x256xf32>
      %55 = arith.maximumf %53, %54 : vector<64x256xf32>
      %cst_46 = arith.constant dense<0.000000e+00> : vector<256xf32>
      %56 = vector.multi_reduction <add>, %55, %cst_46 [0] : vector<64x256xf32> to vector<256xf32>
      %57 = vector.shape_cast %56 : vector<256xf32> to vector<1x256xf32>
      %cst_47 = arith.constant 1.562500e-02 : f32
      %58 = vector.broadcast %cst_47 : f32 to vector<1x256xf32>
      %59 = arith.mulf %57, %58 : vector<1x256xf32>
      %60 = vector.broadcast %59 : vector<1x256xf32> to vector<64x256xf32>
      %61 = arith.subf %55, %60 : vector<64x256xf32>
      %62 = arith.mulf %61, %61 : vector<64x256xf32>
      %cst_48 = arith.constant dense<0.000000e+00> : vector<256xf32>
      %63 = vector.multi_reduction <add>, %62, %cst_48 [0] : vector<64x256xf32> to vector<256xf32>
      %64 = vector.shape_cast %63 : vector<256xf32> to vector<1x256xf32>
      %cst_49 = arith.constant 1.562500e-02 : f32
      %65 = vector.broadcast %cst_49 : f32 to vector<1x256xf32>
      %66 = arith.mulf %64, %65 : vector<1x256xf32>
      %cst_50 = arith.constant 9.99999974E-6 : f32
      %67 = vector.broadcast %cst_50 : f32 to vector<1x256xf32>
      %68 = arith.addf %66, %67 : vector<1x256xf32>
      %69 = math.rsqrt %68 : vector<1x256xf32>
      %c0_51 = arith.constant 0 : index
      %c0_52 = arith.constant 0 : index
      %70 = vector.load %arg17[%c0_51, %c0_52] : memref<1x256xf32, #tpu.memory_space<vmem>>, vector<1x256xf32>
      %71 = vector.broadcast %69 : vector<1x256xf32> to vector<64x256xf32>
      %72 = arith.mulf %61, %71 : vector<64x256xf32>
      %73 = vector.broadcast %70 : vector<1x256xf32> to vector<64x256xf32>
      %74 = arith.mulf %73, %72 : vector<64x256xf32>
      %c0_53 = arith.constant 0 : index
      %c0_54 = arith.constant 0 : index
      %75 = vector.load %arg18[%c0_53, %c0_54] : memref<1x256xf32, #tpu.memory_space<vmem>>, vector<1x256xf32>
      %76 = vector.broadcast %75 : vector<1x256xf32> to vector<64x256xf32>
      %77 = arith.addf %74, %76 : vector<64x256xf32>
      %78 = arith.truncf %77 : vector<64x256xf32> to vector<64x256xbf16>
      %c0_55 = arith.constant 0 : index
      %c0_56 = arith.constant 0 : index
      %79 = vector.load %arg19[%c0_55, %c0_56] : memref<64x256xf32, #tpu.memory_space<vmem>>, vector<64x256xf32>
      tpu.vector_store %arg19[%c0_55, %c0_56], %77 {strides = array<i32>} : memref<64x256xf32, #tpu.memory_space<vmem>>, vector<64x256xf32>,
      %c0_57 = arith.constant 0 : index
      %c0_58 = arith.constant 0 : index
      %80 = vector.load %arg20[%c0_57, %c0_58] : memref<64x256xbf16, #tpu.memory_space<vmem>>, vector<64x256xbf16>
      tpu.vector_store %arg20[%c0_57, %c0_58], %78 {strides = array<i32>} : memref<64x256xbf16, #tpu.memory_space<vmem>>, vector<64x256xbf16>,
      %c0_59 = arith.constant 0 : index
      %c0_60 = arith.constant 0 : index
      %81 = vector.load %arg6[%c0_59, %c0_60] : memref<4x64xbf16, #tpu.memory_space<vmem>>, vector<4x64xbf16>
      %cst_61 = arith.constant dense<0.000000e+00> : vector<4x256xf32>
      %82 = tpu.matmul %81, %78, %cst_61 {dimension_numbers = #tpu.dot_dimension_numbers<[1], [0], [0], [1], [0, 0, 1, 1], [], []>} : vector<4x64xbf16>, vector<64x256xbf16>, vector<4x256xf32> -> vector<4x256xf32>
      %c0_62 = arith.constant 0 : index
      %c0_63 = arith.constant 0 : index
      %83 = vector.load %arg7[%c0_62, %c0_63] : memref<4x1xf32, #tpu.memory_space<vmem>>, vector<4x1xf32>
      %84 = vector.broadcast %83 : vector<4x1xf32> to vector<4x256xf32>
      %85 = arith.mulf %82, %84 : vector<4x256xf32>
      %c0_64 = arith.constant 0 : index
      %c0_65 = arith.constant 0 : index
      %86 = vector.load %arg21[%c0_64, %c0_65] : memref<4x256xf32, #tpu.memory_space<vmem>>, vector<4x256xf32>
      tpu.vector_store %arg21[%c0_64, %c0_65], %85 {strides = array<i32>} : memref<4x256xf32, #tpu.memory_space<vmem>>, vector<4x256xf32>,
    } else {
    }
    return
  }
  func.func @transform_0(%arg0: i32) -> (i32, i32) {
    %c0_i32 = arith.constant 0 : i32
    %c0_i32_0 = arith.constant 0 : i32
    %c0_i32_1 = arith.constant 0 : i32
    return %c0_i32, %c0_i32_0 : i32, i32
  }
  func.func @transform_1(%arg0: i32) -> (i32, i32) {
    %c0_i32 = arith.constant 0 : i32
    %c0_i32_0 = arith.constant 0 : i32
    %c0_i32_1 = arith.constant 0 : i32
    return %c0_i32, %c0_i32_0 : i32, i32
  }
  func.func @transform_2(%arg0: i32) -> (i32, i32) {
    %c0_i32 = arith.constant 0 : i32
    %c0_i32_0 = arith.constant 0 : i32
    return %arg0, %c0_i32 : i32, i32
  }
  func.func @transform_3(%arg0: i32) -> (i32, i32) {
    %c0_i32 = arith.constant 0 : i32
    %c0_i32_0 = arith.constant 0 : i32
    return %arg0, %c0_i32 : i32, i32
  }
  func.func @transform_4(%arg0: i32) -> (i32, i32) {
    %c0_i32 = arith.constant 0 : i32
    %c0_i32_0 = arith.constant 0 : i32
    return %c0_i32, %arg0 : i32, i32
  }
  func.func @transform_5(%arg0: i32) -> (i32, i32) {
    %c0_i32 = arith.constant 0 : i32
    %c0_i32_0 = arith.constant 0 : i32
    %c0_i32_1 = arith.constant 0 : i32
    return %c0_i32, %c0_i32_0 : i32, i32
  }
  func.func @transform_6(%arg0: i32) -> (i32, i32) {
    %c0_i32 = arith.constant 0 : i32
    %c0_i32_0 = arith.constant 0 : i32
    %c0_i32_1 = arith.constant 0 : i32
    return %c0_i32, %c0_i32_0 : i32, i32
  }
  func.func @transform_7(%arg0: i32) -> (i32, i32) {
    %c0_i32 = arith.constant 0 : i32
    %c0_i32_0 = arith.constant 0 : i32
    %c0_i32_1 = arith.constant 0 : i32
    return %c0_i32, %c0_i32_0 : i32, i32
  }
  func.func @transform_8(%arg0: i32) -> (i32, i32) {
    %c0_i32 = arith.constant 0 : i32
    %c0_i32_0 = arith.constant 0 : i32
    %c0_i32_1 = arith.constant 0 : i32
    return %c0_i32, %c0_i32_0 : i32, i32
  }
  func.func @transform_9(%arg0: i32) -> (i32, i32) {
    %c0_i32 = arith.constant 0 : i32
    %c0_i32_0 = arith.constant 0 : i32
    %c0_i32_1 = arith.constant 0 : i32
    return %c0_i32, %c0_i32_0 : i32, i32
  }
  func.func @transform_10(%arg0: i32) -> (i32, i32) {
    %c0_i32 = arith.constant 0 : i32
    %c0_i32_0 = arith.constant 0 : i32
    %c0_i32_1 = arith.constant 0 : i32
    return %c0_i32, %c0_i32_0 : i32, i32
  }
  func.func @transform_11(%arg0: i32) -> (i32, i32) {
    %c0_i32 = arith.constant 0 : i32
    %c0_i32_0 = arith.constant 0 : i32
    %c0_i32_1 = arith.constant 0 : i32
    return %c0_i32, %c0_i32_0 : i32, i32
  }
  func.func @transform_12(%arg0: i32) -> (i32, i32) {
    %c0_i32 = arith.constant 0 : i32
    %c0_i32_0 = arith.constant 0 : i32
    %c0_i32_1 = arith.constant 0 : i32
    return %c0_i32, %c0_i32_0 : i32, i32
  }
  func.func @transform_13(%arg0: i32) -> (i32, i32) {
    %c0_i32 = arith.constant 0 : i32
    %c0_i32_0 = arith.constant 0 : i32
    %c0_i32_1 = arith.constant 0 : i32
    return %c0_i32, %c0_i32_0 : i32, i32
  }
  func.func @transform_14(%arg0: i32) -> (i32, i32) {
    %c0_i32 = arith.constant 0 : i32
    %c0_i32_0 = arith.constant 0 : i32
    %c0_i32_1 = arith.constant 0 : i32
    return %c0_i32, %c0_i32_0 : i32, i32
  }
  func.func @transform_15(%arg0: i32) -> (i32, i32) {
    %c0_i32 = arith.constant 0 : i32
    %c0_i32_0 = arith.constant 0 : i32
    %c0_i32_1 = arith.constant 0 : i32
    return %c0_i32, %c0_i32_0 : i32, i32
  }
  func.func @transform_16(%arg0: i32) -> (i32, i32) {
    %c0_i32 = arith.constant 0 : i32
    %c0_i32_0 = arith.constant 0 : i32
    %c0_i32_1 = arith.constant 0 : i32
    return %c0_i32, %c0_i32_0 : i32, i32
  }
  func.func @transform_17(%arg0: i32) -> (i32, i32) {
    %c0_i32 = arith.constant 0 : i32
    %c0_i32_0 = arith.constant 0 : i32
    %c0_i32_1 = arith.constant 0 : i32
    return %c0_i32, %c0_i32_0 : i32, i32
  }
  func.func @transform_18(%arg0: i32) -> (i32, i32) {
    %c0_i32 = arith.constant 0 : i32
    %c0_i32_0 = arith.constant 0 : i32
    %c0_i32_1 = arith.constant 0 : i32
    return %c0_i32, %c0_i32_0 : i32, i32
  }
  func.func @transform_19(%arg0: i32) -> (i32, i32) {
    %c0_i32 = arith.constant 0 : i32
    %c0_i32_0 = arith.constant 0 : i32
    %c0_i32_1 = arith.constant 0 : i32
    return %c0_i32, %c0_i32_0 : i32, i32
  }
  func.func @transform_20(%arg0: i32) -> (i32, i32) {
    %c0_i32 = arith.constant 0 : i32
    %c0_i32_0 = arith.constant 0 : i32
    %c0_i32_1 = arith.constant 0 : i32
    return %c0_i32, %c0_i32_0 : i32, i32
  }
}

module attributes {stable_mosaic.version = 11 : i64} {
  func.func @_gin_conv_bn_kernel(%arg0: i32, %arg1: memref<64x256xf32, #tpu.memory_space<vmem>>, %arg2: memref<64x256xbf16, #tpu.memory_space<vmem>>, %arg3: memref<256x8xbf16, #tpu.memory_space<vmem>>, %arg4: memref<256x64xbf16, #tpu.memory_space<vmem>>, %arg5: memref<64x256xbf16, #tpu.memory_space<vmem>>, %arg6: memref<4x64xbf16, #tpu.memory_space<vmem>>, %arg7: memref<4x1xf32, #tpu.memory_space<vmem>>, %arg8: memref<8x256xbf16, #tpu.memory_space<vmem>>, %arg9: memref<1x256xf32, #tpu.memory_space<vmem>>, %arg10: memref<256x256xbf16, #tpu.memory_space<vmem>>, %arg11: memref<1x256xf32, #tpu.memory_space<vmem>>, %arg12: memref<256x256xbf16, #tpu.memory_space<vmem>>, %arg13: memref<1x256xf32, #tpu.memory_space<vmem>>, %arg14: memref<256x256xbf16, #tpu.memory_space<vmem>>, %arg15: memref<1x256xf32, #tpu.memory_space<vmem>>, %arg16: memref<1x1xf32, #tpu.memory_space<vmem>>, %arg17: memref<1x256xf32, #tpu.memory_space<vmem>>, %arg18: memref<1x256xf32, #tpu.memory_space<vmem>>, %arg19: memref<64x256xf32, #tpu.memory_space<vmem>>, %arg20: memref<64x256xbf16, #tpu.memory_space<vmem>>, %arg21: memref<4x256xf32, #tpu.memory_space<vmem>>, %arg22: memref<64x256xf32, #tpu.memory_space<vmem>>) attributes {dimension_semantics = [#tpu.dimension_semantics<arbitrary>], iteration_bounds = array<i64: 1>, scalar_prefetch = 0 : i64, scratch_operands = 1 : i64, tpu.core_type = #tpu.core_type<tc>, window_params = [{pipeline_mode = #tpu.pipeline_mode<synchronous>, transform_indices = @transform_0, window_bounds = array<i64: 64, 256>}, {pipeline_mode = #tpu.pipeline_mode<synchronous>, transform_indices = @transform_1, window_bounds = array<i64: 64, 256>}, {transform_indices = @transform_2, window_bounds = array<i64: 256, 8>}, {transform_indices = @transform_3, window_bounds = array<i64: 256, 64>}, {transform_indices = @transform_4, window_bounds = array<i64: 64, 256>}, {pipeline_mode = #tpu.pipeline_mode<synchronous>, transform_indices = @transform_5, window_bounds = array<i64: 4, 64>}, {pipeline_mode = #tpu.pipeline_mode<synchronous>, transform_indices = @transform_6, window_bounds = array<i64: 4, 1>}, {pipeline_mode = #tpu.pipeline_mode<synchronous>, transform_indices = @transform_7, window_bounds = array<i64: 8, 256>}, {pipeline_mode = #tpu.pipeline_mode<synchronous>, transform_indices = @transform_8, window_bounds = array<i64: 1, 256>}, {pipeline_mode = #tpu.pipeline_mode<synchronous>, transform_indices = @transform_9, window_bounds = array<i64: 256, 256>}, {pipeline_mode = #tpu.pipeline_mode<synchronous>, transform_indices = @transform_10, window_bounds = array<i64: 1, 256>}, {pipeline_mode = #tpu.pipeline_mode<synchronous>, transform_indices = @transform_11, window_bounds = array<i64: 256, 256>}, {pipeline_mode = #tpu.pipeline_mode<synchronous>, transform_indices = @transform_12, window_bounds = array<i64: 1, 256>}, {pipeline_mode = #tpu.pipeline_mode<synchronous>, transform_indices = @transform_13, window_bounds = array<i64: 256, 256>}, {pipeline_mode = #tpu.pipeline_mode<synchronous>, transform_indices = @transform_14, window_bounds = array<i64: 1, 256>}, {pipeline_mode = #tpu.pipeline_mode<synchronous>, transform_indices = @transform_15, window_bounds = array<i64: 1, 1>}, {pipeline_mode = #tpu.pipeline_mode<synchronous>, transform_indices = @transform_16, window_bounds = array<i64: 1, 256>}, {pipeline_mode = #tpu.pipeline_mode<synchronous>, transform_indices = @transform_17, window_bounds = array<i64: 1, 256>}, {pipeline_mode = #tpu.pipeline_mode<synchronous>, transform_indices = @transform_18, window_bounds = array<i64: 64, 256>}, {pipeline_mode = #tpu.pipeline_mode<synchronous>, transform_indices = @transform_19, window_bounds = array<i64: 64, 256>}, {pipeline_mode = #tpu.pipeline_mode<synchronous>, transform_indices = @transform_20, window_bounds = array<i64: 4, 256>}]} {
    %c0_i32 = arith.constant 0 : i32
    %0 = arith.cmpi eq, %arg0, %c0_i32 : i32
    %1 = arith.extui %0 : i1 to i32
    %c0_i32_0 = arith.constant 0 : i32
    %2 = arith.cmpi ne, %1, %c0_i32_0 : i32
    scf.if %2 {
      %cst_27 = arith.constant 0.000000e+00 : f32
      %32 = vector.broadcast %cst_27 : f32 to vector<64x256xf32>
      %c0_28 = arith.constant 0 : index
      %c0_29 = arith.constant 0 : index
      %33 = vector.load %arg22[%c0_28, %c0_29] : memref<64x256xf32, #tpu.memory_space<vmem>>, vector<64x256xf32>
      tpu.vector_store %arg22[%c0_28, %c0_29], %32 {strides = array<i32>} : memref<64x256xf32, #tpu.memory_space<vmem>>, vector<64x256xf32>,
    } else {
    }
    %c0 = arith.constant 0 : index
    %c0_1 = arith.constant 0 : index
    %3 = vector.load %arg3[%c0, %c0_1] : memref<256x8xbf16, #tpu.memory_space<vmem>>, vector<256x8xbf16>
    %c0_2 = arith.constant 0 : index
    %c0_3 = arith.constant 0 : index
    %4 = vector.load %arg8[%c0_2, %c0_3] : memref<8x256xbf16, #tpu.memory_space<vmem>>, vector<8x256xbf16>
    %cst = arith.constant dense<0.000000e+00> : vector<256x256xf32>
    %5 = tpu.matmul %3, %4, %cst {dimension_numbers = #tpu.dot_dimension_numbers<[1], [0], [0], [1], [0, 0, 1, 1], [], []>} : vector<256x8xbf16>, vector<8x256xbf16>, vector<256x256xf32> -> vector<256x256xf32>
    %c0_4 = arith.constant 0 : index
    %c0_5 = arith.constant 0 : index
    %6 = vector.load %arg9[%c0_4, %c0_5] : memref<1x256xf32, #tpu.memory_space<vmem>>, vector<1x256xf32>
    %7 = vector.broadcast %6 : vector<1x256xf32> to vector<256x256xf32>
    %8 = arith.addf %5, %7 : vector<256x256xf32>
    %cst_6 = arith.constant 0.000000e+00 : f32
    %9 = vector.broadcast %cst_6 : f32 to vector<256x256xf32>
    %10 = arith.maximumf %8, %9 : vector<256x256xf32>
    %11 = arith.truncf %10 : vector<256x256xf32> to vector<256x256xbf16>
    %c0_7 = arith.constant 0 : index
    %c0_8 = arith.constant 0 : index
    %12 = vector.load %arg10[%c0_7, %c0_8] : memref<256x256xbf16, #tpu.memory_space<vmem>>, vector<256x256xbf16>
    %cst_9 = arith.constant dense<0.000000e+00> : vector<256x256xf32>
    %13 = tpu.matmul %11, %12, %cst_9 {dimension_numbers = #tpu.dot_dimension_numbers<[1], [0], [0], [1], [0, 0, 1, 1], [], []>} : vector<256x256xbf16>, vector<256x256xbf16>, vector<256x256xf32> -> vector<256x256xf32>
    %c0_10 = arith.constant 0 : index
    %c0_11 = arith.constant 0 : index
    %14 = vector.load %arg11[%c0_10, %c0_11] : memref<1x256xf32, #tpu.memory_space<vmem>>, vector<1x256xf32>
    %15 = vector.broadcast %14 : vector<1x256xf32> to vector<256x256xf32>
    %16 = arith.addf %13, %15 : vector<256x256xf32>
    %c0_12 = arith.constant 0 : index
    %c0_13 = arith.constant 0 : index
    %17 = vector.load %arg4[%c0_12, %c0_13] : memref<256x64xbf16, #tpu.memory_space<vmem>>, vector<256x64xbf16>
    %c0_14 = arith.constant 0 : index
    %c0_15 = arith.constant 0 : index
    %18 = vector.load %arg2[%c0_14, %c0_15] : memref<64x256xbf16, #tpu.memory_space<vmem>>, vector<64x256xbf16>
    %cst_16 = arith.constant dense<0.000000e+00> : vector<256x256xf32>
    %19 = tpu.matmul %17, %18, %cst_16 {dimension_numbers = #tpu.dot_dimension_numbers<[1], [0], [0], [1], [0, 0, 1, 1], [], []>} : vector<256x64xbf16>, vector<64x256xbf16>, vector<256x256xf32> -> vector<256x256xf32>
    %20 = arith.addf %19, %16 : vector<256x256xf32>
    %cst_17 = arith.constant 0.000000e+00 : f32
    %21 = vector.broadcast %cst_17 : f32 to vector<256x256xf32>
    %22 = arith.maximumf %20, %21 : vector<256x256xf32>
    %c0_18 = arith.constant 0 : index
    %c0_19 = arith.constant 0 : index
    %23 = vector.load %arg22[%c0_18, %c0_19] : memref<64x256xf32, #tpu.memory_space<vmem>>, vector<64x256xf32>
    %c0_20 = arith.constant 0 : index
    %c0_21 = arith.constant 0 : index
    %24 = vector.load %arg5[%c0_20, %c0_21] : memref<64x256xbf16, #tpu.memory_space<vmem>>, vector<64x256xbf16>
    %25 = arith.truncf %22 : vector<256x256xf32> to vector<256x256xbf16>
    %cst_22 = arith.constant dense<0.000000e+00> : vector<64x256xf32>
    %26 = tpu.matmul %24, %25, %cst_22 {dimension_numbers = #tpu.dot_dimension_numbers<[1], [0], [0], [1], [0, 0, 1, 1], [], []>} : vector<64x256xbf16>, vector<256x256xbf16>, vector<64x256xf32> -> vector<64x256xf32>
    %27 = arith.addf %23, %26 : vector<64x256xf32>
    %c0_23 = arith.constant 0 : index
    %c0_24 = arith.constant 0 : index
    %28 = vector.load %arg22[%c0_23, %c0_24] : memref<64x256xf32, #tpu.memory_space<vmem>>, vector<64x256xf32>
    tpu.vector_store %arg22[%c0_23, %c0_24], %27 {strides = array<i32>} : memref<64x256xf32, #tpu.memory_space<vmem>>, vector<64x256xf32>,
    %c0_i32_25 = arith.constant 0 : i32
    %29 = arith.cmpi eq, %arg0, %c0_i32_25 : i32
    %30 = arith.extui %29 : i1 to i32
    %c0_i32_26 = arith.constant 0 : i32
    %31 = arith.cmpi ne, %30, %c0_i32_26 : i32
    scf.if %31 {
      %c0_27 = arith.constant 0 : index
      %c0_28 = arith.constant 0 : index
      %32 = vector.load %arg1[%c0_27, %c0_28] : memref<64x256xf32, #tpu.memory_space<vmem>>, vector<64x256xf32>
      %c0_29 = arith.constant 0 : index
      %c0_30 = arith.constant 0 : index
      %33 = vector.load %arg16[%c0_29, %c0_30] : memref<1x1xf32, #tpu.memory_space<vmem>>, vector<1x1xf32>
      %cst_31 = arith.constant 1.000000e+00 : f32
      %34 = vector.broadcast %cst_31 : f32 to vector<1x1xf32>
      %35 = arith.addf %34, %33 : vector<1x1xf32>
      %36 = vector.broadcast %35 : vector<1x1xf32> to vector<64x256xf32>
      %37 = arith.mulf %36, %32 : vector<64x256xf32>
      %c0_32 = arith.constant 0 : index
      %c0_33 = arith.constant 0 : index
      %38 = vector.load %arg22[%c0_32, %c0_33] : memref<64x256xf32, #tpu.memory_space<vmem>>, vector<64x256xf32>
      %39 = arith.addf %37, %38 : vector<64x256xf32>
      %40 = arith.truncf %39 : vector<64x256xf32> to vector<64x256xbf16>
      %c0_34 = arith.constant 0 : index
      %c0_35 = arith.constant 0 : index
      %41 = vector.load %arg12[%c0_34, %c0_35] : memref<256x256xbf16, #tpu.memory_space<vmem>>, vector<256x256xbf16>
      %cst_36 = arith.constant dense<0.000000e+00> : vector<64x256xf32>
      %42 = tpu.matmul %40, %41, %cst_36 {dimension_numbers = #tpu.dot_dimension_numbers<[1], [0], [0], [1], [0, 0, 1, 1], [], []>} : vector<64x256xbf16>, vector<256x256xbf16>, vector<64x256xf32> -> vector<64x256xf32>
      %c0_37 = arith.constant 0 : index
      %c0_38 = arith.constant 0 : index
      %43 = vector.load %arg13[%c0_37, %c0_38] : memref<1x256xf32, #tpu.memory_space<vmem>>, vector<1x256xf32>
      %44 = vector.broadcast %43 : vector<1x256xf32> to vector<64x256xf32>
      %45 = arith.addf %42, %44 : vector<64x256xf32>
      %cst_39 = arith.constant 0.000000e+00 : f32
      %46 = vector.broadcast %cst_39 : f32 to vector<64x256xf32>
      %47 = arith.maximumf %45, %46 : vector<64x256xf32>
      %48 = arith.truncf %47 : vector<64x256xf32> to vector<64x256xbf16>
      %c0_40 = arith.constant 0 : index
      %c0_41 = arith.constant 0 : index
      %49 = vector.load %arg14[%c0_40, %c0_41] : memref<256x256xbf16, #tpu.memory_space<vmem>>, vector<256x256xbf16>
      %cst_42 = arith.constant dense<0.000000e+00> : vector<64x256xf32>
      %50 = tpu.matmul %48, %49, %cst_42 {dimension_numbers = #tpu.dot_dimension_numbers<[1], [0], [0], [1], [0, 0, 1, 1], [], []>} : vector<64x256xbf16>, vector<256x256xbf16>, vector<64x256xf32> -> vector<64x256xf32>
      %c0_43 = arith.constant 0 : index
      %c0_44 = arith.constant 0 : index
      %51 = vector.load %arg15[%c0_43, %c0_44] : memref<1x256xf32, #tpu.memory_space<vmem>>, vector<1x256xf32>
      %52 = vector.broadcast %51 : vector<1x256xf32> to vector<64x256xf32>
      %53 = arith.addf %50, %52 : vector<64x256xf32>
      %cst_45 = arith.constant 0.000000e+00 : f32
      %54 = vector.broadcast %cst_45 : f32 to vector<64x256xf32>
      %55 = arith.maximumf %53, %54 : vector<64x256xf32>
      %cst_46 = arith.constant dense<0.000000e+00> : vector<256xf32>
      %56 = vector.multi_reduction <add>, %55, %cst_46 [0] : vector<64x256xf32> to vector<256xf32>
      %57 = vector.shape_cast %56 : vector<256xf32> to vector<1x256xf32>
      %cst_47 = arith.constant 1.562500e-02 : f32
      %58 = vector.broadcast %cst_47 : f32 to vector<1x256xf32>
      %59 = arith.mulf %57, %58 : vector<1x256xf32>
      %60 = vector.broadcast %59 : vector<1x256xf32> to vector<64x256xf32>
      %61 = arith.subf %55, %60 : vector<64x256xf32>
      %62 = arith.mulf %61, %61 : vector<64x256xf32>
      %cst_48 = arith.constant dense<0.000000e+00> : vector<256xf32>
      %63 = vector.multi_reduction <add>, %62, %cst_48 [0] : vector<64x256xf32> to vector<256xf32>
      %64 = vector.shape_cast %63 : vector<256xf32> to vector<1x256xf32>
      %cst_49 = arith.constant 1.562500e-02 : f32
      %65 = vector.broadcast %cst_49 : f32 to vector<1x256xf32>
      %66 = arith.mulf %64, %65 : vector<1x256xf32>
      %cst_50 = arith.constant 9.99999974E-6 : f32
      %67 = vector.broadcast %cst_50 : f32 to vector<1x256xf32>
      %68 = arith.addf %66, %67 : vector<1x256xf32>
      %69 = math.rsqrt %68 : vector<1x256xf32>
      %c0_51 = arith.constant 0 : index
      %c0_52 = arith.constant 0 : index
      %70 = vector.load %arg17[%c0_51, %c0_52] : memref<1x256xf32, #tpu.memory_space<vmem>>, vector<1x256xf32>
      %71 = vector.broadcast %69 : vector<1x256xf32> to vector<64x256xf32>
      %72 = arith.mulf %61, %71 : vector<64x256xf32>
      %73 = vector.broadcast %70 : vector<1x256xf32> to vector<64x256xf32>
      %74 = arith.mulf %73, %72 : vector<64x256xf32>
      %c0_53 = arith.constant 0 : index
      %c0_54 = arith.constant 0 : index
      %75 = vector.load %arg18[%c0_53, %c0_54] : memref<1x256xf32, #tpu.memory_space<vmem>>, vector<1x256xf32>
      %76 = vector.broadcast %75 : vector<1x256xf32> to vector<64x256xf32>
      %77 = arith.addf %74, %76 : vector<64x256xf32>
      %78 = arith.truncf %77 : vector<64x256xf32> to vector<64x256xbf16>
      %c0_55 = arith.constant 0 : index
      %c0_56 = arith.constant 0 : index
      %79 = vector.load %arg19[%c0_55, %c0_56] : memref<64x256xf32, #tpu.memory_space<vmem>>, vector<64x256xf32>
      tpu.vector_store %arg19[%c0_55, %c0_56], %77 {strides = array<i32>} : memref<64x256xf32, #tpu.memory_space<vmem>>, vector<64x256xf32>,
      %c0_57 = arith.constant 0 : index
      %c0_58 = arith.constant 0 : index
      %80 = vector.load %arg20[%c0_57, %c0_58] : memref<64x256xbf16, #tpu.memory_space<vmem>>, vector<64x256xbf16>
      tpu.vector_store %arg20[%c0_57, %c0_58], %78 {strides = array<i32>} : memref<64x256xbf16, #tpu.memory_space<vmem>>, vector<64x256xbf16>,
      %c0_59 = arith.constant 0 : index
      %c0_60 = arith.constant 0 : index
      %81 = vector.load %arg6[%c0_59, %c0_60] : memref<4x64xbf16, #tpu.memory_space<vmem>>, vector<4x64xbf16>
      %cst_61 = arith.constant dense<0.000000e+00> : vector<4x256xf32>
      %82 = tpu.matmul %81, %78, %cst_61 {dimension_numbers = #tpu.dot_dimension_numbers<[1], [0], [0], [1], [0, 0, 1, 1], [], []>} : vector<4x64xbf16>, vector<64x256xbf16>, vector<4x256xf32> -> vector<4x256xf32>
      %c0_62 = arith.constant 0 : index
      %c0_63 = arith.constant 0 : index
      %83 = vector.load %arg7[%c0_62, %c0_63] : memref<4x1xf32, #tpu.memory_space<vmem>>, vector<4x1xf32>
      %84 = vector.broadcast %83 : vector<4x1xf32> to vector<4x256xf32>
      %85 = arith.mulf %82, %84 : vector<4x256xf32>
      %c0_64 = arith.constant 0 : index
      %c0_65 = arith.constant 0 : index
      %86 = vector.load %arg21[%c0_64, %c0_65] : memref<4x256xf32, #tpu.memory_space<vmem>>, vector<4x256xf32>
      tpu.vector_store %arg21[%c0_64, %c0_65], %85 {strides = array<i32>} : memref<4x256xf32, #tpu.memory_space<vmem>>, vector<4x256xf32>,
    } else {
    }
    return
  }
  func.func @transform_0(%arg0: i32) -> (i32, i32) {
    %c0_i32 = arith.constant 0 : i32
    %c0_i32_0 = arith.constant 0 : i32
    %c0_i32_1 = arith.constant 0 : i32
    return %c0_i32, %c0_i32_0 : i32, i32
  }
  func.func @transform_1(%arg0: i32) -> (i32, i32) {
    %c0_i32 = arith.constant 0 : i32
    %c0_i32_0 = arith.constant 0 : i32
    %c0_i32_1 = arith.constant 0 : i32
    return %c0_i32, %c0_i32_0 : i32, i32
  }
  func.func @transform_2(%arg0: i32) -> (i32, i32) {
    %c0_i32 = arith.constant 0 : i32
    %c0_i32_0 = arith.constant 0 : i32
    return %arg0, %c0_i32 : i32, i32
  }
  func.func @transform_3(%arg0: i32) -> (i32, i32) {
    %c0_i32 = arith.constant 0 : i32
    %c0_i32_0 = arith.constant 0 : i32
    return %arg0, %c0_i32 : i32, i32
  }
  func.func @transform_4(%arg0: i32) -> (i32, i32) {
    %c0_i32 = arith.constant 0 : i32
    %c0_i32_0 = arith.constant 0 : i32
    return %c0_i32, %arg0 : i32, i32
  }
  func.func @transform_5(%arg0: i32) -> (i32, i32) {
    %c0_i32 = arith.constant 0 : i32
    %c0_i32_0 = arith.constant 0 : i32
    %c0_i32_1 = arith.constant 0 : i32
    return %c0_i32, %c0_i32_0 : i32, i32
  }
  func.func @transform_6(%arg0: i32) -> (i32, i32) {
    %c0_i32 = arith.constant 0 : i32
    %c0_i32_0 = arith.constant 0 : i32
    %c0_i32_1 = arith.constant 0 : i32
    return %c0_i32, %c0_i32_0 : i32, i32
  }
  func.func @transform_7(%arg0: i32) -> (i32, i32) {
    %c0_i32 = arith.constant 0 : i32
    %c0_i32_0 = arith.constant 0 : i32
    %c0_i32_1 = arith.constant 0 : i32
    return %c0_i32, %c0_i32_0 : i32, i32
  }
  func.func @transform_8(%arg0: i32) -> (i32, i32) {
    %c0_i32 = arith.constant 0 : i32
    %c0_i32_0 = arith.constant 0 : i32
    %c0_i32_1 = arith.constant 0 : i32
    return %c0_i32, %c0_i32_0 : i32, i32
  }
  func.func @transform_9(%arg0: i32) -> (i32, i32) {
    %c0_i32 = arith.constant 0 : i32
    %c0_i32_0 = arith.constant 0 : i32
    %c0_i32_1 = arith.constant 0 : i32
    return %c0_i32, %c0_i32_0 : i32, i32
  }
  func.func @transform_10(%arg0: i32) -> (i32, i32) {
    %c0_i32 = arith.constant 0 : i32
    %c0_i32_0 = arith.constant 0 : i32
    %c0_i32_1 = arith.constant 0 : i32
    return %c0_i32, %c0_i32_0 : i32, i32
  }
  func.func @transform_11(%arg0: i32) -> (i32, i32) {
    %c0_i32 = arith.constant 0 : i32
    %c0_i32_0 = arith.constant 0 : i32
    %c0_i32_1 = arith.constant 0 : i32
    return %c0_i32, %c0_i32_0 : i32, i32
  }
  func.func @transform_12(%arg0: i32) -> (i32, i32) {
    %c0_i32 = arith.constant 0 : i32
    %c0_i32_0 = arith.constant 0 : i32
    %c0_i32_1 = arith.constant 0 : i32
    return %c0_i32, %c0_i32_0 : i32, i32
  }
  func.func @transform_13(%arg0: i32) -> (i32, i32) {
    %c0_i32 = arith.constant 0 : i32
    %c0_i32_0 = arith.constant 0 : i32
    %c0_i32_1 = arith.constant 0 : i32
    return %c0_i32, %c0_i32_0 : i32, i32
  }
  func.func @transform_14(%arg0: i32) -> (i32, i32) {
    %c0_i32 = arith.constant 0 : i32
    %c0_i32_0 = arith.constant 0 : i32
    %c0_i32_1 = arith.constant 0 : i32
    return %c0_i32, %c0_i32_0 : i32, i32
  }
  func.func @transform_15(%arg0: i32) -> (i32, i32) {
    %c0_i32 = arith.constant 0 : i32
    %c0_i32_0 = arith.constant 0 : i32
    %c0_i32_1 = arith.constant 0 : i32
    return %c0_i32, %c0_i32_0 : i32, i32
  }
  func.func @transform_16(%arg0: i32) -> (i32, i32) {
    %c0_i32 = arith.constant 0 : i32
    %c0_i32_0 = arith.constant 0 : i32
    %c0_i32_1 = arith.constant 0 : i32
    return %c0_i32, %c0_i32_0 : i32, i32
  }
  func.func @transform_17(%arg0: i32) -> (i32, i32) {
    %c0_i32 = arith.constant 0 : i32
    %c0_i32_0 = arith.constant 0 : i32
    %c0_i32_1 = arith.constant 0 : i32
    return %c0_i32, %c0_i32_0 : i32, i32
  }
  func.func @transform_18(%arg0: i32) -> (i32, i32) {
    %c0_i32 = arith.constant 0 : i32
    %c0_i32_0 = arith.constant 0 : i32
    %c0_i32_1 = arith.constant 0 : i32
    return %c0_i32, %c0_i32_0 : i32, i32
  }
  func.func @transform_19(%arg0: i32) -> (i32, i32) {
    %c0_i32 = arith.constant 0 : i32
    %c0_i32_0 = arith.constant 0 : i32
    %c0_i32_1 = arith.constant 0 : i32
    return %c0_i32, %c0_i32_0 : i32, i32
  }
  func.func @transform_20(%arg0: i32) -> (i32, i32) {
    %c0_i32 = arith.constant 0 : i32
    %c0_i32_0 = arith.constant 0 : i32
    %c0_i32_1 = arith.constant 0 : i32
    return %c0_i32, %c0_i32_0 : i32, i32
  }
}

module attributes {stable_mosaic.version = 11 : i64} {
  func.func @_head_kernel(%arg0: memref<4x256xf32, #tpu.memory_space<vmem>>, %arg1: memref<4x256xf32, #tpu.memory_space<vmem>>, %arg2: memref<4x256xf32, #tpu.memory_space<vmem>>, %arg3: memref<4x256xf32, #tpu.memory_space<vmem>>, %arg4: memref<1024x256xbf16, #tpu.memory_space<vmem>>, %arg5: memref<1x256xf32, #tpu.memory_space<vmem>>, %arg6: memref<256x256xbf16, #tpu.memory_space<vmem>>, %arg7: memref<1x256xf32, #tpu.memory_space<vmem>>, %arg8: memref<256x256xbf16, #tpu.memory_space<vmem>>, %arg9: memref<1x256xf32, #tpu.memory_space<vmem>>, %arg10: memref<256x1xbf16, #tpu.memory_space<vmem>>, %arg11: memref<1x1xf32, #tpu.memory_space<vmem>>, %arg12: memref<4x1xf32, #tpu.memory_space<vmem>>) attributes {dimension_semantics = [], scalar_prefetch = 0 : i64, scratch_operands = 0 : i64, tpu.core_type = #tpu.core_type<tc>} {
    %c0 = arith.constant 0 : index
    %c0_0 = arith.constant 0 : index
    %0 = vector.load %arg0[%c0, %c0_0] : memref<4x256xf32, #tpu.memory_space<vmem>>, vector<4x256xf32>
    %c0_1 = arith.constant 0 : index
    %c0_2 = arith.constant 0 : index
    %1 = vector.load %arg1[%c0_1, %c0_2] : memref<4x256xf32, #tpu.memory_space<vmem>>, vector<4x256xf32>
    %c0_3 = arith.constant 0 : index
    %c0_4 = arith.constant 0 : index
    %2 = vector.load %arg2[%c0_3, %c0_4] : memref<4x256xf32, #tpu.memory_space<vmem>>, vector<4x256xf32>
    %c0_5 = arith.constant 0 : index
    %c0_6 = arith.constant 0 : index
    %3 = vector.load %arg3[%c0_5, %c0_6] : memref<4x256xf32, #tpu.memory_space<vmem>>, vector<4x256xf32>
    %4 = tpu.concatenate %0, %1, %2, %3 in 1 : vector<4x256xf32>, vector<4x256xf32>, vector<4x256xf32>, vector<4x256xf32> -> vector<4x1024xf32>
    %5 = arith.truncf %4 : vector<4x1024xf32> to vector<4x1024xbf16>
    %c0_7 = arith.constant 0 : index
    %c0_8 = arith.constant 0 : index
    %6 = vector.load %arg4[%c0_7, %c0_8] : memref<1024x256xbf16, #tpu.memory_space<vmem>>, vector<1024x256xbf16>
    %cst = arith.constant dense<0.000000e+00> : vector<4x256xf32>
    %7 = tpu.matmul %5, %6, %cst {dimension_numbers = #tpu.dot_dimension_numbers<[1], [0], [0], [1], [0, 0, 1, 1], [], []>} : vector<4x1024xbf16>, vector<1024x256xbf16>, vector<4x256xf32> -> vector<4x256xf32>
    %c0_9 = arith.constant 0 : index
    %c0_10 = arith.constant 0 : index
    %8 = vector.load %arg5[%c0_9, %c0_10] : memref<1x256xf32, #tpu.memory_space<vmem>>, vector<1x256xf32>
    %9 = vector.broadcast %8 : vector<1x256xf32> to vector<4x256xf32>
    %10 = arith.addf %7, %9 : vector<4x256xf32>
    %cst_11 = arith.constant 0.000000e+00 : f32
    %11 = vector.broadcast %cst_11 : f32 to vector<4x256xf32>
    %12 = arith.maximumf %10, %11 : vector<4x256xf32>
    %13 = arith.truncf %12 : vector<4x256xf32> to vector<4x256xbf16>
    %c0_12 = arith.constant 0 : index
    %c0_13 = arith.constant 0 : index
    %14 = vector.load %arg6[%c0_12, %c0_13] : memref<256x256xbf16, #tpu.memory_space<vmem>>, vector<256x256xbf16>
    %cst_14 = arith.constant dense<0.000000e+00> : vector<4x256xf32>
    %15 = tpu.matmul %13, %14, %cst_14 {dimension_numbers = #tpu.dot_dimension_numbers<[1], [0], [0], [1], [0, 0, 1, 1], [], []>} : vector<4x256xbf16>, vector<256x256xbf16>, vector<4x256xf32> -> vector<4x256xf32>
    %c0_15 = arith.constant 0 : index
    %c0_16 = arith.constant 0 : index
    %16 = vector.load %arg7[%c0_15, %c0_16] : memref<1x256xf32, #tpu.memory_space<vmem>>, vector<1x256xf32>
    %17 = vector.broadcast %16 : vector<1x256xf32> to vector<4x256xf32>
    %18 = arith.addf %15, %17 : vector<4x256xf32>
    %cst_17 = arith.constant 0.000000e+00 : f32
    %19 = vector.broadcast %cst_17 : f32 to vector<4x256xf32>
    %20 = arith.maximumf %18, %19 : vector<4x256xf32>
    %21 = arith.truncf %20 : vector<4x256xf32> to vector<4x256xbf16>
    %c0_18 = arith.constant 0 : index
    %c0_19 = arith.constant 0 : index
    %22 = vector.load %arg8[%c0_18, %c0_19] : memref<256x256xbf16, #tpu.memory_space<vmem>>, vector<256x256xbf16>
    %cst_20 = arith.constant dense<0.000000e+00> : vector<4x256xf32>
    %23 = tpu.matmul %21, %22, %cst_20 {dimension_numbers = #tpu.dot_dimension_numbers<[1], [0], [0], [1], [0, 0, 1, 1], [], []>} : vector<4x256xbf16>, vector<256x256xbf16>, vector<4x256xf32> -> vector<4x256xf32>
    %c0_21 = arith.constant 0 : index
    %c0_22 = arith.constant 0 : index
    %24 = vector.load %arg9[%c0_21, %c0_22] : memref<1x256xf32, #tpu.memory_space<vmem>>, vector<1x256xf32>
    %25 = vector.broadcast %24 : vector<1x256xf32> to vector<4x256xf32>
    %26 = arith.addf %23, %25 : vector<4x256xf32>
    %cst_23 = arith.constant 0.000000e+00 : f32
    %27 = vector.broadcast %cst_23 : f32 to vector<4x256xf32>
    %28 = arith.maximumf %26, %27 : vector<4x256xf32>
    %29 = arith.truncf %28 : vector<4x256xf32> to vector<4x256xbf16>
    %c0_24 = arith.constant 0 : index
    %c0_25 = arith.constant 0 : index
    %30 = vector.load %arg10[%c0_24, %c0_25] : memref<256x1xbf16, #tpu.memory_space<vmem>>, vector<256x1xbf16>
    %cst_26 = arith.constant dense<0.000000e+00> : vector<4x1xf32>
    %31 = tpu.matmul %29, %30, %cst_26 {dimension_numbers = #tpu.dot_dimension_numbers<[1], [0], [0], [1], [0, 0, 1, 1], [], []>} : vector<4x256xbf16>, vector<256x1xbf16>, vector<4x1xf32> -> vector<4x1xf32>
    %c0_27 = arith.constant 0 : index
    %c0_28 = arith.constant 0 : index
    %32 = vector.load %arg11[%c0_27, %c0_28] : memref<1x1xf32, #tpu.memory_space<vmem>>, vector<1x1xf32>
    %33 = vector.broadcast %32 : vector<1x1xf32> to vector<4x1xf32>
    %34 = arith.addf %31, %33 : vector<4x1xf32>
    %c0_29 = arith.constant 0 : index
    %c0_30 = arith.constant 0 : index
    %35 = vector.load %arg12[%c0_29, %c0_30] : memref<4x1xf32, #tpu.memory_space<vmem>>, vector<4x1xf32>
    tpu.vector_store %arg12[%c0_29, %c0_30], %34 {strides = array<i32>} : memref<4x1xf32, #tpu.memory_space<vmem>>, vector<4x1xf32>,
    return
  }
}

</mosaic_0001>

<bundles_post_ra>
// kernel: net_gine_forward.9
= control target key start
LH: loop header
LB: loop body
LE: loop exit
PB: predicated region body
PF: predicated region fallthrough
CT: control target
= control target key end

     0   :  { %vm1689_vm0 = vcmask 3072   ;;  %s2990_s4 = inlined_call_operand.vmem [shape: bf16[1024,256], index: 4, kind: input, shape index: {}]   ;;  %s2991_s1 = inlined_call_operand.vmem [shape: f32[4,256], index: 1, kind: input, shape index: {}]   ;;  %s2992_s2 = inlined_call_operand.vmem [shape: f32[4,256], index: 2, kind: input, shape index: {}]   ;;  %s2993_s0 = inlined_call_operand.vmem [shape: f32[4,256], index: 0, kind: input, shape index: {}]   ;;  %s2994_s6 = inlined_call_operand.vmem [shape: bf16[256,256], index: 6, kind: input, shape index: {}]   ;;  %s2995_s3 = inlined_call_operand.vmem [shape: f32[4,256], index: 3, kind: input, shape index: {}]   ;;  %s2996_s8 = inlined_call_operand.vmem [shape: bf16[256,256], index: 8, kind: input, shape index: {}]   ;;  %s2997_s5 = inlined_call_operand.vmem [shape: f32[1,256], index: 5, kind: input, shape index: {}]   ;;  %s2998_s10 = inlined_call_operand.vmem [shape: bf16[256,1], index: 10, kind: input, shape index: {}]   ;;  %s2999_s7 = inlined_call_operand.vmem [shape: f32[1,256], index: 7, kind: input, shape index: {}]   ;;  %s3000_s9 = inlined_call_operand.vmem [shape: f32[1,256], index: 9, kind: input, shape index: {}]   ;;  %s3001_s11 = inlined_call_operand.<no memory space> [shape: f32[1,1], index: 11, kind: input, shape index: {}]   ;;  %s3002_s12 = inlined_call_operand.vmem [shape: f32[4,1], index: 12, kind: output, shape index: {}]  }
   0x1   :  { %v1938_v0 = vld [vmem:[%s2990_s4 + $0x104] ss:$8 sps:$4 sm:$0xff]   ;;  %v1940_v1 = vld [vmem:[%s2990_s4 + $0x100] ss:$8 sps:$4 sm:$0xff]   ;;  %v1941_v2 = vld [vmem:[%s2990_s4 + $0x114] ss:$8 sps:$4 sm:$0xff]  }
   0x2   :  { %889 = vmatprep.subr.bf16.mxu0 %v1938_v0  ;;  %v1943_v3 = vld [vmem:[%s2990_s4 + $0x110] ss:$8 sps:$4 sm:$0xff]   ;;  %v1944_v4 = vld [vmem:[%s2990_s4 + $0x124] ss:$8 sps:$4 sm:$0xff]   ;;  %v1946_v5 = vld [vmem:[%s2990_s4 + $0x120] ss:$8 sps:$4 sm:$0xff]  }
   0x3   :  { %890 = vmatpush1.bf16.msra.mxu0 %v1940_v1  ;;  %v1947_v6 = vld [vmem:[%s2990_s4 + $0x134] ss:$8 sps:$4 sm:$0xff]   ;;  %v1949_v7 = vld [vmem:[%s2990_s4 + $0x130] ss:$8 sps:$4 sm:$0xff]   ;;  %v1950_v8 = vld [vmem:[%s2990_s4 + $0x144] ss:$8 sps:$4 sm:$0xff]  }
   0x4   :  { %891 = vmatprep.subr.bf16.mxu0 %v1941_v2  ;;  %v1952_v9 = vld [vmem:[%s2990_s4 + $0x140] ss:$8 sps:$4 sm:$0xff]   ;;  %v1953_v10 = vld [vmem:[%s2990_s4 + $0x154] ss:$8 sps:$4 sm:$0xff]   ;;  %v1955_v11 = vld [vmem:[%s2990_s4 + $0x150] ss:$8 sps:$4 sm:$0xff]  }
   0x5   :  { %v1956_v12 = vld [vmem:[%s2990_s4 + $0x164] ss:$8 sps:$4 sm:$0xff]   ;;  %v1958_v15 = vld [vmem:[%s2990_s4 + $0x160] ss:$8 sps:$4 sm:$0xff]   ;;  %v1959_v16 = vld [vmem:[%s2990_s4 + $0x174] ss:$8 sps:$4 sm:$0xff]  }
   0x6   :  { %v2353_v13 = vld [vmem:[%s2991_s1] sm:$0xff]  ;;  %v1961_v18 = vld [vmem:[%s2990_s4 + $0x170] ss:$8 sps:$4 sm:$0xff]   ;;  %v1965_v21 = vld [vmem:[%s2990_s4 + $0x194] ss:$8 sps:$4 sm:$0xff]  }
   0x7   :  { %892 = vmatpush1.bf16.msra.mxu0 %v1943_v3  ;;  %v52_v14 = vcombine.high %v2353_v13, %v2353_v13  ;;  %v1962_v19 = vld [vmem:[%s2990_s4 + $0x184] ss:$8 sps:$4 sm:$0xff]   ;;  %v1964_v20 = vld [vmem:[%s2990_s4 + $0x180] ss:$8 sps:$4 sm:$0xff]   ;;  %v1967_v22 = vld [vmem:[%s2990_s4 + $0x190] ss:$8 sps:$4 sm:$0xff]   ;;  %v62_v50 = vpack.c.bf16 %v2353_v13, %v2353_v13 }
   0x8   :  { %893 = vmatprep.subr.bf16.mxu0 %v1944_v4  ;;  %v1968_v23 = vld [vmem:[%s2990_s4 + $0x1a4] ss:$8 sps:$4 sm:$0xff]   ;;  %v1970_v24 = vld [vmem:[%s2990_s4 + $0x1a0] ss:$8 sps:$4 sm:$0xff]   ;;  %v1971_v25 = vld [vmem:[%s2990_s4 + $0x1b4] ss:$8 sps:$4 sm:$0xff]  }
   0x9   :  { %v63_v17 = vpack.c.bf16 %v52_v14, %v52_v14  ;;  %v2032_v26 = vld [vmem:[%s2990_s4 + $0x4] ss:$8 sps:$4 sm:$0xff]   ;;  %v2034_v27 = vld [vmem:[%s2990_s4] ss:$8 sps:$4 sm:$0xff]   ;;  %v1973_v28 = vld [vmem:[%s2990_s4 + $0x1b0] ss:$8 sps:$4 sm:$0xff]  }
   0xa   :  { %v1974_v29 = vld [vmem:[%s2990_s4 + $0x1c4] ss:$8 sps:$4 sm:$0xff]   ;;  %848 = vmatprep.subr.bf16.mxu1 %v2032_v26  ;;  %v2038_v30 = vld [vmem:[%s2990_s4 + $0x14] ss:$8 sps:$4 sm:$0xff]   ;;  %v2040_v31 = vld [vmem:[%s2990_s4 + $0x10] ss:$8 sps:$4 sm:$0xff]  }
   0xb   :  { %894 = vmatpush1.bf16.msra.mxu0 %v1946_v5  ;;  %921 = vmatprep.mubr.bf16.mxu0 %v63_v17  ;;  %v1976_v32 = vld [vmem:[%s2990_s4 + $0x1c0] ss:$8 sps:$4 sm:$0xff]   ;;  %v1977_v33 = vld [vmem:[%s2990_s4 + $0x1d4] ss:$8 sps:$4 sm:$0xff]   ;;  %v2045_v34 = vld [vmem:[%s2990_s4 + $0x24] ss:$8 sps:$4 sm:$0xff]  }
   0xc   :  { %895 = vmatprep.subr.bf16.mxu0 %v1947_v6  ;;  %849 = vmatpush1.bf16.msra.mxu1 %v2034_v27  ;;  %v2047_v35 = vld [vmem:[%s2990_s4 + $0x20] ss:$8 sps:$4 sm:$0xff]   ;;  %v2051_v36 = vld [vmem:[%s2990_s4 + $0x34] ss:$8 sps:$4 sm:$0xff]   ;;  %v1979_v37 = vld [vmem:[%s2990_s4 + $0x1d0] ss:$8 sps:$4 sm:$0xff]  }
   0xd   :  { %850 = vmatprep.subr.bf16.mxu1 %v2038_v30  ;;  %v1980_v38 = vld [vmem:[%s2990_s4 + $0x1e4] ss:$8 sps:$4 sm:$0xff]   ;;  %v2053_v39 = vld [vmem:[%s2990_s4 + $0x30] ss:$8 sps:$4 sm:$0xff]   ;;  %v1982_v41 = vld [vmem:[%s2990_s4 + $0x1e0] ss:$8 sps:$4 sm:$0xff]  }
   0xe   :  { %v2057_v40 = vld [vmem:[%s2990_s4 + $0x44] ss:$8 sps:$4 sm:$0xff]   ;;  %v1983_v42 = vld [vmem:[%s2990_s4 + $0x1f4] ss:$8 sps:$4 sm:$0xff]   ;;  %v2059_v44 = vld [vmem:[%s2990_s4 + $0x40] ss:$8 sps:$4 sm:$0xff]  }
   0xf   :  { %896 = vmatpush1.bf16.msra.mxu0 %v1949_v7  ;;  %v2441_v43 = vld [vmem:[%s2992_s2] sm:$0xff]  ;;  %v2063_v45 = vld [vmem:[%s2990_s4 + $0x54] ss:$8 sps:$4 sm:$0xff]   ;;  %v1985_v46 = vld [vmem:[%s2990_s4 + $0x1f0] ss:$8 sps:$4 sm:$0xff]  }
  0x10   :  { %897 = vmatprep.subr.bf16.mxu0 %v1950_v8  ;;  %851 = vmatpush1.bf16.msra.mxu1 %v2040_v31  ;;  %v55_v47 = vcombine.high %v2441_v43, %v2441_v43  ;;  %v1989_v48 = vld [vmem:[%s2990_s4 + $0x204] ss:$8 sps:$4 sm:$0xff]   ;;  %v2065_v49 = vld [vmem:[%s2990_s4 + $0x50] ss:$8 sps:$4 sm:$0xff]   ;;  %v1987_v52 = vld [vmem:[%s2990_s4 + $0x200] ss:$8 sps:$4 sm:$0xff]  }
  0x11   :  { %852 = vmatprep.subr.bf16.mxu1 %v2045_v34  ;;  %v2069_v51 = vld [vmem:[%s2990_s4 + $0x64] ss:$8 sps:$4 sm:$0xff]   ;;  %v1992_v54 = vld [vmem:[%s2990_s4 + $0x214] ss:$8 sps:$4 sm:$0xff]   ;;  %v2071_v55 = vld [vmem:[%s2990_s4 + $0x60] ss:$8 sps:$4 sm:$0xff]  }
  0x12   :  { %v65_v53 = vpack.c.bf16 %v55_v47, %v55_v47  ;;  %v2075_v56 = vld [vmem:[%s2990_s4 + $0x74] ss:$8 sps:$4 sm:$0xff]   ;;  %v1990_v57 = vld [vmem:[%s2990_s4 + $0x210] ss:$8 sps:$4 sm:$0xff]   ;;  %v1995_v58 = vld [vmem:[%s2990_s4 + $0x224] ss:$8 sps:$4 sm:$0xff]  }
  0x13   :  { %898 = vmatpush1.bf16.msra.mxu0 %v1952_v9  ;;  %v2077_v59 = vld [vmem:[%s2990_s4 + $0x70] ss:$8 sps:$4 sm:$0xff]   ;;  %v2081_v60 = vld [vmem:[%s2990_s4 + $0x84] ss:$8 sps:$4 sm:$0xff]   ;;  %v1993_v61 = vld [vmem:[%s2990_s4 + $0x220] ss:$8 sps:$4 sm:$0xff]  }
  0x14   :  { %899 = vmatprep.subr.bf16.mxu0 %v1953_v10  ;;  %853 = vmatpush1.bf16.msra.mxu1 %v2047_v35  ;;  %v1998_v62 = vld [vmem:[%s2990_s4 + $0x234] ss:$8 sps:$4 sm:$0xff]   ;;  %v2083_v63 = vld [vmem:[%s2990_s4 + $0x80] ss:$8 sps:$4 sm:$0xff]   ;;  %v1996_v1 = vld [vmem:[%s2990_s4 + $0x230] ss:$8 sps:$4 sm:$0xff]  }
  0x15   :  { %854 = vmatprep.subr.bf16.mxu1 %v2051_v36  ;;  %v2087_v0 = vld [vmem:[%s2990_s4 + $0x94] ss:$8 sps:$4 sm:$0xff]   ;;  %v2001_v2 = vld [vmem:[%s2990_s4 + $0x244] ss:$8 sps:$4 sm:$0xff]   ;;  %v2089_v3 = vld [vmem:[%s2990_s4 + $0x90] ss:$8 sps:$4 sm:$0xff]  }
  0x16   :  { %v2093_v4 = vld [vmem:[%s2990_s4 + $0xa4] ss:$8 sps:$4 sm:$0xff]   ;;  %v1999_v5 = vld [vmem:[%s2990_s4 + $0x240] ss:$8 sps:$4 sm:$0xff]   ;;  %v2004_v6 = vld [vmem:[%s2990_s4 + $0x254] ss:$8 sps:$4 sm:$0xff]  }
  0x17   :  { %900 = vmatpush1.bf16.msra.mxu0 %v1955_v11  ;;  %v2095_v7 = vld [vmem:[%s2990_s4 + $0xa0] ss:$8 sps:$4 sm:$0xff]   ;;  %v2099_v8 = vld [vmem:[%s2990_s4 + $0xb4] ss:$8 sps:$4 sm:$0xff]   ;;  %v2002_v9 = vld [vmem:[%s2990_s4 + $0x250] ss:$8 sps:$4 sm:$0xff]  }
  0x18   :  { %901 = vmatprep.subr.bf16.mxu0 %v1956_v12  ;;  %855 = vmatpush1.bf16.msra.mxu1 %v2053_v39  ;;  %v2007_v10 = vld [vmem:[%s2990_s4 + $0x264] ss:$8 sps:$4 sm:$0xff]   ;;  %v2101_v12 = vld [vmem:[%s2990_s4 + $0xb0] ss:$8 sps:$4 sm:$0xff]   ;;  %v2010_v17 = vld [vmem:[%s2990_s4 + $0x274] ss:$8 sps:$4 sm:$0xff]  }
  0x19   :  { %856 = vmatprep.subr.bf16.mxu1 %v2057_v40  ;;  %v44_v11 = vld [vmem:[%s2993_s0] sm:$0xff]  ;;  %v2123_v27 = vld [vmem:[%s2990_s4 + $0xf4] ss:$8 sps:$4 sm:$0xff]   ;;  %v2125_v30 = vld [vmem:[%s2990_s4 + $0xf0] ss:$8 sps:$4 sm:$0xff]  }
  0x1a   :  { %v49_v13 = vcombine.high %v44_v11, %v44_v11  ;;  %v2105_v14 = vld [vmem:[%s2990_s4 + $0xc4] ss:$8 sps:$4 sm:$0xff]   ;;  %v2119_v26 = vld [vmem:[%s2990_s4 + $0xe0] ss:$8 sps:$4 sm:$0xff]   ;;  %v60_v34 = vpack.c.bf16 %v44_v11, %v44_v11  ;;  %v2139_v36 = vld [vmem:[%s2994_s6 + $0x14] ss:$8 sps:$4 sm:$0xff]  }
  0x1b   :  { %902 = vmatpush1.bf16.msra.mxu0 %v1958_v15  ;;  %v2005_v15 = vld [vmem:[%s2990_s4 + $0x260] ss:$8 sps:$4 sm:$0xff]   ;;  %v2136_v31 = vld [vmem:[%s2994_s6 + $0x4] ss:$8 sps:$4 sm:$0xff]   ;;  %v2137_v39 = vld [vmem:[%s2994_s6 + $0x10] ss:$8 sps:$4 sm:$0xff]  }
  0x1c   :  { %903 = vmatprep.subr.bf16.mxu0 %v1959_v16  ;;  %857 = vmatpush1.bf16.msra.mxu1 %v2059_v44  ;;  %v61_v16 = vpack.c.bf16 %v49_v13, %v49_v13  ;;  %v2134_v35 = vld [vmem:[%s2994_s6] ss:$8 sps:$4 sm:$0xff]   ;;  %v2142_v40 = vld [vmem:[%s2994_s6 + $0x24] ss:$8 sps:$4 sm:$0xff]   ;;  %v2161_v11 = vld [vmem:[%s2994_s6 + $0x90] ss:$8 sps:$4 sm:$0xff]  }
  0x1d   :  { %858 = vmatprep.subr.bf16.mxu1 %v2063_v45  ;;  %v2140_v44 = vld [vmem:[%s2994_s6 + $0x20] ss:$8 sps:$4 sm:$0xff]   ;;  %v2145_v45 = vld [vmem:[%s2994_s6 + $0x34] ss:$8 sps:$4 sm:$0xff]   ;;  %v2031_v47 = vld [vmem:[%s2990_s4 + $0x2e4] ss:$8 sps:$4 sm:$0xff]  }
  0x1e   :  { %880 = vmatprep.mubr.bf16.mxu1 %v61_v16  ;;  %v2066_v13 = vld [vmem:[%s2990_s4 + $0x340] ss:$8 sps:$4 sm:$0xff]   ;;  %v2169_v16 = vld [vmem:[%s2994_s6 + $0xb4] ss:$8 sps:$4 sm:$0xff]  }
  0x1f   :  { %904 = vmatpush1.bf16.msra.mxu0 %v1961_v18  ;;  %v2107_v18 = vld [vmem:[%s2990_s4 + $0xc0] ss:$8 sps:$4 sm:$0xff]  }
  0x20   :  { %905 = vmatprep.subr.bf16.mxu0 %v1962_v19  ;;  %859 = vmatpush1.bf16.msra.mxu1 %v2065_v49  ;;  %v2111_v19 = vld [vmem:[%s2990_s4 + $0xd4] ss:$8 sps:$4 sm:$0xff]   ;;  %v2148_v49 = vld [vmem:[%s2994_s6 + $0x44] ss:$8 sps:$4 sm:$0xff]  }
  0x21   :  { %860 = vmatprep.subr.bf16.mxu1 %v2069_v51  ;;  %v2037_v51 = vld [vmem:[%s2990_s4 + $0x2f4] ss:$8 sps:$4 sm:$0xff]  }
  0x23   :  { %906 = vmatpush1.bf16.msra.mxu0 %v1964_v20  ;;  %v2008_v20 = vld [vmem:[%s2990_s4 + $0x270] ss:$8 sps:$4 sm:$0xff]  }
  0x24   :  { %907 = vmatprep.subr.bf16.mxu0 %v1965_v21  ;;  %861 = vmatpush1.bf16.msra.mxu1 %v2071_v55  ;;  %v2013_v21 = vld [vmem:[%s2990_s4 + $0x284] ss:$8 sps:$4 sm:$0xff]   ;;  %v2035_v55 = vld [vmem:[%s2990_s4 + $0x2f0] ss:$8 sps:$4 sm:$0xff]  }
  0x25   :  { %862 = vmatprep.subr.bf16.mxu1 %v2075_v56 }
  0x27   :  { %908 = vmatpush1.bf16.msra.mxu0 %v1967_v22  ;;  %v2113_v22 = vld [vmem:[%s2990_s4 + $0xd0] ss:$8 sps:$4 sm:$0xff]  }
  0x28   :  { %909 = vmatprep.subr.bf16.mxu0 %v1968_v23  ;;  %863 = vmatpush1.bf16.msra.mxu1 %v2077_v59  ;;  %v2117_v23 = vld [vmem:[%s2990_s4 + $0xe4] ss:$8 sps:$4 sm:$0xff]   ;;  %v64_v59 = vpack.c.bf16 %v2441_v43, %v2441_v43  ;;  %v2152_v43 = vld [vmem:[%s2994_s6 + $0x60] ss:$8 sps:$4 sm:$0xff]  }
  0x29   :  { %864 = vmatprep.subr.bf16.mxu1 %v2081_v60  ;;  %v2154_v60 = vld [vmem:[%s2994_s6 + $0x64] ss:$8 sps:$4 sm:$0xff]  }
  0x2b   :  { %910 = vmatpush1.bf16.msra.mxu0 %v1970_v24  ;;  %v2011_v24 = vld [vmem:[%s2990_s4 + $0x280] ss:$8 sps:$4 sm:$0xff]  }
  0x2c   :  { %911 = vmatprep.subr.bf16.mxu0 %v1971_v25  ;;  %865 = vmatpush1.bf16.msra.mxu1 %v2083_v63  ;;  %v2016_v25 = vld [vmem:[%s2990_s4 + $0x294] ss:$8 sps:$4 sm:$0xff]  }
  0x2d   :  { %866 = vmatprep.subr.bf16.mxu1 %v2087_v0  ;;  %v2050_v63 = vld [vmem:[%s2990_s4 + $0x314] ss:$8 sps:$4 sm:$0xff]  }
  0x2e   :  { %v2157_v0 = vld [vmem:[%s2994_s6 + $0x74] ss:$8 sps:$4 sm:$0xff]  }
  0x2f   :  { %912 = vmatpush1.bf16.msra.mxu0 %v1973_v28  ;;  %v2014_v28 = vld [vmem:[%s2990_s4 + $0x290] ss:$8 sps:$4 sm:$0xff]  }
  0x30   :  { %913 = vmatprep.subr.bf16.mxu0 %v1974_v29  ;;  %867 = vmatpush1.bf16.msra.mxu1 %v2089_v3  ;;  %v2019_v29 = vld [vmem:[%s2990_s4 + $0x2a4] ss:$8 sps:$4 sm:$0xff]   ;;  %v2155_v3 = vld [vmem:[%s2994_s6 + $0x70] ss:$8 sps:$4 sm:$0xff]  }
  0x31   :  { %868 = vmatprep.subr.bf16.mxu1 %v2093_v4  ;;  %v2160_v4 = vld [vmem:[%s2994_s6 + $0x84] ss:$8 sps:$4 sm:$0xff]  }
  0x33   :  { %914 = vmatpush1.bf16.msra.mxu0 %v1976_v32  ;;  %v2017_v32 = vld [vmem:[%s2990_s4 + $0x2a0] ss:$8 sps:$4 sm:$0xff]  }
  0x34   :  { %915 = vmatprep.subr.bf16.mxu0 %v1977_v33  ;;  %869 = vmatpush1.bf16.msra.mxu1 %v2095_v7  ;;  %v2022_v33 = vld [vmem:[%s2990_s4 + $0x2b4] ss:$8 sps:$4 sm:$0xff]   ;;  %v2158_v7 = vld [vmem:[%s2994_s6 + $0x80] ss:$8 sps:$4 sm:$0xff]  }
  0x35   :  { %870 = vmatprep.subr.bf16.mxu1 %v2099_v8  ;;  %v2163_v8 = vld [vmem:[%s2994_s6 + $0x94] ss:$8 sps:$4 sm:$0xff]  }
  0x37   :  { %916 = vmatpush1.bf16.msra.mxu0 %v1979_v37  ;;  %v2020_v37 = vld [vmem:[%s2990_s4 + $0x2b0] ss:$8 sps:$4 sm:$0xff]  }
  0x38   :  { %917 = vmatprep.subr.bf16.mxu0 %v1980_v38  ;;  %871 = vmatpush1.bf16.msra.mxu1 %v2101_v12  ;;  %v2025_v38 = vld [vmem:[%s2990_s4 + $0x2c4] ss:$8 sps:$4 sm:$0xff]  }
  0x39   :  { %872 = vmatprep.subr.bf16.mxu1 %v2105_v14  ;;  %v2166_v12 = vld [vmem:[%s2994_s6 + $0xa4] ss:$8 sps:$4 sm:$0xff]   ;;  %v2074_v14 = vld [vmem:[%s2990_s4 + $0x354] ss:$8 sps:$4 sm:$0xff]  }
  0x3b   :  { %918 = vmatpush1.bf16.msra.mxu0 %v1982_v41  ;;  %v2023_v41 = vld [vmem:[%s2990_s4 + $0x2c0] ss:$8 sps:$4 sm:$0xff]  }
  0x3c   :  { %919 = vmatprep.subr.bf16.mxu0 %v1983_v42  ;;  %873 = vmatpush1.bf16.msra.mxu1 %v2107_v18  ;;  %v2028_v42 = vld [vmem:[%s2990_s4 + $0x2d4] ss:$8 sps:$4 sm:$0xff]   ;;  %v2080_v18 = vld [vmem:[%s2990_s4 + $0x364] ss:$8 sps:$4 sm:$0xff]  }
  0x3d   :  { %874 = vmatprep.subr.bf16.mxu1 %v2111_v19  ;;  %v2167_v19 = vld [vmem:[%s2994_s6 + $0xb0] ss:$8 sps:$4 sm:$0xff]  }
  0x3f   :  { %920 = vmatpush1.bf16.msra.mxu0 %v1985_v46  ;;  %v2026_v46 = vld [vmem:[%s2990_s4 + $0x2d0] ss:$8 sps:$4 sm:$0xff]  }
  0x40   :  { %930 = vmatprep.subr.bf16.mxu0 %v1989_v48  ;;  %875 = vmatpush1.bf16.msra.mxu1 %v2113_v22  ;;  %v2143_v48 = vld [vmem:[%s2994_s6 + $0x30] ss:$8 sps:$4 sm:$0xff]   ;;  %v2086_v22 = vld [vmem:[%s2990_s4 + $0x374] ss:$8 sps:$4 sm:$0xff]  }
  0x41   :  { %876 = vmatprep.subr.bf16.mxu1 %v2117_v23  ;;  %v2170_v23 = vld [vmem:[%s2994_s6 + $0xc0] ss:$8 sps:$4 sm:$0xff]  }
  0x42   :  { %922 = vmatmul.mubr.bf16.vlgmr.msra.gmra.mrb[0].mxu0 %v62_v50  ;;  %v2029_v50 = vld [vmem:[%s2990_s4 + $0x2e0] ss:$8 sps:$4 sm:$0xff]  }
  0x43   :  { %931 = vmatpush1.bf16.msra.mxu0 %v1987_v52  ;;  %962 = vmatprep.mubr.bf16.mxu0 %v65_v53  ;;  %v2645_v52 = vld [vmem:[%s2995_s3] sm:$0xff] }
  0x44   :  { %932 = vmatprep.subr.bf16.mxu0 %v1992_v54  ;;  %877 = vmatpush1.bf16.msra.mxu1 %v2119_v26  ;;  %v2146_v53 = vld [vmem:[%s2994_s6 + $0x40] ss:$8 sps:$4 sm:$0xff]   ;;  %v2151_v54 = vld [vmem:[%s2994_s6 + $0x54] ss:$8 sps:$4 sm:$0xff]   ;;  %v58_v56 = vcombine.high %v2645_v52, %v2645_v52 }
  0x45   :  { %878 = vmatprep.subr.bf16.mxu1 %v2123_v27  ;;  %v2090_v26 = vld [vmem:[%s2990_s4 + $0x380] ss:$8 sps:$4 sm:$0xff]   ;;  %v2098_v27 = vld [vmem:[%s2990_s4 + $0x394] ss:$8 sps:$4 sm:$0xff]  }
  0x47   :  { %933 = vmatpush1.bf16.msra.mxu0 %v1990_v57  ;;  %v2044_v57 = vld [vmem:[%s2990_s4 + $0x304] ss:$8 sps:$4 sm:$0xff]  }
  0x48   :  { %934 = vmatprep.subr.bf16.mxu0 %v1995_v58  ;;  %879 = vmatpush1.bf16.msra.mxu1 %v2125_v30  ;;  %v2149_v58 = vld [vmem:[%s2994_s6 + $0x50] ss:$8 sps:$4 sm:$0xff]   ;;  %v2102_v30 = vld [vmem:[%s2990_s4 + $0x3a0] ss:$8 sps:$4 sm:$0xff]  }
  0x49   :  { %1220 = vmatprep.subr.bf16.mxu1 %v2136_v31  ;;  %v2110_v31 = vld [vmem:[%s2990_s4 + $0x3b4] ss:$8 sps:$4 sm:$0xff]  }
  0x4b   :  { %935 = vmatpush1.bf16.msra.mxu0 %v1993_v61  ;;  %881 = vmatmul.mubr.bf16.vlgmr.msra.gmra.mrb[0].mxu1 %v60_v34  ;;  %v2042_v61 = vld [vmem:[%s2990_s4 + $0x300] ss:$8 sps:$4 sm:$0xff]  }
  0x4c   :  { %936 = vmatprep.subr.bf16.mxu0 %v1998_v62  ;;  %1221 = vmatpush1.bf16.msra.mxu1 %v2134_v35  ;;  %v67_v62 = vpack.c.bf16 %v58_v56, %v58_v56  ;;  %v2114_v34 = vld [vmem:[%s2990_s4 + $0x3c0] ss:$8 sps:$4 sm:$0xff]   ;;  %v2122_v35 = vld [vmem:[%s2990_s4 + $0x3d4] ss:$8 sps:$4 sm:$0xff]  }
  0x4d   :  { %1222 = vmatprep.subr.bf16.mxu1 %v2139_v36  ;;  %v2120_v36 = vld [vmem:[%s2990_s4 + $0x3d0] ss:$8 sps:$4 sm:$0xff]  }
  0x4f   :  { %937 = vmatpush1.bf16.msra.mxu0 %v1996_v1  ;;  %v2048_v1 = vld [vmem:[%s2990_s4 + $0x310] ss:$8 sps:$4 sm:$0xff]  }
  0x50   :  { %938 = vmatprep.subr.bf16.mxu0 %v2001_v2  ;;  %1223 = vmatpush1.bf16.msra.mxu1 %v2137_v39  ;;  %v2056_v2 = vld [vmem:[%s2990_s4 + $0x324] ss:$8 sps:$4 sm:$0xff]   ;;  %v2132_v39 = vld [vmem:[%s2990_s4 + $0x3f4] ss:$8 sps:$4 sm:$0xff]  }
  0x51   :  { %1224 = vmatprep.subr.bf16.mxu1 %v2142_v40  ;;  %v2130_v40 = vld [vmem:[%s2990_s4 + $0x3f0] ss:$8 sps:$4 sm:$0xff]  }
  0x53   :  { %939 = vmatpush1.bf16.msra.mxu0 %v1999_v5  ;;  %v2054_v5 = vld [vmem:[%s2990_s4 + $0x320] ss:$8 sps:$4 sm:$0xff]  }
  0x54   :  { %940 = vmatprep.subr.bf16.mxu0 %v2004_v6  ;;  %1225 = vmatpush1.bf16.msra.mxu1 %v2140_v44  ;;  %v2062_v6 = vld [vmem:[%s2990_s4 + $0x334] ss:$8 sps:$4 sm:$0xff]  }
  0x55   :  { %1226 = vmatprep.subr.bf16.mxu1 %v2145_v45  ;;  %v2175_v44 = vld [vmem:[%s2994_s6 + $0xd4] ss:$8 sps:$4 sm:$0xff]   ;;  %v2178_v45 = vld [vmem:[%s2994_s6 + $0xe4] ss:$8 sps:$4 sm:$0xff]  }
  0x57   :  { %941 = vmatpush1.bf16.msra.mxu0 %v2002_v9  ;;  %v2060_v9 = vld [vmem:[%s2990_s4 + $0x330] ss:$8 sps:$4 sm:$0xff]  }
  0x58   :  { %942 = vmatprep.subr.bf16.mxu0 %v2007_v10  ;;  %1227 = vmatpush1.bf16.msra.mxu1 %v2143_v48  ;;  %v2068_v10 = vld [vmem:[%s2990_s4 + $0x344] ss:$8 sps:$4 sm:$0xff]   ;;  %v2179_v48 = vld [vmem:[%s2994_s6 + $0xf0] ss:$8 sps:$4 sm:$0xff]  }
  0x59   :  { %1228 = vmatprep.subr.bf16.mxu1 %v2148_v49  ;;  %v2184_v49 = vld [vmem:[%s2996_s8 + $0x4] ss:$8 sps:$4 sm:$0xff]  }
  0x5b   :  { %943 = vmatpush1.bf16.msra.mxu0 %v2005_v15  ;;  %v2164_v15 = vld [vmem:[%s2994_s6 + $0xa0] ss:$8 sps:$4 sm:$0xff]  }
  0x5c   :  { %944 = vmatprep.subr.bf16.mxu0 %v2010_v17  ;;  %1229 = vmatpush1.bf16.msra.mxu1 %v2146_v53  ;;  %v2072_v17 = vld [vmem:[%s2990_s4 + $0x350] ss:$8 sps:$4 sm:$0xff]  }
  0x5d   :  { %1230 = vmatprep.subr.bf16.mxu1 %v2151_v54  ;;  %v198_v54 = vlaneseq }
  0x5f   :  { %945 = vmatpush1.bf16.msra.mxu0 %v2008_v20  ;;  %v2172_v20 = vld [vmem:[%s2994_s6 + $0xc4] ss:$8 sps:$4 sm:$0xff]  }
  0x60   :  { %946 = vmatprep.subr.bf16.mxu0 %v2013_v21  ;;  %1231 = vmatpush1.bf16.msra.mxu1 %v2149_v58  ;;  %v2078_v21 = vld [vmem:[%s2990_s4 + $0x360] ss:$8 sps:$4 sm:$0xff]  }
  0x61   :  { %1232 = vmatprep.subr.bf16.mxu1 %v2154_v60 }
  0x63   :  { %947 = vmatpush1.bf16.msra.mxu0 %v2011_v24  ;;  %v2084_v24 = vld [vmem:[%s2990_s4 + $0x370] ss:$8 sps:$4 sm:$0xff]  }
  0x64   :  { %948 = vmatprep.subr.bf16.mxu0 %v2016_v25  ;;  %1233 = vmatpush1.bf16.msra.mxu1 %v2152_v43  ;;  %v2092_v25 = vld [vmem:[%s2990_s4 + $0x384] ss:$8 sps:$4 sm:$0xff]  }
  0x65   :  { %1234 = vmatprep.subr.bf16.mxu1 %v2157_v0 }
  0x67   :  { %949 = vmatpush1.bf16.msra.mxu0 %v2014_v28  ;;  %v2096_v28 = vld [vmem:[%s2990_s4 + $0x390] ss:$8 sps:$4 sm:$0xff]  }
  0x68   :  { %950 = vmatprep.subr.bf16.mxu0 %v2019_v29  ;;  %1235 = vmatpush1.bf16.msra.mxu1 %v2155_v3  ;;  %v2104_v29 = vld [vmem:[%s2990_s4 + $0x3a4] ss:$8 sps:$4 sm:$0xff]  }
  0x69   :  { %1236 = vmatprep.subr.bf16.mxu1 %v2160_v4 }
  0x6b   :  { %951 = vmatpush1.bf16.msra.mxu0 %v2017_v32  ;;  %v2108_v32 = vld [vmem:[%s2990_s4 + $0x3b0] ss:$8 sps:$4 sm:$0xff]  }
  0x6c   :  { %952 = vmatprep.subr.bf16.mxu0 %v2022_v33  ;;  %1237 = vmatpush1.bf16.msra.mxu1 %v2158_v7  ;;  %v2116_v33 = vld [vmem:[%s2990_s4 + $0x3c4] ss:$8 sps:$4 sm:$0xff]   ;;  %v2182_v7 = vld [vmem:[%s2996_s8] ss:$8 sps:$4 sm:$0xff]  }
  0x6d   :  { %1238 = vmatprep.subr.bf16.mxu1 %v2163_v8 }
  0x6f   :  { %953 = vmatpush1.bf16.msra.mxu0 %v2020_v37  ;;  %v2128_v37 = vld [vmem:[%s2990_s4 + $0x3e4] ss:$8 sps:$4 sm:$0xff]  }
  0x70   :  { %954 = vmatprep.subr.bf16.mxu0 %v2025_v38  ;;  %1239 = vmatpush1.bf16.msra.mxu1 %v2161_v11  ;;  %v2126_v38 = vld [vmem:[%s2990_s4 + $0x3e0] ss:$8 sps:$4 sm:$0xff]   ;;  %v2190_v11 = vld [vmem:[%s2996_s8 + $0x24] ss:$8 sps:$4 sm:$0xff]  }
  0x71   :  { %1240 = vmatprep.subr.bf16.mxu1 %v2166_v12  ;;  %v2188_v12 = vld [vmem:[%s2996_s8 + $0x20] ss:$8 sps:$4 sm:$0xff]  }
  0x73   :  { %955 = vmatpush1.bf16.msra.mxu0 %v2023_v41  ;;  %v66_v41 = vpack.c.bf16 %v2645_v52, %v2645_v52 }
  0x74   :  { %956 = vmatprep.subr.bf16.mxu0 %v2028_v42  ;;  %1241 = vmatpush1.bf16.msra.mxu1 %v2164_v15  ;;  %v2173_v42 = vld [vmem:[%s2994_s6 + $0xd0] ss:$8 sps:$4 sm:$0xff]   ;;  %v2196_v15 = vld [vmem:[%s2996_s8 + $0x44] ss:$8 sps:$4 sm:$0xff]  }
  0x75   :  { %1242 = vmatprep.subr.bf16.mxu1 %v2169_v16  ;;  %v2194_v16 = vld [vmem:[%s2996_s8 + $0x40] ss:$8 sps:$4 sm:$0xff]  }
  0x77   :  { %957 = vmatpush1.bf16.msra.mxu0 %v2026_v46  ;;  %v2176_v46 = vld [vmem:[%s2994_s6 + $0xe0] ss:$8 sps:$4 sm:$0xff]  }
  0x78   :  { %958 = vmatprep.subr.bf16.mxu0 %v2031_v47  ;;  %1243 = vmatpush1.bf16.msra.mxu1 %v2167_v19  ;;  %v2181_v47 = vld [vmem:[%s2994_s6 + $0xf4] ss:$8 sps:$4 sm:$0xff]   ;;  %v2202_v19 = vld [vmem:[%s2996_s8 + $0x64] ss:$8 sps:$4 sm:$0xff]  }
  0x79   :  { %1244 = vmatprep.subr.bf16.mxu1 %v2172_v20  ;;  %v2200_v20 = vld [vmem:[%s2996_s8 + $0x60] ss:$8 sps:$4 sm:$0xff]  }
  0x7b   :  { %959 = vmatpush1.bf16.msra.mxu0 %v2029_v50 }
  0x7c   :  { %960 = vmatprep.subr.bf16.mxu0 %v2037_v51  ;;  %1245 = vmatpush1.bf16.msra.mxu1 %v2170_v23  ;;  %v2208_v23 = vld [vmem:[%s2996_s8 + $0x84] ss:$8 sps:$4 sm:$0xff]  }
  0x7d   :  { %1246 = vmatprep.subr.bf16.mxu1 %v2175_v44 }
  0x7f   :  { %961 = vmatpush1.bf16.msra.mxu0 %v2035_v55  ;;  %v199_v55 = vshrl.u32 %v198_v54, 7 }
  0x80   :  { %971 = vmatprep.subr.bf16.mxu0 %v2044_v57  ;;  %1247 = vmatpush1.bf16.msra.mxu1 %v2173_v42  ;;  %v196_v57 = vld [vmem:[%s2997_s5] sm:$0x3] }
  0x81   :  { %1248 = vmatprep.subr.bf16.mxu1 %v2178_v45  ;;  %v2824_v56 = vsub.s32 0, %v199_v55  ;;  %v2829_v58 = vsub.s32 1, %v199_v55  ;;  %v2232_v55 = vld [vmem:[%s2998_s10 + $0x48] sm:$0xff]  }
  0x82   :  { %963 = vmatmul.mubr.bf16.vlgmr.msra.gmra.mrb[0].mxu0 %v64_v59 }
  0x83   :  { %972 = vmatpush1.bf16.msra.mxu0 %v2042_v61  ;;  %1003 = vmatprep.mubr.bf16.mxu0 %v67_v62  ;;  %v201_v59 = vrot.slane %v196_v57, %v2824_v56  ;;  %v205_v60 = vrot.slane %v196_v57, %v2829_v58  ;;  %v2233_v57 = vld [vmem:[%s2998_s10 + $0x8] sm:$0xff]  }
  0x84   :  { %973 = vmatprep.subr.bf16.mxu0 %v2050_v63  ;;  %1249 = vmatpush1.bf16.msra.mxu1 %v2176_v46 }
  0x85   :  { %1250 = vmatprep.subr.bf16.mxu1 %v2181_v47 }
  0x87   :  { %974 = vmatpush1.bf16.msra.mxu0 %v2048_v1 }
  0x88   :  { %975 = vmatprep.subr.bf16.mxu0 %v2056_v2  ;;  %1251 = vmatpush1.bf16.msra.mxu1 %v2179_v48 }
  0x89   :  { %1469 = vmatprep.subr.bf16.mxu1 %v2184_v49 }
  0x8b   :  { %976 = vmatpush1.bf16.msra.mxu0 %v2054_v5 }
  0x8c   :  { %977 = vmatprep.subr.bf16.mxu0 %v2062_v6 }
  0x8f   :  { %978 = vmatpush1.bf16.msra.mxu0 %v2060_v9  ;;  %v2187_v9 = vld [vmem:[%s2996_s8 + $0x14] ss:$8 sps:$4 sm:$0xff]  }
  0x90   :  { %979 = vmatprep.subr.bf16.mxu0 %v2068_v10  ;;  %v2185_v10 = vld [vmem:[%s2996_s8 + $0x10] ss:$8 sps:$4 sm:$0xff]  }
  0x93   :  { %980 = vmatpush1.bf16.msra.mxu0 %v2066_v13  ;;  %v2193_v13 = vld [vmem:[%s2996_s8 + $0x34] ss:$8 sps:$4 sm:$0xff]  }
  0x94   :  { %981 = vmatprep.subr.bf16.mxu0 %v2074_v14  ;;  %v2191_v14 = vld [vmem:[%s2996_s8 + $0x30] ss:$8 sps:$4 sm:$0xff]  }
  0x97   :  { %982 = vmatpush1.bf16.msra.mxu0 %v2072_v17  ;;  %v2199_v17 = vld [vmem:[%s2996_s8 + $0x54] ss:$8 sps:$4 sm:$0xff]  }
  0x98   :  { %983 = vmatprep.subr.bf16.mxu0 %v2080_v18  ;;  %v2197_v18 = vld [vmem:[%s2996_s8 + $0x50] ss:$8 sps:$4 sm:$0xff]  }
  0x9b   :  { %984 = vmatpush1.bf16.msra.mxu0 %v2078_v21  ;;  %v2205_v21 = vld [vmem:[%s2996_s8 + $0x74] ss:$8 sps:$4 sm:$0xff]  }
  0x9c   :  { %985 = vmatprep.subr.bf16.mxu0 %v2086_v22  ;;  %v2203_v22 = vld [vmem:[%s2996_s8 + $0x70] ss:$8 sps:$4 sm:$0xff]  }
  0x9f   :  { %986 = vmatpush1.bf16.msra.mxu0 %v2084_v24  ;;  %v2206_v24 = vld [vmem:[%s2996_s8 + $0x80] ss:$8 sps:$4 sm:$0xff]  }
  0xa0   :  { %987 = vmatprep.subr.bf16.mxu0 %v2092_v25  ;;  %v2211_v25 = vld [vmem:[%s2996_s8 + $0x94] ss:$8 sps:$4 sm:$0xff]  }
  0xa3   :  { %988 = vmatpush1.bf16.msra.mxu0 %v2090_v26  ;;  %v2209_v26 = vld [vmem:[%s2996_s8 + $0x90] ss:$8 sps:$4 sm:$0xff]  }
  0xa4   :  { %989 = vmatprep.subr.bf16.mxu0 %v2098_v27  ;;  %v2214_v27 = vld [vmem:[%s2996_s8 + $0xa4] ss:$8 sps:$4 sm:$0xff]  }
  0xa7   :  { %990 = vmatpush1.bf16.msra.mxu0 %v2096_v28  ;;  %v2212_v28 = vld [vmem:[%s2996_s8 + $0xa0] ss:$8 sps:$4 sm:$0xff]  }
  0xa8   :  { %991 = vmatprep.subr.bf16.mxu0 %v2104_v29  ;;  %v2217_v29 = vld [vmem:[%s2996_s8 + $0xb4] ss:$8 sps:$4 sm:$0xff]  }
  0xab   :  { %992 = vmatpush1.bf16.msra.mxu0 %v2102_v30  ;;  %v2215_v30 = vld [vmem:[%s2996_s8 + $0xb0] ss:$8 sps:$4 sm:$0xff]  }
  0xac   :  { %993 = vmatprep.subr.bf16.mxu0 %v2110_v31  ;;  %v2220_v31 = vld [vmem:[%s2996_s8 + $0xc4] ss:$8 sps:$4 sm:$0xff]  }
  0xaf   :  { %994 = vmatpush1.bf16.msra.mxu0 %v2108_v32  ;;  %v2218_v32 = vld [vmem:[%s2996_s8 + $0xc0] ss:$8 sps:$4 sm:$0xff]  }
  0xb0   :  { %995 = vmatprep.subr.bf16.mxu0 %v2116_v33  ;;  %v2223_v33 = vld [vmem:[%s2996_s8 + $0xd4] ss:$8 sps:$4 sm:$0xff]  }
  0xb3   :  { %996 = vmatpush1.bf16.msra.mxu0 %v2114_v34  ;;  %v2221_v34 = vld [vmem:[%s2996_s8 + $0xd0] ss:$8 sps:$4 sm:$0xff]  }
  0xb4   :  { %997 = vmatprep.subr.bf16.mxu0 %v2122_v35  ;;  %v2226_v35 = vld [vmem:[%s2996_s8 + $0xe4] ss:$8 sps:$4 sm:$0xff]  }
  0xb7   :  { %998 = vmatpush1.bf16.msra.mxu0 %v2120_v36  ;;  %v2224_v36 = vld [vmem:[%s2996_s8 + $0xe0] ss:$8 sps:$4 sm:$0xff]  }
  0xb8   :  { %999 = vmatprep.subr.bf16.mxu0 %v2128_v37  ;;  %v2229_v37 = vld [vmem:[%s2996_s8 + $0xf4] ss:$8 sps:$4 sm:$0xff]  }
  0xbb   :  { %1000 = vmatpush1.bf16.msra.mxu0 %v2126_v38  ;;  %v2227_v38 = vld [vmem:[%s2996_s8 + $0xf0] ss:$8 sps:$4 sm:$0xff]  }
  0xbc   :  { %1001 = vmatprep.subr.bf16.mxu0 %v2132_v39  ;;  %v2230_v39 = vld [vmem:[%s2998_s10 + $0x40] sm:$0xff]  }
  0xbf   :  { %1002 = vmatpush1.bf16.msra.mxu0 %v2130_v40  ;;  %v1048_v40 = vld [vmem:[%s2999_s7] sm:$0x3] }
  0xc0   :  { %v1057_v42 = vrot.slane %v1048_v40, %v2829_v58 }
  0xc2   :  { %1004 = vmatmul.mubr.bf16.vlgmr.msra.gmra.mrb[0].mxu0 %v66_v41  ;;  %v1053_v41 = vrot.slane %v1048_v40, %v2824_v56 }
 0x11e   :  { %v882_v50 = vpop.f32.mrb[0].mxu1 }
 0x11f   :  { %v884_v51 = vpop.f32.mrb[1].mxu1  ;;  %v883_v61 = vadd.f32 %v882_v50, %v201_v59  ;;  %v2234_v59 = vld [vmem:[%s2998_s10 + $0x50] sm:$0xff]  }
 0x120   :  { %v886_v52 = vpop.f32.mrb[2].mxu1  ;;  %v885_v62 = vadd.f32 %v884_v51, %v205_v60  ;;  %v2235_v60 = vld [vmem:[%s2998_s10 + $0x10] sm:$0xff]  }
 0x121   :  { %v887_v53 = vpop.f32.mrb[3].mxu1 }
 0x122   :  { %v2231_v53 = vld [vmem:[%s2998_s10] sm:$0xff]  }
 0x195   :  { %v1005_v63 = vpop.f32.mrb[0].mxu0 }
 0x196   :  { %v1927_v43 = vadd.f32 %v1005_v63, %v883_v61  ;;  %v1007_v0 = vpop.f32.mrb[1].mxu0  ;;  %v2236_v61 = vld [vmem:[%s2998_s10 + $0x58] sm:$0xff]   ;;  %v2238_v63 = vld [vmem:[%s2998_s10 + $0x60] sm:$0xff]  }
 0x197   :  { %v1929_v1 = vadd.f32 %v1007_v0, %v885_v62  ;;  %v1009_v2 = vpop.f32.mrb[2].mxu0  ;;  %v2237_v62 = vld [vmem:[%s2998_s10 + $0x18] sm:$0xff]   ;;  %v2240_v0 = vld [vmem:[%s2998_s10 + $0x68] sm:$0xff]  }
 0x198   :  { %v1012_v3 = vmax.f32 %v1927_v43, 0.0  ;;  %v1010_v4 = vpop.f32.mrb[3].mxu0  ;;  %v2239_v43 = vld [vmem:[%s2998_s10 + $0x20] sm:$0xff]   ;;  %v2242_v2 = vld [vmem:[%s2998_s10 + $0x70] sm:$0xff]  }
 0x199   :  { %v1013_v5 = vmax.f32 %v1929_v1, 0.0  ;;  %v2241_v1 = vld [vmem:[%s2998_s10 + $0x28] sm:$0xff]   ;;  %v2244_v4 = vld [vmem:[%s2998_s10 + $0x78] sm:$0xff]  }
 0x19a   :  { %v1014_v8 = vpack.c.bf16 %v1012_v3, %v1012_v3  ;;  %v2243_v3 = vld [vmem:[%s2998_s10 + $0x30] sm:$0xff]  }
 0x19b   :  { %v1015_v6 = vpack.c.bf16 %v1013_v5, %v1013_v5  ;;  %v2245_v5 = vld [vmem:[%s2998_s10 + $0x38] sm:$0xff]  }
 0x19d   :  { %1252 = vmatprep.mubr.bf16.mxu1 %v1015_v6  ;;  %v1297_v6 = vld [vmem:[%s3000_s9] sm:$0x3] }
 0x19e   :  { %1253 = vmatmul.mubr.bf16.vlgmr.msra.gmra.mrb[4].mxu1 %v1014_v8  ;;  %v1306_v8 = vrot.slane %v1297_v6, %v2829_v58 }
 0x19f   :  { %1470 = vmatpush1.bf16.msra.mxu1 %v2182_v7  ;;  %v1302_v7 = vrot.slane %v1297_v6, %v2824_v56 }
 0x1a0   :  { %1471 = vmatprep.subr.bf16.mxu1 %v2187_v9 }
 0x1a3   :  { %1472 = vmatpush1.bf16.msra.mxu1 %v2185_v10 }
 0x1a4   :  { %1473 = vmatprep.subr.bf16.mxu1 %v2190_v11 }
 0x1a7   :  { %1474 = vmatpush1.bf16.msra.mxu1 %v2188_v12 }
 0x1a8   :  { %1475 = vmatprep.subr.bf16.mxu1 %v2193_v13 }
 0x1ab   :  { %1476 = vmatpush1.bf16.msra.mxu1 %v2191_v14 }
 0x1ac   :  { %1477 = vmatprep.subr.bf16.mxu1 %v2196_v15 }
 0x1af   :  { %1478 = vmatpush1.bf16.msra.mxu1 %v2194_v16 }
 0x1b0   :  { %1479 = vmatprep.subr.bf16.mxu1 %v2199_v17 }
 0x1b3   :  { %1480 = vmatpush1.bf16.msra.mxu1 %v2197_v18 }
 0x1b4   :  { %1481 = vmatprep.subr.bf16.mxu1 %v2202_v19  ;;  %v17_v19 = vstv %s3001_s11 }
 0x1b5   :  { %18 = vst [vmem:[#allocation2] sm:$0x1] %v17_v19 }
 0x1b7   :  { %1482 = vmatpush1.bf16.msra.mxu1 %v2200_v20 }
 0x1b8   :  { %1483 = vmatprep.subr.bf16.mxu1 %v2205_v21 }
 0x1bb   :  { %1484 = vmatpush1.bf16.msra.mxu1 %v2203_v22 }
 0x1bc   :  { %1485 = vmatprep.subr.bf16.mxu1 %v2208_v23  ;;  %v1887_v20 = vld [vmem:[#allocation2] ss:$0 sm:$0xff] }
 0x1bf   :  { %1486 = vmatpush1.bf16.msra.mxu1 %v2206_v24 }
 0x1c0   :  { %1487 = vmatprep.subr.bf16.mxu1 %v2211_v25 }
 0x1c3   :  { %1488 = vmatpush1.bf16.msra.mxu1 %v2209_v26 }
 0x1c4   :  { %1489 = vmatprep.subr.bf16.mxu1 %v2214_v27 }
 0x1c7   :  { %1490 = vmatpush1.bf16.msra.mxu1 %v2212_v28 }
 0x1c8   :  { %1491 = vmatprep.subr.bf16.mxu1 %v2217_v29 }
 0x1cb   :  { %1492 = vmatpush1.bf16.msra.mxu1 %v2215_v30 }
 0x1cc   :  { %1493 = vmatprep.subr.bf16.mxu1 %v2220_v31 }
 0x1cf   :  { %1494 = vmatpush1.bf16.msra.mxu1 %v2218_v32 }
 0x1d0   :  { %1495 = vmatprep.subr.bf16.mxu1 %v2223_v33 }
 0x1d3   :  { %1496 = vmatpush1.bf16.msra.mxu1 %v2221_v34 }
 0x1d4   :  { %1497 = vmatprep.subr.bf16.mxu1 %v2226_v35 }
 0x1d7   :  { %1498 = vmatpush1.bf16.msra.mxu1 %v2224_v36 }
 0x1d8   :  { %1499 = vmatprep.subr.bf16.mxu1 %v2229_v37 }
 0x1db   :  { %1500 = vmatpush1.bf16.msra.mxu1 %v2227_v38 }
 0x1dc   :  { %1904 = vmatprep.subr.bf16.mxu1 %v2230_v39 }
 0x271   :  { %v1254_v44 = vpop.f32.mrb[4].mxu1 }
 0x272   :  { %v1255_v45 = vadd.f32 %v1254_v44, %v1053_v41  ;;  %v1256_v46 = vpop.f32.mrb[5].mxu1 }
 0x273   :  { %v1257_v47 = vadd.f32 %v1256_v46, %v1057_v42  ;;  %v1258_v48 = vpop.f32.mrb[6].mxu1 }
 0x274   :  { %v1261_v49 = vmax.f32 %v1255_v45, 0.0  ;;  %v1259_v50 = vpop.f32.mrb[7].mxu1 }
 0x275   :  { %v1262_v51 = vmax.f32 %v1257_v47, 0.0 }
 0x276   :  { %v1263_v54 = vpack.c.bf16 %v1261_v49, %v1261_v49 }
 0x277   :  { %v1264_v52 = vpack.c.bf16 %v1262_v51, %v1262_v51 }
 0x279   :  { %1501 = vmatprep.mubr.bf16.mxu1 %v1264_v52 }
 0x27a   :  { %1502 = vmatmul.mubr.bf16.vlgmr.msra.gmra.mrb[8].mxu1 %v1263_v54 }
 0x27b   :  { %1905 = vmatpush3.bf16.msra.mxu1 %v2231_v53 }
 0x27c   :  { %1906 = vmatprep.subr.bf16.mxu1 %v2232_v55 }
 0x27f   :  { %1907 = vmatpush3.bf16.msra.mxu1 %v2233_v57 }
 0x280   :  { %1908 = vmatprep.subr.bf16.mxu1 %v2234_v59 }
 0x283   :  { %1909 = vmatpush3.bf16.msra.mxu1 %v2235_v60 }
 0x284   :  { %1910 = vmatprep.subr.bf16.mxu1 %v2236_v61 }
 0x287   :  { %1911 = vmatpush3.bf16.msra.mxu1 %v2237_v62 }
 0x288   :  { %1912 = vmatprep.subr.bf16.mxu1 %v2238_v63 }
 0x28b   :  { %1913 = vmatpush3.bf16.msra.mxu1 %v2239_v43 }
 0x28c   :  { %1914 = vmatprep.subr.bf16.mxu1 %v2240_v0 }
 0x28f   :  { %1915 = vmatpush3.bf16.msra.mxu1 %v2241_v1 }
 0x290   :  { %1916 = vmatprep.subr.bf16.mxu1 %v2242_v2 }
 0x293   :  { %1917 = vmatpush3.bf16.msra.mxu1 %v2243_v3 }
 0x294   :  { %1918 = vmatprep.subr.bf16.mxu1 %v2244_v4 }
 0x297   :  { %1919 = vmatpush3.bf16.msra.mxu1 %v2245_v5 }
 0x34d   :  { %v1503_v9 = vpop.f32.mrb[8].mxu1 }
 0x34e   :  { %v1504_v10 = vadd.f32 %v1503_v9, %v1302_v7  ;;  %v1505_v11 = vpop.f32.mrb[9].mxu1 }
 0x34f   :  { %v1506_v12 = vadd.f32 %v1505_v11, %v1306_v8  ;;  %v1507_v13 = vpop.f32.mrb[10].mxu1 }
 0x350   :  { %v1510_v14 = vmax.f32 %v1504_v10, 0.0  ;;  %v1508_v15 = vpop.f32.mrb[11].mxu1 }
 0x351   :  { %v1511_v16 = vmax.f32 %v1506_v12, 0.0 }
 0x352   :  { %v1512_v18 = vpack.c.bf16 %v1510_v14, %v1510_v14 }
 0x353   :  { %v1513_v17 = vpack.c.bf16 %v1511_v16, %v1511_v16 }
 0x355   :  { %1681 = vmatprep.mubr.bf16.mxu1 %v1513_v17 }
 0x356   :  { %1682 = vmatmul.mubr.bf16.vlgmr.msra.gmra.mrb[12].mxu1 %v1512_v18 }
 0x429   :  { %v1920_v56 = vpop.f32.mrb[12].mxu1 }
 0x42a   :  { %v1921_v58 = vpop.f32.mrb[13].mxu1 }
 0x42b   :  { %v1922_v21 = vadd.f32 %v1921_v58, %v1920_v56  ;;  %v1923_v22 = vpop.f32.mrb[14].mxu1 }
 0x42c   :  { %v1924_v23 = vpop.f32.mrb[15].mxu1 }
 0x42d   :  { %v1684_v24 = vadd.f32 %v1922_v21, %v1887_v20 }
 0x42f   :  { %1690 = vst.msk [vmem:[%s3002_s12] sm:$0xf] %vm1689_vm0, %v1684_v24 }

// kernel: net_gine_forward.5
= control target key start
LH: loop header
LB: loop body
LE: loop exit
PB: predicated region body
PF: predicated region fallthrough
CT: control target
= control target key end

     0   :  { %vm246_vm0 = vcmask 1043456   ;;  %vm197_vm1 = vcmask 64512   ;;  %vm835_vm2 = vcmask 523264   ;;  %s3256_s7 = inlined_call_operand.vmem [shape: bf16[8,128], index: 7, kind: input, shape index: {}]   ;;  %s3257_s2 = inlined_call_operand.vmem [shape: bf16[256,8], index: 2, kind: input, shape index: {}]   ;;  %s3258_s9 = inlined_call_operand.vmem [shape: bf16[128,128], index: 9, kind: input, shape index: {}]   ;;  %s3259_s1 = inlined_call_operand.vmem [shape: bf16[64,128], index: 1, kind: input, shape index: {}]   ;;  %s3260_s3 = inlined_call_operand.vmem [shape: bf16[256,64], index: 3, kind: input, shape index: {}]   ;;  %s3261_s8 = inlined_call_operand.vmem [shape: f32[1,128], index: 8, kind: input, shape index: {}]   ;;  %s3262_s4 = inlined_call_operand.vmem [shape: bf16[64,256], index: 4, kind: input, shape index: {}]   ;;  %s3263_s15 = inlined_call_operand.<no memory space> [shape: f32[1,1], index: 15, kind: input, shape index: {}]   ;;  %s3264_s11 = inlined_call_operand.vmem [shape: bf16[128,128], index: 11, kind: input, shape index: {}]   ;;  %s3265_s6 = inlined_call_operand.vmem [shape: f32[4,1], index: 6, kind: input, shape index: {}]   ;;  %s3266_s10 = inlined_call_operand.vmem [shape: f32[1,128], index: 10, kind: input, shape index: {}]   ;;  %s3267_s13 = inlined_call_operand.vmem [shape: bf16[128,256], index: 13, kind: input, shape index: {}]   ;;  %s3268_s0 = inlined_call_operand.vmem [shape: f32[64,128], index: 0, kind: input, shape index: {}]   ;;  %s3269_s12 = inlined_call_operand.vmem [shape: f32[1,128], index: 12, kind: input, shape index: {}]   ;;  %s3270_s14 = inlined_call_operand.vmem [shape: f32[1,256], index: 14, kind: input, shape index: {}]   ;;  %s3271_s16 = inlined_call_operand.vmem [shape: f32[1,256], index: 16, kind: input, shape index: {}]   ;;  %s3272_s17 = inlined_call_operand.vmem [shape: f32[1,256], index: 17, kind: input, shape index: {}]   ;;  %s3273_s18 = inlined_call_operand.vmem [shape: f32[64,256], index: 18, kind: output, shape index: {0}]   ;;  %s3274_s19 = inlined_call_operand.vmem [shape: bf16[64,256], index: 19, kind: output, shape index: {1}]   ;;  %s3275_s5 = inlined_call_operand.vmem [shape: bf16[4,64], index: 5, kind: input, shape index: {}]   ;;  %s3276_s20 = inlined_call_operand.vmem [shape: f32[4,256], index: 20, kind: output, shape index: {2}]  }
   0x1   :  { %3281 = sst [smem:[#allocation4_spill]] %s3256_s7  ;;  %v2680_v27 = vld [vmem:[%s3261_s8] ss:$0 sm:$0xff] }
   0x2   :  { %3282 = sst [smem:[#allocation5_spill]] %s3257_s2  ;;  %s3286_s23 = sld [smem:[#allocation4_spill]] }
   0x3   :  { %3283 = sst [smem:[#allocation6_spill]] %s3258_s9  ;;  %s3287_s25 = sld [smem:[#allocation5_spill]] }
   0x4   :  { %3284 = sst [smem:[#allocation7_spill]] %s3259_s1  ;;  %s3288_s1 = sld [smem:[#allocation6_spill]] }
   0x5   :  { %3285 = sst [smem:[#allocation8_spill]] %s3260_s3  ;;  %s3289_s2 = sld [smem:[#allocation7_spill]] }
   0x6   :  { %s3290_s3 = sld [smem:[#allocation8_spill]] }
   0x8   :  { %v109_v0 = vld [vmem:[%s3286_s23] sm:$0xf] }
   0x9   :  { %2382 = vmatprep.subr.msk.bf16.mxu0 %vm246_vm0, %v109_v0  ;;  %v248_v1 = vsel %vm246_vm0, %v109_v0, 0  ;;  %v2385_v2 = vld [vmem:[%s3287_s25] sm:$0xff]   ;;  %v2386_v3 = vld [vmem:[%s3287_s25 + $0x8] sm:$0xff]   ;;  %v2387_v4 = vld [vmem:[%s3287_s25 + $0x10] sm:$0xff]  }
   0xa   :  { %2173 = vmatpush3.bf16.msra.mxu0 %v248_v1  ;;  %2174 = vmatprep.mubr.msk.bf16.mxu0 %vm197_vm1, %v2385_v2  ;;  %v2388_v5 = vld [vmem:[%s3287_s25 + $0x18] sm:$0xff]   ;;  %v2389_v6 = vld [vmem:[%s3287_s25 + $0x20] sm:$0xff]   ;;  %v2390_v7 = vld [vmem:[%s3287_s25 + $0x28] sm:$0xff]  }
   0xb   :  { %v2391_v8 = vld [vmem:[%s3287_s25 + $0x30] sm:$0xff]   ;;  %v2401_v9 = vld [vmem:[%s3288_s1] sm:$0xff]   ;;  %v2402_v10 = vld [vmem:[%s3288_s1 + $0x8] sm:$0xff]  }
   0xc   :  { %2206 = vmatprep.subr.bf16.mxu1 %v2401_v9  ;;  %v2403_v11 = vld [vmem:[%s3288_s1 + $0x10] sm:$0xff]   ;;  %v2392_v12 = vld [vmem:[%s3287_s25 + $0x38] sm:$0xff]   ;;  %v2393_v14 = vld [vmem:[%s3287_s25 + $0x40] sm:$0xff]  }
   0xd   :  { %2175 = vmatmul.mubr.msk.bf16.vlgmr.msra.gmra.mrb[0].mxu0 %vm197_vm1, %v2386_v3  ;;  %2207 = vmatpush3.bf16.msra.mxu1 %v2401_v9  ;;  %v2404_v13 = vld [vmem:[%s3288_s1 + $0x18] sm:$0xff]   ;;  %v2405_v15 = vld [vmem:[%s3288_s1 + $0x20] sm:$0xff]   ;;  %v2394_v16 = vld [vmem:[%s3287_s25 + $0x48] sm:$0xff]  }
   0xe   :  { %2178 = vmatprep.mubr.msk.bf16.mxu0 %vm197_vm1, %v2387_v4  ;;  %2208 = vmatprep.subr.bf16.mxu1 %v2402_v10  ;;  %v2406_v17 = vld [vmem:[%s3288_s1 + $0x28] sm:$0xff]   ;;  %v2395_v18 = vld [vmem:[%s3287_s25 + $0x50] sm:$0xff]   ;;  %v2396_v19 = vld [vmem:[%s3287_s25 + $0x58] sm:$0xff]  }
   0xf   :  { %v2397_v20 = vld [vmem:[%s3287_s25 + $0x60] sm:$0xff]   ;;  %v2398_v21 = vld [vmem:[%s3287_s25 + $0x68] sm:$0xff]   ;;  %v2399_v22 = vld [vmem:[%s3287_s25 + $0x70] sm:$0xff]  }
  0x10   :  { %v2400_v23 = vld [vmem:[%s3287_s25 + $0x78] sm:$0xff]   ;;  %v2407_v24 = vld [vmem:[%s3288_s1 + $0x30] sm:$0xff]   ;;  %v2409_v26 = vld [vmem:[%s3289_s2] sm:$0xff]  }
  0x11   :  { %2209 = vmatpush3.bf16.msra.mxu1 %v2402_v10  ;;  %v2408_v25 = vld [vmem:[%s3288_s1 + $0x38] sm:$0xff]   ;;  %v2410_v45 = vld [vmem:[%s3289_s2 + $0x8] sm:$0xff]   ;;  %v2411_v53 = vld [vmem:[%s3289_s2 + $0x10] sm:$0xff]  }
  0x12   :  { %2210 = vmatprep.subr.bf16.mxu1 %v2403_v11  ;;  %v2412_v61 = vld [vmem:[%s3289_s2 + $0x18] sm:$0xff]  }
  0x15   :  { %2179 = vmatmul.mubr.msk.bf16.gmra.mrb[4].mxu0 %vm197_vm1, %v2388_v5  ;;  %2211 = vmatpush3.bf16.msra.mxu1 %v2403_v11 }
  0x16   :  { %2182 = vmatprep.mubr.msk.bf16.mxu0 %vm197_vm1, %v2389_v6  ;;  %2212 = vmatprep.subr.bf16.mxu1 %v2404_v13 }
  0x19   :  { %2213 = vmatpush3.bf16.msra.mxu1 %v2404_v13 }
  0x1a   :  { %2214 = vmatprep.subr.bf16.mxu1 %v2405_v15 }
  0x1d   :  { %2183 = vmatmul.mubr.msk.bf16.gmra.mrb[8].mxu0 %vm197_vm1, %v2390_v7  ;;  %2215 = vmatpush3.bf16.msra.mxu1 %v2405_v15 }
  0x1e   :  { %2186 = vmatprep.mubr.msk.bf16.mxu0 %vm197_vm1, %v2391_v8  ;;  %2216 = vmatprep.subr.bf16.mxu1 %v2406_v17 }
  0x21   :  { %2217 = vmatpush3.bf16.msra.mxu1 %v2406_v17 }
  0x22   :  { %2218 = vmatprep.subr.bf16.mxu1 %v2407_v24 }
  0x25   :  { %2187 = vmatmul.mubr.msk.bf16.gmra.mrb[12].mxu0 %vm197_vm1, %v2392_v12  ;;  %2219 = vmatpush3.bf16.msra.mxu1 %v2407_v24 }
  0x26   :  { %2190 = vmatprep.mubr.msk.bf16.mxu0 %vm197_vm1, %v2393_v14  ;;  %2220 = vmatprep.subr.bf16.mxu1 %v2408_v25 }
  0x29   :  { %2221 = vmatpush3.bf16.msra.mxu1 %v2408_v25 }
  0x2a   :  { %2254 = vmatprep.subr.bf16.mxu1 %v2409_v26 }
  0x2d   :  { %2191 = vmatmul.mubr.msk.bf16.gmra.mrb[16].mxu0 %vm197_vm1, %v2394_v16 }
  0x2e   :  { %2194 = vmatprep.mubr.msk.bf16.mxu0 %vm197_vm1, %v2395_v18 }
  0x35   :  { %2195 = vmatmul.mubr.msk.bf16.gmra.mrb[20].mxu0 %vm197_vm1, %v2396_v19 }
  0x36   :  { %2198 = vmatprep.mubr.msk.bf16.mxu0 %vm197_vm1, %v2397_v20 }
  0x3d   :  { %2199 = vmatmul.mubr.msk.bf16.gmra.mrb[24].mxu0 %vm197_vm1, %v2398_v21 }
  0x3e   :  { %2202 = vmatprep.mubr.msk.bf16.mxu0 %vm197_vm1, %v2399_v22 }
  0x45   :  { %2203 = vmatmul.mubr.msk.bf16.gmra.mrb[28].mxu0 %vm197_vm1, %v2400_v23 }
  0xe0   :  { %v2176_v28 = vpop.f32.mrb[0].mxu0 }
  0xe1   :  { %v293_v29 = vadd.f32 %v2176_v28, %v2680_v27  ;;  %v284_v30 = vpop.f32.mrb[1].mxu0 }
  0xe2   :  { %v285_v31 = vadd.f32 %v2680_v27, %v284_v30  ;;  %v2177_v32 = vpop.f32.mrb[2].mxu0 }
  0xe3   :  { %v296_v33 = vadd.f32 %v2177_v32, %v2680_v27  ;;  %v287_v34 = vpop.f32.mrb[3].mxu0  ;;  %v413_v36 = vmax.f32 %v293_v29, 0.0 }
  0xe4   :  { %v288_v35 = vadd.f32 %v2680_v27, %v287_v34  ;;  %v411_v38 = vmax.f32 %v285_v31, 0.0 }
  0xe5   :  { %v414_v37 = vmax.f32 %v296_v33, 0.0 }
  0xe6   :  { %v412_v39 = vmax.f32 %v288_v35, 0.0 }
  0xe7   :  { %v444_v40 = vpack.c.bf16 %v414_v37, %v413_v36 }
  0xe8   :  { %v2180_v41 = vpop.f32.mrb[4].mxu0  ;;  %v443_v42 = vpack.c.bf16 %v412_v39, %v411_v38 }
  0xe9   :  { %v309_v43 = vadd.f32 %v2180_v41, %v2680_v27  ;;  %v300_v44 = vpop.f32.mrb[5].mxu0 }
  0xea   :  { %v301_v46 = vadd.f32 %v2680_v27, %v300_v44  ;;  %v2181_v47 = vpop.f32.mrb[6].mxu0  ;;  %2222 = vmatprep.mubr.bf16.mxu1 %v443_v42 }
  0xeb   :  { %v312_v48 = vadd.f32 %v2181_v47, %v2680_v27  ;;  %v303_v49 = vpop.f32.mrb[7].mxu0  ;;  %2223 = vmatmul.mubr.bf16.vlgmr.msra.gmra.mrb[0].mxu1 %v444_v40  ;;  %v417_v51 = vmax.f32 %v309_v43, 0.0 }
  0xec   :  { %v304_v50 = vadd.f32 %v2680_v27, %v303_v49  ;;  %2255 = vmatpush3.bf16.msra.mxu1 %v2409_v26  ;;  %v415_v54 = vmax.f32 %v301_v46, 0.0 }
  0xed   :  { %v418_v52 = vmax.f32 %v312_v48, 0.0  ;;  %2256 = vmatprep.subr.bf16.mxu1 %v2410_v45 }
  0xee   :  { %v416_v55 = vmax.f32 %v304_v50, 0.0 }
  0xef   :  { %v446_v56 = vpack.c.bf16 %v418_v52, %v417_v51 }
  0xf0   :  { %v445_v57 = vpack.c.bf16 %v416_v55, %v415_v54  ;;  %v2184_v58 = vpop.f32.mrb[8].mxu0  ;;  %2257 = vmatpush3.bf16.msra.mxu1 %v2410_v45 }
  0xf1   :  { %v325_v59 = vadd.f32 %v2184_v58, %v2680_v27  ;;  %v316_v60 = vpop.f32.mrb[9].mxu0  ;;  %2258 = vmatprep.subr.bf16.mxu1 %v2411_v53 }
  0xf2   :  { %v317_v62 = vadd.f32 %v2680_v27, %v316_v60  ;;  %v2185_v63 = vpop.f32.mrb[10].mxu0  ;;  %2226 = vmatprep.mubr.bf16.mxu1 %v445_v57 }
  0xf3   :  { %v328_v0 = vadd.f32 %v2185_v63, %v2680_v27  ;;  %v319_v1 = vpop.f32.mrb[11].mxu0  ;;  %2227 = vmatmul.mubr.bf16.gmra.mrb[4].mxu1 %v446_v56  ;;  %v421_v3 = vmax.f32 %v325_v59, 0.0 }
  0xf4   :  { %v320_v2 = vadd.f32 %v2680_v27, %v319_v1  ;;  %2259 = vmatpush3.bf16.msra.mxu1 %v2411_v53  ;;  %v419_v5 = vmax.f32 %v317_v62, 0.0 }
  0xf5   :  { %v422_v4 = vmax.f32 %v328_v0, 0.0  ;;  %2260 = vmatprep.subr.bf16.mxu1 %v2412_v61 }
  0xf6   :  { %v420_v6 = vmax.f32 %v320_v2, 0.0 }
  0xf7   :  { %v448_v7 = vpack.c.bf16 %v422_v4, %v421_v3 }
  0xf8   :  { %v447_v8 = vpack.c.bf16 %v420_v6, %v419_v5  ;;  %v2188_v9 = vpop.f32.mrb[12].mxu0  ;;  %2261 = vmatpush3.bf16.msra.mxu1 %v2412_v61 }
  0xf9   :  { %v341_v10 = vadd.f32 %v2188_v9, %v2680_v27  ;;  %v332_v11 = vpop.f32.mrb[13].mxu0 }
  0xfa   :  { %v333_v12 = vadd.f32 %v2680_v27, %v332_v11  ;;  %v2189_v13 = vpop.f32.mrb[14].mxu0  ;;  %2230 = vmatprep.mubr.bf16.mxu1 %v447_v8 }
  0xfb   :  { %v344_v14 = vadd.f32 %v2189_v13, %v2680_v27  ;;  %v335_v15 = vpop.f32.mrb[15].mxu0  ;;  %2231 = vmatmul.mubr.bf16.gmra.mrb[8].mxu1 %v448_v7  ;;  %v425_v17 = vmax.f32 %v341_v10, 0.0 }
  0xfc   :  { %v336_v16 = vadd.f32 %v2680_v27, %v335_v15  ;;  %v423_v19 = vmax.f32 %v333_v12, 0.0 }
  0xfd   :  { %v426_v18 = vmax.f32 %v344_v14, 0.0 }
  0xfe   :  { %v424_v20 = vmax.f32 %v336_v16, 0.0  ;;  %v2413_v16 = vld [vmem:[%s3290_s3] sm:$0xff]  }
  0xff   :  { %v450_v21 = vpack.c.bf16 %v426_v18, %v425_v17  ;;  %v2414_v17 = vld [vmem:[%s3290_s3 + $0x8] sm:$0xff]   ;;  %v2416_v18 = vld [vmem:[%s3290_s3 + $0x18] sm:$0xff]  }
 0x100   :  { %v449_v22 = vpack.c.bf16 %v424_v20, %v423_v19  ;;  %v2192_v23 = vpop.f32.mrb[16].mxu0  ;;  %v2417_v19 = vld [vmem:[%s3290_s3 + $0x20] sm:$0xff]   ;;  %v2418_v20 = vld [vmem:[%s3290_s3 + $0x28] sm:$0xff]  }
 0x101   :  { %v357_v24 = vadd.f32 %v2192_v23, %v2680_v27  ;;  %v348_v25 = vpop.f32.mrb[17].mxu0  ;;  %v2421_v23 = vld [vmem:[%s3290_s3 + $0x40] sm:$0xff]  }
 0x102   :  { %v349_v26 = vadd.f32 %v2680_v27, %v348_v25  ;;  %v2193_v28 = vpop.f32.mrb[18].mxu0  ;;  %2234 = vmatprep.mubr.bf16.mxu1 %v449_v22  ;;  %v2420_v22 = vld [vmem:[%s3290_s3 + $0x38] sm:$0xff]   ;;  %v2423_v25 = vld [vmem:[%s3290_s3 + $0x50] sm:$0xff]  }
 0x103   :  { %v360_v29 = vadd.f32 %v2193_v28, %v2680_v27  ;;  %v351_v30 = vpop.f32.mrb[19].mxu0  ;;  %2235 = vmatmul.mubr.bf16.gmra.mrb[12].mxu1 %v450_v21  ;;  %v429_v32 = vmax.f32 %v357_v24, 0.0  ;;  %v2419_v21 = vld [vmem:[%s3290_s3 + $0x30] sm:$0xff]   ;;  %v2422_v24 = vld [vmem:[%s3290_s3 + $0x48] sm:$0xff]   ;;  %v2425_v28 = vld [vmem:[%s3290_s3 + $0x60] sm:$0xff]  }
 0x104   :  { %v352_v31 = vadd.f32 %v2680_v27, %v351_v30  ;;  %v427_v34 = vmax.f32 %v349_v26, 0.0  ;;  %v2424_v26 = vld [vmem:[%s3290_s3 + $0x58] sm:$0xff]   ;;  %v2427_v30 = vld [vmem:[%s3290_s3 + $0x70] sm:$0xff]  }
 0x105   :  { %v430_v33 = vmax.f32 %v360_v29, 0.0  ;;  %v2426_v29 = vld [vmem:[%s3290_s3 + $0x68] sm:$0xff]  }
 0x106   :  { %v428_v35 = vmax.f32 %v352_v31, 0.0  ;;  %v2428_v31 = vld [vmem:[%s3290_s3 + $0x78] sm:$0xff]  }
 0x107   :  { %v452_v36 = vpack.c.bf16 %v430_v33, %v429_v32  ;;  %v2431_v32 = vld [vmem:[%s3262_s4 + $0x4] ss:$8 sps:$4 sm:$0xff]   ;;  %v1244_v33 = vlaneseq }
 0x108   :  { %v451_v37 = vpack.c.bf16 %v428_v35, %v427_v34  ;;  %v2196_v38 = vpop.f32.mrb[20].mxu0  ;;  %1181 = vmatprep.mubr.bf16.mxu0 %v2431_v32  ;;  %v2477_v34 = vmov 0   ;;  %v26_v35 = vstv %s3263_s15 }
 0x109   :  { %v373_v39 = vadd.f32 %v2196_v38, %v2680_v27  ;;  %v364_v40 = vpop.f32.mrb[21].mxu0  ;;  %2384 = vset.pattern.permute.xlu0 %v2477_v34  ;;  %27 = vst [vmem:[#allocation3] sm:$0x1] %v26_v35 }
 0x10a   :  { %v365_v41 = vadd.f32 %v2680_v27, %v364_v40  ;;  %v2197_v42 = vpop.f32.mrb[22].mxu0  ;;  %2238 = vmatprep.mubr.bf16.mxu1 %v451_v37 }
 0x10b   :  { %v376_v43 = vadd.f32 %v2197_v42, %v2680_v27  ;;  %v367_v44 = vpop.f32.mrb[23].mxu0  ;;  %2239 = vmatmul.mubr.bf16.gmra.mrb[16].mxu1 %v452_v36  ;;  %v433_v46 = vmax.f32 %v373_v39, 0.0  ;;  %v2795_v36 = vshrl.u32 %v1244_v33, 7  ;;  %v2807_v42 = vld [vmem:[%s3266_s10] ss:$0 sm:$0xff] }
 0x10c   :  { %v368_v45 = vadd.f32 %v2680_v27, %v367_v44  ;;  %v431_v48 = vmax.f32 %v365_v41, 0.0  ;;  %v1906_v41 = vld [vmem:[%s3265_s6] sm:$0xf] }
 0x10d   :  { %v434_v47 = vmax.f32 %v376_v43, 0.0  ;;  %v2798_v37 = vsub.s32 0, %v2795_v36 }
 0x10e   :  { %v432_v49 = vmax.f32 %v368_v45, 0.0 }
 0x10f   :  { %v454_v50 = vpack.c.bf16 %v434_v47, %v433_v46 }
 0x110   :  { %v453_v51 = vpack.c.bf16 %v432_v49, %v431_v48  ;;  %v2200_v52 = vpop.f32.mrb[24].mxu0  ;;  %v1241_v38 = vld [vmem:[#allocation3] sm:$0x1] }
 0x111   :  { %v389_v53 = vadd.f32 %v2200_v52, %v2680_v27  ;;  %v380_v54 = vpop.f32.mrb[25].mxu0  ;;  %v1242_v39 = vadd.f32 1.0, %v1241_v38 }
 0x112   :  { %v381_v55 = vadd.f32 %v2680_v27, %v380_v54  ;;  %v2201_v56 = vpop.f32.mrb[26].mxu0  ;;  %2242 = vmatprep.mubr.bf16.mxu1 %v453_v51 }
 0x113   :  { %v392_v57 = vadd.f32 %v2201_v56, %v2680_v27  ;;  %v383_v58 = vpop.f32.mrb[27].mxu0  ;;  %2243 = vmatmul.mubr.bf16.gmra.mrb[20].mxu1 %v454_v50  ;;  %v437_v60 = vmax.f32 %v389_v53, 0.0  ;;  %v1247_v40 = vrot.slane %v1242_v39, %v2798_v37 }
 0x114   :  { %v384_v59 = vadd.f32 %v2680_v27, %v383_v58  ;;  %v435_v62 = vmax.f32 %v381_v55, 0.0 }
 0x115   :  { %v438_v61 = vmax.f32 %v392_v57, 0.0  ;;  %1249 = vperm.xlu0 %2384, %v1247_v40  }
 0x116   :  { %v436_v63 = vmax.f32 %v384_v59, 0.0 }
 0x117   :  { %v456_v0 = vpack.c.bf16 %v438_v61, %v437_v60 }
 0x118   :  { %v455_v1 = vpack.c.bf16 %v436_v63, %v435_v62  ;;  %v2204_v2 = vpop.f32.mrb[28].mxu0 }
 0x119   :  { %v405_v3 = vadd.f32 %v2204_v2, %v2680_v27  ;;  %v396_v4 = vpop.f32.mrb[29].mxu0  ;;  %1909 = vperm.xlu0 %2384, %v1906_v41  }
 0x11a   :  { %v397_v5 = vadd.f32 %v2680_v27, %v396_v4  ;;  %v2205_v6 = vpop.f32.mrb[30].mxu0  ;;  %2246 = vmatprep.mubr.bf16.mxu1 %v455_v1 }
 0x11b   :  { %v408_v7 = vadd.f32 %v2205_v6, %v2680_v27  ;;  %v399_v8 = vpop.f32.mrb[31].mxu0  ;;  %2247 = vmatmul.mubr.bf16.gmra.mrb[24].mxu1 %v456_v0  ;;  %v441_v10 = vmax.f32 %v405_v3, 0.0 }
 0x11c   :  { %v400_v9 = vadd.f32 %v2680_v27, %v399_v8  ;;  %v439_v12 = vmax.f32 %v397_v5, 0.0  ;;  %v2415_v27 = vld [vmem:[%s3290_s3 + $0x10] sm:$0xff]  }
 0x11d   :  { %v442_v11 = vmax.f32 %v408_v7, 0.0 }
 0x11e   :  { %v440_v13 = vmax.f32 %v400_v9, 0.0 }
 0x11f   :  { %v458_v14 = vpack.c.bf16 %v442_v11, %v441_v10 }
 0x120   :  { %v457_v15 = vpack.c.bf16 %v440_v13, %v439_v12 }
 0x122   :  { %2250 = vmatprep.mubr.bf16.mxu1 %v457_v15 }
 0x123   :  { %2251 = vmatmul.mubr.bf16.gmra.mrb[28].mxu1 %v458_v14 }
 0x124   :  { %2262 = vmatprep.mubr.msk.bf16.mxu1 %vm835_vm2, %v2413_v16 }
 0x12b   :  { %2263 = vmatmul.mubr.msk.bf16.vlgmr.msra.gmra.mrb[0].mxu1 %vm835_vm2, %v2414_v17 }
 0x12c   :  { %2266 = vmatprep.mubr.msk.bf16.mxu1 %vm835_vm2, %v2415_v27 }
 0x133   :  { %2267 = vmatmul.mubr.msk.bf16.gmra.mrb[4].mxu1 %vm835_vm2, %v2416_v18 }
 0x134   :  { %2270 = vmatprep.mubr.msk.bf16.mxu1 %vm835_vm2, %v2417_v19 }
 0x13b   :  { %2271 = vmatmul.mubr.msk.bf16.gmra.mrb[8].mxu1 %vm835_vm2, %v2418_v20 }
 0x13c   :  { %2274 = vmatprep.mubr.msk.bf16.mxu1 %vm835_vm2, %v2419_v21 }
 0x143   :  { %2275 = vmatmul.mubr.msk.bf16.gmra.mrb[12].mxu1 %vm835_vm2, %v2420_v22 }
 0x144   :  { %2278 = vmatprep.mubr.msk.bf16.mxu1 %vm835_vm2, %v2421_v23 }
 0x14b   :  { %2279 = vmatmul.mubr.msk.bf16.gmra.mrb[16].mxu1 %vm835_vm2, %v2422_v24 }
 0x14c   :  { %2282 = vmatprep.mubr.msk.bf16.mxu1 %vm835_vm2, %v2423_v25 }
 0x153   :  { %2283 = vmatmul.mubr.msk.bf16.gmra.mrb[20].mxu1 %vm835_vm2, %v2424_v26 }
 0x154   :  { %2286 = vmatprep.mubr.msk.bf16.mxu1 %vm835_vm2, %v2425_v28 }
 0x15b   :  { %2287 = vmatmul.mubr.msk.bf16.gmra.mrb[24].mxu1 %vm835_vm2, %v2426_v29 }
 0x15c   :  { %2290 = vmatprep.mubr.msk.bf16.mxu1 %vm835_vm2, %v2427_v30 }
 0x163   :  { %2291 = vmatmul.mubr.msk.bf16.gmra.mrb[28].mxu1 %vm835_vm2, %v2428_v31 }
 0x164   :  { %1897 = vmatprep.mubr.bf16.mxu1 %v2477_v34 }
 0x1fe   :  { %v2264_v43 = vpop.f32.mrb[0].mxu1 }
 0x1ff   :  { %v2318_v44 = vadd.f32 %v2264_v43, %v2807_v42  ;;  %v918_v45 = vpop.f32.mrb[1].mxu1 }
 0x200   :  { %v2319_v46 = vadd.f32 %v2807_v42, %v918_v45  ;;  %v2265_v47 = vpop.f32.mrb[2].mxu1 }
 0x201   :  { %v2320_v48 = vadd.f32 %v2265_v47, %v2807_v42  ;;  %v921_v49 = vpop.f32.mrb[3].mxu1  ;;  %v1047_v51 = vmax.f32 %v2318_v44, 0.0 }
 0x202   :  { %v2321_v50 = vadd.f32 %v2807_v42, %v921_v49  ;;  %v1045_v53 = vmax.f32 %v2319_v46, 0.0 }
 0x203   :  { %v1048_v52 = vmax.f32 %v2320_v48, 0.0 }
 0x204   :  { %v1046_v54 = vmax.f32 %v2321_v50, 0.0 }
 0x205   :  { %v2813_v55 = vpack.c.bf16 %v1048_v52, %v1047_v51 }
 0x206   :  { %v2815_v56 = vpack.c.bf16 %v1046_v54, %v1045_v53  ;;  %v2268_v57 = vpop.f32.mrb[4].mxu1 }
 0x207   :  { %v2322_v58 = vadd.f32 %v2268_v57, %v2807_v42  ;;  %v934_v59 = vpop.f32.mrb[5].mxu1 }
 0x208   :  { %v2323_v60 = vadd.f32 %v2807_v42, %v934_v59  ;;  %v2269_v61 = vpop.f32.mrb[6].mxu1 }
 0x209   :  { %v2324_v62 = vadd.f32 %v2269_v61, %v2807_v42  ;;  %v937_v63 = vpop.f32.mrb[7].mxu1  ;;  %v1051_v1 = vmax.f32 %v2322_v58, 0.0 }
 0x20a   :  { %v2325_v0 = vadd.f32 %v2807_v42, %v937_v63  ;;  %v1049_v3 = vmax.f32 %v2323_v60, 0.0 }
 0x20b   :  { %v1052_v2 = vmax.f32 %v2324_v62, 0.0 }
 0x20c   :  { %v1050_v4 = vmax.f32 %v2325_v0, 0.0 }
 0x20d   :  { %v2821_v5 = vpack.c.bf16 %v1052_v2, %v1051_v1 }
 0x20e   :  { %v2823_v6 = vpack.c.bf16 %v1050_v4, %v1049_v3  ;;  %v2272_v7 = vpop.f32.mrb[8].mxu1 }
 0x20f   :  { %v2326_v8 = vadd.f32 %v2272_v7, %v2807_v42  ;;  %v950_v9 = vpop.f32.mrb[9].mxu1 }
 0x210   :  { %v2327_v10 = vadd.f32 %v2807_v42, %v950_v9  ;;  %v2273_v11 = vpop.f32.mrb[10].mxu1 }
 0x211   :  { %v2328_v12 = vadd.f32 %v2273_v11, %v2807_v42  ;;  %v953_v13 = vpop.f32.mrb[11].mxu1  ;;  %v1055_v15 = vmax.f32 %v2326_v8, 0.0 }
 0x212   :  { %v2329_v14 = vadd.f32 %v2807_v42, %v953_v13  ;;  %v1053_v17 = vmax.f32 %v2327_v10, 0.0 }
 0x213   :  { %v1056_v16 = vmax.f32 %v2328_v12, 0.0 }
 0x214   :  { %v1054_v27 = vmax.f32 %v2329_v14, 0.0 }
 0x215   :  { %v2829_v18 = vpack.c.bf16 %v1056_v16, %v1055_v15 }
 0x216   :  { %v2831_v19 = vpack.c.bf16 %v1054_v27, %v1053_v17  ;;  %v2276_v20 = vpop.f32.mrb[12].mxu1 }
 0x217   :  { %v2330_v21 = vadd.f32 %v2276_v20, %v2807_v42  ;;  %v966_v22 = vpop.f32.mrb[13].mxu1 }
 0x218   :  { %v2331_v23 = vadd.f32 %v2807_v42, %v966_v22  ;;  %v2277_v24 = vpop.f32.mrb[14].mxu1 }
 0x219   :  { %v2332_v25 = vadd.f32 %v2277_v24, %v2807_v42  ;;  %v969_v26 = vpop.f32.mrb[15].mxu1  ;;  %v1059_v29 = vmax.f32 %v2330_v21, 0.0 }
 0x21a   :  { %v2333_v28 = vadd.f32 %v2807_v42, %v969_v26  ;;  %v1057_v31 = vmax.f32 %v2331_v23, 0.0 }
 0x21b   :  { %v1060_v30 = vmax.f32 %v2332_v25, 0.0 }
 0x21c   :  { %v1058_v32 = vmax.f32 %v2333_v28, 0.0 }
 0x21d   :  { %v2837_v33 = vpack.c.bf16 %v1060_v30, %v1059_v29 }
 0x21e   :  { %v2839_v35 = vpack.c.bf16 %v1058_v32, %v1057_v31  ;;  %v2280_v38 = vpop.f32.mrb[16].mxu1 }
 0x21f   :  { %v2334_v39 = vadd.f32 %v2280_v38, %v2807_v42  ;;  %v982_v40 = vpop.f32.mrb[17].mxu1  ;;  %v2441_v38 = vld [vmem:[%s3264_s11] sm:$0xff]  }
 0x220   :  { %v2335_v41 = vadd.f32 %v2807_v42, %v982_v40  ;;  %v2281_v43 = vpop.f32.mrb[18].mxu1  ;;  %v2444_v40 = vld [vmem:[%s3264_s11 + $0x18] sm:$0xff]  }
 0x221   :  { %v2336_v44 = vadd.f32 %v2281_v43, %v2807_v42  ;;  %v985_v45 = vpop.f32.mrb[19].mxu1  ;;  %v1063_v47 = vmax.f32 %v2334_v39, 0.0  ;;  %v2435_v39 = vld [vmem:[%s3262_s4 + $0x24] ss:$8 sps:$4 sm:$0xff]   ;;  %v2438_v43 = vld [vmem:[%s3262_s4 + $0x34] ss:$8 sps:$4 sm:$0xff]  }
 0x222   :  { %v2337_v46 = vadd.f32 %v2807_v42, %v985_v45  ;;  %v1061_v49 = vmax.f32 %v2335_v41, 0.0  ;;  %v2437_v41 = vld [vmem:[%s3262_s4 + $0x20] ss:$8 sps:$4 sm:$0xff]  }
 0x223   :  { %v1064_v48 = vmax.f32 %v2336_v44, 0.0  ;;  %v2440_v44 = vld [vmem:[%s3262_s4 + $0x30] ss:$8 sps:$4 sm:$0xff]   ;;  %v2445_v45 = vld [vmem:[%s3264_s11 + $0x20] sm:$0xff]  }
 0x224   :  { %v1062_v50 = vmax.f32 %v2337_v46, 0.0  ;;  %v2446_v46 = vld [vmem:[%s3264_s11 + $0x28] sm:$0xff]  }
 0x225   :  { %v1102_v51 = vpack.c.bf16 %v1064_v48, %v1063_v47  ;;  %v2447_v47 = vld [vmem:[%s3264_s11 + $0x30] sm:$0xff]   ;;  %v2448_v48 = vld [vmem:[%s3264_s11 + $0x38] sm:$0xff]  }
 0x226   :  { %v1101_v52 = vpack.c.bf16 %v1062_v50, %v1061_v49  ;;  %v2284_v53 = vpop.f32.mrb[20].mxu1  ;;  %v2451_v49 = vld [vmem:[%s3267_s13 + $0x4] ss:$8 sps:$4 sm:$0xff]   ;;  %v2913_v50 = vpop.permute.xlu0 %1249 }
 0x227   :  { %v2338_v54 = vadd.f32 %v2284_v53, %v2807_v42  ;;  %v998_v57 = vpop.f32.mrb[21].mxu1 }
 0x228   :  { %v2339_v58 = vadd.f32 %v2807_v42, %v998_v57  ;;  %v2285_v59 = vpop.f32.mrb[22].mxu1  ;;  %2120 = vmatprep.subr.bf16.mxu0 %v1101_v52  ;;  %v1234_v52 = vld [vmem:[%s3268_s0 + $0x8] sm:$0xff] }
 0x229   :  { %v2340_v60 = vadd.f32 %v2285_v59, %v2807_v42  ;;  %v1001_v61 = vpop.f32.mrb[23].mxu1  ;;  %2121 = vmatpush3.bf16.msra.mxu0 %v2815_v56  ;;  %v1067_v63 = vmax.f32 %v2338_v54, 0.0 }
 0x22a   :  { %v2341_v62 = vadd.f32 %v2807_v42, %v1001_v61  ;;  %2122 = vmatprep.subr.bf16.mxu0 %v1102_v51  ;;  %v1065_v1 = vmax.f32 %v2339_v58, 0.0  ;;  %v1233_v51 = vld [vmem:[%s3268_s0] sm:$0xff] }
 0x22b   :  { %v1068_v0 = vmax.f32 %v2340_v60, 0.0  ;;  %v1252_v58 = vmul.f32 %v2913_v50, %v1233_v51  ;;  %v1253_v60 = vmul.f32 %v2913_v50, %v1234_v52  ;;  %v2466_v52 = vld [vmem:[%s3267_s13 + $0x54] ss:$8 sps:$4 sm:$0xff]  }
 0x22c   :  { %v1066_v2 = vmax.f32 %v2341_v62, 0.0 }
 0x22d   :  { %v1104_v3 = vpack.c.bf16 %v1068_v0, %v1067_v63  ;;  %2123 = vmatpush3.bf16.msra.mxu0 %v2813_v55 }
 0x22e   :  { %v1103_v4 = vpack.c.bf16 %v1066_v2, %v1065_v1  ;;  %v2288_v7 = vpop.f32.mrb[24].mxu1  ;;  %v1235_v1 = vld [vmem:[%s3268_s0 + $0x10] sm:$0xff]  ;;  %v1236_v2 = vld [vmem:[%s3268_s0 + $0x18] sm:$0xff] }
 0x22f   :  { %v2342_v8 = vadd.f32 %v2288_v7, %v2807_v42  ;;  %v1014_v9 = vpop.f32.mrb[25].mxu1 }
 0x230   :  { %v2343_v10 = vadd.f32 %v2807_v42, %v1014_v9  ;;  %v2289_v11 = vpop.f32.mrb[26].mxu1  ;;  %2124 = vmatprep.subr.bf16.mxu0 %v1103_v4  ;;  %v1254_v9 = vmul.f32 %v2913_v50, %v1235_v1 }
 0x231   :  { %v2344_v56 = vadd.f32 %v2289_v11, %v2807_v42  ;;  %v1017_v12 = vpop.f32.mrb[27].mxu1  ;;  %2125 = vmatpush3.bf16.msra.mxu0 %v2823_v6  ;;  %v1071_v14 = vmax.f32 %v2342_v8, 0.0  ;;  %v1255_v11 = vmul.f32 %v2913_v50, %v1236_v2 }
 0x232   :  { %v2345_v13 = vadd.f32 %v2807_v42, %v1017_v12  ;;  %2126 = vmatprep.subr.bf16.mxu0 %v1104_v3  ;;  %v1069_v55 = vmax.f32 %v2343_v10, 0.0 }
 0x233   :  { %v1072_v15 = vmax.f32 %v2344_v56, 0.0 }
 0x234   :  { %v1070_v16 = vmax.f32 %v2345_v13, 0.0 }
 0x235   :  { %v1106_v17 = vpack.c.bf16 %v1072_v15, %v1071_v14  ;;  %2127 = vmatpush3.bf16.msra.mxu0 %v2821_v5  ;;  %v2449_v15 = vld [vmem:[%s3267_s13] ss:$8 sps:$4 sm:$0xff]  }
 0x236   :  { %v1105_v27 = vpack.c.bf16 %v1070_v16, %v1069_v55  ;;  %v2292_v20 = vpop.f32.mrb[28].mxu1 }
 0x237   :  { %v2346_v21 = vadd.f32 %v2292_v20, %v2807_v42  ;;  %v1030_v22 = vpop.f32.mrb[29].mxu1  ;;  %v1237_v20 = vld [vmem:[%s3268_s0 + $0x20] sm:$0xff] }
 0x238   :  { %v2347_v23 = vadd.f32 %v2807_v42, %v1030_v22  ;;  %v2293_v24 = vpop.f32.mrb[30].mxu1  ;;  %2128 = vmatprep.subr.bf16.mxu0 %v1105_v27 }
 0x239   :  { %v2348_v6 = vadd.f32 %v2293_v24, %v2807_v42  ;;  %v1033_v25 = vpop.f32.mrb[31].mxu1  ;;  %2129 = vmatpush3.bf16.msra.mxu0 %v2831_v19  ;;  %v1075_v28 = vmax.f32 %v2346_v21, 0.0  ;;  %v2432_v19 = vld [vmem:[%s3262_s4 + $0x14] ss:$8 sps:$4 sm:$0xff]   ;;  %v1238_v21 = vld [vmem:[%s3268_s0 + $0x28] sm:$0xff] }
 0x23a   :  { %v2349_v26 = vadd.f32 %v2807_v42, %v1033_v25  ;;  %2130 = vmatprep.subr.bf16.mxu0 %v1106_v17  ;;  %v1073_v5 = vmax.f32 %v2347_v23, 0.0  ;;  %v2429_v42 = vld [vmem:[%s3262_s4] ss:$8 sps:$4 sm:$0xff]   ;;  %v2454_v17 = vld [vmem:[%s3267_s13 + $0x14] ss:$8 sps:$4 sm:$0xff]   ;;  %v1256_v25 = vmul.f32 %v2913_v50, %v1237_v20 }
 0x23b   :  { %v1076_v29 = vmax.f32 %v2348_v6, 0.0  ;;  %v2452_v6 = vld [vmem:[%s3267_s13 + $0x10] ss:$8 sps:$4 sm:$0xff]  }
 0x23c   :  { %v1074_v30 = vmax.f32 %v2349_v26, 0.0 }
 0x23d   :  { %v1108_v31 = vpack.c.bf16 %v1076_v29, %v1075_v28  ;;  %2131 = vmatpush3.bf16.msra.mxu0 %v2829_v18  ;;  %v2442_v18 = vld [vmem:[%s3264_s11 + $0x8] sm:$0xff]   ;;  %v1257_v28 = vmul.f32 %v2913_v50, %v1238_v21 }
 0x23e   :  { %v1107_v32 = vpack.c.bf16 %v1074_v30, %v1073_v5  ;;  %v2457_v29 = vld [vmem:[%s3267_s13 + $0x24] ss:$8 sps:$4 sm:$0xff]  }
 0x240   :  { %2132 = vmatprep.subr.bf16.mxu0 %v1107_v32 }
 0x241   :  { %2133 = vmatpush3.bf16.msra.mxu0 %v2839_v35  ;;  %v2443_v35 = vld [vmem:[%s3264_s11 + $0x10] sm:$0xff]  }
 0x242   :  { %2134 = vmatprep.subr.bf16.mxu0 %v1108_v31  ;;  %v2455_v31 = vld [vmem:[%s3267_s13 + $0x20] ss:$8 sps:$4 sm:$0xff]  }
 0x245   :  { %2135 = vmatpush3.bf16.msra.mxu0 %v2837_v33  ;;  %v2434_v33 = vld [vmem:[%s3262_s4 + $0x10] ss:$8 sps:$4 sm:$0xff]  }
 0x246   :  { %2294 = vmatprep.subr.bf16.mxu0 %v2441_v38 }
 0x248   :  { %1182 = vmatmul.mubr.bf16.vlgmr.msra.gmra.mrb[32].mxu0 %v2429_v42  ;;  %v2460_v42 = vld [vmem:[%s3267_s13 + $0x34] ss:$8 sps:$4 sm:$0xff]  }
 0x249   :  { %1189 = vmatprep.mubr.bf16.mxu0 %v2432_v19  ;;  %2295 = vmatpush3.bf16.msra.mxu0 %v2441_v38 }
 0x24a   :  { %2296 = vmatprep.subr.bf16.mxu0 %v2442_v18 }
 0x24d   :  { %2297 = vmatpush3.bf16.msra.mxu0 %v2442_v18  ;;  %v1239_v18 = vld [vmem:[%s3268_s0 + $0x30] sm:$0xff] }
 0x24e   :  { %2298 = vmatprep.subr.bf16.mxu0 %v2443_v35 }
 0x250   :  { %1190 = vmatmul.mubr.bf16.gmra.mrb[36].mxu0 %v2434_v33 }
 0x251   :  { %1197 = vmatprep.mubr.bf16.mxu0 %v2435_v39  ;;  %2299 = vmatpush3.bf16.msra.mxu0 %v2443_v35  ;;  %v1240_v35 = vld [vmem:[%s3268_s0 + $0x38] sm:$0xff] }
 0x252   :  { %2300 = vmatprep.subr.bf16.mxu0 %v2444_v40 }
 0x255   :  { %2301 = vmatpush3.bf16.msra.mxu0 %v2444_v40 }
 0x256   :  { %2302 = vmatprep.subr.bf16.mxu0 %v2445_v45 }
 0x258   :  { %1198 = vmatmul.mubr.bf16.gmra.mrb[40].mxu0 %v2437_v41  ;;  %v2458_v41 = vld [vmem:[%s3267_s13 + $0x30] ss:$8 sps:$4 sm:$0xff]  }
 0x259   :  { %1205 = vmatprep.mubr.bf16.mxu0 %v2438_v43  ;;  %2303 = vmatpush3.bf16.msra.mxu0 %v2445_v45  ;;  %v1258_v43 = vmul.f32 %v2913_v50, %v1239_v18  ;;  %v1259_v45 = vmul.f32 %v2913_v50, %v1240_v35  ;;  %v2464_v50 = vld [vmem:[%s3267_s13 + $0x50] ss:$8 sps:$4 sm:$0xff]  }
 0x25a   :  { %2304 = vmatprep.subr.bf16.mxu0 %v2446_v46 }
 0x25d   :  { %2305 = vmatpush3.bf16.msra.mxu0 %v2446_v46  ;;  %v2463_v46 = vld [vmem:[%s3267_s13 + $0x44] ss:$8 sps:$4 sm:$0xff]  }
 0x25e   :  { %2306 = vmatprep.subr.bf16.mxu0 %v2447_v47 }
 0x260   :  { %1206 = vmatmul.mubr.bf16.gmra.mrb[44].mxu0 %v2440_v44 }
 0x261   :  { %2307 = vmatpush3.bf16.msra.mxu0 %v2447_v47 }
 0x262   :  { %2308 = vmatprep.subr.bf16.mxu0 %v2448_v48 }
 0x265   :  { %2309 = vmatpush3.bf16.msra.mxu0 %v2448_v48 }
 0x266   :  { %1536 = vmatprep.subr.bf16.mxu0 %v2451_v49  ;;  %v2461_v49 = vld [vmem:[%s3267_s13 + $0x40] ss:$8 sps:$4 sm:$0xff]  }
 0x31b   :  { %v2136_v53 = vpop.f32.mrb[32].mxu0 }
 0x31c   :  { %v2137_v54 = vpop.f32.mrb[33].mxu0 }
 0x31d   :  { %v2138_v57 = vadd.f32 %v2137_v54, %v2136_v53  ;;  %v2139_v59 = vpop.f32.mrb[34].mxu0  ;;  %v2469_v53 = vld [vmem:[%s3267_s13 + $0x64] ss:$8 sps:$4 sm:$0xff]   ;;  %v2467_v54 = vld [vmem:[%s3267_s13 + $0x60] ss:$8 sps:$4 sm:$0xff]  }
 0x31e   :  { %v2140_v61 = vpop.f32.mrb[35].mxu0 }
 0x31f   :  { %v2141_v62 = vadd.f32 %v2140_v61, %v2139_v59  ;;  %v1268_v63 = vadd.f32 %v2138_v57, %v1252_v58  ;;  %v2472_v57 = vld [vmem:[%s3267_s13 + $0x74] ss:$8 sps:$4 sm:$0xff]   ;;  %v2470_v58 = vld [vmem:[%s3267_s13 + $0x70] ss:$8 sps:$4 sm:$0xff]   ;;  %v2017_v59 = vld [vmem:[%s3269_s12] ss:$0 sm:$0xff] }
 0x321   :  { %v1269_v0 = vadd.f32 %v2141_v62, %v1253_v60 }
 0x323   :  { %v2142_v3 = vpop.f32.mrb[36].mxu0  ;;  %v1276_v4 = vpack.c.bf16 %v1269_v0, %v1268_v63 }
 0x324   :  { %v2143_v7 = vpop.f32.mrb[37].mxu0 }
 0x325   :  { %v2144_v8 = vadd.f32 %v2143_v7, %v2142_v3  ;;  %v2145_v10 = vpop.f32.mrb[38].mxu0  ;;  %2310 = vmatprep.mubr.bf16.mxu0 %v1276_v4 }
 0x326   :  { %v2146_v56 = vpop.f32.mrb[39].mxu0 }
 0x327   :  { %v2147_v12 = vadd.f32 %v2146_v56, %v2145_v10  ;;  %v1270_v13 = vadd.f32 %v2144_v8, %v1254_v9 }
 0x329   :  { %v1271_v14 = vadd.f32 %v2147_v12, %v1255_v11 }
 0x32b   :  { %v1277_v55 = vpack.c.bf16 %v1271_v14, %v1270_v13  ;;  %v2148_v16 = vpop.f32.mrb[40].mxu0 }
 0x32c   :  { %v2149_v27 = vpop.f32.mrb[41].mxu0 }
 0x32d   :  { %v2150_v22 = vadd.f32 %v2149_v27, %v2148_v16  ;;  %v2151_v23 = vpop.f32.mrb[42].mxu0  ;;  %2311 = vmatmul.mubr.bf16.vlgmr.msra.gmra.mrb[48].mxu0 %v1277_v55 }
 0x32e   :  { %v2152_v24 = vpop.f32.mrb[43].mxu0  ;;  %1537 = vmatpush1.bf16.msra.mxu0 %v2449_v15 }
 0x32f   :  { %v2153_v26 = vadd.f32 %v2152_v24, %v2151_v23  ;;  %1538 = vmatprep.subr.bf16.mxu0 %v2454_v17  ;;  %v1272_v5 = vadd.f32 %v2150_v22, %v1256_v25  ;;  %v1444_v25 = vld [vmem:[%s3270_s14] sm:$0x3] }
 0x331   :  { %v1273_v30 = vadd.f32 %v2153_v26, %v1257_v28  ;;  %v1449_v26 = vrot.slane %v1444_v25, %v2798_v37 }
 0x332   :  { %1539 = vmatpush1.bf16.msra.mxu0 %v2452_v6  ;;  %v3000_v6 = vsub.s32 1, %v2795_v36 }
 0x333   :  { %v2154_v32 = vpop.f32.mrb[44].mxu0  ;;  %v1278_v38 = vpack.c.bf16 %v1273_v30, %v1272_v5  ;;  %1540 = vmatprep.subr.bf16.mxu0 %v2457_v29 }
 0x334   :  { %v2155_v19 = vpop.f32.mrb[45].mxu0  ;;  %v1453_v28 = vrot.slane %v1444_v25, %v3000_v6 }
 0x335   :  { %v2156_v33 = vadd.f32 %v2155_v19, %v2154_v32  ;;  %v2157_v39 = vpop.f32.mrb[46].mxu0  ;;  %2314 = vmatprep.mubr.bf16.mxu0 %v1278_v38 }
 0x336   :  { %v2158_v40 = vpop.f32.mrb[47].mxu0  ;;  %1541 = vmatpush1.bf16.msra.mxu0 %v2455_v31 }
 0x337   :  { %v2159_v44 = vadd.f32 %v2158_v40, %v2157_v39  ;;  %1542 = vmatprep.subr.bf16.mxu0 %v2460_v42  ;;  %v1274_v47 = vadd.f32 %v2156_v33, %v1258_v43 }
 0x339   :  { %v1275_v48 = vadd.f32 %v2159_v44, %v1259_v45 }
 0x33a   :  { %1543 = vmatpush1.bf16.msra.mxu0 %v2458_v41 }
 0x33b   :  { %v1279_v51 = vpack.c.bf16 %v1275_v48, %v1274_v47  ;;  %1544 = vmatprep.subr.bf16.mxu0 %v2463_v46 }
 0x33d   :  { %2315 = vmatmul.mubr.bf16.gmra.mrb[52].mxu0 %v1279_v51 }
 0x33e   :  { %1545 = vmatpush1.bf16.msra.mxu0 %v2461_v49  ;;  %1568 = vmatprep.mubr.bf16.mxu0 %v2477_v34 }
 0x33f   :  { %1546 = vmatprep.subr.bf16.mxu0 %v2466_v52 }
 0x342   :  { %1547 = vmatpush1.bf16.msra.mxu0 %v2464_v50 }
 0x343   :  { %1548 = vmatprep.subr.bf16.mxu0 %v2469_v53 }
 0x346   :  { %1549 = vmatpush1.bf16.msra.mxu0 %v2467_v54 }
 0x347   :  { %1550 = vmatprep.subr.bf16.mxu0 %v2472_v57 }
 0x34a   :  { %1551 = vmatpush1.bf16.msra.mxu0 %v2470_v58 }
 0x400   :  { %v2312_v60 = vpop.f32.mrb[48].mxu0 }
 0x401   :  { %v1394_v61 = vadd.f32 %v2312_v60, %v2017_v59  ;;  %v1385_v62 = vpop.f32.mrb[49].mxu0 }
 0x402   :  { %v1386_v63 = vadd.f32 %v2017_v59, %v1385_v62  ;;  %v2313_v0 = vpop.f32.mrb[50].mxu0 }
 0x403   :  { %v1397_v1 = vadd.f32 %v2313_v0, %v2017_v59  ;;  %v1388_v2 = vpop.f32.mrb[51].mxu0  ;;  %v1418_v4 = vmax.f32 %v1394_v61, 0.0 }
 0x404   :  { %v1389_v3 = vadd.f32 %v2017_v59, %v1388_v2  ;;  %v1416_v8 = vmax.f32 %v1386_v63, 0.0 }
 0x405   :  { %v1419_v7 = vmax.f32 %v1397_v1, 0.0 }
 0x406   :  { %v1417_v9 = vmax.f32 %v1389_v3, 0.0 }
 0x407   :  { %v1425_v10 = vpack.c.bf16 %v1419_v7, %v1418_v4 }
 0x408   :  { %v1424_v11 = vpack.c.bf16 %v1417_v9, %v1416_v8 }
 0x40a   :  { %1569 = vmatmul.mubr.bf16.vlgmr.msra.gmra.mrb[56].mxu0 %v1424_v11 }
 0x40b   :  { %1578 = vmatprep.mubr.bf16.mxu0 %v2477_v34 }
 0x410   :  { %v2316_v56 = vpop.f32.mrb[52].mxu0 }
 0x411   :  { %v1410_v12 = vadd.f32 %v2316_v56, %v2017_v59  ;;  %v1401_v13 = vpop.f32.mrb[53].mxu0 }
 0x412   :  { %v1402_v14 = vadd.f32 %v2017_v59, %v1401_v13  ;;  %v2317_v15 = vpop.f32.mrb[54].mxu0  ;;  %1579 = vmatmul.mubr.bf16.gmra.mrb[60].mxu0 %v1425_v10 }
 0x413   :  { %v1413_v55 = vadd.f32 %v2317_v15, %v2017_v59  ;;  %v1404_v16 = vpop.f32.mrb[55].mxu0  ;;  %1588 = vmatprep.mubr.bf16.mxu0 %v2477_v34  ;;  %v1422_v27 = vmax.f32 %v1410_v12, 0.0 }
 0x414   :  { %v1405_v17 = vadd.f32 %v2017_v59, %v1404_v16  ;;  %v1420_v21 = vmax.f32 %v1402_v14, 0.0 }
 0x415   :  { %v1423_v20 = vmax.f32 %v1413_v55, 0.0 }
 0x416   :  { %v1421_v22 = vmax.f32 %v1405_v17, 0.0 }
 0x417   :  { %v1427_v23 = vpack.c.bf16 %v1423_v20, %v1422_v27 }
 0x418   :  { %v1426_v24 = vpack.c.bf16 %v1421_v22, %v1420_v21 }
 0x41a   :  { %1589 = vmatmul.mubr.bf16.gmra.mrb[64].mxu0 %v1426_v24 }
 0x41b   :  { %1598 = vmatprep.mubr.bf16.mxu0 %v2477_v34 }
 0x422   :  { %1599 = vmatmul.mubr.bf16.gmra.mrb[68].mxu0 %v1427_v23 }
 0x4dd   :  { %v1570_v29 = vpop.f32.mrb[56].mxu0 }
 0x4de   :  { %v3007_v5 = vadd.f32 %v1570_v29, %v1449_v26  ;;  %v1572_v30 = vpop.f32.mrb[57].mxu0 }
 0x4df   :  { %v3009_v31 = vadd.f32 %v1572_v30, %v1453_v28  ;;  %v1574_v32 = vpop.f32.mrb[58].mxu0 }
 0x4e0   :  { %v3011_v34 = vadd.f32 %v1574_v32, %v1449_v26  ;;  %v1576_v38 = vpop.f32.mrb[59].mxu0  ;;  %v1609_v42 = vmax.f32 %v3007_v5, 0.0 }
 0x4e1   :  { %v3013_v36 = vadd.f32 %v1576_v38, %v1453_v28  ;;  %v1610_v18 = vmax.f32 %v3009_v31, 0.0 }
 0x4e2   :  { %v1611_v19 = vmax.f32 %v3011_v34, 0.0 }
 0x4e3   :  { %v1612_v35 = vmax.f32 %v3013_v36, 0.0 }
 0x4e4   :  { %v1625_v33 = vadd.f32 %v1611_v19, %v1609_v42 }
 0x4e5   :  { %v1638_v39 = vadd.f32 %v1612_v35, %v1610_v18  ;;  %v1580_v40 = vpop.f32.mrb[60].mxu0 }
 0x4e6   :  { %v3027_v41 = vadd.f32 %v1580_v40, %v1449_v26  ;;  %v1582_v43 = vpop.f32.mrb[61].mxu0 }
 0x4e7   :  { %v3029_v44 = vadd.f32 %v1582_v43, %v1453_v28  ;;  %v1584_v45 = vpop.f32.mrb[62].mxu0 }
 0x4e8   :  { %v1613_v46 = vmax.f32 %v3027_v41, 0.0  ;;  %v1585_v47 = vadd.f32 %v1584_v45, %v1449_v26  ;;  %v1586_v48 = vpop.f32.mrb[63].mxu0 }
 0x4e9   :  { %v1614_v49 = vmax.f32 %v3029_v44, 0.0  ;;  %v3033_v51 = vadd.f32 %v1586_v48, %v1453_v28 }
 0x4ea   :  { %v1626_v52 = vadd.f32 %v1625_v33, %v1613_v46  ;;  %v1615_v50 = vmax.f32 %v1585_v47, 0.0 }
 0x4eb   :  { %v1639_v53 = vadd.f32 %v1638_v39, %v1614_v49  ;;  %v1616_v54 = vmax.f32 %v3033_v51, 0.0 }
 0x4ec   :  { %v1627_v57 = vadd.f32 %v1626_v52, %v1615_v50 }
 0x4ed   :  { %v1640_v58 = vadd.f32 %v1639_v53, %v1616_v54  ;;  %v1590_v59 = vpop.f32.mrb[64].mxu0 }
 0x4ee   :  { %v1591_v60 = vadd.f32 %v1590_v59, %v1449_v26  ;;  %v1592_v61 = vpop.f32.mrb[65].mxu0 }
 0x4ef   :  { %v1593_v62 = vadd.f32 %v1592_v61, %v1453_v28  ;;  %v1594_v63 = vpop.f32.mrb[66].mxu0 }
 0x4f0   :  { %v1617_v0 = vmax.f32 %v1591_v60, 0.0  ;;  %v1595_v1 = vadd.f32 %v1594_v63, %v1449_v26  ;;  %v1596_v2 = vpop.f32.mrb[67].mxu0 }
 0x4f1   :  { %v1618_v3 = vmax.f32 %v1593_v62, 0.0  ;;  %v1597_v4 = vadd.f32 %v1596_v2, %v1453_v28 }
 0x4f2   :  { %v1628_v7 = vadd.f32 %v1627_v57, %v1617_v0  ;;  %v1619_v8 = vmax.f32 %v1595_v1, 0.0 }
 0x4f3   :  { %v1641_v9 = vadd.f32 %v1640_v58, %v1618_v3  ;;  %v1620_v10 = vmax.f32 %v1597_v4, 0.0 }
 0x4f4   :  { %v1629_v11 = vadd.f32 %v1628_v7, %v1619_v8 }
 0x4f5   :  { %v1642_v56 = vadd.f32 %v1641_v9, %v1620_v10  ;;  %v1600_v12 = vpop.f32.mrb[68].mxu0 }
 0x4f6   :  { %v1601_v13 = vadd.f32 %v1600_v12, %v1449_v26  ;;  %v1602_v14 = vpop.f32.mrb[69].mxu0 }
 0x4f7   :  { %v1603_v15 = vadd.f32 %v1602_v14, %v1453_v28  ;;  %v1604_v55 = vpop.f32.mrb[70].mxu0 }
 0x4f8   :  { %v1621_v16 = vmax.f32 %v1601_v13, 0.0  ;;  %v1605_v17 = vadd.f32 %v1604_v55, %v1449_v26  ;;  %v1606_v27 = vpop.f32.mrb[71].mxu0 }
 0x4f9   :  { %v1622_v20 = vmax.f32 %v1603_v15, 0.0  ;;  %v1607_v21 = vadd.f32 %v1606_v27, %v1453_v28 }
 0x4fa   :  { %v1630_v22 = vadd.f32 %v1629_v11, %v1621_v16  ;;  %v1623_v23 = vmax.f32 %v1605_v17, 0.0 }
 0x4fb   :  { %v1643_v24 = vadd.f32 %v1642_v56, %v1622_v20  ;;  %v1624_v25 = vmax.f32 %v1607_v21, 0.0 }
 0x4fc   :  { %v1631_v29 = vadd.f32 %v1630_v22, %v1623_v23 }
 0x4fd   :  { %v1644_v30 = vadd.f32 %v1643_v24, %v1624_v25 }
 0x4fe   :  { %v1632_v32 = vrot.slane %v1631_v29, 4 }
 0x4ff   :  { %v1645_v38 = vrot.slane %v1644_v30, 4 }
 0x500   :  { %v1633_v33 = vadd.f32 %v1632_v32, %v1631_v29 }
 0x501   :  { %v1646_v39 = vadd.f32 %v1645_v38, %v1644_v30 }
 0x502   :  { %v1634_v40 = vrot.slane %v1633_v33, 2 }
 0x503   :  { %v1647_v41 = vrot.slane %v1646_v39, 2 }
 0x504   :  { %v1635_v43 = vadd.f32 %v1634_v40, %v1633_v33 }
 0x505   :  { %v1648_v45 = vadd.f32 %v1647_v41, %v1646_v39 }
 0x506   :  { %v1636_v47 = vrot.slane %v1635_v43, 1 }
 0x507   :  { %v1649_v48 = vrot.slane %v1648_v45, 1 }
 0x508   :  { %v1637_v26 = vadd.f32 %v1636_v47, %v1635_v43 }
 0x509   :  { %v1650_v52 = vadd.f32 %v1649_v48, %v1648_v45 }
 0x50a   :  { %v1651_v53 = vmul.f32 0.015625, %v1637_v26 }
 0x50b   :  { %v1652_v28 = vmul.f32 0.015625, %v1650_v52 }
 0x50c   :  { %v3042_v57 = vsub.f32 %v1609_v42, %v1651_v53  ;;  %v3046_v58 = vsub.f32 %v1611_v19, %v1651_v53  ;;  %v3048_v59 = vsub.f32 %v1613_v46, %v1651_v53  ;;  %v3050_v60 = vsub.f32 %v1615_v50, %v1651_v53 }
 0x50d   :  { %v3052_v61 = vsub.f32 %v1617_v0, %v1651_v53  ;;  %v3054_v62 = vsub.f32 %v1619_v8, %v1651_v53  ;;  %v3056_v63 = vsub.f32 %v1621_v16, %v1651_v53  ;;  %v3058_v1 = vsub.f32 %v1623_v23, %v1651_v53 }
 0x50e   :  { %v1669_v5 = vmul.f32 %v3042_v57, %v3042_v57  ;;  %v1671_v34 = vmul.f32 %v3046_v58, %v3046_v58  ;;  %v1673_v42 = vmul.f32 %v3048_v59, %v3048_v59  ;;  %v1675_v19 = vmul.f32 %v3050_v60, %v3050_v60 }
 0x50f   :  { %v3070_v50 = vsub.f32 %v1610_v18, %v1652_v28  ;;  %v3074_v0 = vsub.f32 %v1612_v35, %v1652_v28  ;;  %v3078_v2 = vsub.f32 %v1614_v49, %v1652_v28  ;;  %v3082_v4 = vsub.f32 %v1616_v54, %v1652_v28 }
 0x510   :  { %v1685_v46 = vadd.f32 %v1671_v34, %v1669_v5  ;;  %v3084_v7 = vsub.f32 %v1618_v3, %v1652_v28  ;;  %v3086_v8 = vsub.f32 %v1620_v10, %v1652_v28  ;;  %v3088_v9 = vsub.f32 %v1622_v20, %v1652_v28  ;;  %v1717_v5 = vld [vmem:[%s3271_s16] sm:$0x3] }
 0x511   :  { %v3090_v18 = vsub.f32 %v1624_v25, %v1652_v28  ;;  %v1670_v36 = vmul.f32 %v3070_v50, %v3070_v50  ;;  %v1672_v35 = vmul.f32 %v3074_v0, %v3074_v0  ;;  %v1677_v44 = vmul.f32 %v3052_v61, %v3052_v61  ;;  %v1761_v34 = vld [vmem:[%s3272_s17] sm:$0x3] }
 0x512   :  { %v1686_v31 = vadd.f32 %v1685_v46, %v1673_v42  ;;  %v1674_v51 = vmul.f32 %v3078_v2, %v3078_v2  ;;  %v1679_v3 = vmul.f32 %v3054_v62, %v3054_v62  ;;  %v1676_v11 = vmul.f32 %v3082_v4, %v3082_v4 }
 0x513   :  { %v1698_v54 = vadd.f32 %v1672_v35, %v1670_v36  ;;  %v1681_v12 = vmul.f32 %v3056_v63, %v3056_v63  ;;  %v1678_v14 = vmul.f32 %v3084_v7, %v3084_v7  ;;  %v1683_v55 = vmul.f32 %v3058_v1, %v3058_v1 }
 0x514   :  { %v1687_v49 = vadd.f32 %v1686_v31, %v1675_v19  ;;  %v1680_v17 = vmul.f32 %v3086_v8, %v3086_v8  ;;  %v1682_v21 = vmul.f32 %v3088_v9, %v3088_v9  ;;  %v1684_v24 = vmul.f32 %v3090_v18, %v3090_v18 }
 0x515   :  { %v1699_v56 = vadd.f32 %v1698_v54, %v1674_v51  ;;  %v1738_v42 = vrot.slane %v1717_v5, %v2798_v37  ;;  %v3124_v46 = vrot.slane %v1717_v5, %v3000_v6  ;;  %v3127_v31 = vrot.slane %v1761_v34, %v2798_v37 }
 0x516   :  { %v1688_v10 = vadd.f32 %v1687_v49, %v1677_v44  ;;  %v3130_v36 = vrot.slane %v1761_v34, %v3000_v6 }
 0x517   :  { %v1700_v15 = vadd.f32 %v1699_v56, %v1676_v11 }
 0x518   :  { %v1689_v13 = vadd.f32 %v1688_v10, %v1679_v3 }
 0x519   :  { %v1701_v27 = vadd.f32 %v1700_v15, %v1678_v14 }
 0x51a   :  { %v1690_v16 = vadd.f32 %v1689_v13, %v1681_v12 }
 0x51b   :  { %v1702_v22 = vadd.f32 %v1701_v27, %v1680_v17 }
 0x51c   :  { %v1691_v20 = vadd.f32 %v1690_v16, %v1683_v55 }
 0x51d   :  { %v1703_v25 = vadd.f32 %v1702_v22, %v1682_v21 }
 0x51e   :  { %v1692_v23 = vrot.slane %v1691_v20, 4 }
 0x51f   :  { %v1704_v30 = vadd.f32 %v1703_v25, %v1684_v24 }
 0x520   :  { %v1693_v29 = vadd.f32 %v1692_v23, %v1691_v20 }
 0x521   :  { %v1705_v38 = vrot.slane %v1704_v30, 4 }
 0x522   :  { %v1694_v32 = vrot.slane %v1693_v29, 2 }
 0x523   :  { %v1706_v39 = vadd.f32 %v1705_v38, %v1704_v30 }
 0x524   :  { %v1695_v33 = vadd.f32 %v1694_v32, %v1693_v29 }
 0x525   :  { %v1707_v41 = vrot.slane %v1706_v39, 2 }
 0x526   :  { %v1696_v40 = vrot.slane %v1695_v33, 1 }
 0x527   :  { %v1708_v45 = vadd.f32 %v1707_v41, %v1706_v39 }
 0x528   :  { %v1697_v43 = vadd.f32 %v1696_v40, %v1695_v33 }
 0x529   :  { %v1709_v48 = vrot.slane %v1708_v45, 1 }
 0x52a   :  { %v1711_v47 = vmul.f32 0.015625, %v1697_v43 }
 0x52b   :  { %v1710_v52 = vadd.f32 %v1709_v48, %v1708_v45 }
 0x52c   :  { %v1713_v26 = vadd.f32 1e-05, %v1711_v47 }
 0x52d   :  { %v1712_v53 = vmul.f32 0.015625, %v1710_v52 }
 0x52e   :  { %2473 = vrsqrt.f32 %v1713_v26 }
 0x52f   :  { %v1714_v28 = vadd.f32 1e-05, %v1712_v53 }
 0x531   :  { %2475 = vrsqrt.f32 %v1714_v28 }
 0x538   :  { %v2474_v19 = vpop.eup %2473 }
 0x539   :  { %v1730_v35 = vmul.f32 %v2474_v19, %v3056_v63  ;;  %v1732_v44 = vmul.f32 %v2474_v19, %v3058_v1  ;;  %v1718_v49 = vmul.f32 %v2474_v19, %v3042_v57  ;;  %v1720_v51 = vmul.f32 %v2474_v19, %v3046_v58 }
 0x53a   :  { %v1722_v54 = vmul.f32 %v2474_v19, %v3048_v59  ;;  %v1724_v3 = vmul.f32 %v2474_v19, %v3050_v60  ;;  %v1726_v10 = vmul.f32 %v2474_v19, %v3052_v61  ;;  %v1728_v37 = vmul.f32 %v2474_v19, %v3054_v62 }
 0x53b   :  { %v1759_v11 = vmul.f32 %v1738_v42, %v1732_v44  ;;  %v1745_v56 = vmul.f32 %v1738_v42, %v1718_v49  ;;  %v1747_v6 = vmul.f32 %v1738_v42, %v1720_v51  ;;  %v1757_v12 = vmul.f32 %v1738_v42, %v1730_v35  ;;  %v2476_v13 = vpop.eup %2475  ;;  %v1910_v49 = vpop.permute.xlu0 %1909 }
 0x53c   :  { %v1749_v63 = vmul.f32 %v1738_v42, %v1722_v54  ;;  %v1751_v14 = vmul.f32 %v1738_v42, %v1724_v3  ;;  %v1753_v1 = vmul.f32 %v1738_v42, %v1726_v10  ;;  %v1755_v15 = vmul.f32 %v1738_v42, %v1728_v37 }
 0x53d   :  { %v3141_v57 = vadd.f32 %v3127_v31, %v1759_v11  ;;  %v1733_v58 = vmul.f32 %v2476_v13, %v3090_v18  ;;  %v1719_v59 = vmul.f32 %v2476_v13, %v3070_v50  ;;  %v1721_v60 = vmul.f32 %v2476_v13, %v3074_v0 }
 0x53e   :  { %v1773_v61 = vadd.f32 %v3127_v31, %v1745_v56  ;;  %v1775_v62 = vadd.f32 %v3127_v31, %v1747_v6  ;;  %v1723_v55 = vmul.f32 %v2476_v13, %v3078_v2  ;;  %v1725_v16 = vmul.f32 %v2476_v13, %v3082_v4 }
 0x53f   :  { %1811 = vst [vmem:[%s3273_s18 + $0x70] sm:$0xff] %v3141_v57  ;;  %v1760_v17 = vmul.f32 %v3124_v46, %v1733_v58  ;;  %v1746_v18 = vmul.f32 %v3124_v46, %v1719_v59  ;;  %v1748_v50 = vmul.f32 %v3124_v46, %v1721_v60  ;;  %v1777_v0 = vadd.f32 %v3127_v31, %v1749_v63 }
 0x540   :  { %v1789_v27 = vpack.c.bf16 %v1775_v62, %v1773_v61  ;;  %1797 = vst [vmem:[%s3273_s18] sm:$0xff] %v1773_v61  ;;  %1799 = vst [vmem:[%s3273_s18 + $0x10] sm:$0xff] %v1775_v62  ;;  %v1750_v2 = vmul.f32 %v3124_v46, %v1723_v55  ;;  %v1752_v4 = vmul.f32 %v3124_v46, %v1725_v16 }
 0x541   :  { %v1779_v20 = vadd.f32 %v3127_v31, %v1751_v14  ;;  %v1774_v21 = vadd.f32 %v3130_v36, %v1746_v18  ;;  %v1776_v22 = vadd.f32 %v3130_v36, %v1748_v50  ;;  %1801 = vst [vmem:[%s3273_s18 + $0x20] sm:$0xff] %v1777_v0  ;;  %v1727_v23 = vmul.f32 %v2476_v13, %v3084_v7 }
 0x542   :  { %v1729_v24 = vmul.f32 %v2476_v13, %v3086_v8  ;;  %v1778_v25 = vadd.f32 %v3130_v36, %v1750_v2  ;;  %v1780_v29 = vadd.f32 %v3130_v36, %v1752_v4  ;;  %v1781_v32 = vadd.f32 %v3127_v31, %v1753_v1 }
 0x543   :  { %v1791_v30 = vpack.c.bf16 %v1779_v20, %v1777_v0  ;;  %1803 = vst [vmem:[%s3273_s18 + $0x30] sm:$0xff] %v1779_v20  ;;  %v1790_v38 = vpack.c.bf16 %v1776_v22, %v1774_v21  ;;  %1798 = vst [vmem:[%s3273_s18 + $0x8] sm:$0xff] %v1774_v21  ;;  %v2051_v7 = vpack.c.bf16 %v1774_v21, %v1773_v61 }
 0x544   :  { %1800 = vst [vmem:[%s3273_s18 + $0x18] sm:$0xff] %v1776_v22  ;;  %v2052_v8 = vpack.c.bf16 %v1776_v22, %v1775_v62  ;;  %v1754_v33 = vmul.f32 %v3124_v46, %v1727_v23  ;;  %v1792_v39 = vpack.c.bf16 %v1780_v29, %v1778_v25  ;;  %1802 = vst [vmem:[%s3273_s18 + $0x28] sm:$0xff] %v1778_v25 }
 0x545   :  { %1804 = vst [vmem:[%s3273_s18 + $0x38] sm:$0xff] %v1780_v29  ;;  %v2053_v40 = vpack.c.bf16 %v1778_v25, %v1777_v0  ;;  %v2054_v41 = vpack.c.bf16 %v1780_v29, %v1779_v20  ;;  %v1756_v43 = vmul.f32 %v3124_v46, %v1729_v24  ;;  %1805 = vst [vmem:[%s3273_s18 + $0x40] sm:$0xff] %v1781_v32  ;;  %1865 = vmatprep.subr.bf16.mxu1 %v1790_v38 }
 0x546   :  { %1853 = vst [vmem:[%s3274_s19] sm:$0xff] %v2051_v7  ;;  %1854 = vst [vmem:[%s3274_s19 + $0x8] sm:$0xff] %v2052_v8  ;;  %v1782_v45 = vadd.f32 %v3130_v36, %v1754_v33  ;;  %v1783_v47 = vadd.f32 %v3127_v31, %v1755_v15  ;;  %v1731_v48 = vmul.f32 %v2476_v13, %v3088_v9  ;;  %1866 = vmatpush1.bf16.msra.mxu1 %v1789_v27 }
 0x547   :  { %v1788_v26 = vadd.f32 %v3130_v36, %v1760_v17  ;;  %1855 = vst [vmem:[%s3274_s19 + $0x10] sm:$0xff] %v2053_v40  ;;  %1856 = vst [vmem:[%s3274_s19 + $0x18] sm:$0xff] %v2054_v41  ;;  %v1784_v52 = vadd.f32 %v3130_v36, %v1756_v43  ;;  %v1785_v53 = vadd.f32 %v3127_v31, %v1757_v12  ;;  %1867 = vmatprep.subr.bf16.mxu1 %v1792_v39 }
 0x548   :  { %1806 = vst [vmem:[%s3273_s18 + $0x48] sm:$0xff] %v1782_v45  ;;  %v1793_v9 = vpack.c.bf16 %v1783_v47, %v1781_v32  ;;  %1807 = vst [vmem:[%s3273_s18 + $0x50] sm:$0xff] %v1783_v47  ;;  %v2055_v28 = vpack.c.bf16 %v1782_v45, %v1781_v32  ;;  %v1758_v5 = vmul.f32 %v3124_v46, %v1731_v48 }
 0x549   :  { %1812 = vst [vmem:[%s3273_s18 + $0x78] sm:$0xff] %v1788_v26  ;;  %v2058_v34 = vpack.c.bf16 %v1788_v26, %v3141_v57  ;;  %v1794_v42 = vpack.c.bf16 %v1784_v52, %v1782_v45  ;;  %1808 = vst [vmem:[%s3273_s18 + $0x58] sm:$0xff] %v1784_v52  ;;  %v2056_v19 = vpack.c.bf16 %v1784_v52, %v1783_v47 }
 0x54a   :  { %v1795_v31 = vpack.c.bf16 %v3141_v57, %v1785_v53  ;;  %1809 = vst [vmem:[%s3273_s18 + $0x60] sm:$0xff] %v1785_v53  ;;  %1857 = vst [vmem:[%s3274_s19 + $0x20] sm:$0xff] %v2055_v28  ;;  %v1786_v46 = vadd.f32 %v3130_v36, %v1758_v5  ;;  %1868 = vmatpush1.bf16.msra.mxu1 %v1791_v30  ;;  %v1861_v36 = vld [vmem:[%s3275_s5] sm:$0x3] }
 0x54b   :  { %1860 = vst [vmem:[%s3274_s19 + $0x38] sm:$0xff] %v2058_v34  ;;  %1858 = vst [vmem:[%s3274_s19 + $0x28] sm:$0xff] %v2056_v19  ;;  %1869 = vmatprep.subr.bf16.mxu1 %v1794_v42 }
 0x54c   :  { %v1796_v35 = vpack.c.bf16 %v1788_v26, %v1786_v46  ;;  %1810 = vst [vmem:[%s3273_s18 + $0x68] sm:$0xff] %v1786_v46  ;;  %v2057_v44 = vpack.c.bf16 %v1786_v46, %v1785_v53 }
 0x54e   :  { %1859 = vst [vmem:[%s3274_s19 + $0x30] sm:$0xff] %v2057_v44  ;;  %1870 = vmatpush1.bf16.msra.mxu1 %v1793_v9 }
 0x54f   :  { %1871 = vmatprep.subr.bf16.mxu1 %v1796_v35 }
 0x552   :  { %1872 = vmatpush1.bf16.msra.mxu1 %v1795_v31 }
 0x555   :  { %2050 = vmatmul.mubr.msk.bf16.vlgmr.msra.gmra.mrb[32].mxu1 %vm835_vm2, %v1861_v36 }
 0x628   :  { %v1899_v51 = vpop.f32.mrb[32].mxu1 }
 0x629   :  { %v1912_v54 = vmul.f32 %v1910_v49, %v1899_v51  ;;  %v1901_v3 = vpop.f32.mrb[33].mxu1 }
 0x62a   :  { %v1913_v10 = vmul.f32 %v1910_v49, %v1901_v3  ;;  %v1903_v37 = vpop.f32.mrb[34].mxu1 }
 0x62b   :  { %v1904_v11 = vpop.f32.mrb[35].mxu1 }
 0x62c   :  { %v1916_v56 = vcombine.low %v1912_v54, %v1913_v10 }
 0x62e   :  { %1918 = vst [vmem:[%s3276_s20] sm:$0xff] %v1916_v56 }

// kernel: net_gine_forward.6
= control target key start
LH: loop header
LB: loop body
LE: loop exit
PB: predicated region body
PF: predicated region fallthrough
CT: control target
= control target key end

     0   :  { %vm264_vm0 = vcmask 1043456   ;;  %v3142_v1 = vmov 0   ;;  %vm215_vm1 = vcmask 64512   ;;  %v120_v54 = vlaneseq  ;;  %s4231_s7 = inlined_call_operand.vmem [shape: bf16[8,256], index: 7, kind: input, shape index: {}]   ;;  %s4232_s2 = inlined_call_operand.vmem [shape: bf16[256,8], index: 2, kind: input, shape index: {}]   ;;  %s4233_s9 = inlined_call_operand.vmem [shape: bf16[256,256], index: 9, kind: input, shape index: {}]   ;;  %s4234_s1 = inlined_call_operand.vmem [shape: bf16[64,256], index: 1, kind: input, shape index: {}]   ;;  %s4235_s8 = inlined_call_operand.vmem [shape: f32[1,256], index: 8, kind: input, shape index: {}]   ;;  %s4236_s3 = inlined_call_operand.vmem [shape: bf16[256,64], index: 3, kind: input, shape index: {}]   ;;  %s4237_s10 = inlined_call_operand.vmem [shape: f32[1,256], index: 10, kind: input, shape index: {}]   ;;  %s4238_s4 = inlined_call_operand.vmem [shape: bf16[64,256], index: 4, kind: input, shape index: {}]   ;;  %s4239_s15 = inlined_call_operand.<no memory space> [shape: f32[1,1], index: 15, kind: input, shape index: {}]   ;;  %s4240_s11 = inlined_call_operand.vmem [shape: bf16[256,256], index: 11, kind: input, shape index: {}]   ;;  %s4241_s6 = inlined_call_operand.vmem [shape: f32[4,1], index: 6, kind: input, shape index: {}]   ;;  %s4242_s13 = inlined_call_operand.vmem [shape: bf16[256,256], index: 13, kind: input, shape index: {}]   ;;  %s4243_s0 = inlined_call_operand.vmem [shape: f32[64,256], index: 0, kind: input, shape index: {}]   ;;  %s4244_s12 = inlined_call_operand.vmem [shape: f32[1,256], index: 12, kind: input, shape index: {}]   ;;  %s4245_s14 = inlined_call_operand.vmem [shape: f32[1,256], index: 14, kind: input, shape index: {}]   ;;  %s4246_s16 = inlined_call_operand.vmem [shape: f32[1,256], index: 16, kind: input, shape index: {}]   ;;  %s4247_s17 = inlined_call_operand.vmem [shape: f32[1,256], index: 17, kind: input, shape index: {}]   ;;  %s4248_s18 = inlined_call_operand.vmem [shape: f32[64,256], index: 18, kind: output, shape index: {0}]   ;;  %s4249_s19 = inlined_call_operand.vmem [shape: bf16[64,256], index: 19, kind: output, shape index: {1}]   ;;  %s4250_s5 = inlined_call_operand.vmem [shape: bf16[4,64], index: 5, kind: input, shape index: {}]   ;;  %s4251_s20 = inlined_call_operand.vmem [shape: f32[4,256], index: 20, kind: output, shape index: {2}]  }
   0x1   :  { %4255 = sst [smem:[#allocation4_spill]] %s4231_s7  ;;  %303 = vmatprep.mubr.bf16.mxu0 %v3142_v1  ;;  %2935 = vset.pattern.permute.xlu0 %v3142_v1  ;;  %vm1117_vm2 = vcmask 523264  }
   0x2   :  { %4256 = sst [smem:[#allocation5_spill]] %s4232_s2  ;;  %s4260_s23 = sld [smem:[#allocation4_spill]]  ;;  %v121_v55 = vshrl.u32 %v120_v54, 7 }
   0x3   :  { %4257 = sst [smem:[#allocation6_spill]] %s4233_s9  ;;  %s4261_s25 = sld [smem:[#allocation5_spill]] }
   0x4   :  { %4258 = sst [smem:[#allocation7_spill]] %s4234_s1  ;;  %v3431_v56 = vsub.s32 0, %v121_v55  ;;  %v3436_v58 = vsub.s32 1, %v121_v55 }
   0x5   :  { %4259 = sst [smem:[#allocation8_spill]] %s4235_s8  ;;  %s4262_s8 = sld [smem:[#allocation6_spill]] }
   0x6   :  { %s4263_s29 = sld [smem:[#allocation7_spill]]  ;;  %s4264_s21 = sld [smem:[#allocation8_spill]] }
   0x8   :  { %v117_v0 = vld [vmem:[%s4260_s23] sm:$0xff] }
   0x9   :  { %v2627_v2 = vcombine.high %v117_v0, %v117_v0  ;;  %v2626_v3 = vcombine.low %v117_v0, %v117_v0  ;;  %v2938_v5 = vld [vmem:[%s4261_s25] sm:$0xff]   ;;  %v2939_v6 = vld [vmem:[%s4261_s25 + $0x8] sm:$0xff]   ;;  %v2940_v10 = vld [vmem:[%s4261_s25 + $0x10] sm:$0xff]  }
   0xa   :  { %v2941_v15 = vld [vmem:[%s4261_s25 + $0x18] sm:$0xff]   ;;  %v2942_v20 = vld [vmem:[%s4261_s25 + $0x20] sm:$0xff]   ;;  %v2943_v25 = vld [vmem:[%s4261_s25 + $0x28] sm:$0xff]  }
   0xb   :  { %2628 = vmatprep.subr.msk.bf16.mxu0 %vm264_vm0, %v2627_v2  ;;  %v266_v4 = vsel %vm264_vm0, %v2626_v3, 0  ;;  %v2954_v7 = vld [vmem:[%s4262_s8 + $0x4] ss:$8 sps:$4 sm:$0xff]   ;;  %v2956_v8 = vld [vmem:[%s4262_s8] ss:$8 sps:$4 sm:$0xff]   ;;  %v2944_v30 = vld [vmem:[%s4261_s25 + $0x30] sm:$0xff]  }
   0xc   :  { %272 = vmatpush1.bf16.msra.mxu0 %v266_v4  ;;  %v2957_v9 = vld [vmem:[%s4262_s8 + $0x14] ss:$8 sps:$4 sm:$0xff]   ;;  %764 = vmatprep.subr.bf16.mxu1 %v2954_v7  ;;  %v2959_v11 = vld [vmem:[%s4262_s8 + $0x10] ss:$8 sps:$4 sm:$0xff]   ;;  %v2960_v12 = vld [vmem:[%s4262_s8 + $0x24] ss:$8 sps:$4 sm:$0xff]  }
   0xd   :  { %765 = vmatpush1.bf16.msra.mxu1 %v2956_v8  ;;  %v2962_v13 = vld [vmem:[%s4262_s8 + $0x20] ss:$8 sps:$4 sm:$0xff]   ;;  %v2963_v14 = vld [vmem:[%s4262_s8 + $0x34] ss:$8 sps:$4 sm:$0xff]   ;;  %v2965_v16 = vld [vmem:[%s4262_s8 + $0x30] ss:$8 sps:$4 sm:$0xff]  }
   0xe   :  { %766 = vmatprep.subr.bf16.mxu1 %v2957_v9  ;;  %v2966_v17 = vld [vmem:[%s4262_s8 + $0x44] ss:$8 sps:$4 sm:$0xff]   ;;  %v2968_v18 = vld [vmem:[%s4262_s8 + $0x40] ss:$8 sps:$4 sm:$0xff]   ;;  %v2969_v19 = vld [vmem:[%s4262_s8 + $0x54] ss:$8 sps:$4 sm:$0xff]  }
   0xf   :  { %2629 = vmatmul.mubr.msk.bf16.vlgmr.msra.gmra.mrb[0].mxu0 %vm215_vm1, %v2938_v5  ;;  %v2971_v21 = vld [vmem:[%s4262_s8 + $0x50] ss:$8 sps:$4 sm:$0xff]   ;;  %v2972_v22 = vld [vmem:[%s4262_s8 + $0x64] ss:$8 sps:$4 sm:$0xff]   ;;  %v2974_v23 = vld [vmem:[%s4262_s8 + $0x60] ss:$8 sps:$4 sm:$0xff]  }
  0x10   :  { %313 = vmatprep.mubr.bf16.mxu0 %v3142_v1  ;;  %v2975_v24 = vld [vmem:[%s4262_s8 + $0x74] ss:$8 sps:$4 sm:$0xff]   ;;  %v2977_v26 = vld [vmem:[%s4262_s8 + $0x70] ss:$8 sps:$4 sm:$0xff]   ;;  %v2978_v27 = vld [vmem:[%s4262_s8 + $0x84] ss:$8 sps:$4 sm:$0xff]  }
  0x11   :  { %767 = vmatpush1.bf16.msra.mxu1 %v2959_v11  ;;  %v2980_v28 = vld [vmem:[%s4262_s8 + $0x80] ss:$8 sps:$4 sm:$0xff]   ;;  %v2981_v29 = vld [vmem:[%s4262_s8 + $0x94] ss:$8 sps:$4 sm:$0xff]   ;;  %v2983_v31 = vld [vmem:[%s4262_s8 + $0x90] ss:$8 sps:$4 sm:$0xff]  }
  0x12   :  { %768 = vmatprep.subr.bf16.mxu1 %v2960_v12  ;;  %v2984_v32 = vld [vmem:[%s4262_s8 + $0xa4] ss:$8 sps:$4 sm:$0xff]   ;;  %v2986_v33 = vld [vmem:[%s4262_s8 + $0xa0] ss:$8 sps:$4 sm:$0xff]   ;;  %v2987_v34 = vld [vmem:[%s4262_s8 + $0xb4] ss:$8 sps:$4 sm:$0xff]  }
  0x13   :  { %v2945_v35 = vld [vmem:[%s4261_s25 + $0x38] sm:$0xff]   ;;  %v2990_v37 = vld [vmem:[%s4262_s8 + $0xc4] ss:$8 sps:$4 sm:$0xff]   ;;  %v2992_v38 = vld [vmem:[%s4262_s8 + $0xc0] ss:$8 sps:$4 sm:$0xff]  }
  0x14   :  { %v2989_v36 = vld [vmem:[%s4262_s8 + $0xb0] ss:$8 sps:$4 sm:$0xff]   ;;  %v2993_v39 = vld [vmem:[%s4262_s8 + $0xd4] ss:$8 sps:$4 sm:$0xff]   ;;  %v2946_v40 = vld [vmem:[%s4261_s25 + $0x40] sm:$0xff]  }
  0x15   :  { %769 = vmatpush1.bf16.msra.mxu1 %v2962_v13  ;;  %v2947_v41 = vld [vmem:[%s4261_s25 + $0x48] sm:$0xff]   ;;  %v2948_v42 = vld [vmem:[%s4261_s25 + $0x50] sm:$0xff]   ;;  %v2949_v44 = vld [vmem:[%s4261_s25 + $0x58] sm:$0xff]  }
  0x16   :  { %770 = vmatprep.subr.bf16.mxu1 %v2963_v14  ;;  %v2995_v43 = vld [vmem:[%s4262_s8 + $0xd0] ss:$8 sps:$4 sm:$0xff]   ;;  %v2996_v45 = vld [vmem:[%s4262_s8 + $0xe4] ss:$8 sps:$4 sm:$0xff]   ;;  %v2998_v46 = vld [vmem:[%s4262_s8 + $0xe0] ss:$8 sps:$4 sm:$0xff]  }
  0x17   :  { %2630 = vmatmul.mubr.msk.bf16.gmra.mrb[4].mxu0 %vm215_vm1, %v2939_v6  ;;  %v2999_v47 = vld [vmem:[%s4262_s8 + $0xf4] ss:$8 sps:$4 sm:$0xff]   ;;  %v3001_v48 = vld [vmem:[%s4262_s8 + $0xf0] ss:$8 sps:$4 sm:$0xff]   ;;  %v2950_v49 = vld [vmem:[%s4261_s25 + $0x60] sm:$0xff]  }
  0x18   :  { %323 = vmatprep.mubr.bf16.mxu0 %v3142_v1  ;;  %v2951_v50 = vld [vmem:[%s4261_s25 + $0x68] sm:$0xff]   ;;  %v2952_v51 = vld [vmem:[%s4261_s25 + $0x70] sm:$0xff]   ;;  %v2953_v52 = vld [vmem:[%s4261_s25 + $0x78] sm:$0xff]  }
  0x19   :  { %771 = vmatpush1.bf16.msra.mxu1 %v2965_v16  ;;  %v3004_v53 = vld [vmem:[%s4263_s29 + $0x4] ss:$8 sps:$4 sm:$0xff]   ;;  %v118_v57 = vld [vmem:[%s4264_s21] sm:$0x3]  ;;  %v3007_v12 = vld [vmem:[%s4263_s29 + $0x14] ss:$8 sps:$4 sm:$0xff]  }
  0x1a   :  { %772 = vmatprep.subr.bf16.mxu1 %v2966_v17  ;;  %v3439_v59 = vrot.slane %v118_v57, %v3431_v56  ;;  %v3442_v60 = vrot.slane %v118_v57, %v3436_v58 }
  0x1d   :  { %773 = vmatpush1.bf16.msra.mxu1 %v2968_v18 }
  0x1e   :  { %774 = vmatprep.subr.bf16.mxu1 %v2969_v19  ;;  %v3005_v19 = vld [vmem:[%s4263_s29 + $0x10] ss:$8 sps:$4 sm:$0xff]  }
  0x1f   :  { %2631 = vmatmul.mubr.msk.bf16.gmra.mrb[8].mxu0 %vm215_vm1, %v2940_v10  ;;  %v3002_v10 = vld [vmem:[%s4263_s29] ss:$8 sps:$4 sm:$0xff]  }
  0x20   :  { %333 = vmatprep.mubr.bf16.mxu0 %v3142_v1 }
  0x21   :  { %775 = vmatpush1.bf16.msra.mxu1 %v2971_v21 }
  0x22   :  { %776 = vmatprep.subr.bf16.mxu1 %v2972_v22 }
  0x25   :  { %777 = vmatpush1.bf16.msra.mxu1 %v2974_v23  ;;  %v3010_v23 = vld [vmem:[%s4263_s29 + $0x24] ss:$8 sps:$4 sm:$0xff]  }
  0x26   :  { %778 = vmatprep.subr.bf16.mxu1 %v2975_v24 }
  0x27   :  { %2632 = vmatmul.mubr.msk.bf16.gmra.mrb[12].mxu0 %vm215_vm1, %v2941_v15 }
  0x28   :  { %343 = vmatprep.mubr.bf16.mxu0 %v3142_v1 }
  0x29   :  { %779 = vmatpush1.bf16.msra.mxu1 %v2977_v26 }
  0x2a   :  { %780 = vmatprep.subr.bf16.mxu1 %v2978_v27 }
  0x2d   :  { %781 = vmatpush1.bf16.msra.mxu1 %v2980_v28  ;;  %v3008_v28 = vld [vmem:[%s4263_s29 + $0x20] ss:$8 sps:$4 sm:$0xff]  }
  0x2e   :  { %782 = vmatprep.subr.bf16.mxu1 %v2981_v29 }
  0x2f   :  { %2633 = vmatmul.mubr.msk.bf16.gmra.mrb[16].mxu0 %vm215_vm1, %v2942_v20 }
  0x30   :  { %353 = vmatprep.mubr.bf16.mxu0 %v3142_v1 }
  0x31   :  { %783 = vmatpush1.bf16.msra.mxu1 %v2983_v31 }
  0x32   :  { %784 = vmatprep.subr.bf16.mxu1 %v2984_v32 }
  0x35   :  { %785 = vmatpush1.bf16.msra.mxu1 %v2986_v33 }
  0x36   :  { %786 = vmatprep.subr.bf16.mxu1 %v2987_v34 }
  0x37   :  { %2634 = vmatmul.mubr.msk.bf16.gmra.mrb[20].mxu0 %vm215_vm1, %v2943_v25 }
  0x38   :  { %363 = vmatprep.mubr.bf16.mxu0 %v3142_v1 }
  0x39   :  { %787 = vmatpush1.bf16.msra.mxu1 %v2989_v36 }
  0x3a   :  { %788 = vmatprep.subr.bf16.mxu1 %v2990_v37 }
  0x3d   :  { %789 = vmatpush1.bf16.msra.mxu1 %v2992_v38 }
  0x3e   :  { %790 = vmatprep.subr.bf16.mxu1 %v2993_v39 }
  0x3f   :  { %2635 = vmatmul.mubr.msk.bf16.gmra.mrb[24].mxu0 %vm215_vm1, %v2944_v30  ;;  %v3013_v30 = vld [vmem:[%s4263_s29 + $0x34] ss:$8 sps:$4 sm:$0xff]  }
  0x40   :  { %373 = vmatprep.mubr.bf16.mxu0 %v3142_v1 }
  0x41   :  { %791 = vmatpush1.bf16.msra.mxu1 %v2995_v43 }
  0x42   :  { %792 = vmatprep.subr.bf16.mxu1 %v2996_v45 }
  0x45   :  { %793 = vmatpush1.bf16.msra.mxu1 %v2998_v46 }
  0x46   :  { %794 = vmatprep.subr.bf16.mxu1 %v2999_v47 }
  0x47   :  { %2636 = vmatmul.mubr.msk.bf16.gmra.mrb[28].mxu0 %vm215_vm1, %v2945_v35 }
  0x48   :  { %383 = vmatprep.mubr.bf16.mxu0 %v3142_v1 }
  0x49   :  { %795 = vmatpush1.bf16.msra.mxu1 %v3001_v48 }
  0x4a   :  { %1166 = vmatprep.subr.bf16.mxu1 %v3004_v53 }
  0x4f   :  { %2637 = vmatmul.mubr.msk.bf16.gmra.mrb[32].mxu0 %vm215_vm1, %v2946_v40  ;;  %v3011_v40 = vld [vmem:[%s4263_s29 + $0x30] ss:$8 sps:$4 sm:$0xff]  }
  0x50   :  { %393 = vmatprep.mubr.bf16.mxu0 %v3142_v1 }
  0x57   :  { %2638 = vmatmul.mubr.msk.bf16.gmra.mrb[36].mxu0 %vm215_vm1, %v2947_v41 }
  0x58   :  { %403 = vmatprep.mubr.bf16.mxu0 %v3142_v1 }
  0x5f   :  { %2639 = vmatmul.mubr.msk.bf16.gmra.mrb[40].mxu0 %vm215_vm1, %v2948_v42 }
  0x60   :  { %413 = vmatprep.mubr.bf16.mxu0 %v3142_v1 }
  0x67   :  { %2640 = vmatmul.mubr.msk.bf16.gmra.mrb[44].mxu0 %vm215_vm1, %v2949_v44 }
  0x68   :  { %423 = vmatprep.mubr.bf16.mxu0 %v3142_v1 }
  0x6f   :  { %2641 = vmatmul.mubr.msk.bf16.gmra.mrb[48].mxu0 %vm215_vm1, %v2950_v49 }
  0x70   :  { %433 = vmatprep.mubr.bf16.mxu0 %v3142_v1 }
  0x77   :  { %2642 = vmatmul.mubr.msk.bf16.gmra.mrb[52].mxu0 %vm215_vm1, %v2951_v50 }
  0x78   :  { %443 = vmatprep.mubr.bf16.mxu0 %v3142_v1 }
  0x7f   :  { %2643 = vmatmul.mubr.msk.bf16.gmra.mrb[56].mxu0 %vm215_vm1, %v2952_v51 }
  0x80   :  { %453 = vmatprep.mubr.bf16.mxu0 %v3142_v1 }
  0x87   :  { %2644 = vmatmul.mubr.msk.bf16.gmra.mrb[60].mxu0 %vm215_vm1, %v2953_v52 }
  0xe2   :  { %v305_v61 = vpop.f32.mrb[0].mxu0 }
  0xe3   :  { %v306_v62 = vadd.f32 %v305_v61, %v3439_v59  ;;  %v307_v63 = vpop.f32.mrb[1].mxu0 }
  0xe4   :  { %v308_v0 = vadd.f32 %v307_v63, %v3442_v60  ;;  %v309_v2 = vpop.f32.mrb[2].mxu0 }
  0xe5   :  { %v310_v3 = vadd.f32 %v309_v2, %v3439_v59  ;;  %v311_v4 = vpop.f32.mrb[3].mxu0  ;;  %v464_v6 = vmax.f32 %v306_v62, 0.0 }
  0xe6   :  { %v312_v5 = vadd.f32 %v311_v4, %v3442_v60  ;;  %v465_v8 = vmax.f32 %v308_v0, 0.0 }
  0xe7   :  { %v466_v7 = vmax.f32 %v310_v3, 0.0 }
  0xe8   :  { %v467_v9 = vmax.f32 %v312_v5, 0.0 }
  0xe9   :  { %v528_v11 = vpack.c.bf16 %v466_v7, %v464_v6 }
  0xea   :  { %v315_v13 = vpop.f32.mrb[4].mxu0  ;;  %v529_v14 = vpack.c.bf16 %v467_v9, %v465_v8 }
  0xeb   :  { %v316_v15 = vadd.f32 %v315_v13, %v3439_v59  ;;  %v317_v16 = vpop.f32.mrb[5].mxu0 }
  0xec   :  { %v318_v17 = vadd.f32 %v317_v16, %v3442_v60  ;;  %v319_v18 = vpop.f32.mrb[6].mxu0  ;;  %796 = vmatprep.mubr.bf16.mxu1 %v529_v14 }
  0xed   :  { %v320_v20 = vadd.f32 %v319_v18, %v3439_v59  ;;  %v321_v21 = vpop.f32.mrb[7].mxu0  ;;  %797 = vmatmul.mubr.bf16.vlgmr.msra.gmra.mrb[0].mxu1 %v528_v11  ;;  %v468_v24 = vmax.f32 %v316_v15, 0.0 }
  0xee   :  { %v322_v22 = vadd.f32 %v321_v21, %v3442_v60  ;;  %1167 = vmatpush1.bf16.msra.mxu1 %v3002_v10  ;;  %v469_v26 = vmax.f32 %v318_v17, 0.0 }
  0xef   :  { %v470_v25 = vmax.f32 %v320_v20, 0.0  ;;  %1168 = vmatprep.subr.bf16.mxu1 %v3007_v12 }
  0xf0   :  { %v471_v27 = vmax.f32 %v322_v22, 0.0 }
  0xf1   :  { %v530_v29 = vpack.c.bf16 %v470_v25, %v468_v24 }
  0xf2   :  { %v531_v31 = vpack.c.bf16 %v471_v27, %v469_v26  ;;  %v325_v32 = vpop.f32.mrb[8].mxu0  ;;  %1169 = vmatpush1.bf16.msra.mxu1 %v3005_v19 }
  0xf3   :  { %v326_v33 = vadd.f32 %v325_v32, %v3439_v59  ;;  %v327_v34 = vpop.f32.mrb[9].mxu0  ;;  %1170 = vmatprep.subr.bf16.mxu1 %v3010_v23 }
  0xf4   :  { %v328_v35 = vadd.f32 %v327_v34, %v3442_v60  ;;  %v329_v36 = vpop.f32.mrb[10].mxu0  ;;  %806 = vmatprep.mubr.bf16.mxu1 %v531_v31 }
  0xf5   :  { %v330_v37 = vadd.f32 %v329_v36, %v3439_v59  ;;  %v331_v38 = vpop.f32.mrb[11].mxu0  ;;  %807 = vmatmul.mubr.bf16.gmra.mrb[4].mxu1 %v530_v29  ;;  %v472_v41 = vmax.f32 %v326_v33, 0.0 }
  0xf6   :  { %v332_v39 = vadd.f32 %v331_v38, %v3442_v60  ;;  %1171 = vmatpush1.bf16.msra.mxu1 %v3008_v28  ;;  %v473_v43 = vmax.f32 %v328_v35, 0.0 }
  0xf7   :  { %v474_v42 = vmax.f32 %v330_v37, 0.0  ;;  %1172 = vmatprep.subr.bf16.mxu1 %v3013_v30 }
  0xf8   :  { %v475_v44 = vmax.f32 %v332_v39, 0.0 }
  0xf9   :  { %v532_v45 = vpack.c.bf16 %v474_v42, %v472_v41 }
  0xfa   :  { %v533_v46 = vpack.c.bf16 %v475_v44, %v473_v43  ;;  %v335_v47 = vpop.f32.mrb[12].mxu0  ;;  %1173 = vmatpush1.bf16.msra.mxu1 %v3011_v40 }
  0xfb   :  { %v336_v48 = vadd.f32 %v335_v47, %v3439_v59  ;;  %v337_v49 = vpop.f32.mrb[13].mxu0 }
  0xfc   :  { %v338_v50 = vadd.f32 %v337_v49, %v3442_v60  ;;  %v339_v51 = vpop.f32.mrb[14].mxu0  ;;  %816 = vmatprep.mubr.bf16.mxu1 %v533_v46 }
  0xfd   :  { %v340_v52 = vadd.f32 %v339_v51, %v3439_v59  ;;  %v341_v53 = vpop.f32.mrb[15].mxu0  ;;  %817 = vmatmul.mubr.bf16.gmra.mrb[8].mxu1 %v532_v45  ;;  %v476_v55 = vmax.f32 %v336_v48, 0.0 }
  0xfe   :  { %v342_v54 = vadd.f32 %v341_v53, %v3442_v60  ;;  %v477_v61 = vmax.f32 %v338_v50, 0.0 }
  0xff   :  { %v478_v57 = vmax.f32 %v340_v52, 0.0 }
 0x100   :  { %v479_v62 = vmax.f32 %v342_v54, 0.0 }
 0x101   :  { %v534_v63 = vpack.c.bf16 %v478_v57, %v476_v55 }
 0x102   :  { %v535_v0 = vpack.c.bf16 %v479_v62, %v477_v61  ;;  %v345_v2 = vpop.f32.mrb[16].mxu0 }
 0x103   :  { %v346_v3 = vadd.f32 %v345_v2, %v3439_v59  ;;  %v347_v4 = vpop.f32.mrb[17].mxu0 }
 0x104   :  { %v348_v5 = vadd.f32 %v347_v4, %v3442_v60  ;;  %v349_v6 = vpop.f32.mrb[18].mxu0  ;;  %826 = vmatprep.mubr.bf16.mxu1 %v535_v0 }
 0x105   :  { %v350_v7 = vadd.f32 %v349_v6, %v3439_v59  ;;  %v351_v8 = vpop.f32.mrb[19].mxu0  ;;  %827 = vmatmul.mubr.bf16.gmra.mrb[12].mxu1 %v534_v63  ;;  %v480_v10 = vmax.f32 %v346_v3, 0.0 }
 0x106   :  { %v352_v9 = vadd.f32 %v351_v8, %v3442_v60  ;;  %v481_v12 = vmax.f32 %v348_v5, 0.0 }
 0x107   :  { %v482_v11 = vmax.f32 %v350_v7, 0.0 }
 0x108   :  { %v483_v13 = vmax.f32 %v352_v9, 0.0 }
 0x109   :  { %v536_v14 = vpack.c.bf16 %v482_v11, %v480_v10 }
 0x10a   :  { %v537_v15 = vpack.c.bf16 %v483_v13, %v481_v12  ;;  %v355_v16 = vpop.f32.mrb[20].mxu0 }
 0x10b   :  { %v356_v17 = vadd.f32 %v355_v16, %v3439_v59  ;;  %v357_v18 = vpop.f32.mrb[21].mxu0 }
 0x10c   :  { %v358_v19 = vadd.f32 %v357_v18, %v3442_v60  ;;  %v359_v20 = vpop.f32.mrb[22].mxu0  ;;  %836 = vmatprep.mubr.bf16.mxu1 %v537_v15 }
 0x10d   :  { %v360_v21 = vadd.f32 %v359_v20, %v3439_v59  ;;  %v361_v22 = vpop.f32.mrb[23].mxu0  ;;  %837 = vmatmul.mubr.bf16.gmra.mrb[16].mxu1 %v536_v14  ;;  %v484_v24 = vmax.f32 %v356_v17, 0.0 }
 0x10e   :  { %v362_v23 = vadd.f32 %v361_v22, %v3442_v60  ;;  %v485_v26 = vmax.f32 %v358_v19, 0.0 }
 0x10f   :  { %v486_v25 = vmax.f32 %v360_v21, 0.0 }
 0x110   :  { %v487_v27 = vmax.f32 %v362_v23, 0.0 }
 0x111   :  { %v538_v28 = vpack.c.bf16 %v486_v25, %v484_v24 }
 0x112   :  { %v539_v29 = vpack.c.bf16 %v487_v27, %v485_v26  ;;  %v365_v30 = vpop.f32.mrb[24].mxu0 }
 0x113   :  { %v366_v31 = vadd.f32 %v365_v30, %v3439_v59  ;;  %v367_v32 = vpop.f32.mrb[25].mxu0 }
 0x114   :  { %v368_v33 = vadd.f32 %v367_v32, %v3442_v60  ;;  %v369_v34 = vpop.f32.mrb[26].mxu0  ;;  %846 = vmatprep.mubr.bf16.mxu1 %v539_v29 }
 0x115   :  { %v370_v35 = vadd.f32 %v369_v34, %v3439_v59  ;;  %v371_v36 = vpop.f32.mrb[27].mxu0  ;;  %847 = vmatmul.mubr.bf16.gmra.mrb[20].mxu1 %v538_v28  ;;  %v488_v38 = vmax.f32 %v366_v31, 0.0 }
 0x116   :  { %v372_v37 = vadd.f32 %v371_v36, %v3442_v60  ;;  %v489_v40 = vmax.f32 %v368_v33, 0.0 }
 0x117   :  { %v490_v39 = vmax.f32 %v370_v35, 0.0 }
 0x118   :  { %v491_v41 = vmax.f32 %v372_v37, 0.0 }
 0x119   :  { %v540_v42 = vpack.c.bf16 %v490_v39, %v488_v38 }
 0x11a   :  { %v541_v43 = vpack.c.bf16 %v491_v41, %v489_v40  ;;  %v375_v44 = vpop.f32.mrb[28].mxu0 }
 0x11b   :  { %v376_v45 = vadd.f32 %v375_v44, %v3439_v59  ;;  %v377_v46 = vpop.f32.mrb[29].mxu0 }
 0x11c   :  { %v378_v47 = vadd.f32 %v377_v46, %v3442_v60  ;;  %v379_v48 = vpop.f32.mrb[30].mxu0  ;;  %856 = vmatprep.mubr.bf16.mxu1 %v541_v43 }
 0x11d   :  { %v380_v49 = vadd.f32 %v379_v48, %v3439_v59  ;;  %v381_v50 = vpop.f32.mrb[31].mxu0  ;;  %857 = vmatmul.mubr.bf16.gmra.mrb[24].mxu1 %v540_v42  ;;  %v492_v52 = vmax.f32 %v376_v45, 0.0 }
 0x11e   :  { %v382_v51 = vadd.f32 %v381_v50, %v3442_v60  ;;  %v493_v54 = vmax.f32 %v378_v47, 0.0 }
 0x11f   :  { %v494_v53 = vmax.f32 %v380_v49, 0.0 }
 0x120   :  { %v495_v55 = vmax.f32 %v382_v51, 0.0 }
 0x121   :  { %v542_v57 = vpack.c.bf16 %v494_v53, %v492_v52 }
 0x122   :  { %v543_v61 = vpack.c.bf16 %v495_v55, %v493_v54  ;;  %v385_v62 = vpop.f32.mrb[32].mxu0 }
 0x123   :  { %v386_v63 = vadd.f32 %v385_v62, %v3439_v59  ;;  %v387_v0 = vpop.f32.mrb[33].mxu0 }
 0x124   :  { %v388_v2 = vadd.f32 %v387_v0, %v3442_v60  ;;  %v389_v3 = vpop.f32.mrb[34].mxu0  ;;  %866 = vmatprep.mubr.bf16.mxu1 %v543_v61 }
 0x125   :  { %v390_v4 = vadd.f32 %v389_v3, %v3439_v59  ;;  %v391_v5 = vpop.f32.mrb[35].mxu0  ;;  %867 = vmatmul.mubr.bf16.gmra.mrb[28].mxu1 %v542_v57  ;;  %v496_v7 = vmax.f32 %v386_v63, 0.0 }
 0x126   :  { %v392_v6 = vadd.f32 %v391_v5, %v3442_v60  ;;  %v497_v9 = vmax.f32 %v388_v2, 0.0 }
 0x127   :  { %v498_v8 = vmax.f32 %v390_v4, 0.0 }
 0x128   :  { %v499_v10 = vmax.f32 %v392_v6, 0.0 }
 0x129   :  { %v544_v11 = vpack.c.bf16 %v498_v8, %v496_v7 }
 0x12a   :  { %v545_v12 = vpack.c.bf16 %v499_v10, %v497_v9  ;;  %v395_v13 = vpop.f32.mrb[36].mxu0 }
 0x12b   :  { %v396_v14 = vadd.f32 %v395_v13, %v3439_v59  ;;  %v397_v15 = vpop.f32.mrb[37].mxu0 }
 0x12c   :  { %v398_v16 = vadd.f32 %v397_v15, %v3442_v60  ;;  %v399_v17 = vpop.f32.mrb[38].mxu0  ;;  %876 = vmatprep.mubr.bf16.mxu1 %v545_v12 }
 0x12d   :  { %v400_v18 = vadd.f32 %v399_v17, %v3439_v59  ;;  %v401_v19 = vpop.f32.mrb[39].mxu0  ;;  %877 = vmatmul.mubr.bf16.gmra.mrb[32].mxu1 %v544_v11  ;;  %v500_v21 = vmax.f32 %v396_v14, 0.0 }
 0x12e   :  { %v402_v20 = vadd.f32 %v401_v19, %v3442_v60  ;;  %v501_v23 = vmax.f32 %v398_v16, 0.0 }
 0x12f   :  { %v502_v22 = vmax.f32 %v400_v18, 0.0 }
 0x130   :  { %v503_v24 = vmax.f32 %v402_v20, 0.0 }
 0x131   :  { %v546_v25 = vpack.c.bf16 %v502_v22, %v500_v21 }
 0x132   :  { %v547_v26 = vpack.c.bf16 %v503_v24, %v501_v23  ;;  %v405_v27 = vpop.f32.mrb[40].mxu0 }
 0x133   :  { %v406_v28 = vadd.f32 %v405_v27, %v3439_v59  ;;  %v407_v29 = vpop.f32.mrb[41].mxu0 }
 0x134   :  { %v408_v30 = vadd.f32 %v407_v29, %v3442_v60  ;;  %v409_v31 = vpop.f32.mrb[42].mxu0  ;;  %886 = vmatprep.mubr.bf16.mxu1 %v547_v26 }
 0x135   :  { %v410_v32 = vadd.f32 %v409_v31, %v3439_v59  ;;  %v411_v33 = vpop.f32.mrb[43].mxu0  ;;  %887 = vmatmul.mubr.bf16.gmra.mrb[36].mxu1 %v546_v25  ;;  %v504_v35 = vmax.f32 %v406_v28, 0.0 }
 0x136   :  { %v412_v34 = vadd.f32 %v411_v33, %v3442_v60  ;;  %v505_v37 = vmax.f32 %v408_v30, 0.0 }
 0x137   :  { %v506_v36 = vmax.f32 %v410_v32, 0.0 }
 0x138   :  { %v507_v38 = vmax.f32 %v412_v34, 0.0 }
 0x139   :  { %v548_v39 = vpack.c.bf16 %v506_v36, %v504_v35 }
 0x13a   :  { %v549_v40 = vpack.c.bf16 %v507_v38, %v505_v37  ;;  %v415_v41 = vpop.f32.mrb[44].mxu0 }
 0x13b   :  { %v416_v42 = vadd.f32 %v415_v41, %v3439_v59  ;;  %v417_v43 = vpop.f32.mrb[45].mxu0 }
 0x13c   :  { %v418_v44 = vadd.f32 %v417_v43, %v3442_v60  ;;  %v419_v45 = vpop.f32.mrb[46].mxu0  ;;  %896 = vmatprep.mubr.bf16.mxu1 %v549_v40 }
 0x13d   :  { %v420_v46 = vadd.f32 %v419_v45, %v3439_v59  ;;  %v421_v47 = vpop.f32.mrb[47].mxu0  ;;  %897 = vmatmul.mubr.bf16.gmra.mrb[40].mxu1 %v548_v39  ;;  %v508_v49 = vmax.f32 %v416_v42, 0.0 }
 0x13e   :  { %v422_v48 = vadd.f32 %v421_v47, %v3442_v60  ;;  %v509_v51 = vmax.f32 %v418_v44, 0.0 }
 0x13f   :  { %v510_v50 = vmax.f32 %v420_v46, 0.0 }
 0x140   :  { %v511_v52 = vmax.f32 %v422_v48, 0.0 }
 0x141   :  { %v550_v53 = vpack.c.bf16 %v510_v50, %v508_v49 }
 0x142   :  { %v551_v54 = vpack.c.bf16 %v511_v52, %v509_v51  ;;  %v425_v55 = vpop.f32.mrb[48].mxu0  ;;  %v3014_v52 = vld [vmem:[%s4236_s3] sm:$0xff]  }
 0x143   :  { %v426_v57 = vadd.f32 %v425_v55, %v3439_v59  ;;  %v427_v61 = vpop.f32.mrb[49].mxu0  ;;  %v3019_v55 = vld [vmem:[%s4236_s3 + $0x28] sm:$0xff]  }
 0x144   :  { %v428_v62 = vadd.f32 %v427_v61, %v3442_v60  ;;  %v429_v63 = vpop.f32.mrb[50].mxu0  ;;  %906 = vmatprep.mubr.bf16.mxu1 %v551_v54  ;;  %v3018_v54 = vld [vmem:[%s4236_s3 + $0x20] sm:$0xff]   ;;  %v3021_v61 = vld [vmem:[%s4236_s3 + $0x38] sm:$0xff]  }
 0x145   :  { %v430_v0 = vadd.f32 %v429_v63, %v3439_v59  ;;  %v431_v2 = vpop.f32.mrb[51].mxu0  ;;  %907 = vmatmul.mubr.bf16.gmra.mrb[44].mxu1 %v550_v53  ;;  %v512_v4 = vmax.f32 %v426_v57, 0.0  ;;  %v3017_v53 = vld [vmem:[%s4236_s3 + $0x18] sm:$0xff]   ;;  %v3020_v57 = vld [vmem:[%s4236_s3 + $0x30] sm:$0xff]   ;;  %v3023_v63 = vld [vmem:[%s4236_s3 + $0x48] sm:$0xff]  }
 0x146   :  { %v432_v3 = vadd.f32 %v431_v2, %v3442_v60  ;;  %v513_v6 = vmax.f32 %v428_v62, 0.0  ;;  %v3022_v62 = vld [vmem:[%s4236_s3 + $0x40] sm:$0xff]   ;;  %v3025_v2 = vld [vmem:[%s4236_s3 + $0x58] sm:$0xff]  }
 0x147   :  { %v514_v5 = vmax.f32 %v430_v0, 0.0  ;;  %v3024_v0 = vld [vmem:[%s4236_s3 + $0x50] sm:$0xff]  }
 0x148   :  { %v515_v7 = vmax.f32 %v432_v3, 0.0  ;;  %v3026_v3 = vld [vmem:[%s4236_s3 + $0x60] sm:$0xff]  }
 0x149   :  { %v552_v8 = vpack.c.bf16 %v514_v5, %v512_v4  ;;  %v3027_v4 = vld [vmem:[%s4236_s3 + $0x68] sm:$0xff]   ;;  %v3028_v5 = vld [vmem:[%s4236_s3 + $0x70] sm:$0xff]  }
 0x14a   :  { %v553_v9 = vpack.c.bf16 %v515_v7, %v513_v6  ;;  %v435_v10 = vpop.f32.mrb[52].mxu0  ;;  %v3029_v6 = vld [vmem:[%s4236_s3 + $0x78] sm:$0xff]   ;;  %v592_v7 = vld [vmem:[%s4237_s10] sm:$0x3] }
 0x14b   :  { %v436_v11 = vadd.f32 %v435_v10, %v3439_v59  ;;  %v437_v12 = vpop.f32.mrb[53].mxu0 }
 0x14c   :  { %v438_v13 = vadd.f32 %v437_v12, %v3442_v60  ;;  %v439_v14 = vpop.f32.mrb[54].mxu0  ;;  %916 = vmatprep.mubr.bf16.mxu1 %v553_v9  ;;  %v3616_v9 = vrot.slane %v592_v7, %v3436_v58 }
 0x14d   :  { %v440_v15 = vadd.f32 %v439_v14, %v3439_v59  ;;  %v441_v16 = vpop.f32.mrb[55].mxu0  ;;  %917 = vmatmul.mubr.bf16.gmra.mrb[48].mxu1 %v552_v8  ;;  %v516_v18 = vmax.f32 %v436_v11, 0.0  ;;  %v3613_v8 = vrot.slane %v592_v7, %v3431_v56 }
 0x14e   :  { %v442_v17 = vadd.f32 %v441_v16, %v3442_v60  ;;  %v517_v20 = vmax.f32 %v438_v13, 0.0 }
 0x14f   :  { %v518_v19 = vmax.f32 %v440_v15, 0.0 }
 0x150   :  { %v519_v21 = vmax.f32 %v442_v17, 0.0 }
 0x151   :  { %v554_v22 = vpack.c.bf16 %v518_v19, %v516_v18  ;;  %v3032_v18 = vld [vmem:[%s4238_s4 + $0x4] ss:$8 sps:$4 sm:$0xff]  }
 0x152   :  { %v555_v23 = vpack.c.bf16 %v519_v21, %v517_v20  ;;  %v445_v24 = vpop.f32.mrb[56].mxu0  ;;  %1551 = vmatprep.mubr.bf16.mxu0 %v3032_v18 }
 0x153   :  { %v446_v25 = vadd.f32 %v445_v24, %v3439_v59  ;;  %v447_v26 = vpop.f32.mrb[57].mxu0 }
 0x154   :  { %v448_v27 = vadd.f32 %v447_v26, %v3442_v60  ;;  %v449_v28 = vpop.f32.mrb[58].mxu0  ;;  %926 = vmatprep.mubr.bf16.mxu1 %v555_v23 }
 0x155   :  { %v450_v29 = vadd.f32 %v449_v28, %v3439_v59  ;;  %v451_v30 = vpop.f32.mrb[59].mxu0  ;;  %927 = vmatmul.mubr.bf16.gmra.mrb[52].mxu1 %v554_v22  ;;  %v520_v32 = vmax.f32 %v446_v25, 0.0 }
 0x156   :  { %v452_v31 = vadd.f32 %v451_v30, %v3442_v60  ;;  %v521_v34 = vmax.f32 %v448_v27, 0.0 }
 0x157   :  { %v522_v33 = vmax.f32 %v450_v29, 0.0 }
 0x158   :  { %v523_v35 = vmax.f32 %v452_v31, 0.0 }
 0x159   :  { %v556_v36 = vpack.c.bf16 %v522_v33, %v520_v32 }
 0x15a   :  { %v557_v37 = vpack.c.bf16 %v523_v35, %v521_v34  ;;  %v455_v38 = vpop.f32.mrb[60].mxu0 }
 0x15b   :  { %v456_v39 = vadd.f32 %v455_v38, %v3439_v59  ;;  %v457_v40 = vpop.f32.mrb[61].mxu0 }
 0x15c   :  { %v458_v41 = vadd.f32 %v457_v40, %v3442_v60  ;;  %v459_v42 = vpop.f32.mrb[62].mxu0  ;;  %936 = vmatprep.mubr.bf16.mxu1 %v557_v37 }
 0x15d   :  { %v460_v43 = vadd.f32 %v459_v42, %v3439_v59  ;;  %v461_v44 = vpop.f32.mrb[63].mxu0  ;;  %937 = vmatmul.mubr.bf16.gmra.mrb[56].mxu1 %v556_v36  ;;  %v524_v46 = vmax.f32 %v456_v39, 0.0  ;;  %v3015_v59 = vld [vmem:[%s4236_s3 + $0x8] sm:$0xff]  }
 0x15e   :  { %v462_v45 = vadd.f32 %v461_v44, %v3442_v60  ;;  %v525_v48 = vmax.f32 %v458_v41, 0.0  ;;  %v3016_v60 = vld [vmem:[%s4236_s3 + $0x10] sm:$0xff]  }
 0x15f   :  { %v526_v47 = vmax.f32 %v460_v43, 0.0 }
 0x160   :  { %v527_v49 = vmax.f32 %v462_v45, 0.0 }
 0x161   :  { %v558_v50 = vpack.c.bf16 %v526_v47, %v524_v46 }
 0x162   :  { %v559_v51 = vpack.c.bf16 %v527_v49, %v525_v48 }
 0x164   :  { %946 = vmatprep.mubr.bf16.mxu1 %v559_v51 }
 0x165   :  { %947 = vmatmul.mubr.bf16.gmra.mrb[60].mxu1 %v558_v50 }
 0x166   :  { %1198 = vmatprep.mubr.bf16.mxu1 %v3142_v1 }
 0x16d   :  { %2701 = vmatmul.mubr.msk.bf16.vlgmr.msra.gmra.mrb[0].mxu1 %vm1117_vm2, %v3014_v52 }
 0x16e   :  { %1208 = vmatprep.mubr.bf16.mxu1 %v3142_v1 }
 0x175   :  { %2702 = vmatmul.mubr.msk.bf16.gmra.mrb[4].mxu1 %vm1117_vm2, %v3015_v59 }
 0x176   :  { %1218 = vmatprep.mubr.bf16.mxu1 %v3142_v1 }
 0x17d   :  { %2703 = vmatmul.mubr.msk.bf16.gmra.mrb[8].mxu1 %vm1117_vm2, %v3016_v60 }
 0x17e   :  { %1228 = vmatprep.mubr.bf16.mxu1 %v3142_v1 }
 0x185   :  { %2704 = vmatmul.mubr.msk.bf16.gmra.mrb[12].mxu1 %vm1117_vm2, %v3017_v53 }
 0x186   :  { %1238 = vmatprep.mubr.bf16.mxu1 %v3142_v1 }
 0x18d   :  { %2705 = vmatmul.mubr.msk.bf16.gmra.mrb[16].mxu1 %vm1117_vm2, %v3018_v54 }
 0x18e   :  { %1248 = vmatprep.mubr.bf16.mxu1 %v3142_v1 }
 0x195   :  { %2706 = vmatmul.mubr.msk.bf16.gmra.mrb[20].mxu1 %vm1117_vm2, %v3019_v55 }
 0x196   :  { %1258 = vmatprep.mubr.bf16.mxu1 %v3142_v1 }
 0x19d   :  { %2707 = vmatmul.mubr.msk.bf16.gmra.mrb[24].mxu1 %vm1117_vm2, %v3020_v57 }
 0x19e   :  { %1268 = vmatprep.mubr.bf16.mxu1 %v3142_v1 }
 0x1a5   :  { %2708 = vmatmul.mubr.msk.bf16.gmra.mrb[28].mxu1 %vm1117_vm2, %v3021_v61 }
 0x1a6   :  { %1278 = vmatprep.mubr.bf16.mxu1 %v3142_v1 }
 0x1ad   :  { %2709 = vmatmul.mubr.msk.bf16.gmra.mrb[32].mxu1 %vm1117_vm2, %v3022_v62 }
 0x1ae   :  { %1288 = vmatprep.mubr.bf16.mxu1 %v3142_v1 }
 0x1b5   :  { %2710 = vmatmul.mubr.msk.bf16.gmra.mrb[36].mxu1 %vm1117_vm2, %v3023_v63 }
 0x1b6   :  { %1298 = vmatprep.mubr.bf16.mxu1 %v3142_v1 }
 0x1bd   :  { %2711 = vmatmul.mubr.msk.bf16.gmra.mrb[40].mxu1 %vm1117_vm2, %v3024_v0 }
 0x1be   :  { %1308 = vmatprep.mubr.bf16.mxu1 %v3142_v1 }
 0x1c5   :  { %2712 = vmatmul.mubr.msk.bf16.gmra.mrb[44].mxu1 %vm1117_vm2, %v3025_v2 }
 0x1c6   :  { %1318 = vmatprep.mubr.bf16.mxu1 %v3142_v1 }
 0x1cd   :  { %2713 = vmatmul.mubr.msk.bf16.gmra.mrb[48].mxu1 %vm1117_vm2, %v3026_v3 }
 0x1ce   :  { %1328 = vmatprep.mubr.bf16.mxu1 %v3142_v1 }
 0x1d5   :  { %2714 = vmatmul.mubr.msk.bf16.gmra.mrb[52].mxu1 %vm1117_vm2, %v3027_v4 }
 0x1d6   :  { %1338 = vmatprep.mubr.bf16.mxu1 %v3142_v1 }
 0x1dd   :  { %2715 = vmatmul.mubr.msk.bf16.gmra.mrb[56].mxu1 %vm1117_vm2, %v3028_v5  ;;  %v26_v5 = vstv %s4239_s15 }
 0x1de   :  { %1348 = vmatprep.mubr.bf16.mxu1 %v3142_v1  ;;  %27 = vst [vmem:[#allocation3] sm:$0x1] %v26_v5 }
 0x1e5   :  { %2716 = vmatmul.mubr.msk.bf16.gmra.mrb[60].mxu1 %vm1117_vm2, %v3029_v6 }
 0x240   :  { %v1200_v10 = vpop.f32.mrb[0].mxu1 }
 0x241   :  { %v2806_v11 = vadd.f32 %v1200_v10, %v3613_v8  ;;  %v1202_v12 = vpop.f32.mrb[1].mxu1 }
 0x242   :  { %v2807_v13 = vadd.f32 %v1202_v12, %v3616_v9  ;;  %v1204_v14 = vpop.f32.mrb[2].mxu1 }
 0x243   :  { %v2808_v15 = vadd.f32 %v1204_v14, %v3613_v8  ;;  %v1206_v16 = vpop.f32.mrb[3].mxu1  ;;  %v1359_v19 = vmax.f32 %v2806_v11, 0.0 }
 0x244   :  { %v2809_v17 = vadd.f32 %v1206_v16, %v3616_v9  ;;  %v1360_v21 = vmax.f32 %v2807_v13, 0.0 }
 0x245   :  { %v1361_v20 = vmax.f32 %v2808_v15, 0.0 }
 0x246   :  { %v1362_v22 = vmax.f32 %v2809_v17, 0.0 }
 0x247   :  { %v1447_v23 = vpack.c.bf16 %v1361_v20, %v1359_v19 }
 0x248   :  { %v1448_v24 = vpack.c.bf16 %v1362_v22, %v1360_v21  ;;  %v1210_v25 = vpop.f32.mrb[4].mxu1  ;;  %v1643_v22 = vld [vmem:[#allocation3] sm:$0x1] }
 0x249   :  { %v2810_v26 = vadd.f32 %v1210_v25, %v3613_v8  ;;  %v1212_v27 = vpop.f32.mrb[5].mxu1  ;;  %v1644_v25 = vadd.f32 1.0, %v1643_v22 }
 0x24a   :  { %v2811_v28 = vadd.f32 %v1212_v27, %v3616_v9  ;;  %v1214_v29 = vpop.f32.mrb[6].mxu1  ;;  %1519 = vmatprep.subr.bf16.mxu0 %v1448_v24 }
 0x24b   :  { %v2812_v30 = vadd.f32 %v1214_v29, %v3613_v8  ;;  %v1216_v31 = vpop.f32.mrb[7].mxu1  ;;  %1520 = vmatpush1.bf16.msra.mxu0 %v1447_v23  ;;  %v1363_v33 = vmax.f32 %v2810_v26, 0.0 }
 0x24c   :  { %v2813_v32 = vadd.f32 %v1216_v31, %v3616_v9  ;;  %v1364_v35 = vmax.f32 %v2811_v28, 0.0 }
 0x24d   :  { %v1365_v34 = vmax.f32 %v2812_v30, 0.0  ;;  %v1649_v30 = vrot.slane %v1644_v25, %v3431_v56 }
 0x24e   :  { %v1366_v36 = vmax.f32 %v2813_v32, 0.0 }
 0x24f   :  { %v1449_v37 = vpack.c.bf16 %v1365_v34, %v1363_v33  ;;  %1651 = vperm.xlu0 %2935, %v1649_v30  }
 0x250   :  { %v1450_v38 = vpack.c.bf16 %v1366_v36, %v1364_v35  ;;  %v1220_v39 = vpop.f32.mrb[8].mxu1  ;;  %v2585_v36 = vld [vmem:[%s4241_s6] sm:$0xf] }
 0x251   :  { %v2814_v40 = vadd.f32 %v1220_v39, %v3613_v8  ;;  %v1222_v41 = vpop.f32.mrb[9].mxu1 }
 0x252   :  { %v2815_v42 = vadd.f32 %v1222_v41, %v3616_v9  ;;  %v1224_v43 = vpop.f32.mrb[10].mxu1  ;;  %1521 = vmatprep.subr.bf16.mxu0 %v1450_v38 }
 0x253   :  { %v2816_v44 = vadd.f32 %v1224_v43, %v3613_v8  ;;  %v1226_v45 = vpop.f32.mrb[11].mxu1  ;;  %1522 = vmatpush1.bf16.msra.mxu0 %v1449_v37  ;;  %v1367_v47 = vmax.f32 %v2814_v40, 0.0  ;;  %2588 = vperm.xlu0 %2935, %v2585_v36  }
 0x254   :  { %v2817_v46 = vadd.f32 %v1226_v45, %v3616_v9  ;;  %v1368_v49 = vmax.f32 %v2815_v42, 0.0 }
 0x255   :  { %v1369_v48 = vmax.f32 %v2816_v44, 0.0 }
 0x256   :  { %v1370_v50 = vmax.f32 %v2817_v46, 0.0 }
 0x257   :  { %v1451_v51 = vpack.c.bf16 %v1369_v48, %v1367_v47 }
 0x258   :  { %v1452_v52 = vpack.c.bf16 %v1370_v50, %v1368_v49  ;;  %v1230_v59 = vpop.f32.mrb[12].mxu1 }
 0x259   :  { %v2818_v60 = vadd.f32 %v1230_v59, %v3613_v8  ;;  %v1232_v53 = vpop.f32.mrb[13].mxu1 }
 0x25a   :  { %v2819_v54 = vadd.f32 %v1232_v53, %v3616_v9  ;;  %v1234_v55 = vpop.f32.mrb[14].mxu1  ;;  %1523 = vmatprep.subr.bf16.mxu0 %v1452_v52 }
 0x25b   :  { %v2820_v57 = vadd.f32 %v1234_v55, %v3613_v8  ;;  %v1236_v61 = vpop.f32.mrb[15].mxu1  ;;  %1524 = vmatpush1.bf16.msra.mxu0 %v1451_v51  ;;  %v1371_v63 = vmax.f32 %v2818_v60, 0.0 }
 0x25c   :  { %v2821_v62 = vadd.f32 %v1236_v61, %v3616_v9  ;;  %v1372_v2 = vmax.f32 %v2819_v54, 0.0 }
 0x25d   :  { %v1373_v0 = vmax.f32 %v2820_v57, 0.0 }
 0x25e   :  { %v1374_v3 = vmax.f32 %v2821_v62, 0.0 }
 0x25f   :  { %v1453_v4 = vpack.c.bf16 %v1373_v0, %v1371_v63 }
 0x260   :  { %v1454_v6 = vpack.c.bf16 %v1374_v3, %v1372_v2  ;;  %v1240_v7 = vpop.f32.mrb[16].mxu1 }
 0x261   :  { %v2822_v10 = vadd.f32 %v1240_v7, %v3613_v8  ;;  %v1242_v11 = vpop.f32.mrb[17].mxu1 }
 0x262   :  { %v2823_v12 = vadd.f32 %v1242_v11, %v3616_v9  ;;  %v1244_v13 = vpop.f32.mrb[18].mxu1  ;;  %1525 = vmatprep.subr.bf16.mxu0 %v1454_v6 }
 0x263   :  { %v2824_v14 = vadd.f32 %v1244_v13, %v3613_v8  ;;  %v1246_v15 = vpop.f32.mrb[19].mxu1  ;;  %1526 = vmatpush1.bf16.msra.mxu0 %v1453_v4  ;;  %v1375_v17 = vmax.f32 %v2822_v10, 0.0 }
 0x264   :  { %v2825_v16 = vadd.f32 %v1246_v15, %v3616_v9  ;;  %v1376_v19 = vmax.f32 %v2823_v12, 0.0 }
 0x265   :  { %v1377_v18 = vmax.f32 %v2824_v14, 0.0 }
 0x266   :  { %v1378_v20 = vmax.f32 %v2825_v16, 0.0 }
 0x267   :  { %v1455_v21 = vpack.c.bf16 %v1377_v18, %v1375_v17 }
 0x268   :  { %v1456_v23 = vpack.c.bf16 %v1378_v20, %v1376_v19  ;;  %v1250_v24 = vpop.f32.mrb[20].mxu1 }
 0x269   :  { %v2826_v26 = vadd.f32 %v1250_v24, %v3613_v8  ;;  %v1252_v27 = vpop.f32.mrb[21].mxu1 }
 0x26a   :  { %v2827_v28 = vadd.f32 %v1252_v27, %v3616_v9  ;;  %v1254_v29 = vpop.f32.mrb[22].mxu1  ;;  %1527 = vmatprep.subr.bf16.mxu0 %v1456_v23 }
 0x26b   :  { %v2828_v31 = vadd.f32 %v1254_v29, %v3613_v8  ;;  %v1256_v32 = vpop.f32.mrb[23].mxu1  ;;  %1528 = vmatpush1.bf16.msra.mxu0 %v1455_v21  ;;  %v1379_v34 = vmax.f32 %v2826_v26, 0.0 }
 0x26c   :  { %v2829_v33 = vadd.f32 %v1256_v32, %v3616_v9  ;;  %v1380_v37 = vmax.f32 %v2827_v28, 0.0 }
 0x26d   :  { %v1381_v35 = vmax.f32 %v2828_v31, 0.0 }
 0x26e   :  { %v1382_v38 = vmax.f32 %v2829_v33, 0.0 }
 0x26f   :  { %v1457_v39 = vpack.c.bf16 %v1381_v35, %v1379_v34 }
 0x270   :  { %v1458_v40 = vpack.c.bf16 %v1382_v38, %v1380_v37  ;;  %v1260_v41 = vpop.f32.mrb[24].mxu1 }
 0x271   :  { %v2830_v42 = vadd.f32 %v1260_v41, %v3613_v8  ;;  %v1262_v43 = vpop.f32.mrb[25].mxu1 }
 0x272   :  { %v2831_v44 = vadd.f32 %v1262_v43, %v3616_v9  ;;  %v1264_v45 = vpop.f32.mrb[26].mxu1  ;;  %1529 = vmatprep.subr.bf16.mxu0 %v1458_v40 }
 0x273   :  { %v2832_v46 = vadd.f32 %v1264_v45, %v3613_v8  ;;  %v1266_v47 = vpop.f32.mrb[27].mxu1  ;;  %1530 = vmatpush1.bf16.msra.mxu0 %v1457_v39  ;;  %v1383_v49 = vmax.f32 %v2830_v42, 0.0 }
 0x274   :  { %v2833_v48 = vadd.f32 %v1266_v47, %v3616_v9  ;;  %v1384_v51 = vmax.f32 %v2831_v44, 0.0 }
 0x275   :  { %v1385_v50 = vmax.f32 %v2832_v46, 0.0 }
 0x276   :  { %v1386_v52 = vmax.f32 %v2833_v48, 0.0 }
 0x277   :  { %v1459_v59 = vpack.c.bf16 %v1385_v50, %v1383_v49 }
 0x278   :  { %v1460_v60 = vpack.c.bf16 %v1386_v52, %v1384_v51  ;;  %v1270_v53 = vpop.f32.mrb[28].mxu1 }
 0x279   :  { %v2834_v54 = vadd.f32 %v1270_v53, %v3613_v8  ;;  %v1272_v55 = vpop.f32.mrb[29].mxu1 }
 0x27a   :  { %v2835_v57 = vadd.f32 %v1272_v55, %v3616_v9  ;;  %v1274_v61 = vpop.f32.mrb[30].mxu1  ;;  %1531 = vmatprep.subr.bf16.mxu0 %v1460_v60 }
 0x27b   :  { %v2836_v62 = vadd.f32 %v1274_v61, %v3613_v8  ;;  %v1276_v63 = vpop.f32.mrb[31].mxu1  ;;  %1532 = vmatpush1.bf16.msra.mxu0 %v1459_v59  ;;  %v1387_v2 = vmax.f32 %v2834_v54, 0.0 }
 0x27c   :  { %v2837_v0 = vadd.f32 %v1276_v63, %v3616_v9  ;;  %v1388_v4 = vmax.f32 %v2835_v57, 0.0 }
 0x27d   :  { %v1389_v3 = vmax.f32 %v2836_v62, 0.0 }
 0x27e   :  { %v1390_v5 = vmax.f32 %v2837_v0, 0.0 }
 0x27f   :  { %v1461_v6 = vpack.c.bf16 %v1389_v3, %v1387_v2 }
 0x280   :  { %v1462_v7 = vpack.c.bf16 %v1390_v5, %v1388_v4  ;;  %v1280_v10 = vpop.f32.mrb[32].mxu1 }
 0x281   :  { %v2838_v11 = vadd.f32 %v1280_v10, %v3613_v8  ;;  %v1282_v12 = vpop.f32.mrb[33].mxu1 }
 0x282   :  { %v2839_v13 = vadd.f32 %v1282_v12, %v3616_v9  ;;  %v1284_v14 = vpop.f32.mrb[34].mxu1  ;;  %1533 = vmatprep.subr.bf16.mxu0 %v1462_v7 }
 0x283   :  { %v2840_v15 = vadd.f32 %v1284_v14, %v3613_v8  ;;  %v1286_v16 = vpop.f32.mrb[35].mxu1  ;;  %1534 = vmatpush1.bf16.msra.mxu0 %v1461_v6  ;;  %v1391_v18 = vmax.f32 %v2838_v11, 0.0 }
 0x284   :  { %v2841_v17 = vadd.f32 %v1286_v16, %v3616_v9  ;;  %v1392_v20 = vmax.f32 %v2839_v13, 0.0 }
 0x285   :  { %v1393_v19 = vmax.f32 %v2840_v15, 0.0 }
 0x286   :  { %v1394_v21 = vmax.f32 %v2841_v17, 0.0 }
 0x287   :  { %v1463_v22 = vpack.c.bf16 %v1393_v19, %v1391_v18 }
 0x288   :  { %v1464_v23 = vpack.c.bf16 %v1394_v21, %v1392_v20  ;;  %v1290_v24 = vpop.f32.mrb[36].mxu1 }
 0x289   :  { %v2842_v25 = vadd.f32 %v1290_v24, %v3613_v8  ;;  %v1292_v26 = vpop.f32.mrb[37].mxu1 }
 0x28a   :  { %v2843_v27 = vadd.f32 %v1292_v26, %v3616_v9  ;;  %v1294_v28 = vpop.f32.mrb[38].mxu1  ;;  %1535 = vmatprep.subr.bf16.mxu0 %v1464_v23 }
 0x28b   :  { %v2844_v29 = vadd.f32 %v1294_v28, %v3613_v8  ;;  %v1296_v30 = vpop.f32.mrb[39].mxu1  ;;  %1536 = vmatpush1.bf16.msra.mxu0 %v1463_v22  ;;  %v1395_v32 = vmax.f32 %v2842_v25, 0.0 }
 0x28c   :  { %v2845_v31 = vadd.f32 %v1296_v30, %v3616_v9  ;;  %v1396_v34 = vmax.f32 %v2843_v27, 0.0 }
 0x28d   :  { %v1397_v33 = vmax.f32 %v2844_v29, 0.0 }
 0x28e   :  { %v1398_v35 = vmax.f32 %v2845_v31, 0.0 }
 0x28f   :  { %v1465_v36 = vpack.c.bf16 %v1397_v33, %v1395_v32 }
 0x290   :  { %v1466_v37 = vpack.c.bf16 %v1398_v35, %v1396_v34  ;;  %v1300_v38 = vpop.f32.mrb[40].mxu1 }
 0x291   :  { %v2846_v39 = vadd.f32 %v1300_v38, %v3613_v8  ;;  %v1302_v40 = vpop.f32.mrb[41].mxu1 }
 0x292   :  { %v2847_v41 = vadd.f32 %v1302_v40, %v3616_v9  ;;  %v1304_v42 = vpop.f32.mrb[42].mxu1  ;;  %1537 = vmatprep.subr.bf16.mxu0 %v1466_v37 }
 0x293   :  { %v2848_v43 = vadd.f32 %v1304_v42, %v3613_v8  ;;  %v1306_v44 = vpop.f32.mrb[43].mxu1  ;;  %1538 = vmatpush1.bf16.msra.mxu0 %v1465_v36  ;;  %v1399_v46 = vmax.f32 %v2846_v39, 0.0 }
 0x294   :  { %v2849_v45 = vadd.f32 %v1306_v44, %v3616_v9  ;;  %v1400_v48 = vmax.f32 %v2847_v41, 0.0 }
 0x295   :  { %v1401_v47 = vmax.f32 %v2848_v43, 0.0 }
 0x296   :  { %v1402_v49 = vmax.f32 %v2849_v45, 0.0 }
 0x297   :  { %v1467_v50 = vpack.c.bf16 %v1401_v47, %v1399_v46 }
 0x298   :  { %v1468_v51 = vpack.c.bf16 %v1402_v49, %v1400_v48  ;;  %v1310_v52 = vpop.f32.mrb[44].mxu1 }
 0x299   :  { %v2850_v59 = vadd.f32 %v1310_v52, %v3613_v8  ;;  %v1312_v60 = vpop.f32.mrb[45].mxu1 }
 0x29a   :  { %v2851_v53 = vadd.f32 %v1312_v60, %v3616_v9  ;;  %v1314_v54 = vpop.f32.mrb[46].mxu1  ;;  %1539 = vmatprep.subr.bf16.mxu0 %v1468_v51 }
 0x29b   :  { %v2852_v55 = vadd.f32 %v1314_v54, %v3613_v8  ;;  %v1316_v57 = vpop.f32.mrb[47].mxu1  ;;  %1540 = vmatpush1.bf16.msra.mxu0 %v1467_v50  ;;  %v1403_v62 = vmax.f32 %v2850_v59, 0.0 }
 0x29c   :  { %v2853_v61 = vadd.f32 %v1316_v57, %v3616_v9  ;;  %v1404_v0 = vmax.f32 %v2851_v53, 0.0 }
 0x29d   :  { %v1405_v63 = vmax.f32 %v2852_v55, 0.0 }
 0x29e   :  { %v1406_v2 = vmax.f32 %v2853_v61, 0.0 }
 0x29f   :  { %v1469_v3 = vpack.c.bf16 %v1405_v63, %v1403_v62 }
 0x2a0   :  { %v1470_v4 = vpack.c.bf16 %v1406_v2, %v1404_v0  ;;  %v1320_v5 = vpop.f32.mrb[48].mxu1  ;;  %v3044_v2 = vld [vmem:[%s4240_s11 + $0x4] ss:$8 sps:$4 sm:$0xff]  }
 0x2a1   :  { %v2854_v6 = vadd.f32 %v1320_v5, %v3613_v8  ;;  %v1322_v7 = vpop.f32.mrb[49].mxu1  ;;  %v3045_v5 = vld [vmem:[%s4240_s11 + $0x10] ss:$8 sps:$4 sm:$0xff]  }
 0x2a2   :  { %v2855_v10 = vadd.f32 %v1322_v7, %v3616_v9  ;;  %v1324_v11 = vpop.f32.mrb[50].mxu1  ;;  %1541 = vmatprep.subr.bf16.mxu0 %v1470_v4  ;;  %v3047_v4 = vld [vmem:[%s4240_s11 + $0x14] ss:$8 sps:$4 sm:$0xff]   ;;  %v3035_v7 = vld [vmem:[%s4238_s4 + $0x10] ss:$8 sps:$4 sm:$0xff]  }
 0x2a3   :  { %v2856_v12 = vadd.f32 %v1324_v11, %v3613_v8  ;;  %v1326_v13 = vpop.f32.mrb[51].mxu1  ;;  %1542 = vmatpush1.bf16.msra.mxu0 %v1469_v3  ;;  %v1407_v15 = vmax.f32 %v2854_v6, 0.0  ;;  %v3030_v3 = vld [vmem:[%s4238_s4] ss:$8 sps:$4 sm:$0xff]   ;;  %v3050_v6 = vld [vmem:[%s4240_s11 + $0x24] ss:$8 sps:$4 sm:$0xff]  }
 0x2a4   :  { %v2857_v14 = vadd.f32 %v1326_v13, %v3616_v9  ;;  %v1408_v17 = vmax.f32 %v2855_v10, 0.0  ;;  %v3036_v10 = vld [vmem:[%s4238_s4 + $0x24] ss:$8 sps:$4 sm:$0xff]   ;;  %v3048_v11 = vld [vmem:[%s4240_s11 + $0x20] ss:$8 sps:$4 sm:$0xff]  }
 0x2a5   :  { %v1409_v16 = vmax.f32 %v2856_v12, 0.0  ;;  %v3053_v12 = vld [vmem:[%s4240_s11 + $0x34] ss:$8 sps:$4 sm:$0xff]   ;;  %v3051_v13 = vld [vmem:[%s4240_s11 + $0x30] ss:$8 sps:$4 sm:$0xff]  }
 0x2a6   :  { %v1410_v18 = vmax.f32 %v2857_v14, 0.0  ;;  %v3056_v14 = vld [vmem:[%s4240_s11 + $0x44] ss:$8 sps:$4 sm:$0xff]  }
 0x2a7   :  { %v1471_v19 = vpack.c.bf16 %v1409_v16, %v1407_v15  ;;  %v3038_v15 = vld [vmem:[%s4238_s4 + $0x20] ss:$8 sps:$4 sm:$0xff]   ;;  %v3039_v16 = vld [vmem:[%s4238_s4 + $0x34] ss:$8 sps:$4 sm:$0xff]  }
 0x2a8   :  { %v1472_v20 = vpack.c.bf16 %v1410_v18, %v1408_v17  ;;  %v1330_v21 = vpop.f32.mrb[52].mxu1  ;;  %v3054_v17 = vld [vmem:[%s4240_s11 + $0x40] ss:$8 sps:$4 sm:$0xff]   ;;  %v3059_v18 = vld [vmem:[%s4240_s11 + $0x54] ss:$8 sps:$4 sm:$0xff]  }
 0x2a9   :  { %v2858_v22 = vadd.f32 %v1330_v21, %v3613_v8  ;;  %v1332_v23 = vpop.f32.mrb[53].mxu1  ;;  %v3041_v21 = vld [vmem:[%s4238_s4 + $0x30] ss:$8 sps:$4 sm:$0xff]  }
 0x2aa   :  { %v2859_v24 = vadd.f32 %v1332_v23, %v3616_v9  ;;  %v1334_v25 = vpop.f32.mrb[54].mxu1  ;;  %1543 = vmatprep.subr.bf16.mxu0 %v1472_v20  ;;  %v3062_v20 = vld [vmem:[%s4240_s11 + $0x64] ss:$8 sps:$4 sm:$0xff]   ;;  %v3065_v23 = vld [vmem:[%s4240_s11 + $0x74] ss:$8 sps:$4 sm:$0xff]  }
 0x2ab   :  { %v2860_v26 = vadd.f32 %v1334_v25, %v3613_v8  ;;  %v1336_v27 = vpop.f32.mrb[55].mxu1  ;;  %1544 = vmatpush1.bf16.msra.mxu0 %v1471_v19  ;;  %v1411_v29 = vmax.f32 %v2858_v22, 0.0  ;;  %v3057_v19 = vld [vmem:[%s4240_s11 + $0x50] ss:$8 sps:$4 sm:$0xff]   ;;  %v3060_v22 = vld [vmem:[%s4240_s11 + $0x60] ss:$8 sps:$4 sm:$0xff]  }
 0x2ac   :  { %v2861_v28 = vadd.f32 %v1336_v27, %v3616_v9  ;;  %v1412_v31 = vmax.f32 %v2859_v24, 0.0  ;;  %v3063_v24 = vld [vmem:[%s4240_s11 + $0x70] ss:$8 sps:$4 sm:$0xff]   ;;  %v3068_v25 = vld [vmem:[%s4240_s11 + $0x84] ss:$8 sps:$4 sm:$0xff]  }
 0x2ad   :  { %v1413_v30 = vmax.f32 %v2860_v26, 0.0  ;;  %v3066_v26 = vld [vmem:[%s4240_s11 + $0x80] ss:$8 sps:$4 sm:$0xff]   ;;  %v3071_v27 = vld [vmem:[%s4240_s11 + $0x94] ss:$8 sps:$4 sm:$0xff]  }
 0x2ae   :  { %v1414_v32 = vmax.f32 %v2861_v28, 0.0  ;;  %v3069_v28 = vld [vmem:[%s4240_s11 + $0x90] ss:$8 sps:$4 sm:$0xff]  }
 0x2af   :  { %v1473_v33 = vpack.c.bf16 %v1413_v30, %v1411_v29  ;;  %v3074_v29 = vld [vmem:[%s4240_s11 + $0xa4] ss:$8 sps:$4 sm:$0xff]   ;;  %v3072_v30 = vld [vmem:[%s4240_s11 + $0xa0] ss:$8 sps:$4 sm:$0xff]  }
 0x2b0   :  { %v1474_v34 = vpack.c.bf16 %v1414_v32, %v1412_v31  ;;  %v1340_v35 = vpop.f32.mrb[56].mxu1  ;;  %v3077_v31 = vld [vmem:[%s4240_s11 + $0xb4] ss:$8 sps:$4 sm:$0xff]   ;;  %v3075_v32 = vld [vmem:[%s4240_s11 + $0xb0] ss:$8 sps:$4 sm:$0xff]  }
 0x2b1   :  { %v2862_v36 = vadd.f32 %v1340_v35, %v3613_v8  ;;  %v1342_v37 = vpop.f32.mrb[57].mxu1  ;;  %v3083_v35 = vld [vmem:[%s4240_s11 + $0xd4] ss:$8 sps:$4 sm:$0xff]  }
 0x2b2   :  { %v2863_v38 = vadd.f32 %v1342_v37, %v3616_v9  ;;  %v1344_v39 = vpop.f32.mrb[58].mxu1  ;;  %1545 = vmatprep.subr.bf16.mxu0 %v1474_v34  ;;  %v3078_v34 = vld [vmem:[%s4240_s11 + $0xc0] ss:$8 sps:$4 sm:$0xff]   ;;  %v3086_v37 = vld [vmem:[%s4240_s11 + $0xe4] ss:$8 sps:$4 sm:$0xff]  }
 0x2b3   :  { %v2864_v40 = vadd.f32 %v1344_v39, %v3613_v8  ;;  %v1346_v41 = vpop.f32.mrb[59].mxu1  ;;  %1546 = vmatpush1.bf16.msra.mxu0 %v1473_v33  ;;  %v1415_v43 = vmax.f32 %v2862_v36, 0.0  ;;  %v3080_v33 = vld [vmem:[%s4240_s11 + $0xc4] ss:$8 sps:$4 sm:$0xff]   ;;  %v3081_v36 = vld [vmem:[%s4240_s11 + $0xd0] ss:$8 sps:$4 sm:$0xff]  }
 0x2b4   :  { %v2865_v42 = vadd.f32 %v1346_v41, %v3616_v9  ;;  %v1416_v45 = vmax.f32 %v2863_v38, 0.0  ;;  %v3084_v38 = vld [vmem:[%s4240_s11 + $0xe0] ss:$8 sps:$4 sm:$0xff]   ;;  %v3089_v39 = vld [vmem:[%s4240_s11 + $0xf4] ss:$8 sps:$4 sm:$0xff]  }
 0x2b5   :  { %v1417_v44 = vmax.f32 %v2864_v40, 0.0  ;;  %v3087_v40 = vld [vmem:[%s4240_s11 + $0xf0] ss:$8 sps:$4 sm:$0xff]   ;;  %v3092_v41 = vld [vmem:[%s4242_s13 + $0x4] ss:$8 sps:$4 sm:$0xff]  }
 0x2b6   :  { %v1418_v46 = vmax.f32 %v2865_v42, 0.0 }
 0x2b7   :  { %v1475_v47 = vpack.c.bf16 %v1417_v44, %v1415_v43  ;;  %v1627_v43 = vld [vmem:[%s4243_s0] sm:$0xff]  ;;  %v1629_v44 = vld [vmem:[%s4243_s0 + $0x10] sm:$0xff] }
 0x2b8   :  { %v1476_v48 = vpack.c.bf16 %v1418_v46, %v1416_v45  ;;  %v1350_v49 = vpop.f32.mrb[60].mxu1  ;;  %v1628_v45 = vld [vmem:[%s4243_s0 + $0x8] sm:$0xff]  ;;  %v1630_v46 = vld [vmem:[%s4243_s0 + $0x18] sm:$0xff] }
 0x2b9   :  { %v2866_v50 = vadd.f32 %v1350_v49, %v3613_v8  ;;  %v1352_v51 = vpop.f32.mrb[61].mxu1 }
 0x2ba   :  { %v2867_v52 = vadd.f32 %v1352_v51, %v3616_v9  ;;  %v1354_v59 = vpop.f32.mrb[62].mxu1  ;;  %1547 = vmatprep.subr.bf16.mxu0 %v1476_v48 }
 0x2bb   :  { %v2868_v60 = vadd.f32 %v1354_v59, %v3613_v8  ;;  %v1356_v53 = vpop.f32.mrb[63].mxu1  ;;  %1548 = vmatpush1.bf16.msra.mxu0 %v1475_v47  ;;  %v1419_v55 = vmax.f32 %v2866_v50, 0.0  ;;  %v3033_v8 = vld [vmem:[%s4238_s4 + $0x14] ss:$8 sps:$4 sm:$0xff]  }
 0x2bc   :  { %v2869_v54 = vadd.f32 %v1356_v53, %v3616_v9  ;;  %v1420_v61 = vmax.f32 %v2867_v52, 0.0  ;;  %v3042_v9 = vld [vmem:[%s4240_s11] ss:$8 sps:$4 sm:$0xff]  }
 0x2bd   :  { %v1421_v57 = vmax.f32 %v2868_v60, 0.0 }
 0x2be   :  { %v1422_v62 = vmax.f32 %v2869_v54, 0.0 }
 0x2bf   :  { %v1477_v63 = vpack.c.bf16 %v1421_v57, %v1419_v55 }
 0x2c0   :  { %v1478_v0 = vpack.c.bf16 %v1422_v62, %v1420_v61 }
 0x2c2   :  { %1549 = vmatprep.subr.bf16.mxu0 %v1478_v0  ;;  %v1633_v0 = vld [vmem:[%s4243_s0 + $0x30] sm:$0xff] }
 0x2c3   :  { %1550 = vmatpush1.bf16.msra.mxu0 %v1477_v63  ;;  %v1631_v63 = vld [vmem:[%s4243_s0 + $0x20] sm:$0xff] }
 0x2c4   :  { %1914 = vmatprep.subr.bf16.mxu0 %v3044_v2  ;;  %v3090_v2 = vld [vmem:[%s4242_s13] ss:$8 sps:$4 sm:$0xff]  }
 0x2c6   :  { %1552 = vmatmul.mubr.bf16.vlgmr.msra.gmra.mrb[64].mxu0 %v3030_v3  ;;  %v1632_v3 = vld [vmem:[%s4243_s0 + $0x28] sm:$0xff] }
 0x2c7   :  { %1561 = vmatprep.mubr.bf16.mxu0 %v3033_v8  ;;  %1915 = vmatpush1.bf16.msra.mxu0 %v3042_v9  ;;  %v1634_v8 = vld [vmem:[%s4243_s0 + $0x38] sm:$0xff] }
 0x2c8   :  { %1916 = vmatprep.subr.bf16.mxu0 %v3047_v4  ;;  %v3095_v9 = vld [vmem:[%s4242_s13 + $0x14] ss:$8 sps:$4 sm:$0xff]  }
 0x2cb   :  { %1917 = vmatpush1.bf16.msra.mxu0 %v3045_v5 }
 0x2cc   :  { %1918 = vmatprep.subr.bf16.mxu0 %v3050_v6 }
 0x2ce   :  { %1562 = vmatmul.mubr.bf16.gmra.mrb[68].mxu0 %v3035_v7  ;;  %v3812_v42 = vpop.permute.xlu0 %1651 }
 0x2cf   :  { %1571 = vmatprep.mubr.bf16.mxu0 %v3036_v10  ;;  %1919 = vmatpush1.bf16.msra.mxu0 %v3048_v11  ;;  %v1654_v47 = vmul.f32 %v3812_v42, %v1627_v43  ;;  %v1656_v48 = vmul.f32 %v3812_v42, %v1629_v44  ;;  %v1655_v50 = vmul.f32 %v3812_v42, %v1628_v45  ;;  %v1639_v45 = vld [vmem:[%s4243_s0 + $0x60] sm:$0xff] }
 0x2d0   :  { %1920 = vmatprep.subr.bf16.mxu0 %v3053_v12  ;;  %v1657_v51 = vmul.f32 %v3812_v42, %v1630_v46  ;;  %v1658_v5 = vmul.f32 %v3812_v42, %v1631_v63  ;;  %v1660_v7 = vmul.f32 %v3812_v42, %v1633_v0  ;;  %v1659_v10 = vmul.f32 %v3812_v42, %v1632_v3  ;;  %v1641_v46 = vld [vmem:[%s4243_s0 + $0x70] sm:$0xff]  ;;  %v3110_v0 = vld [vmem:[%s4242_s13 + $0x64] ss:$8 sps:$4 sm:$0xff]  }
 0x2d1   :  { %v1661_v12 = vmul.f32 %v3812_v42, %v1634_v8 }
 0x2d3   :  { %1921 = vmatpush1.bf16.msra.mxu0 %v3051_v13  ;;  %v3093_v13 = vld [vmem:[%s4242_s13 + $0x10] ss:$8 sps:$4 sm:$0xff]  }
 0x2d4   :  { %1922 = vmatprep.subr.bf16.mxu0 %v3056_v14 }
 0x2d6   :  { %1572 = vmatmul.mubr.bf16.gmra.mrb[72].mxu0 %v3038_v15 }
 0x2d7   :  { %1581 = vmatprep.mubr.bf16.mxu0 %v3039_v16  ;;  %1923 = vmatpush1.bf16.msra.mxu0 %v3054_v17  ;;  %v3098_v17 = vld [vmem:[%s4242_s13 + $0x24] ss:$8 sps:$4 sm:$0xff]  }
 0x2d8   :  { %1924 = vmatprep.subr.bf16.mxu0 %v3059_v18 }
 0x2db   :  { %1925 = vmatpush1.bf16.msra.mxu0 %v3057_v19 }
 0x2dc   :  { %1926 = vmatprep.subr.bf16.mxu0 %v3062_v20 }
 0x2de   :  { %1582 = vmatmul.mubr.bf16.gmra.mrb[76].mxu0 %v3041_v21 }
 0x2df   :  { %1927 = vmatpush1.bf16.msra.mxu0 %v3060_v22  ;;  %v1635_v22 = vld [vmem:[%s4243_s0 + $0x40] sm:$0xff] }
 0x2e0   :  { %1928 = vmatprep.subr.bf16.mxu0 %v3065_v23  ;;  %v1637_v23 = vld [vmem:[%s4243_s0 + $0x50] sm:$0xff] }
 0x2e3   :  { %1929 = vmatpush1.bf16.msra.mxu0 %v3063_v24  ;;  %v3096_v24 = vld [vmem:[%s4242_s13 + $0x20] ss:$8 sps:$4 sm:$0xff]  }
 0x2e4   :  { %1930 = vmatprep.subr.bf16.mxu0 %v3068_v25  ;;  %v1636_v25 = vld [vmem:[%s4243_s0 + $0x48] sm:$0xff] }
 0x2e7   :  { %1931 = vmatpush1.bf16.msra.mxu0 %v3066_v26  ;;  %v1638_v26 = vld [vmem:[%s4243_s0 + $0x58] sm:$0xff] }
 0x2e8   :  { %1932 = vmatprep.subr.bf16.mxu0 %v3071_v27  ;;  %v3101_v27 = vld [vmem:[%s4242_s13 + $0x34] ss:$8 sps:$4 sm:$0xff]  }
 0x2eb   :  { %1933 = vmatpush1.bf16.msra.mxu0 %v3069_v28 }
 0x2ec   :  { %1934 = vmatprep.subr.bf16.mxu0 %v3074_v29  ;;  %v1662_v29 = vmul.f32 %v3812_v42, %v1635_v22  ;;  %v3137_v22 = vld [vmem:[%s4242_s13 + $0xf4] ss:$8 sps:$4 sm:$0xff]  }
 0x2ef   :  { %1935 = vmatpush1.bf16.msra.mxu0 %v3072_v30 }
 0x2f0   :  { %1936 = vmatprep.subr.bf16.mxu0 %v3077_v31  ;;  %v1664_v31 = vmul.f32 %v3812_v42, %v1637_v23  ;;  %v3135_v23 = vld [vmem:[%s4242_s13 + $0xf0] ss:$8 sps:$4 sm:$0xff]  }
 0x2f3   :  { %1937 = vmatpush1.bf16.msra.mxu0 %v3075_v32  ;;  %v1663_v32 = vmul.f32 %v3812_v42, %v1636_v25 }
 0x2f4   :  { %1938 = vmatprep.subr.bf16.mxu0 %v3080_v33 }
 0x2f7   :  { %1939 = vmatpush1.bf16.msra.mxu0 %v3078_v34  ;;  %v1665_v34 = vmul.f32 %v3812_v42, %v1638_v26 }
 0x2f8   :  { %1940 = vmatprep.subr.bf16.mxu0 %v3083_v35  ;;  %v3099_v35 = vld [vmem:[%s4242_s13 + $0x30] ss:$8 sps:$4 sm:$0xff]  }
 0x2fb   :  { %1941 = vmatpush1.bf16.msra.mxu0 %v3081_v36 }
 0x2fc   :  { %1942 = vmatprep.subr.bf16.mxu0 %v3086_v37 }
 0x2ff   :  { %1943 = vmatpush1.bf16.msra.mxu0 %v3084_v38 }
 0x300   :  { %1944 = vmatprep.subr.bf16.mxu0 %v3089_v39  ;;  %v3104_v39 = vld [vmem:[%s4242_s13 + $0x44] ss:$8 sps:$4 sm:$0xff]  }
 0x303   :  { %1945 = vmatpush1.bf16.msra.mxu0 %v3087_v40 }
 0x304   :  { %2215 = vmatprep.subr.bf16.mxu0 %v3092_v41 }
 0x399   :  { %v1553_v49 = vpop.f32.mrb[64].mxu0 }
 0x39a   :  { %v1555_v52 = vpop.f32.mrb[65].mxu0  ;;  %v1686_v60 = vadd.f32 %v1654_v47, %v1553_v49  ;;  %v3102_v47 = vld [vmem:[%s4242_s13 + $0x40] ss:$8 sps:$4 sm:$0xff]   ;;  %v1642_v49 = vld [vmem:[%s4243_s0 + $0x78] sm:$0xff] }
 0x39b   :  { %v1557_v59 = vpop.f32.mrb[66].mxu0  ;;  %v1687_v55 = vadd.f32 %v1655_v50, %v1555_v52  ;;  %v3107_v50 = vld [vmem:[%s4242_s13 + $0x54] ss:$8 sps:$4 sm:$0xff]   ;;  %v1666_v52 = vmul.f32 %v3812_v42, %v1639_v45 }
 0x39c   :  { %v1688_v53 = vadd.f32 %v1656_v48, %v1557_v59  ;;  %v1559_v54 = vpop.f32.mrb[67].mxu0  ;;  %v1640_v48 = vld [vmem:[%s4243_s0 + $0x68] sm:$0xff] }
 0x39d   :  { %v1689_v57 = vadd.f32 %v1657_v51, %v1559_v54 }
 0x39e   :  { %v1702_v61 = vpack.c.bf16 %v1688_v53, %v1686_v60  ;;  %v1668_v60 = vmul.f32 %v3812_v42, %v1641_v46  ;;  %v1667_v53 = vmul.f32 %v3812_v42, %v1640_v48 }
 0x39f   :  { %v1703_v62 = vpack.c.bf16 %v1689_v57, %v1687_v55  ;;  %v1669_v55 = vmul.f32 %v3812_v42, %v1642_v49  ;;  %v3105_v57 = vld [vmem:[%s4242_s13 + $0x50] ss:$8 sps:$4 sm:$0xff]   ;;  %v3108_v42 = vld [vmem:[%s4242_s13 + $0x60] ss:$8 sps:$4 sm:$0xff]  }
 0x3a1   :  { %v1563_v4 = vpop.f32.mrb[68].mxu0  ;;  %1946 = vmatprep.mubr.bf16.mxu0 %v1703_v62 }
 0x3a2   :  { %v1565_v6 = vpop.f32.mrb[69].mxu0  ;;  %1947 = vmatmul.mubr.bf16.vlgmr.msra.gmra.mrb[80].mxu0 %v1702_v61  ;;  %v1690_v14 = vadd.f32 %v1658_v5, %v1563_v4  ;;  %v3113_v4 = vld [vmem:[%s4242_s13 + $0x74] ss:$8 sps:$4 sm:$0xff]   ;;  %v3111_v5 = vld [vmem:[%s4242_s13 + $0x70] ss:$8 sps:$4 sm:$0xff]  }
 0x3a3   :  { %v1567_v11 = vpop.f32.mrb[70].mxu0  ;;  %2216 = vmatpush1.bf16.msra.mxu0 %v3090_v2  ;;  %v1691_v18 = vadd.f32 %v1659_v10, %v1565_v6  ;;  %v3116_v6 = vld [vmem:[%s4242_s13 + $0x84] ss:$8 sps:$4 sm:$0xff]   ;;  %v3119_v10 = vld [vmem:[%s4242_s13 + $0x94] ss:$8 sps:$4 sm:$0xff]  }
 0x3a4   :  { %v1692_v15 = vadd.f32 %v1660_v7, %v1567_v11  ;;  %v1569_v16 = vpop.f32.mrb[71].mxu0  ;;  %2217 = vmatprep.subr.bf16.mxu0 %v3095_v9  ;;  %v3114_v7 = vld [vmem:[%s4242_s13 + $0x80] ss:$8 sps:$4 sm:$0xff]   ;;  %v3117_v11 = vld [vmem:[%s4242_s13 + $0x90] ss:$8 sps:$4 sm:$0xff]  }
 0x3a5   :  { %v1693_v19 = vadd.f32 %v1661_v12, %v1569_v16  ;;  %v3122_v12 = vld [vmem:[%s4242_s13 + $0xa4] ss:$8 sps:$4 sm:$0xff]  }
 0x3a6   :  { %v1704_v20 = vpack.c.bf16 %v1692_v15, %v1690_v14  ;;  %v3125_v14 = vld [vmem:[%s4242_s13 + $0xb4] ss:$8 sps:$4 sm:$0xff]   ;;  %v3123_v15 = vld [vmem:[%s4242_s13 + $0xb0] ss:$8 sps:$4 sm:$0xff]   ;;  %v3128_v16 = vld [vmem:[%s4242_s13 + $0xc4] ss:$8 sps:$4 sm:$0xff]  }
 0x3a7   :  { %v1705_v21 = vpack.c.bf16 %v1693_v19, %v1691_v18  ;;  %2218 = vmatpush1.bf16.msra.mxu0 %v3093_v13  ;;  %v3120_v13 = vld [vmem:[%s4242_s13 + $0xa0] ss:$8 sps:$4 sm:$0xff]   ;;  %v3131_v18 = vld [vmem:[%s4242_s13 + $0xd4] ss:$8 sps:$4 sm:$0xff]   ;;  %v3129_v19 = vld [vmem:[%s4242_s13 + $0xd0] ss:$8 sps:$4 sm:$0xff]  }
 0x3a8   :  { %2219 = vmatprep.subr.bf16.mxu0 %v3098_v17  ;;  %v3126_v17 = vld [vmem:[%s4242_s13 + $0xc0] ss:$8 sps:$4 sm:$0xff]  }
 0x3a9   :  { %v1573_v28 = vpop.f32.mrb[72].mxu0  ;;  %1956 = vmatprep.mubr.bf16.mxu0 %v1705_v21  ;;  %v3132_v21 = vld [vmem:[%s4242_s13 + $0xe0] ss:$8 sps:$4 sm:$0xff]  }
 0x3aa   :  { %v1575_v30 = vpop.f32.mrb[73].mxu0  ;;  %1957 = vmatmul.mubr.bf16.gmra.mrb[84].mxu0 %v1704_v20  ;;  %v1694_v36 = vadd.f32 %v1662_v29, %v1573_v28  ;;  %v3134_v20 = vld [vmem:[%s4242_s13 + $0xe4] ss:$8 sps:$4 sm:$0xff]  }
 0x3ab   :  { %v1577_v33 = vpop.f32.mrb[74].mxu0  ;;  %2220 = vmatpush1.bf16.msra.mxu0 %v3096_v24  ;;  %v1695_v40 = vadd.f32 %v1663_v32, %v1575_v30  ;;  %v1742_v24 = vld [vmem:[%s4244_s12] sm:$0x3] }
 0x3ac   :  { %v1696_v37 = vadd.f32 %v1664_v31, %v1577_v33  ;;  %v1579_v38 = vpop.f32.mrb[75].mxu0  ;;  %2221 = vmatprep.subr.bf16.mxu0 %v3101_v27  ;;  %v1747_v25 = vrot.slane %v1742_v24, %v3431_v56  ;;  %v1751_v26 = vrot.slane %v1742_v24, %v3436_v58 }
 0x3ad   :  { %v1697_v41 = vadd.f32 %v1665_v34, %v1579_v38 }
 0x3ae   :  { %v1706_v43 = vpack.c.bf16 %v1696_v37, %v1694_v36 }
 0x3af   :  { %v1707_v44 = vpack.c.bf16 %v1697_v41, %v1695_v40  ;;  %2222 = vmatpush1.bf16.msra.mxu0 %v3099_v35 }
 0x3b0   :  { %2223 = vmatprep.subr.bf16.mxu0 %v3104_v39 }
 0x3b1   :  { %v1583_v51 = vpop.f32.mrb[76].mxu0  ;;  %1966 = vmatprep.mubr.bf16.mxu0 %v1707_v44 }
 0x3b2   :  { %v1585_v59 = vpop.f32.mrb[77].mxu0  ;;  %1967 = vmatmul.mubr.bf16.gmra.mrb[88].mxu0 %v1706_v43  ;;  %v1698_v61 = vadd.f32 %v1666_v52, %v1583_v51 }
 0x3b3   :  { %v1587_v54 = vpop.f32.mrb[78].mxu0  ;;  %2224 = vmatpush1.bf16.msra.mxu0 %v3102_v47  ;;  %v1699_v2 = vadd.f32 %v1667_v53, %v1585_v59 }
 0x3b4   :  { %v1700_v62 = vadd.f32 %v1668_v60, %v1587_v54  ;;  %v1589_v63 = vpop.f32.mrb[79].mxu0  ;;  %2225 = vmatprep.subr.bf16.mxu0 %v3107_v50 }
 0x3b5   :  { %v1701_v3 = vadd.f32 %v1669_v55, %v1589_v63 }
 0x3b6   :  { %v1708_v8 = vpack.c.bf16 %v1700_v62, %v1698_v61 }
 0x3b7   :  { %v1709_v9 = vpack.c.bf16 %v1701_v3, %v1699_v2  ;;  %2226 = vmatpush1.bf16.msra.mxu0 %v3105_v57 }
 0x3b8   :  { %2227 = vmatprep.subr.bf16.mxu0 %v3110_v0 }
 0x3b9   :  { %1976 = vmatprep.mubr.bf16.mxu0 %v1709_v9 }
 0x3ba   :  { %1977 = vmatmul.mubr.bf16.gmra.mrb[92].mxu0 %v1708_v8 }
 0x3bb   :  { %2228 = vmatpush1.bf16.msra.mxu0 %v3108_v42 }
 0x3bc   :  { %2229 = vmatprep.subr.bf16.mxu0 %v3113_v4 }
 0x3bf   :  { %2230 = vmatpush1.bf16.msra.mxu0 %v3111_v5 }
 0x3c0   :  { %2231 = vmatprep.subr.bf16.mxu0 %v3116_v6 }
 0x3c3   :  { %2232 = vmatpush1.bf16.msra.mxu0 %v3114_v7 }
 0x3c4   :  { %2233 = vmatprep.subr.bf16.mxu0 %v3119_v10 }
 0x3c7   :  { %2234 = vmatpush1.bf16.msra.mxu0 %v3117_v11 }
 0x3c8   :  { %2235 = vmatprep.subr.bf16.mxu0 %v3122_v12 }
 0x3cb   :  { %2236 = vmatpush1.bf16.msra.mxu0 %v3120_v13 }
 0x3cc   :  { %2237 = vmatprep.subr.bf16.mxu0 %v3125_v14 }
 0x3cf   :  { %2238 = vmatpush1.bf16.msra.mxu0 %v3123_v15 }
 0x3d0   :  { %2239 = vmatprep.subr.bf16.mxu0 %v3128_v16 }
 0x3d3   :  { %2240 = vmatpush1.bf16.msra.mxu0 %v3126_v17 }
 0x3d4   :  { %2241 = vmatprep.subr.bf16.mxu0 %v3131_v18 }
 0x3d7   :  { %2242 = vmatpush1.bf16.msra.mxu0 %v3129_v19 }
 0x3d8   :  { %2243 = vmatprep.subr.bf16.mxu0 %v3134_v20 }
 0x3db   :  { %2244 = vmatpush1.bf16.msra.mxu0 %v3132_v21 }
 0x3dc   :  { %2245 = vmatprep.subr.bf16.mxu0 %v3137_v22  ;;  %v2043_v22 = vld [vmem:[%s4245_s14] sm:$0x3] }
 0x3dd   :  { %v2052_v24 = vrot.slane %v2043_v22, %v3436_v58 }
 0x3df   :  { %2246 = vmatpush1.bf16.msra.mxu0 %v3135_v23  ;;  %v2048_v23 = vrot.slane %v2043_v22, %v3431_v56 }
 0x475   :  { %v1948_v27 = vpop.f32.mrb[80].mxu0 }
 0x476   :  { %v1949_v28 = vadd.f32 %v1948_v27, %v1747_v25  ;;  %v1950_v29 = vpop.f32.mrb[81].mxu0 }
 0x477   :  { %v1951_v30 = vadd.f32 %v1950_v29, %v1751_v26  ;;  %v1952_v31 = vpop.f32.mrb[82].mxu0 }
 0x478   :  { %v1953_v32 = vadd.f32 %v1952_v31, %v1747_v25  ;;  %v1954_v33 = vpop.f32.mrb[83].mxu0  ;;  %v1987_v35 = vmax.f32 %v1949_v28, 0.0 }
 0x479   :  { %v1955_v34 = vadd.f32 %v1954_v33, %v1751_v26  ;;  %v1988_v37 = vmax.f32 %v1951_v30, 0.0 }
 0x47a   :  { %v1989_v36 = vmax.f32 %v1953_v32, 0.0 }
 0x47b   :  { %v1990_v38 = vmax.f32 %v1955_v34, 0.0 }
 0x47c   :  { %v2003_v39 = vpack.c.bf16 %v1989_v36, %v1987_v35 }
 0x47d   :  { %v2004_v40 = vpack.c.bf16 %v1990_v38, %v1988_v37  ;;  %v1958_v41 = vpop.f32.mrb[84].mxu0 }
 0x47e   :  { %v1959_v43 = vadd.f32 %v1958_v41, %v1747_v25  ;;  %v1960_v44 = vpop.f32.mrb[85].mxu0 }
 0x47f   :  { %v1961_v45 = vadd.f32 %v1960_v44, %v1751_v26  ;;  %v1962_v46 = vpop.f32.mrb[86].mxu0  ;;  %2247 = vmatprep.mubr.bf16.mxu0 %v2004_v40 }
 0x480   :  { %v1963_v47 = vadd.f32 %v1962_v46, %v1747_v25  ;;  %v1964_v48 = vpop.f32.mrb[87].mxu0  ;;  %2248 = vmatmul.mubr.bf16.vlgmr.msra.gmra.mrb[96].mxu0 %v2003_v39  ;;  %v1991_v50 = vmax.f32 %v1959_v43, 0.0 }
 0x481   :  { %v1965_v49 = vadd.f32 %v1964_v48, %v1751_v26  ;;  %v1992_v52 = vmax.f32 %v1961_v45, 0.0 }
 0x482   :  { %v1993_v51 = vmax.f32 %v1963_v47, 0.0 }
 0x483   :  { %v1994_v59 = vmax.f32 %v1965_v49, 0.0 }
 0x484   :  { %v2005_v60 = vpack.c.bf16 %v1993_v51, %v1991_v50 }
 0x485   :  { %v2006_v53 = vpack.c.bf16 %v1994_v59, %v1992_v52  ;;  %v1968_v54 = vpop.f32.mrb[88].mxu0 }
 0x486   :  { %v1969_v55 = vadd.f32 %v1968_v54, %v1747_v25  ;;  %v1970_v57 = vpop.f32.mrb[89].mxu0 }
 0x487   :  { %v1971_v61 = vadd.f32 %v1970_v57, %v1751_v26  ;;  %v1972_v62 = vpop.f32.mrb[90].mxu0  ;;  %2257 = vmatprep.mubr.bf16.mxu0 %v2006_v53 }
 0x488   :  { %v1973_v63 = vadd.f32 %v1972_v62, %v1747_v25  ;;  %v1974_v0 = vpop.f32.mrb[91].mxu0  ;;  %2258 = vmatmul.mubr.bf16.gmra.mrb[100].mxu0 %v2005_v60  ;;  %v1995_v3 = vmax.f32 %v1969_v55, 0.0 }
 0x489   :  { %v1975_v2 = vadd.f32 %v1974_v0, %v1751_v26  ;;  %v1996_v9 = vmax.f32 %v1971_v61, 0.0 }
 0x48a   :  { %v1997_v8 = vmax.f32 %v1973_v63, 0.0 }
 0x48b   :  { %v1998_v42 = vmax.f32 %v1975_v2, 0.0 }
 0x48c   :  { %v2007_v4 = vpack.c.bf16 %v1997_v8, %v1995_v3 }
 0x48d   :  { %v2008_v5 = vpack.c.bf16 %v1998_v42, %v1996_v9  ;;  %v1978_v6 = vpop.f32.mrb[92].mxu0 }
 0x48e   :  { %v1979_v7 = vadd.f32 %v1978_v6, %v1747_v25  ;;  %v1980_v10 = vpop.f32.mrb[93].mxu0 }
 0x48f   :  { %v1981_v11 = vadd.f32 %v1980_v10, %v1751_v26  ;;  %v1982_v12 = vpop.f32.mrb[94].mxu0  ;;  %2267 = vmatprep.mubr.bf16.mxu0 %v2008_v5 }
 0x490   :  { %v1983_v13 = vadd.f32 %v1982_v12, %v1747_v25  ;;  %v1984_v14 = vpop.f32.mrb[95].mxu0  ;;  %2268 = vmatmul.mubr.bf16.gmra.mrb[104].mxu0 %v2007_v4  ;;  %v1999_v16 = vmax.f32 %v1979_v7, 0.0 }
 0x491   :  { %v1985_v15 = vadd.f32 %v1984_v14, %v1751_v26  ;;  %v2000_v18 = vmax.f32 %v1981_v11, 0.0 }
 0x492   :  { %v2001_v17 = vmax.f32 %v1983_v13, 0.0 }
 0x493   :  { %v2002_v19 = vmax.f32 %v1985_v15, 0.0 }
 0x494   :  { %v2009_v20 = vpack.c.bf16 %v2001_v17, %v1999_v16 }
 0x495   :  { %v2010_v21 = vpack.c.bf16 %v2002_v19, %v2000_v18 }
 0x497   :  { %2277 = vmatprep.mubr.bf16.mxu0 %v2010_v21 }
 0x498   :  { %2278 = vmatmul.mubr.bf16.gmra.mrb[108].mxu0 %v2009_v20 }
 0x499   :  { %2576 = vmatprep.mubr.bf16.mxu0 %v3142_v1 }
 0x553   :  { %v2249_v25 = vpop.f32.mrb[96].mxu0 }
 0x554   :  { %v3982_v26 = vadd.f32 %v2249_v25, %v2048_v23  ;;  %v2251_v27 = vpop.f32.mrb[97].mxu0 }
 0x555   :  { %v3984_v28 = vadd.f32 %v2251_v27, %v2052_v24  ;;  %v2253_v29 = vpop.f32.mrb[98].mxu0 }
 0x556   :  { %v3986_v30 = vadd.f32 %v2253_v29, %v2048_v23  ;;  %v2255_v31 = vpop.f32.mrb[99].mxu0  ;;  %v2288_v1 = vmax.f32 %v3982_v26, 0.0 }
 0x557   :  { %v3988_v32 = vadd.f32 %v2255_v31, %v2052_v24  ;;  %v2289_v34 = vmax.f32 %v3984_v28, 0.0 }
 0x558   :  { %v2290_v33 = vmax.f32 %v3986_v30, 0.0 }
 0x559   :  { %v2291_v35 = vmax.f32 %v3988_v32, 0.0 }
 0x55a   :  { %v2304_v36 = vadd.f32 %v2290_v33, %v2288_v1 }
 0x55b   :  { %v2317_v37 = vadd.f32 %v2291_v35, %v2289_v34  ;;  %v2259_v38 = vpop.f32.mrb[100].mxu0 }
 0x55c   :  { %v4002_v39 = vadd.f32 %v2259_v38, %v2048_v23  ;;  %v2261_v40 = vpop.f32.mrb[101].mxu0 }
 0x55d   :  { %v4004_v41 = vadd.f32 %v2261_v40, %v2052_v24  ;;  %v2263_v43 = vpop.f32.mrb[102].mxu0 }
 0x55e   :  { %v2292_v44 = vmax.f32 %v4002_v39, 0.0  ;;  %v2264_v45 = vadd.f32 %v2263_v43, %v2048_v23  ;;  %v2265_v46 = vpop.f32.mrb[103].mxu0 }
 0x55f   :  { %v2293_v47 = vmax.f32 %v4004_v41, 0.0  ;;  %v4008_v48 = vadd.f32 %v2265_v46, %v2052_v24 }
 0x560   :  { %v2305_v49 = vadd.f32 %v2304_v36, %v2292_v44  ;;  %v2294_v50 = vmax.f32 %v2264_v45, 0.0 }
 0x561   :  { %v2318_v51 = vadd.f32 %v2317_v37, %v2293_v47  ;;  %v2295_v52 = vmax.f32 %v4008_v48, 0.0 }
 0x562   :  { %v2306_v59 = vadd.f32 %v2305_v49, %v2294_v50 }
 0x563   :  { %v2319_v60 = vadd.f32 %v2318_v51, %v2295_v52  ;;  %v2269_v53 = vpop.f32.mrb[104].mxu0 }
 0x564   :  { %v2270_v54 = vadd.f32 %v2269_v53, %v2048_v23  ;;  %v2271_v55 = vpop.f32.mrb[105].mxu0 }
 0x565   :  { %v2272_v57 = vadd.f32 %v2271_v55, %v2052_v24  ;;  %v2273_v61 = vpop.f32.mrb[106].mxu0 }
 0x566   :  { %v2296_v62 = vmax.f32 %v2270_v54, 0.0  ;;  %v2274_v63 = vadd.f32 %v2273_v61, %v2048_v23  ;;  %v2275_v0 = vpop.f32.mrb[107].mxu0 }
 0x567   :  { %v2297_v2 = vmax.f32 %v2272_v57, 0.0  ;;  %v2276_v3 = vadd.f32 %v2275_v0, %v2052_v24 }
 0x568   :  { %v2307_v8 = vadd.f32 %v2306_v59, %v2296_v62  ;;  %v2298_v9 = vmax.f32 %v2274_v63, 0.0 }
 0x569   :  { %v2320_v42 = vadd.f32 %v2319_v60, %v2297_v2  ;;  %v2299_v4 = vmax.f32 %v2276_v3, 0.0 }
 0x56a   :  { %v2308_v5 = vadd.f32 %v2307_v8, %v2298_v9 }
 0x56b   :  { %v2321_v6 = vadd.f32 %v2320_v42, %v2299_v4  ;;  %v2279_v7 = vpop.f32.mrb[108].mxu0 }
 0x56c   :  { %v2280_v10 = vadd.f32 %v2279_v7, %v2048_v23  ;;  %v2281_v11 = vpop.f32.mrb[109].mxu0 }
 0x56d   :  { %v2282_v12 = vadd.f32 %v2281_v11, %v2052_v24  ;;  %v2283_v13 = vpop.f32.mrb[110].mxu0 }
 0x56e   :  { %v2300_v14 = vmax.f32 %v2280_v10, 0.0  ;;  %v2284_v15 = vadd.f32 %v2283_v13, %v2048_v23  ;;  %v2285_v16 = vpop.f32.mrb[111].mxu0 }
 0x56f   :  { %v2301_v17 = vmax.f32 %v2282_v12, 0.0  ;;  %v2286_v18 = vadd.f32 %v2285_v16, %v2052_v24 }
 0x570   :  { %v2309_v19 = vadd.f32 %v2308_v5, %v2300_v14  ;;  %v2302_v20 = vmax.f32 %v2284_v15, 0.0 }
 0x571   :  { %v2322_v21 = vadd.f32 %v2321_v6, %v2301_v17  ;;  %v2303_v22 = vmax.f32 %v2286_v18, 0.0 }
 0x572   :  { %v2310_v25 = vadd.f32 %v2309_v19, %v2302_v20 }
 0x573   :  { %v2323_v27 = vadd.f32 %v2322_v21, %v2303_v22 }
 0x574   :  { %v2311_v29 = vrot.slane %v2310_v25, 4 }
 0x575   :  { %v2324_v31 = vrot.slane %v2323_v27, 4 }
 0x576   :  { %v2312_v36 = vadd.f32 %v2311_v29, %v2310_v25 }
 0x577   :  { %v2325_v37 = vadd.f32 %v2324_v31, %v2323_v27 }
 0x578   :  { %v2313_v38 = vrot.slane %v2312_v36, 2 }
 0x579   :  { %v2326_v39 = vrot.slane %v2325_v37, 2 }
 0x57a   :  { %v2314_v40 = vadd.f32 %v2313_v38, %v2312_v36 }
 0x57b   :  { %v2327_v43 = vadd.f32 %v2326_v39, %v2325_v37 }
 0x57c   :  { %v2315_v45 = vrot.slane %v2314_v40, 1 }
 0x57d   :  { %v2328_v46 = vrot.slane %v2327_v43, 1 }
 0x57e   :  { %v2316_v23 = vadd.f32 %v2315_v45, %v2314_v40 }
 0x57f   :  { %v2329_v49 = vadd.f32 %v2328_v46, %v2327_v43 }
 0x580   :  { %v2330_v51 = vmul.f32 0.015625, %v2316_v23 }
 0x581   :  { %v2331_v24 = vmul.f32 0.015625, %v2329_v49 }
 0x582   :  { %v4017_v59 = vsub.f32 %v2288_v1, %v2330_v51  ;;  %v4021_v60 = vsub.f32 %v2290_v33, %v2330_v51  ;;  %v4023_v53 = vsub.f32 %v2292_v44, %v2330_v51  ;;  %v4025_v54 = vsub.f32 %v2294_v50, %v2330_v51 }
 0x583   :  { %v4027_v55 = vsub.f32 %v2296_v62, %v2330_v51  ;;  %v4029_v57 = vsub.f32 %v2298_v9, %v2330_v51  ;;  %v4031_v61 = vsub.f32 %v2300_v14, %v2330_v51  ;;  %v4033_v63 = vsub.f32 %v2302_v20, %v2330_v51 }
 0x584   :  { %v2348_v26 = vmul.f32 %v4017_v59, %v4017_v59  ;;  %v2350_v30 = vmul.f32 %v4021_v60, %v4021_v60  ;;  %v2352_v1 = vmul.f32 %v4023_v53, %v4023_v53  ;;  %v2354_v33 = vmul.f32 %v4025_v54, %v4025_v54 }
 0x585   :  { %v4045_v50 = vsub.f32 %v2289_v34, %v2331_v24  ;;  %v4049_v62 = vsub.f32 %v2291_v35, %v2331_v24  ;;  %v4053_v0 = vsub.f32 %v2293_v47, %v2331_v24  ;;  %v4057_v3 = vsub.f32 %v2295_v52, %v2331_v24 }
 0x586   :  { %v2364_v44 = vadd.f32 %v2350_v30, %v2348_v26  ;;  %v4059_v8 = vsub.f32 %v2297_v2, %v2331_v24  ;;  %v4061_v9 = vsub.f32 %v2299_v4, %v2331_v24  ;;  %v4063_v42 = vsub.f32 %v2301_v17, %v2331_v24  ;;  %v2396_v26 = vld [vmem:[%s4246_s16] sm:$0x3] }
 0x587   :  { %v4065_v34 = vsub.f32 %v2303_v22, %v2331_v24  ;;  %v2349_v32 = vmul.f32 %v4045_v50, %v4045_v50  ;;  %v2351_v35 = vmul.f32 %v4049_v62, %v4049_v62  ;;  %v2356_v41 = vmul.f32 %v4027_v55, %v4027_v55  ;;  %v2440_v30 = vld [vmem:[%s4247_s17] sm:$0x3] }
 0x588   :  { %v2365_v28 = vadd.f32 %v2364_v44, %v2352_v1  ;;  %v2353_v48 = vmul.f32 %v4053_v0, %v4053_v0  ;;  %v2358_v2 = vmul.f32 %v4029_v57, %v4029_v57  ;;  %v2355_v5 = vmul.f32 %v4057_v3, %v4057_v3 }
 0x589   :  { %v2377_v52 = vadd.f32 %v2351_v35, %v2349_v32  ;;  %v2360_v7 = vmul.f32 %v4031_v61, %v4031_v61  ;;  %v2357_v11 = vmul.f32 %v4059_v8, %v4059_v8  ;;  %v2362_v13 = vmul.f32 %v4033_v63, %v4033_v63 }
 0x58a   :  { %v2366_v47 = vadd.f32 %v2365_v28, %v2354_v33  ;;  %v2359_v15 = vmul.f32 %v4061_v9, %v4061_v9  ;;  %v2361_v18 = vmul.f32 %v4063_v42, %v4063_v42  ;;  %v2363_v21 = vmul.f32 %v4065_v34, %v4065_v34 }
 0x58b   :  { %v2378_v6 = vadd.f32 %v2377_v52, %v2353_v48  ;;  %v2417_v1 = vrot.slane %v2396_v26, %v3431_v56  ;;  %v4099_v44 = vrot.slane %v2440_v30, %v3431_v56  ;;  %v4102_v28 = vrot.slane %v2396_v26, %v3436_v58 }
 0x58c   :  { %v2367_v4 = vadd.f32 %v2366_v47, %v2356_v41  ;;  %v4105_v32 = vrot.slane %v2440_v30, %v3436_v58 }
 0x58d   :  { %v2379_v12 = vadd.f32 %v2378_v6, %v2355_v5 }
 0x58e   :  { %v2368_v10 = vadd.f32 %v2367_v4, %v2358_v2 }
 0x58f   :  { %v2380_v16 = vadd.f32 %v2379_v12, %v2357_v11 }
 0x590   :  { %v2369_v14 = vadd.f32 %v2368_v10, %v2360_v7 }
 0x591   :  { %v2381_v19 = vadd.f32 %v2380_v16, %v2359_v15 }
 0x592   :  { %v2370_v17 = vadd.f32 %v2369_v14, %v2362_v13 }
 0x593   :  { %v2382_v22 = vadd.f32 %v2381_v19, %v2361_v18 }
 0x594   :  { %v2371_v20 = vrot.slane %v2370_v17, 4 }
 0x595   :  { %v2383_v27 = vadd.f32 %v2382_v22, %v2363_v21 }
 0x596   :  { %v2372_v25 = vadd.f32 %v2371_v20, %v2370_v17 }
 0x597   :  { %v2384_v31 = vrot.slane %v2383_v27, 4 }
 0x598   :  { %v2373_v29 = vrot.slane %v2372_v25, 2 }
 0x599   :  { %v2385_v37 = vadd.f32 %v2384_v31, %v2383_v27 }
 0x59a   :  { %v2374_v36 = vadd.f32 %v2373_v29, %v2372_v25 }
 0x59b   :  { %v2386_v39 = vrot.slane %v2385_v37, 2 }
 0x59c   :  { %v2375_v38 = vrot.slane %v2374_v36, 1 }
 0x59d   :  { %v2387_v43 = vadd.f32 %v2386_v39, %v2385_v37 }
 0x59e   :  { %v2376_v40 = vadd.f32 %v2375_v38, %v2374_v36 }
 0x59f   :  { %v2388_v46 = vrot.slane %v2387_v43, 1 }
 0x5a0   :  { %v2390_v45 = vmul.f32 0.015625, %v2376_v40 }
 0x5a1   :  { %v2389_v49 = vadd.f32 %v2388_v46, %v2387_v43 }
 0x5a2   :  { %v2392_v23 = vadd.f32 1e-05, %v2390_v45 }
 0x5a3   :  { %v2391_v51 = vmul.f32 0.015625, %v2389_v49 }
 0x5a4   :  { %3138 = vrsqrt.f32 %v2392_v23 }
 0x5a5   :  { %v2393_v24 = vadd.f32 1e-05, %v2391_v51 }
 0x5a7   :  { %3140 = vrsqrt.f32 %v2393_v24 }
 0x5ae   :  { %v3139_v33 = vpop.eup %3138 }
 0x5af   :  { %v2409_v35 = vmul.f32 %v3139_v33, %v4031_v61  ;;  %v2411_v41 = vmul.f32 %v3139_v33, %v4033_v63  ;;  %v2397_v47 = vmul.f32 %v3139_v33, %v4017_v59  ;;  %v2399_v48 = vmul.f32 %v3139_v33, %v4021_v60 }
 0x5b0   :  { %v2401_v52 = vmul.f32 %v3139_v33, %v4023_v53  ;;  %v2403_v2 = vmul.f32 %v3139_v33, %v4025_v54  ;;  %v2405_v56 = vmul.f32 %v3139_v33, %v4027_v55  ;;  %v2407_v4 = vmul.f32 %v3139_v33, %v4029_v57 }
 0x5b1   :  { %v2438_v5 = vmul.f32 %v2417_v1, %v2411_v41  ;;  %v2424_v6 = vmul.f32 %v2417_v1, %v2397_v47  ;;  %v2426_v58 = vmul.f32 %v2417_v1, %v2399_v48  ;;  %v2436_v7 = vmul.f32 %v2417_v1, %v2409_v35  ;;  %v3141_v10 = vpop.eup %3140  ;;  %v2589_v47 = vpop.permute.xlu0 %2588 }
 0x5b2   :  { %v2428_v61 = vmul.f32 %v2417_v1, %v2401_v52  ;;  %v2430_v11 = vmul.f32 %v2417_v1, %v2403_v2  ;;  %v2432_v63 = vmul.f32 %v2417_v1, %v2405_v56  ;;  %v2434_v12 = vmul.f32 %v2417_v1, %v2407_v4 }
 0x5b3   :  { %v4116_v59 = vadd.f32 %v4099_v44, %v2438_v5  ;;  %v2412_v60 = vmul.f32 %v3141_v10, %v4065_v34  ;;  %v2398_v53 = vmul.f32 %v3141_v10, %v4045_v50  ;;  %v2400_v54 = vmul.f32 %v3141_v10, %v4049_v62 }
 0x5b4   :  { %v2452_v55 = vadd.f32 %v4099_v44, %v2424_v6  ;;  %v2454_v57 = vadd.f32 %v4099_v44, %v2426_v58  ;;  %v2402_v13 = vmul.f32 %v3141_v10, %v4053_v0  ;;  %v2404_v14 = vmul.f32 %v3141_v10, %v4057_v3 }
 0x5b5   :  { %2490 = vst [vmem:[%s4248_s18 + $0x70] sm:$0xff] %v4116_v59  ;;  %v2439_v15 = vmul.f32 %v4102_v28, %v2412_v60  ;;  %v2425_v34 = vmul.f32 %v4102_v28, %v2398_v53  ;;  %v2427_v50 = vmul.f32 %v4102_v28, %v2400_v54  ;;  %v2456_v62 = vadd.f32 %v4099_v44, %v2428_v61 }
 0x5b6   :  { %v2468_v16 = vpack.c.bf16 %v2454_v57, %v2452_v55  ;;  %2476 = vst [vmem:[%s4248_s18] sm:$0xff] %v2452_v55  ;;  %2478 = vst [vmem:[%s4248_s18 + $0x10] sm:$0xff] %v2454_v57  ;;  %v2429_v0 = vmul.f32 %v4102_v28, %v2402_v13  ;;  %v2431_v3 = vmul.f32 %v4102_v28, %v2404_v14 }
 0x5b7   :  { %v2458_v17 = vadd.f32 %v4099_v44, %v2430_v11  ;;  %v2453_v18 = vadd.f32 %v4105_v32, %v2425_v34  ;;  %v2455_v19 = vadd.f32 %v4105_v32, %v2427_v50  ;;  %2480 = vst [vmem:[%s4248_s18 + $0x20] sm:$0xff] %v2456_v62  ;;  %v2406_v20 = vmul.f32 %v3141_v10, %v4059_v8 }
 0x5b8   :  { %v2408_v21 = vmul.f32 %v3141_v10, %v4061_v9  ;;  %v2457_v22 = vadd.f32 %v4105_v32, %v2429_v0  ;;  %v2459_v25 = vadd.f32 %v4105_v32, %v2431_v3  ;;  %v2460_v29 = vadd.f32 %v4099_v44, %v2432_v63 }
 0x5b9   :  { %v2470_v27 = vpack.c.bf16 %v2458_v17, %v2456_v62  ;;  %2482 = vst [vmem:[%s4248_s18 + $0x30] sm:$0xff] %v2458_v17  ;;  %v2469_v31 = vpack.c.bf16 %v2455_v19, %v2453_v18  ;;  %2477 = vst [vmem:[%s4248_s18 + $0x8] sm:$0xff] %v2453_v18  ;;  %v2798_v8 = vpack.c.bf16 %v2453_v18, %v2452_v55 }
 0x5ba   :  { %2479 = vst [vmem:[%s4248_s18 + $0x18] sm:$0xff] %v2455_v19  ;;  %v2799_v9 = vpack.c.bf16 %v2455_v19, %v2454_v57  ;;  %v2433_v36 = vmul.f32 %v4102_v28, %v2406_v20  ;;  %v2471_v37 = vpack.c.bf16 %v2459_v25, %v2457_v22  ;;  %2481 = vst [vmem:[%s4248_s18 + $0x28] sm:$0xff] %v2457_v22 }
 0x5bb   :  { %2483 = vst [vmem:[%s4248_s18 + $0x38] sm:$0xff] %v2459_v25  ;;  %v2800_v38 = vpack.c.bf16 %v2457_v22, %v2456_v62  ;;  %v2801_v39 = vpack.c.bf16 %v2459_v25, %v2458_v17  ;;  %v2435_v40 = vmul.f32 %v4102_v28, %v2408_v21  ;;  %2484 = vst [vmem:[%s4248_s18 + $0x40] sm:$0xff] %v2460_v29  ;;  %2544 = vmatprep.subr.bf16.mxu0 %v2469_v31 }
 0x5bc   :  { %2532 = vst [vmem:[%s4249_s19] sm:$0xff] %v2798_v8  ;;  %2533 = vst [vmem:[%s4249_s19 + $0x8] sm:$0xff] %v2799_v9  ;;  %v2461_v43 = vadd.f32 %v4105_v32, %v2433_v36  ;;  %v2462_v45 = vadd.f32 %v4099_v44, %v2434_v12  ;;  %v2410_v46 = vmul.f32 %v3141_v10, %v4063_v42  ;;  %2545 = vmatpush1.bf16.msra.mxu0 %v2468_v16 }
 0x5bd   :  { %v2467_v23 = vadd.f32 %v4105_v32, %v2439_v15  ;;  %2534 = vst [vmem:[%s4249_s19 + $0x10] sm:$0xff] %v2800_v38  ;;  %2535 = vst [vmem:[%s4249_s19 + $0x18] sm:$0xff] %v2801_v39  ;;  %v2463_v49 = vadd.f32 %v4105_v32, %v2435_v40  ;;  %v2464_v51 = vadd.f32 %v4099_v44, %v2436_v7  ;;  %2546 = vmatprep.subr.bf16.mxu0 %v2471_v37 }
 0x5be   :  { %2485 = vst [vmem:[%s4248_s18 + $0x48] sm:$0xff] %v2461_v43  ;;  %v2472_v42 = vpack.c.bf16 %v2462_v45, %v2460_v29  ;;  %2486 = vst [vmem:[%s4248_s18 + $0x50] sm:$0xff] %v2462_v45  ;;  %v2802_v24 = vpack.c.bf16 %v2461_v43, %v2460_v29  ;;  %v2437_v26 = vmul.f32 %v4102_v28, %v2410_v46 }
 0x5bf   :  { %2491 = vst [vmem:[%s4248_s18 + $0x78] sm:$0xff] %v2467_v23  ;;  %v2805_v30 = vpack.c.bf16 %v2467_v23, %v4116_v59  ;;  %v2473_v1 = vpack.c.bf16 %v2463_v49, %v2461_v43  ;;  %2487 = vst [vmem:[%s4248_s18 + $0x58] sm:$0xff] %v2463_v49  ;;  %v2803_v33 = vpack.c.bf16 %v2463_v49, %v2462_v45 }
 0x5c0   :  { %v2474_v44 = vpack.c.bf16 %v4116_v59, %v2464_v51  ;;  %2488 = vst [vmem:[%s4248_s18 + $0x60] sm:$0xff] %v2464_v51  ;;  %2536 = vst [vmem:[%s4249_s19 + $0x20] sm:$0xff] %v2802_v24  ;;  %v2465_v28 = vadd.f32 %v4105_v32, %v2437_v26  ;;  %2547 = vmatpush1.bf16.msra.mxu0 %v2470_v27  ;;  %v2540_v32 = vld [vmem:[%s4250_s5] sm:$0x3] }
 0x5c1   :  { %2539 = vst [vmem:[%s4249_s19 + $0x38] sm:$0xff] %v2805_v30  ;;  %2537 = vst [vmem:[%s4249_s19 + $0x28] sm:$0xff] %v2803_v33  ;;  %2548 = vmatprep.subr.bf16.mxu0 %v2473_v1 }
 0x5c2   :  { %v2475_v35 = vpack.c.bf16 %v2467_v23, %v2465_v28  ;;  %2489 = vst [vmem:[%s4248_s18 + $0x68] sm:$0xff] %v2465_v28  ;;  %v2804_v41 = vpack.c.bf16 %v2465_v28, %v2464_v51 }
 0x5c4   :  { %2538 = vst [vmem:[%s4249_s19 + $0x30] sm:$0xff] %v2804_v41  ;;  %2549 = vmatpush1.bf16.msra.mxu0 %v2472_v42 }
 0x5c5   :  { %2550 = vmatprep.subr.bf16.mxu0 %v2475_v35 }
 0x5c8   :  { %2551 = vmatpush1.bf16.msra.mxu0 %v2474_v44 }
 0x5cb   :  { %2797 = vmatmul.mubr.msk.bf16.vlgmr.msra.gmra.mrb[112].mxu0 %vm1117_vm2, %v2540_v32 }
 0x69e   :  { %v2578_v48 = vpop.f32.mrb[112].mxu0 }
 0x69f   :  { %v2591_v52 = vmul.f32 %v2589_v47, %v2578_v48  ;;  %v2580_v2 = vpop.f32.mrb[113].mxu0 }
 0x6a0   :  { %v2592_v56 = vmul.f32 %v2589_v47, %v2580_v2  ;;  %v2582_v4 = vpop.f32.mrb[114].mxu0 }
 0x6a1   :  { %v2583_v5 = vpop.f32.mrb[115].mxu0 }
 0x6a2   :  { %v2595_v6 = vcombine.low %v2591_v52, %v2592_v56 }
 0x6a4   :  { %2597 = vst [vmem:[%s4251_s20] sm:$0xff] %v2595_v6 }

// kernel: net_gine_forward.8
= control target key start
LH: loop header
LB: loop body
LE: loop exit
PB: predicated region body
PF: predicated region fallthrough
CT: control target
= control target key end

     0   :  { %s4269_s0 = inlined_call_operand.vmem [shape: f32[64,256], index: 0, kind: input, shape index: {}]   ;;  %s4270_s1 = inlined_call_operand.vmem [shape: bf16[64,256], index: 1, kind: input, shape index: {}]   ;;  %s4271_s2 = inlined_call_operand.vmem [shape: bf16[256,8], index: 2, kind: input, shape index: {}]   ;;  %s4272_s3 = inlined_call_operand.vmem [shape: bf16[256,64], index: 3, kind: input, shape index: {}]   ;;  %s4273_s4 = inlined_call_operand.vmem [shape: bf16[64,256], index: 4, kind: input, shape index: {}]   ;;  %s4274_s5 = inlined_call_operand.vmem [shape: bf16[4,64], index: 5, kind: input, shape index: {}]   ;;  %s4275_s6 = inlined_call_operand.vmem [shape: f32[4,1], index: 6, kind: input, shape index: {}]   ;;  %s4276_s7 = inlined_call_operand.vmem [shape: bf16[8,256], index: 7, kind: input, shape index: {}]   ;;  %s4277_s8 = inlined_call_operand.vmem [shape: f32[1,256], index: 8, kind: input, shape index: {}]   ;;  %s4278_s9 = inlined_call_operand.vmem [shape: bf16[256,256], index: 9, kind: input, shape index: {}]   ;;  %s4279_s10 = inlined_call_operand.vmem [shape: f32[1,256], index: 10, kind: input, shape index: {}]   ;;  %s4280_s11 = inlined_call_operand.vmem [shape: bf16[256,256], index: 11, kind: input, shape index: {}]   ;;  %s4281_s12 = inlined_call_operand.vmem [shape: f32[1,256], index: 12, kind: input, shape index: {}]   ;;  %s4282_s13 = inlined_call_operand.vmem [shape: bf16[256,256], index: 13, kind: input, shape index: {}]   ;;  %s4283_s14 = inlined_call_operand.vmem [shape: f32[1,256], index: 14, kind: input, shape index: {}]   ;;  %s4284_s15 = inlined_call_operand.<no memory space> [shape: f32[1,1], index: 15, kind: input, shape index: {}]   ;;  %s4285_s16 = inlined_call_operand.vmem [shape: f32[1,256], index: 16, kind: input, shape index: {}]   ;;  %s4286_s17 = inlined_call_operand.vmem [shape: f32[1,256], index: 17, kind: input, shape index: {}]   ;;  %s4287_s18 = inlined_call_operand.hbm [shape: f32[64,256], index: 18, kind: output, shape index: {0}]   ;;  %s4288_s19 = inlined_call_operand.hbm [shape: bf16[64,256], index: 19, kind: output, shape index: {1}]   ;;  %s4289_s20 = inlined_call_operand.vmem [shape: f32[4,256], index: 20, kind: output, shape index: {2}]  }
   0x1   :  { %4295 = sst [smem:[#allocation10_spill]] %s4269_s0  ;;  %v26_v0 = vstv %s4284_s15 }
   0x2   :  { %4296 = sst [smem:[#allocation11_spill]] %s4270_s1  ;;  %27 = vst [vmem:[#allocation3] sm:$0x1] %v26_v0 }
   0x3   :  { %4297 = sst [smem:[#allocation12_spill]] %s4271_s2 }
   0x4   :  { %4298 = sst [smem:[#allocation13_spill]] %s4272_s3 }
   0x5   :  { %4299 = sst [smem:[#allocation14_spill]] %s4273_s4 }
   0x6   :  { %28 = vsyncpa [#allocation5], 0  ;;  %v119_v1 = vld [vmem:[%s4276_s7] sm:$0xff]  ;;  %vm266_vm0 = vcmask 1043456   ;;  %v3222_v4 = vmov 0   ;;  %s4300_s3 = sld [smem:[#allocation12_spill]] }
   0x7   :  { %v2653_v2 = vcombine.high %v119_v1, %v119_v1  ;;  %v2652_v3 = vcombine.low %v119_v1, %v119_v1  ;;  %305 = vmatprep.mubr.bf16.mxu0 %v3222_v4  ;;  %2967 = vset.pattern.permute.xlu0 %v3222_v4  ;;  %vm217_vm1 = vcmask 64512   ;;  %v2986_v8 = vld [vmem:[%s4278_s9 + $0x4] ss:$8 sps:$4 sm:$0xff]   ;;  %v2988_v9 = vld [vmem:[%s4278_s9] ss:$8 sps:$4 sm:$0xff]  }
   0x8   :  { %v2989_v10 = vld [vmem:[%s4278_s9 + $0x14] ss:$8 sps:$4 sm:$0xff]   ;;  %766 = vmatprep.subr.bf16.mxu1 %v2986_v8  ;;  %v2991_v12 = vld [vmem:[%s4278_s9 + $0x10] ss:$8 sps:$4 sm:$0xff]   ;;  %v2992_v13 = vld [vmem:[%s4278_s9 + $0x24] ss:$8 sps:$4 sm:$0xff]  }
   0x9   :  { %2654 = vmatprep.subr.msk.bf16.mxu0 %vm266_vm0, %v2653_v2  ;;  %v268_v5 = vsel %vm266_vm0, %v2652_v3, 0  ;;  %767 = vmatpush1.bf16.msra.mxu1 %v2988_v9  ;;  %v2994_v14 = vld [vmem:[%s4278_s9 + $0x20] ss:$8 sps:$4 sm:$0xff]   ;;  %v2995_v15 = vld [vmem:[%s4278_s9 + $0x34] ss:$8 sps:$4 sm:$0xff]  }
   0xa   :  { %274 = vmatpush1.bf16.msra.mxu0 %v268_v5  ;;  %768 = vmatprep.subr.bf16.mxu1 %v2989_v10  ;;  %v2997_v17 = vld [vmem:[%s4278_s9 + $0x30] ss:$8 sps:$4 sm:$0xff]   ;;  %v2998_v18 = vld [vmem:[%s4278_s9 + $0x44] ss:$8 sps:$4 sm:$0xff]   ;;  %v3000_v19 = vld [vmem:[%s4278_s9 + $0x40] ss:$8 sps:$4 sm:$0xff]  }
   0xb   :  { %v3001_v20 = vld [vmem:[%s4278_s9 + $0x54] ss:$8 sps:$4 sm:$0xff]   ;;  %v3003_v22 = vld [vmem:[%s4278_s9 + $0x50] ss:$8 sps:$4 sm:$0xff]   ;;  %v3004_v23 = vld [vmem:[%s4278_s9 + $0x64] ss:$8 sps:$4 sm:$0xff]  }
   0xc   :  { %v2970_v6 = vld [vmem:[%s4300_s3] sm:$0xff]   ;;  %v2971_v7 = vld [vmem:[%s4300_s3 + $0x8] sm:$0xff]   ;;  %v2972_v11 = vld [vmem:[%s4300_s3 + $0x10] sm:$0xff]  }
   0xd   :  { %2655 = vmatmul.mubr.msk.bf16.vlgmr.msra.gmra.mrb[0].mxu0 %vm217_vm1, %v2970_v6  ;;  %769 = vmatpush1.bf16.msra.mxu1 %v2991_v12  ;;  %v2973_v16 = vld [vmem:[%s4300_s3 + $0x18] sm:$0xff]   ;;  %v2974_v21 = vld [vmem:[%s4300_s3 + $0x20] sm:$0xff]   ;;  %v2975_v26 = vld [vmem:[%s4300_s3 + $0x28] sm:$0xff]  }
   0xe   :  { %315 = vmatprep.mubr.bf16.mxu0 %v3222_v4  ;;  %770 = vmatprep.subr.bf16.mxu1 %v2992_v13  ;;  %v3006_v24 = vld [vmem:[%s4278_s9 + $0x60] ss:$8 sps:$4 sm:$0xff]   ;;  %v3007_v25 = vld [vmem:[%s4278_s9 + $0x74] ss:$8 sps:$4 sm:$0xff]   ;;  %v3009_v27 = vld [vmem:[%s4278_s9 + $0x70] ss:$8 sps:$4 sm:$0xff]  }
   0xf   :  { %v3010_v28 = vld [vmem:[%s4278_s9 + $0x84] ss:$8 sps:$4 sm:$0xff]   ;;  %v3012_v29 = vld [vmem:[%s4278_s9 + $0x80] ss:$8 sps:$4 sm:$0xff]   ;;  %v3013_v30 = vld [vmem:[%s4278_s9 + $0x94] ss:$8 sps:$4 sm:$0xff]  }
  0x10   :  { %v2976_v31 = vld [vmem:[%s4300_s3 + $0x30] sm:$0xff]   ;;  %v3016_v33 = vld [vmem:[%s4278_s9 + $0xa4] ss:$8 sps:$4 sm:$0xff]   ;;  %v3018_v34 = vld [vmem:[%s4278_s9 + $0xa0] ss:$8 sps:$4 sm:$0xff]  }
  0x11   :  { %771 = vmatpush1.bf16.msra.mxu1 %v2994_v14  ;;  %v3015_v32 = vld [vmem:[%s4278_s9 + $0x90] ss:$8 sps:$4 sm:$0xff]   ;;  %v3019_v35 = vld [vmem:[%s4278_s9 + $0xb4] ss:$8 sps:$4 sm:$0xff]   ;;  %v3022_v38 = vld [vmem:[%s4278_s9 + $0xc4] ss:$8 sps:$4 sm:$0xff]  }
  0x12   :  { %772 = vmatprep.subr.bf16.mxu1 %v2995_v15  ;;  %v2977_v36 = vld [vmem:[%s4300_s3 + $0x38] sm:$0xff]   ;;  %v3024_v39 = vld [vmem:[%s4278_s9 + $0xc0] ss:$8 sps:$4 sm:$0xff]  }
  0x13   :  { %v3021_v37 = vld [vmem:[%s4278_s9 + $0xb0] ss:$8 sps:$4 sm:$0xff]   ;;  %v3025_v40 = vld [vmem:[%s4278_s9 + $0xd4] ss:$8 sps:$4 sm:$0xff]   ;;  %v2978_v41 = vld [vmem:[%s4300_s3 + $0x40] sm:$0xff]  }
  0x15   :  { %2656 = vmatmul.mubr.msk.bf16.gmra.mrb[4].mxu0 %vm217_vm1, %v2971_v7  ;;  %773 = vmatpush1.bf16.msra.mxu1 %v2997_v17 }
  0x16   :  { %325 = vmatprep.mubr.bf16.mxu0 %v3222_v4  ;;  %774 = vmatprep.subr.bf16.mxu1 %v2998_v18 }
  0x19   :  { %775 = vmatpush1.bf16.msra.mxu1 %v3000_v19 }
  0x1a   :  { %776 = vmatprep.subr.bf16.mxu1 %v3001_v20 }
  0x1d   :  { %2657 = vmatmul.mubr.msk.bf16.gmra.mrb[8].mxu0 %vm217_vm1, %v2972_v11  ;;  %777 = vmatpush1.bf16.msra.mxu1 %v3003_v22 }
  0x1e   :  { %335 = vmatprep.mubr.bf16.mxu0 %v3222_v4  ;;  %778 = vmatprep.subr.bf16.mxu1 %v3004_v23 }
  0x21   :  { %779 = vmatpush1.bf16.msra.mxu1 %v3006_v24 }
  0x22   :  { %780 = vmatprep.subr.bf16.mxu1 %v3007_v25 }
  0x25   :  { %2658 = vmatmul.mubr.msk.bf16.gmra.mrb[12].mxu0 %vm217_vm1, %v2973_v16  ;;  %781 = vmatpush1.bf16.msra.mxu1 %v3009_v27 }
  0x26   :  { %345 = vmatprep.mubr.bf16.mxu0 %v3222_v4  ;;  %782 = vmatprep.subr.bf16.mxu1 %v3010_v28 }
  0x29   :  { %783 = vmatpush1.bf16.msra.mxu1 %v3012_v29 }
  0x2a   :  { %784 = vmatprep.subr.bf16.mxu1 %v3013_v30 }
  0x2d   :  { %2659 = vmatmul.mubr.msk.bf16.gmra.mrb[16].mxu0 %vm217_vm1, %v2974_v21  ;;  %785 = vmatpush1.bf16.msra.mxu1 %v3015_v32 }
  0x2e   :  { %355 = vmatprep.mubr.bf16.mxu0 %v3222_v4  ;;  %786 = vmatprep.subr.bf16.mxu1 %v3016_v33 }
  0x31   :  { %787 = vmatpush1.bf16.msra.mxu1 %v3018_v34 }
  0x32   :  { %788 = vmatprep.subr.bf16.mxu1 %v3019_v35 }
  0x35   :  { %2660 = vmatmul.mubr.msk.bf16.gmra.mrb[20].mxu0 %vm217_vm1, %v2975_v26  ;;  %789 = vmatpush1.bf16.msra.mxu1 %v3021_v37 }
  0x36   :  { %365 = vmatprep.mubr.bf16.mxu0 %v3222_v4  ;;  %790 = vmatprep.subr.bf16.mxu1 %v3022_v38 }
  0x39   :  { %791 = vmatpush1.bf16.msra.mxu1 %v3024_v39 }
  0x3a   :  { %792 = vmatprep.subr.bf16.mxu1 %v3025_v40 }
  0x3d   :  { %2661 = vmatmul.mubr.msk.bf16.gmra.mrb[24].mxu0 %vm217_vm1, %v2976_v31 }
  0x3e   :  { %375 = vmatprep.mubr.bf16.mxu0 %v3222_v4 }
  0x45   :  { %2662 = vmatmul.mubr.msk.bf16.gmra.mrb[28].mxu0 %vm217_vm1, %v2977_v36 }
  0x46   :  { %385 = vmatprep.mubr.bf16.mxu0 %v3222_v4 }
  0x4d   :  { %2663 = vmatmul.mubr.msk.bf16.gmra.mrb[32].mxu0 %vm217_vm1, %v2978_v41 }
  0x4e   :  { %395 = vmatprep.mubr.bf16.mxu0 %v3222_v4 }
  0x4f   :  { %29 = vsyncpa [#allocation7], 0  ;;  %v2979_v42 = vld [vmem:[%s4300_s3 + $0x48] sm:$0xff]   ;;  %v2980_v43 = vld [vmem:[%s4300_s3 + $0x50] sm:$0xff]   ;;  %s4301_s24 = sld [smem:[#allocation11_spill]]  ;;  %v122_v55 = vlaneseq  ;;  %s4302_s25 = sld [smem:[#allocation13_spill]] }
  0x50   :  { %v3027_v44 = vld [vmem:[%s4278_s9 + $0xd0] ss:$8 sps:$4 sm:$0xff]   ;;  %v3028_v46 = vld [vmem:[%s4278_s9 + $0xe4] ss:$8 sps:$4 sm:$0xff]   ;;  %v3030_v47 = vld [vmem:[%s4278_s9 + $0xe0] ss:$8 sps:$4 sm:$0xff]  }
  0x51   :  { %793 = vmatpush1.bf16.msra.mxu1 %v3027_v44  ;;  %v2981_v45 = vld [vmem:[%s4300_s3 + $0x58] sm:$0xff]   ;;  %v2982_v50 = vld [vmem:[%s4300_s3 + $0x60] sm:$0xff]   ;;  %v2983_v51 = vld [vmem:[%s4300_s3 + $0x68] sm:$0xff]   ;;  %v123_v56 = vshrl.u32 %v122_v55, 7  ;;  %vm1119_vm2 = vcmask 523264   ;;  %s4303_s23 = sld [smem:[#allocation14_spill]] }
  0x52   :  { %794 = vmatprep.subr.bf16.mxu1 %v3028_v46  ;;  %v3031_v48 = vld [vmem:[%s4278_s9 + $0xf4] ss:$8 sps:$4 sm:$0xff]   ;;  %v3033_v49 = vld [vmem:[%s4278_s9 + $0xf0] ss:$8 sps:$4 sm:$0xff]   ;;  %v120_v58 = vld [vmem:[%s4277_s8] sm:$0x3] }
  0x53   :  { %v2984_v52 = vld [vmem:[%s4300_s3 + $0x70] sm:$0xff]   ;;  %v2985_v54 = vld [vmem:[%s4300_s3 + $0x78] sm:$0xff]   ;;  %v3520_v57 = vsub.s32 0, %v123_v56  ;;  %v3525_v59 = vsub.s32 1, %v123_v56  ;;  %s3223_s4 = smov [#allocation4]  }
  0x54   :  { %s2605_s29 = sshll.u32 %s3223_s4, 4  ;;  %s2606_s29 = int_to_ptr.vmem [resolvable:$true] %s2605_s29 }
  0x55   :  { %2664 = vmatmul.mubr.msk.bf16.gmra.mrb[36].mxu0 %vm217_vm1, %v2979_v42  ;;  %795 = vmatpush1.bf16.msra.mxu1 %v3030_v47  ;;  %v3036_v53 = vld [vmem:[%s4301_s24 + $0x4] ss:$8 sps:$4 sm:$0xff]   ;;  %v3528_v60 = vrot.slane %v120_v58, %v3520_v57  ;;  %v3531_v61 = vrot.slane %v120_v58, %v3525_v59  ;;  %v3034_v14 = vld [vmem:[%s4301_s24] ss:$8 sps:$4 sm:$0xff]   ;;  %v3039_v17 = vld [vmem:[%s4301_s24 + $0x14] ss:$8 sps:$4 sm:$0xff]   ;;  %p3179_p1 = scmp.lt.s32.totalorder %s2606_s29, %s2606_s29 }
  0x56   :  { %405 = vmatprep.mubr.bf16.mxu0 %v3222_v4  ;;  %796 = vmatprep.subr.bf16.mxu1 %v3031_v48  ;;  %v3037_v23 = vld [vmem:[%s4301_s24 + $0x10] ss:$8 sps:$4 sm:$0xff]   ;;  %v3042_v26 = vld [vmem:[%s4301_s24 + $0x24] ss:$8 sps:$4 sm:$0xff]   ;;  %v3040_v32 = vld [vmem:[%s4301_s24 + $0x20] ss:$8 sps:$4 sm:$0xff]  }
  0x57   :  { %v3045_v35 = vld [vmem:[%s4301_s24 + $0x34] ss:$8 sps:$4 sm:$0xff]   ;;  %v3043_v41 = vld [vmem:[%s4301_s24 + $0x30] ss:$8 sps:$4 sm:$0xff]   ;;  %s3174_s30 = scalar_lea.vmem %s2606_s29, 2048 }
  0x58   :  { %p3175_p0 = scmp.ne.s32.totalorder %s2606_s29, %s3174_s30  ;;  %p3180_p2 = scmp.lt.s32.totalorder %s3174_s30, %s3174_s30 }
  0x59   :  { %797 = vmatpush1.bf16.msra.mxu1 %v3033_v49 }
  0x5a   :  { %1168 = vmatprep.subr.bf16.mxu1 %v3036_v53  ;;  %p3181_p3 = por %p3180_p2, %p3179_p1 }
  0x5c   :  { %p3182_p4 = pnand %p3181_p3, %p3175_p0 }
  0x5d   :  { %2665 = vmatmul.mubr.msk.bf16.gmra.mrb[40].mxu0 %vm217_vm1, %v2980_v43 }
  0x5e   :  { %415 = vmatprep.mubr.bf16.mxu0 %v3222_v4 }
  0x65   :  { %2666 = vmatmul.mubr.msk.bf16.gmra.mrb[44].mxu0 %vm217_vm1, %v2981_v45 }
  0x66   :  { %425 = vmatprep.mubr.bf16.mxu0 %v3222_v4 }
  0x6d   :  { %2667 = vmatmul.mubr.msk.bf16.gmra.mrb[48].mxu0 %vm217_vm1, %v2982_v50 }
  0x6e   :  { %435 = vmatprep.mubr.bf16.mxu0 %v3222_v4 }
  0x75   :  { %2668 = vmatmul.mubr.msk.bf16.gmra.mrb[52].mxu0 %vm217_vm1, %v2983_v51 }
  0x76   :  { %445 = vmatprep.mubr.bf16.mxu0 %v3222_v4 }
  0x7d   :  { %2669 = vmatmul.mubr.msk.bf16.gmra.mrb[56].mxu0 %vm217_vm1, %v2984_v52 }
  0x7e   :  { %455 = vmatprep.mubr.bf16.mxu0 %v3222_v4 }
  0x85   :  { %2670 = vmatmul.mubr.msk.bf16.gmra.mrb[60].mxu0 %vm217_vm1, %v2985_v54 }
  0xe0   :  { %v307_v62 = vpop.f32.mrb[0].mxu0 }
  0xe1   :  { %v308_v63 = vadd.f32 %v307_v62, %v3528_v60  ;;  %v309_v0 = vpop.f32.mrb[1].mxu0 }
  0xe2   :  { %v310_v1 = vadd.f32 %v309_v0, %v3531_v61  ;;  %v311_v2 = vpop.f32.mrb[2].mxu0 }
  0xe3   :  { %v312_v3 = vadd.f32 %v311_v2, %v3528_v60  ;;  %v313_v5 = vpop.f32.mrb[3].mxu0  ;;  %v466_v7 = vmax.f32 %v308_v63, 0.0 }
  0xe4   :  { %v314_v6 = vadd.f32 %v313_v5, %v3531_v61  ;;  %v467_v9 = vmax.f32 %v310_v1, 0.0 }
  0xe5   :  { %v468_v8 = vmax.f32 %v312_v3, 0.0 }
  0xe6   :  { %v469_v10 = vmax.f32 %v314_v6, 0.0 }
  0xe7   :  { %v530_v11 = vpack.c.bf16 %v468_v8, %v466_v7 }
  0xe8   :  { %v317_v12 = vpop.f32.mrb[4].mxu0  ;;  %v531_v13 = vpack.c.bf16 %v469_v10, %v467_v9 }
  0xe9   :  { %v318_v15 = vadd.f32 %v317_v12, %v3528_v60  ;;  %v319_v16 = vpop.f32.mrb[5].mxu0 }
  0xea   :  { %v320_v18 = vadd.f32 %v319_v16, %v3531_v61  ;;  %v321_v19 = vpop.f32.mrb[6].mxu0  ;;  %798 = vmatprep.mubr.bf16.mxu1 %v531_v13 }
  0xeb   :  { %v322_v20 = vadd.f32 %v321_v19, %v3528_v60  ;;  %v323_v21 = vpop.f32.mrb[7].mxu0  ;;  %799 = vmatmul.mubr.bf16.vlgmr.msra.gmra.mrb[0].mxu1 %v530_v11  ;;  %v470_v24 = vmax.f32 %v318_v15, 0.0 }
  0xec   :  { %v324_v22 = vadd.f32 %v323_v21, %v3531_v61  ;;  %1169 = vmatpush1.bf16.msra.mxu1 %v3034_v14  ;;  %v471_v27 = vmax.f32 %v320_v18, 0.0 }
  0xed   :  { %v472_v25 = vmax.f32 %v322_v20, 0.0  ;;  %1170 = vmatprep.subr.bf16.mxu1 %v3039_v17 }
  0xee   :  { %v473_v28 = vmax.f32 %v324_v22, 0.0 }
  0xef   :  { %v532_v29 = vpack.c.bf16 %v472_v25, %v470_v24 }
  0xf0   :  { %v533_v30 = vpack.c.bf16 %v473_v28, %v471_v27  ;;  %v327_v31 = vpop.f32.mrb[8].mxu0  ;;  %1171 = vmatpush1.bf16.msra.mxu1 %v3037_v23 }
  0xf1   :  { %v328_v33 = vadd.f32 %v327_v31, %v3528_v60  ;;  %v329_v34 = vpop.f32.mrb[9].mxu0  ;;  %1172 = vmatprep.subr.bf16.mxu1 %v3042_v26 }
  0xf2   :  { %v330_v36 = vadd.f32 %v329_v34, %v3531_v61  ;;  %v331_v37 = vpop.f32.mrb[10].mxu0  ;;  %808 = vmatprep.mubr.bf16.mxu1 %v533_v30 }
  0xf3   :  { %v332_v38 = vadd.f32 %v331_v37, %v3528_v60  ;;  %v333_v39 = vpop.f32.mrb[11].mxu0  ;;  %809 = vmatmul.mubr.bf16.gmra.mrb[4].mxu1 %v532_v29  ;;  %v474_v42 = vmax.f32 %v328_v33, 0.0 }
  0xf4   :  { %v334_v40 = vadd.f32 %v333_v39, %v3531_v61  ;;  %1173 = vmatpush1.bf16.msra.mxu1 %v3040_v32  ;;  %v475_v44 = vmax.f32 %v330_v36, 0.0 }
  0xf5   :  { %v476_v43 = vmax.f32 %v332_v38, 0.0  ;;  %1174 = vmatprep.subr.bf16.mxu1 %v3045_v35 }
  0xf6   :  { %v477_v45 = vmax.f32 %v334_v40, 0.0 }
  0xf7   :  { %v534_v46 = vpack.c.bf16 %v476_v43, %v474_v42 }
  0xf8   :  { %v535_v47 = vpack.c.bf16 %v477_v45, %v475_v44  ;;  %v337_v48 = vpop.f32.mrb[12].mxu0  ;;  %1175 = vmatpush1.bf16.msra.mxu1 %v3043_v41 }
  0xf9   :  { %v338_v49 = vadd.f32 %v337_v48, %v3528_v60  ;;  %v339_v50 = vpop.f32.mrb[13].mxu0 }
  0xfa   :  { %v340_v51 = vadd.f32 %v339_v50, %v3531_v61  ;;  %v341_v52 = vpop.f32.mrb[14].mxu0  ;;  %818 = vmatprep.mubr.bf16.mxu1 %v535_v47 }
  0xfb   :  { %v342_v53 = vadd.f32 %v341_v52, %v3528_v60  ;;  %v343_v54 = vpop.f32.mrb[15].mxu0  ;;  %819 = vmatmul.mubr.bf16.gmra.mrb[8].mxu1 %v534_v46  ;;  %v478_v56 = vmax.f32 %v338_v49, 0.0 }
  0xfc   :  { %v344_v55 = vadd.f32 %v343_v54, %v3531_v61  ;;  %v479_v62 = vmax.f32 %v340_v51, 0.0 }
  0xfd   :  { %v480_v58 = vmax.f32 %v342_v53, 0.0 }
  0xfe   :  { %v481_v63 = vmax.f32 %v344_v55, 0.0 }
  0xff   :  { %v536_v0 = vpack.c.bf16 %v480_v58, %v478_v56 }
 0x100   :  { %v537_v1 = vpack.c.bf16 %v481_v63, %v479_v62  ;;  %v347_v2 = vpop.f32.mrb[16].mxu0 }
 0x101   :  { %v348_v3 = vadd.f32 %v347_v2, %v3528_v60  ;;  %v349_v5 = vpop.f32.mrb[17].mxu0 }
 0x102   :  { %v350_v6 = vadd.f32 %v349_v5, %v3531_v61  ;;  %v351_v7 = vpop.f32.mrb[18].mxu0  ;;  %828 = vmatprep.mubr.bf16.mxu1 %v537_v1 }
 0x103   :  { %v352_v8 = vadd.f32 %v351_v7, %v3528_v60  ;;  %v353_v9 = vpop.f32.mrb[19].mxu0  ;;  %829 = vmatmul.mubr.bf16.gmra.mrb[12].mxu1 %v536_v0  ;;  %v482_v11 = vmax.f32 %v348_v3, 0.0 }
 0x104   :  { %v354_v10 = vadd.f32 %v353_v9, %v3531_v61  ;;  %v483_v13 = vmax.f32 %v350_v6, 0.0 }
 0x105   :  { %v484_v12 = vmax.f32 %v352_v8, 0.0 }
 0x106   :  { %v485_v14 = vmax.f32 %v354_v10, 0.0 }
 0x107   :  { %v538_v15 = vpack.c.bf16 %v484_v12, %v482_v11 }
 0x108   :  { %v539_v16 = vpack.c.bf16 %v485_v14, %v483_v13  ;;  %v357_v17 = vpop.f32.mrb[20].mxu0 }
 0x109   :  { %v358_v18 = vadd.f32 %v357_v17, %v3528_v60  ;;  %v359_v19 = vpop.f32.mrb[21].mxu0 }
 0x10a   :  { %v360_v20 = vadd.f32 %v359_v19, %v3531_v61  ;;  %v361_v21 = vpop.f32.mrb[22].mxu0  ;;  %838 = vmatprep.mubr.bf16.mxu1 %v539_v16 }
 0x10b   :  { %v362_v22 = vadd.f32 %v361_v21, %v3528_v60  ;;  %v363_v23 = vpop.f32.mrb[23].mxu0  ;;  %839 = vmatmul.mubr.bf16.gmra.mrb[16].mxu1 %v538_v15  ;;  %v486_v25 = vmax.f32 %v358_v18, 0.0 }
 0x10c   :  { %v364_v24 = vadd.f32 %v363_v23, %v3531_v61  ;;  %v487_v27 = vmax.f32 %v360_v20, 0.0 }
 0x10d   :  { %v488_v26 = vmax.f32 %v362_v22, 0.0 }
 0x10e   :  { %v489_v28 = vmax.f32 %v364_v24, 0.0 }
 0x10f   :  { %v540_v29 = vpack.c.bf16 %v488_v26, %v486_v25 }
 0x110   :  { %v541_v30 = vpack.c.bf16 %v489_v28, %v487_v27  ;;  %v367_v31 = vpop.f32.mrb[24].mxu0 }
 0x111   :  { %v368_v32 = vadd.f32 %v367_v31, %v3528_v60  ;;  %v369_v33 = vpop.f32.mrb[25].mxu0 }
 0x112   :  { %v370_v34 = vadd.f32 %v369_v33, %v3531_v61  ;;  %v371_v35 = vpop.f32.mrb[26].mxu0  ;;  %848 = vmatprep.mubr.bf16.mxu1 %v541_v30 }
 0x113   :  { %v372_v36 = vadd.f32 %v371_v35, %v3528_v60  ;;  %v373_v37 = vpop.f32.mrb[27].mxu0  ;;  %849 = vmatmul.mubr.bf16.gmra.mrb[20].mxu1 %v540_v29  ;;  %v490_v39 = vmax.f32 %v368_v32, 0.0 }
 0x114   :  { %v374_v38 = vadd.f32 %v373_v37, %v3531_v61  ;;  %v491_v41 = vmax.f32 %v370_v34, 0.0 }
 0x115   :  { %v492_v40 = vmax.f32 %v372_v36, 0.0 }
 0x116   :  { %v493_v42 = vmax.f32 %v374_v38, 0.0 }
 0x117   :  { %v542_v43 = vpack.c.bf16 %v492_v40, %v490_v39 }
 0x118   :  { %v543_v44 = vpack.c.bf16 %v493_v42, %v491_v41  ;;  %v377_v45 = vpop.f32.mrb[28].mxu0 }
 0x119   :  { %v378_v46 = vadd.f32 %v377_v45, %v3528_v60  ;;  %v379_v47 = vpop.f32.mrb[29].mxu0 }
 0x11a   :  { %v380_v48 = vadd.f32 %v379_v47, %v3531_v61  ;;  %v381_v49 = vpop.f32.mrb[30].mxu0  ;;  %858 = vmatprep.mubr.bf16.mxu1 %v543_v44 }
 0x11b   :  { %v382_v50 = vadd.f32 %v381_v49, %v3528_v60  ;;  %v383_v51 = vpop.f32.mrb[31].mxu0  ;;  %859 = vmatmul.mubr.bf16.gmra.mrb[24].mxu1 %v542_v43  ;;  %v494_v53 = vmax.f32 %v378_v46, 0.0 }
 0x11c   :  { %v384_v52 = vadd.f32 %v383_v51, %v3531_v61  ;;  %v495_v55 = vmax.f32 %v380_v48, 0.0 }
 0x11d   :  { %v496_v54 = vmax.f32 %v382_v50, 0.0 }
 0x11e   :  { %v497_v56 = vmax.f32 %v384_v52, 0.0 }
 0x11f   :  { %v544_v58 = vpack.c.bf16 %v496_v54, %v494_v53 }
 0x120   :  { %v545_v62 = vpack.c.bf16 %v497_v56, %v495_v55  ;;  %v387_v63 = vpop.f32.mrb[32].mxu0 }
 0x121   :  { %v388_v0 = vadd.f32 %v387_v63, %v3528_v60  ;;  %v389_v1 = vpop.f32.mrb[33].mxu0 }
 0x122   :  { %v390_v2 = vadd.f32 %v389_v1, %v3531_v61  ;;  %v391_v3 = vpop.f32.mrb[34].mxu0  ;;  %868 = vmatprep.mubr.bf16.mxu1 %v545_v62 }
 0x123   :  { %v392_v5 = vadd.f32 %v391_v3, %v3528_v60  ;;  %v393_v6 = vpop.f32.mrb[35].mxu0  ;;  %869 = vmatmul.mubr.bf16.gmra.mrb[28].mxu1 %v544_v58  ;;  %v498_v8 = vmax.f32 %v388_v0, 0.0 }
 0x124   :  { %v394_v7 = vadd.f32 %v393_v6, %v3531_v61  ;;  %v499_v10 = vmax.f32 %v390_v2, 0.0 }
 0x125   :  { %v500_v9 = vmax.f32 %v392_v5, 0.0 }
 0x126   :  { %v501_v11 = vmax.f32 %v394_v7, 0.0 }
 0x127   :  { %v546_v12 = vpack.c.bf16 %v500_v9, %v498_v8 }
 0x128   :  { %v547_v13 = vpack.c.bf16 %v501_v11, %v499_v10  ;;  %v397_v14 = vpop.f32.mrb[36].mxu0 }
 0x129   :  { %v398_v15 = vadd.f32 %v397_v14, %v3528_v60  ;;  %v399_v16 = vpop.f32.mrb[37].mxu0 }
 0x12a   :  { %v400_v17 = vadd.f32 %v399_v16, %v3531_v61  ;;  %v401_v18 = vpop.f32.mrb[38].mxu0  ;;  %878 = vmatprep.mubr.bf16.mxu1 %v547_v13 }
 0x12b   :  { %v402_v19 = vadd.f32 %v401_v18, %v3528_v60  ;;  %v403_v20 = vpop.f32.mrb[39].mxu0  ;;  %879 = vmatmul.mubr.bf16.gmra.mrb[32].mxu1 %v546_v12  ;;  %v502_v22 = vmax.f32 %v398_v15, 0.0 }
 0x12c   :  { %v404_v21 = vadd.f32 %v403_v20, %v3531_v61  ;;  %v503_v24 = vmax.f32 %v400_v17, 0.0 }
 0x12d   :  { %v504_v23 = vmax.f32 %v402_v19, 0.0 }
 0x12e   :  { %v505_v25 = vmax.f32 %v404_v21, 0.0 }
 0x12f   :  { %v548_v26 = vpack.c.bf16 %v504_v23, %v502_v22 }
 0x130   :  { %v549_v27 = vpack.c.bf16 %v505_v25, %v503_v24  ;;  %v407_v28 = vpop.f32.mrb[40].mxu0 }
 0x131   :  { %v408_v29 = vadd.f32 %v407_v28, %v3528_v60  ;;  %v409_v30 = vpop.f32.mrb[41].mxu0 }
 0x132   :  { %v410_v31 = vadd.f32 %v409_v30, %v3531_v61  ;;  %v411_v32 = vpop.f32.mrb[42].mxu0  ;;  %888 = vmatprep.mubr.bf16.mxu1 %v549_v27 }
 0x133   :  { %v412_v33 = vadd.f32 %v411_v32, %v3528_v60  ;;  %v413_v34 = vpop.f32.mrb[43].mxu0  ;;  %889 = vmatmul.mubr.bf16.gmra.mrb[36].mxu1 %v548_v26  ;;  %v506_v36 = vmax.f32 %v408_v29, 0.0 }
 0x134   :  { %v414_v35 = vadd.f32 %v413_v34, %v3531_v61  ;;  %v507_v38 = vmax.f32 %v410_v31, 0.0 }
 0x135   :  { %v508_v37 = vmax.f32 %v412_v33, 0.0 }
 0x136   :  { %v509_v39 = vmax.f32 %v414_v35, 0.0 }
 0x137   :  { %v550_v40 = vpack.c.bf16 %v508_v37, %v506_v36 }
 0x138   :  { %v551_v41 = vpack.c.bf16 %v509_v39, %v507_v38  ;;  %v417_v42 = vpop.f32.mrb[44].mxu0 }
 0x139   :  { %v418_v43 = vadd.f32 %v417_v42, %v3528_v60  ;;  %v419_v44 = vpop.f32.mrb[45].mxu0 }
 0x13a   :  { %v420_v45 = vadd.f32 %v419_v44, %v3531_v61  ;;  %v421_v46 = vpop.f32.mrb[46].mxu0  ;;  %898 = vmatprep.mubr.bf16.mxu1 %v551_v41 }
 0x13b   :  { %v422_v47 = vadd.f32 %v421_v46, %v3528_v60  ;;  %v423_v48 = vpop.f32.mrb[47].mxu0  ;;  %899 = vmatmul.mubr.bf16.gmra.mrb[40].mxu1 %v550_v40  ;;  %v510_v50 = vmax.f32 %v418_v43, 0.0 }
 0x13c   :  { %v424_v49 = vadd.f32 %v423_v48, %v3531_v61  ;;  %v511_v52 = vmax.f32 %v420_v45, 0.0 }
 0x13d   :  { %v512_v51 = vmax.f32 %v422_v47, 0.0 }
 0x13e   :  { %v513_v53 = vmax.f32 %v424_v49, 0.0 }
 0x13f   :  { %v552_v54 = vpack.c.bf16 %v512_v51, %v510_v50 }
 0x140   :  { %v553_v55 = vpack.c.bf16 %v513_v53, %v511_v52  ;;  %v427_v56 = vpop.f32.mrb[48].mxu0  ;;  %v3046_v53 = vld [vmem:[%s4302_s25] sm:$0xff]  }
 0x141   :  { %v428_v58 = vadd.f32 %v427_v56, %v3528_v60  ;;  %v429_v62 = vpop.f32.mrb[49].mxu0  ;;  %v3051_v56 = vld [vmem:[%s4302_s25 + $0x28] sm:$0xff]  }
 0x142   :  { %v430_v63 = vadd.f32 %v429_v62, %v3531_v61  ;;  %v431_v0 = vpop.f32.mrb[50].mxu0  ;;  %908 = vmatprep.mubr.bf16.mxu1 %v553_v55  ;;  %v3050_v55 = vld [vmem:[%s4302_s25 + $0x20] sm:$0xff]   ;;  %v3053_v62 = vld [vmem:[%s4302_s25 + $0x38] sm:$0xff]  }
 0x143   :  { %v432_v1 = vadd.f32 %v431_v0, %v3528_v60  ;;  %v433_v2 = vpop.f32.mrb[51].mxu0  ;;  %909 = vmatmul.mubr.bf16.gmra.mrb[44].mxu1 %v552_v54  ;;  %v514_v5 = vmax.f32 %v428_v58, 0.0  ;;  %v3049_v54 = vld [vmem:[%s4302_s25 + $0x18] sm:$0xff]   ;;  %v3052_v58 = vld [vmem:[%s4302_s25 + $0x30] sm:$0xff]   ;;  %v3055_v0 = vld [vmem:[%s4302_s25 + $0x48] sm:$0xff]  }
 0x144   :  { %v434_v3 = vadd.f32 %v433_v2, %v3531_v61  ;;  %v515_v7 = vmax.f32 %v430_v63, 0.0  ;;  %v3054_v63 = vld [vmem:[%s4302_s25 + $0x40] sm:$0xff]   ;;  %v3057_v2 = vld [vmem:[%s4302_s25 + $0x58] sm:$0xff]  }
 0x145   :  { %v516_v6 = vmax.f32 %v432_v1, 0.0  ;;  %v3056_v1 = vld [vmem:[%s4302_s25 + $0x50] sm:$0xff]  }
 0x146   :  { %v517_v8 = vmax.f32 %v434_v3, 0.0  ;;  %v3058_v3 = vld [vmem:[%s4302_s25 + $0x60] sm:$0xff]  }
 0x147   :  { %v554_v9 = vpack.c.bf16 %v516_v6, %v514_v5  ;;  %v3059_v5 = vld [vmem:[%s4302_s25 + $0x68] sm:$0xff]   ;;  %v3060_v6 = vld [vmem:[%s4302_s25 + $0x70] sm:$0xff]  }
 0x148   :  { %v555_v10 = vpack.c.bf16 %v517_v8, %v515_v7  ;;  %v437_v11 = vpop.f32.mrb[52].mxu0  ;;  %v3061_v7 = vld [vmem:[%s4302_s25 + $0x78] sm:$0xff]   ;;  %v594_v8 = vld [vmem:[%s4279_s10] sm:$0x3] }
 0x149   :  { %v438_v12 = vadd.f32 %v437_v11, %v3528_v60  ;;  %v439_v13 = vpop.f32.mrb[53].mxu0 }
 0x14a   :  { %v440_v14 = vadd.f32 %v439_v13, %v3531_v61  ;;  %v441_v15 = vpop.f32.mrb[54].mxu0  ;;  %918 = vmatprep.mubr.bf16.mxu1 %v555_v10  ;;  %v3705_v10 = vrot.slane %v594_v8, %v3525_v59 }
 0x14b   :  { %v442_v16 = vadd.f32 %v441_v15, %v3528_v60  ;;  %v443_v17 = vpop.f32.mrb[55].mxu0  ;;  %919 = vmatmul.mubr.bf16.gmra.mrb[48].mxu1 %v554_v9  ;;  %v518_v19 = vmax.f32 %v438_v12, 0.0  ;;  %v3702_v9 = vrot.slane %v594_v8, %v3520_v57 }
 0x14c   :  { %v444_v18 = vadd.f32 %v443_v17, %v3531_v61  ;;  %v519_v21 = vmax.f32 %v440_v14, 0.0 }
 0x14d   :  { %v520_v20 = vmax.f32 %v442_v16, 0.0 }
 0x14e   :  { %v521_v22 = vmax.f32 %v444_v18, 0.0  ;;  %v3064_v18 = vld [vmem:[%s4303_s23 + $0x4] ss:$8 sps:$4 sm:$0xff]  }
 0x14f   :  { %v556_v23 = vpack.c.bf16 %v520_v20, %v518_v19  ;;  %1553 = vmatprep.mubr.bf16.mxu0 %v3064_v18 }
 0x150   :  { %v557_v24 = vpack.c.bf16 %v521_v22, %v519_v21  ;;  %v447_v25 = vpop.f32.mrb[56].mxu0 }
 0x151   :  { %v448_v26 = vadd.f32 %v447_v25, %v3528_v60  ;;  %v449_v27 = vpop.f32.mrb[57].mxu0 }
 0x152   :  { %v450_v28 = vadd.f32 %v449_v27, %v3531_v61  ;;  %v451_v29 = vpop.f32.mrb[58].mxu0  ;;  %928 = vmatprep.mubr.bf16.mxu1 %v557_v24 }
 0x153   :  { %v452_v30 = vadd.f32 %v451_v29, %v3528_v60  ;;  %v453_v31 = vpop.f32.mrb[59].mxu0  ;;  %929 = vmatmul.mubr.bf16.gmra.mrb[52].mxu1 %v556_v23  ;;  %v522_v33 = vmax.f32 %v448_v26, 0.0 }
 0x154   :  { %v454_v32 = vadd.f32 %v453_v31, %v3531_v61  ;;  %v523_v35 = vmax.f32 %v450_v28, 0.0 }
 0x155   :  { %v524_v34 = vmax.f32 %v452_v30, 0.0 }
 0x156   :  { %v525_v36 = vmax.f32 %v454_v32, 0.0 }
 0x157   :  { %v558_v37 = vpack.c.bf16 %v524_v34, %v522_v33 }
 0x158   :  { %v559_v38 = vpack.c.bf16 %v525_v36, %v523_v35  ;;  %v457_v39 = vpop.f32.mrb[60].mxu0 }
 0x159   :  { %v458_v40 = vadd.f32 %v457_v39, %v3528_v60  ;;  %v459_v41 = vpop.f32.mrb[61].mxu0 }
 0x15a   :  { %v460_v42 = vadd.f32 %v459_v41, %v3531_v61  ;;  %v461_v43 = vpop.f32.mrb[62].mxu0  ;;  %938 = vmatprep.mubr.bf16.mxu1 %v559_v38 }
 0x15b   :  { %v462_v44 = vadd.f32 %v461_v43, %v3528_v60  ;;  %v463_v45 = vpop.f32.mrb[63].mxu0  ;;  %939 = vmatmul.mubr.bf16.gmra.mrb[56].mxu1 %v558_v37  ;;  %v526_v47 = vmax.f32 %v458_v40, 0.0  ;;  %v3047_v60 = vld [vmem:[%s4302_s25 + $0x8] sm:$0xff]  }
 0x15c   :  { %v464_v46 = vadd.f32 %v463_v45, %v3531_v61  ;;  %v527_v49 = vmax.f32 %v460_v42, 0.0  ;;  %v3048_v61 = vld [vmem:[%s4302_s25 + $0x10] sm:$0xff]  }
 0x15d   :  { %v528_v48 = vmax.f32 %v462_v44, 0.0 }
 0x15e   :  { %v529_v50 = vmax.f32 %v464_v46, 0.0 }
 0x15f   :  { %v560_v51 = vpack.c.bf16 %v528_v48, %v526_v47 }
 0x160   :  { %v561_v52 = vpack.c.bf16 %v529_v50, %v527_v49 }
 0x162   :  { %948 = vmatprep.mubr.bf16.mxu1 %v561_v52 }
 0x163   :  { %949 = vmatmul.mubr.bf16.gmra.mrb[60].mxu1 %v560_v51 }
 0x164   :  { %1200 = vmatprep.mubr.bf16.mxu1 %v3222_v4 }
 0x16b   :  { %2727 = vmatmul.mubr.msk.bf16.vlgmr.msra.gmra.mrb[0].mxu1 %vm1119_vm2, %v3046_v53 }
 0x16c   :  { %1210 = vmatprep.mubr.bf16.mxu1 %v3222_v4 }
 0x173   :  { %2728 = vmatmul.mubr.msk.bf16.gmra.mrb[4].mxu1 %vm1119_vm2, %v3047_v60 }
 0x174   :  { %1220 = vmatprep.mubr.bf16.mxu1 %v3222_v4 }
 0x17b   :  { %2729 = vmatmul.mubr.msk.bf16.gmra.mrb[8].mxu1 %vm1119_vm2, %v3048_v61 }
 0x17c   :  { %1230 = vmatprep.mubr.bf16.mxu1 %v3222_v4 }
 0x183   :  { %2730 = vmatmul.mubr.msk.bf16.gmra.mrb[12].mxu1 %vm1119_vm2, %v3049_v54 }
 0x184   :  { %1240 = vmatprep.mubr.bf16.mxu1 %v3222_v4 }
 0x18b   :  { %2731 = vmatmul.mubr.msk.bf16.gmra.mrb[16].mxu1 %vm1119_vm2, %v3050_v55 }
 0x18c   :  { %1250 = vmatprep.mubr.bf16.mxu1 %v3222_v4 }
 0x193   :  { %2732 = vmatmul.mubr.msk.bf16.gmra.mrb[20].mxu1 %vm1119_vm2, %v3051_v56 }
 0x194   :  { %1260 = vmatprep.mubr.bf16.mxu1 %v3222_v4 }
 0x19b   :  { %2733 = vmatmul.mubr.msk.bf16.gmra.mrb[24].mxu1 %vm1119_vm2, %v3052_v58 }
 0x19c   :  { %1270 = vmatprep.mubr.bf16.mxu1 %v3222_v4 }
 0x1a3   :  { %2734 = vmatmul.mubr.msk.bf16.gmra.mrb[28].mxu1 %vm1119_vm2, %v3053_v62 }
 0x1a4   :  { %1280 = vmatprep.mubr.bf16.mxu1 %v3222_v4 }
 0x1ab   :  { %2735 = vmatmul.mubr.msk.bf16.gmra.mrb[32].mxu1 %vm1119_vm2, %v3054_v63 }
 0x1ac   :  { %1290 = vmatprep.mubr.bf16.mxu1 %v3222_v4 }
 0x1b3   :  { %2736 = vmatmul.mubr.msk.bf16.gmra.mrb[36].mxu1 %vm1119_vm2, %v3055_v0 }
 0x1b4   :  { %1300 = vmatprep.mubr.bf16.mxu1 %v3222_v4 }
 0x1bb   :  { %2737 = vmatmul.mubr.msk.bf16.gmra.mrb[40].mxu1 %vm1119_vm2, %v3056_v1 }
 0x1bc   :  { %1310 = vmatprep.mubr.bf16.mxu1 %v3222_v4 }
 0x1c3   :  { %2738 = vmatmul.mubr.msk.bf16.gmra.mrb[44].mxu1 %vm1119_vm2, %v3057_v2 }
 0x1c4   :  { %1320 = vmatprep.mubr.bf16.mxu1 %v3222_v4 }
 0x1cb   :  { %2739 = vmatmul.mubr.msk.bf16.gmra.mrb[48].mxu1 %vm1119_vm2, %v3058_v3 }
 0x1cc   :  { %1330 = vmatprep.mubr.bf16.mxu1 %v3222_v4 }
 0x1d3   :  { %2740 = vmatmul.mubr.msk.bf16.gmra.mrb[52].mxu1 %vm1119_vm2, %v3059_v5  ;;  %v1645_v5 = vld [vmem:[#allocation3] sm:$0x1] }
 0x1d4   :  { %1340 = vmatprep.mubr.bf16.mxu1 %v3222_v4 }
 0x1db   :  { %2741 = vmatmul.mubr.msk.bf16.gmra.mrb[56].mxu1 %vm1119_vm2, %v3060_v6 }
 0x1dc   :  { %1350 = vmatprep.mubr.bf16.mxu1 %v3222_v4 }
 0x1e3   :  { %2742 = vmatmul.mubr.msk.bf16.gmra.mrb[60].mxu1 %vm1119_vm2, %v3061_v7  ;;  %v1646_v7 = vadd.f32 1.0, %v1645_v5 }
 0x23e   :  { %v1202_v11 = vpop.f32.mrb[0].mxu1 }
 0x23f   :  { %v2832_v12 = vadd.f32 %v1202_v11, %v3702_v9  ;;  %v1204_v13 = vpop.f32.mrb[1].mxu1 }
 0x240   :  { %v2833_v14 = vadd.f32 %v1204_v13, %v3705_v10  ;;  %v1206_v15 = vpop.f32.mrb[2].mxu1 }
 0x241   :  { %v2834_v16 = vadd.f32 %v1206_v15, %v3702_v9  ;;  %v1208_v17 = vpop.f32.mrb[3].mxu1  ;;  %v1361_v20 = vmax.f32 %v2832_v12, 0.0 }
 0x242   :  { %v2835_v19 = vadd.f32 %v1208_v17, %v3705_v10  ;;  %v1362_v22 = vmax.f32 %v2833_v14, 0.0  ;;  %v1651_v14 = vrot.slane %v1646_v7, %v3520_v57 }
 0x243   :  { %v1363_v21 = vmax.f32 %v2834_v16, 0.0 }
 0x244   :  { %v1364_v23 = vmax.f32 %v2835_v19, 0.0  ;;  %1653 = vperm.xlu0 %2967, %v1651_v14  }
 0x245   :  { %v1449_v24 = vpack.c.bf16 %v1363_v21, %v1361_v20  ;;  %v2587_v20 = vld [vmem:[%s4275_s6] sm:$0xf]  ;;  %s4304_s6 = sld [smem:[#allocation10_spill]] }
 0x246   :  { %v1450_v25 = vpack.c.bf16 %v1364_v23, %v1362_v22  ;;  %v1212_v26 = vpop.f32.mrb[4].mxu1 }
 0x247   :  { %v2836_v27 = vadd.f32 %v1212_v26, %v3702_v9  ;;  %v1214_v28 = vpop.f32.mrb[5].mxu1 }
 0x248   :  { %v2837_v29 = vadd.f32 %v1214_v28, %v3705_v10  ;;  %v1216_v30 = vpop.f32.mrb[6].mxu1  ;;  %1521 = vmatprep.subr.bf16.mxu0 %v1450_v25  ;;  %2590 = vperm.xlu0 %2967, %v2587_v20  }
 0x249   :  { %v2838_v31 = vadd.f32 %v1216_v30, %v3702_v9  ;;  %v1218_v32 = vpop.f32.mrb[7].mxu1  ;;  %1522 = vmatpush1.bf16.msra.mxu0 %v1449_v24  ;;  %v1365_v34 = vmax.f32 %v2836_v27, 0.0 }
 0x24a   :  { %v2839_v33 = vadd.f32 %v1218_v32, %v3705_v10  ;;  %v1366_v36 = vmax.f32 %v2837_v29, 0.0 }
 0x24b   :  { %v1367_v35 = vmax.f32 %v2838_v31, 0.0 }
 0x24c   :  { %v1368_v37 = vmax.f32 %v2839_v33, 0.0 }
 0x24d   :  { %v1451_v38 = vpack.c.bf16 %v1367_v35, %v1365_v34 }
 0x24e   :  { %v1452_v39 = vpack.c.bf16 %v1368_v37, %v1366_v36  ;;  %v1222_v40 = vpop.f32.mrb[8].mxu1 }
 0x24f   :  { %v2840_v41 = vadd.f32 %v1222_v40, %v3702_v9  ;;  %v1224_v42 = vpop.f32.mrb[9].mxu1 }
 0x250   :  { %v2841_v43 = vadd.f32 %v1224_v42, %v3705_v10  ;;  %v1226_v44 = vpop.f32.mrb[10].mxu1  ;;  %1523 = vmatprep.subr.bf16.mxu0 %v1452_v39 }
 0x251   :  { %v2842_v45 = vadd.f32 %v1226_v44, %v3702_v9  ;;  %v1228_v46 = vpop.f32.mrb[11].mxu1  ;;  %1524 = vmatpush1.bf16.msra.mxu0 %v1451_v38  ;;  %v1369_v48 = vmax.f32 %v2840_v41, 0.0 }
 0x252   :  { %v2843_v47 = vadd.f32 %v1228_v46, %v3705_v10  ;;  %v1370_v50 = vmax.f32 %v2841_v43, 0.0 }
 0x253   :  { %v1371_v49 = vmax.f32 %v2842_v45, 0.0 }
 0x254   :  { %v1372_v51 = vmax.f32 %v2843_v47, 0.0 }
 0x255   :  { %v1453_v52 = vpack.c.bf16 %v1371_v49, %v1369_v48 }
 0x256   :  { %v1454_v53 = vpack.c.bf16 %v1372_v51, %v1370_v50  ;;  %v1232_v60 = vpop.f32.mrb[12].mxu1 }
 0x257   :  { %v2844_v61 = vadd.f32 %v1232_v60, %v3702_v9  ;;  %v1234_v54 = vpop.f32.mrb[13].mxu1 }
 0x258   :  { %v2845_v55 = vadd.f32 %v1234_v54, %v3705_v10  ;;  %v1236_v56 = vpop.f32.mrb[14].mxu1  ;;  %1525 = vmatprep.subr.bf16.mxu0 %v1454_v53 }
 0x259   :  { %v2846_v58 = vadd.f32 %v1236_v56, %v3702_v9  ;;  %v1238_v62 = vpop.f32.mrb[15].mxu1  ;;  %1526 = vmatpush1.bf16.msra.mxu0 %v1453_v52  ;;  %v1373_v0 = vmax.f32 %v2844_v61, 0.0 }
 0x25a   :  { %v2847_v63 = vadd.f32 %v1238_v62, %v3705_v10  ;;  %v1374_v2 = vmax.f32 %v2845_v55, 0.0 }
 0x25b   :  { %v1375_v1 = vmax.f32 %v2846_v58, 0.0 }
 0x25c   :  { %v1376_v3 = vmax.f32 %v2847_v63, 0.0 }
 0x25d   :  { %v1455_v6 = vpack.c.bf16 %v1375_v1, %v1373_v0 }
 0x25e   :  { %v1456_v8 = vpack.c.bf16 %v1376_v3, %v1374_v2  ;;  %v1242_v11 = vpop.f32.mrb[16].mxu1 }
 0x25f   :  { %v2848_v12 = vadd.f32 %v1242_v11, %v3702_v9  ;;  %v1244_v13 = vpop.f32.mrb[17].mxu1 }
 0x260   :  { %v2849_v15 = vadd.f32 %v1244_v13, %v3705_v10  ;;  %v1246_v16 = vpop.f32.mrb[18].mxu1  ;;  %1527 = vmatprep.subr.bf16.mxu0 %v1456_v8 }
 0x261   :  { %v2850_v17 = vadd.f32 %v1246_v16, %v3702_v9  ;;  %v1248_v18 = vpop.f32.mrb[19].mxu1  ;;  %1528 = vmatpush1.bf16.msra.mxu0 %v1455_v6  ;;  %v1377_v21 = vmax.f32 %v2848_v12, 0.0 }
 0x262   :  { %v2851_v19 = vadd.f32 %v1248_v18, %v3705_v10  ;;  %v1378_v23 = vmax.f32 %v2849_v15, 0.0 }
 0x263   :  { %v1379_v22 = vmax.f32 %v2850_v17, 0.0 }
 0x264   :  { %v1380_v24 = vmax.f32 %v2851_v19, 0.0 }
 0x265   :  { %v1457_v25 = vpack.c.bf16 %v1379_v22, %v1377_v21 }
 0x266   :  { %v1458_v26 = vpack.c.bf16 %v1380_v24, %v1378_v23  ;;  %v1252_v27 = vpop.f32.mrb[20].mxu1 }
 0x267   :  { %v2852_v28 = vadd.f32 %v1252_v27, %v3702_v9  ;;  %v1254_v29 = vpop.f32.mrb[21].mxu1 }
 0x268   :  { %v2853_v30 = vadd.f32 %v1254_v29, %v3705_v10  ;;  %v1256_v31 = vpop.f32.mrb[22].mxu1  ;;  %1529 = vmatprep.subr.bf16.mxu0 %v1458_v26 }
 0x269   :  { %v2854_v32 = vadd.f32 %v1256_v31, %v3702_v9  ;;  %v1258_v33 = vpop.f32.mrb[23].mxu1  ;;  %1530 = vmatpush1.bf16.msra.mxu0 %v1457_v25  ;;  %v1381_v35 = vmax.f32 %v2852_v28, 0.0 }
 0x26a   :  { %v2855_v34 = vadd.f32 %v1258_v33, %v3705_v10  ;;  %v1382_v37 = vmax.f32 %v2853_v30, 0.0 }
 0x26b   :  { %v1383_v36 = vmax.f32 %v2854_v32, 0.0 }
 0x26c   :  { %v1384_v38 = vmax.f32 %v2855_v34, 0.0 }
 0x26d   :  { %v1459_v39 = vpack.c.bf16 %v1383_v36, %v1381_v35 }
 0x26e   :  { %v1460_v40 = vpack.c.bf16 %v1384_v38, %v1382_v37  ;;  %v1262_v41 = vpop.f32.mrb[24].mxu1 }
 0x26f   :  { %v2856_v42 = vadd.f32 %v1262_v41, %v3702_v9  ;;  %v1264_v43 = vpop.f32.mrb[25].mxu1 }
 0x270   :  { %v2857_v44 = vadd.f32 %v1264_v43, %v3705_v10  ;;  %v1266_v45 = vpop.f32.mrb[26].mxu1  ;;  %1531 = vmatprep.subr.bf16.mxu0 %v1460_v40 }
 0x271   :  { %v2858_v46 = vadd.f32 %v1266_v45, %v3702_v9  ;;  %v1268_v47 = vpop.f32.mrb[27].mxu1  ;;  %1532 = vmatpush1.bf16.msra.mxu0 %v1459_v39  ;;  %v1385_v49 = vmax.f32 %v2856_v42, 0.0 }
 0x272   :  { %v2859_v48 = vadd.f32 %v1268_v47, %v3705_v10  ;;  %v1386_v51 = vmax.f32 %v2857_v44, 0.0 }
 0x273   :  { %v1387_v50 = vmax.f32 %v2858_v46, 0.0 }
 0x274   :  { %v1388_v52 = vmax.f32 %v2859_v48, 0.0 }
 0x275   :  { %v1461_v53 = vpack.c.bf16 %v1387_v50, %v1385_v49 }
 0x276   :  { %v1462_v60 = vpack.c.bf16 %v1388_v52, %v1386_v51  ;;  %v1272_v61 = vpop.f32.mrb[28].mxu1 }
 0x277   :  { %v2860_v54 = vadd.f32 %v1272_v61, %v3702_v9  ;;  %v1274_v55 = vpop.f32.mrb[29].mxu1 }
 0x278   :  { %v2861_v56 = vadd.f32 %v1274_v55, %v3705_v10  ;;  %v1276_v58 = vpop.f32.mrb[30].mxu1  ;;  %1533 = vmatprep.subr.bf16.mxu0 %v1462_v60 }
 0x279   :  { %v2862_v62 = vadd.f32 %v1276_v58, %v3702_v9  ;;  %v1278_v63 = vpop.f32.mrb[31].mxu1  ;;  %1534 = vmatpush1.bf16.msra.mxu0 %v1461_v53  ;;  %v1389_v1 = vmax.f32 %v2860_v54, 0.0 }
 0x27a   :  { %v2863_v0 = vadd.f32 %v1278_v63, %v3705_v10  ;;  %v1390_v3 = vmax.f32 %v2861_v56, 0.0 }
 0x27b   :  { %v1391_v2 = vmax.f32 %v2862_v62, 0.0 }
 0x27c   :  { %v1392_v5 = vmax.f32 %v2863_v0, 0.0 }
 0x27d   :  { %v1463_v6 = vpack.c.bf16 %v1391_v2, %v1389_v1 }
 0x27e   :  { %v1464_v7 = vpack.c.bf16 %v1392_v5, %v1390_v3  ;;  %v1282_v8 = vpop.f32.mrb[32].mxu1 }
 0x27f   :  { %v2864_v11 = vadd.f32 %v1282_v8, %v3702_v9  ;;  %v1284_v12 = vpop.f32.mrb[33].mxu1 }
 0x280   :  { %v2865_v13 = vadd.f32 %v1284_v12, %v3705_v10  ;;  %v1286_v14 = vpop.f32.mrb[34].mxu1  ;;  %1535 = vmatprep.subr.bf16.mxu0 %v1464_v7 }
 0x281   :  { %v2866_v15 = vadd.f32 %v1286_v14, %v3702_v9  ;;  %v1288_v16 = vpop.f32.mrb[35].mxu1  ;;  %1536 = vmatpush1.bf16.msra.mxu0 %v1463_v6  ;;  %v1393_v18 = vmax.f32 %v2864_v11, 0.0 }
 0x282   :  { %v2867_v17 = vadd.f32 %v1288_v16, %v3705_v10  ;;  %v1394_v20 = vmax.f32 %v2865_v13, 0.0 }
 0x283   :  { %v1395_v19 = vmax.f32 %v2866_v15, 0.0 }
 0x284   :  { %v1396_v21 = vmax.f32 %v2867_v17, 0.0 }
 0x285   :  { %v1465_v22 = vpack.c.bf16 %v1395_v19, %v1393_v18 }
 0x286   :  { %v1466_v23 = vpack.c.bf16 %v1396_v21, %v1394_v20  ;;  %v1292_v24 = vpop.f32.mrb[36].mxu1 }
 0x287   :  { %v2868_v25 = vadd.f32 %v1292_v24, %v3702_v9  ;;  %v1294_v26 = vpop.f32.mrb[37].mxu1 }
 0x288   :  { %v2869_v27 = vadd.f32 %v1294_v26, %v3705_v10  ;;  %v1296_v28 = vpop.f32.mrb[38].mxu1  ;;  %1537 = vmatprep.subr.bf16.mxu0 %v1466_v23 }
 0x289   :  { %v2870_v29 = vadd.f32 %v1296_v28, %v3702_v9  ;;  %v1298_v30 = vpop.f32.mrb[39].mxu1  ;;  %1538 = vmatpush1.bf16.msra.mxu0 %v1465_v22  ;;  %v1397_v32 = vmax.f32 %v2868_v25, 0.0 }
 0x28a   :  { %v2871_v31 = vadd.f32 %v1298_v30, %v3705_v10  ;;  %v1398_v34 = vmax.f32 %v2869_v27, 0.0 }
 0x28b   :  { %v1399_v33 = vmax.f32 %v2870_v29, 0.0 }
 0x28c   :  { %v1400_v35 = vmax.f32 %v2871_v31, 0.0 }
 0x28d   :  { %v1467_v36 = vpack.c.bf16 %v1399_v33, %v1397_v32 }
 0x28e   :  { %v1468_v37 = vpack.c.bf16 %v1400_v35, %v1398_v34  ;;  %v1302_v38 = vpop.f32.mrb[40].mxu1 }
 0x28f   :  { %v2872_v39 = vadd.f32 %v1302_v38, %v3702_v9  ;;  %v1304_v40 = vpop.f32.mrb[41].mxu1 }
 0x290   :  { %v2873_v41 = vadd.f32 %v1304_v40, %v3705_v10  ;;  %v1306_v42 = vpop.f32.mrb[42].mxu1  ;;  %1539 = vmatprep.subr.bf16.mxu0 %v1468_v37 }
 0x291   :  { %v2874_v43 = vadd.f32 %v1306_v42, %v3702_v9  ;;  %v1308_v44 = vpop.f32.mrb[43].mxu1  ;;  %1540 = vmatpush1.bf16.msra.mxu0 %v1467_v36  ;;  %v1401_v46 = vmax.f32 %v2872_v39, 0.0 }
 0x292   :  { %v2875_v45 = vadd.f32 %v1308_v44, %v3705_v10  ;;  %v1402_v48 = vmax.f32 %v2873_v41, 0.0 }
 0x293   :  { %v1403_v47 = vmax.f32 %v2874_v43, 0.0 }
 0x294   :  { %v1404_v49 = vmax.f32 %v2875_v45, 0.0 }
 0x295   :  { %v1469_v50 = vpack.c.bf16 %v1403_v47, %v1401_v46 }
 0x296   :  { %v1470_v51 = vpack.c.bf16 %v1404_v49, %v1402_v48  ;;  %v1312_v52 = vpop.f32.mrb[44].mxu1 }
 0x297   :  { %v2876_v53 = vadd.f32 %v1312_v52, %v3702_v9  ;;  %v1314_v60 = vpop.f32.mrb[45].mxu1 }
 0x298   :  { %v2877_v61 = vadd.f32 %v1314_v60, %v3705_v10  ;;  %v1316_v54 = vpop.f32.mrb[46].mxu1  ;;  %1541 = vmatprep.subr.bf16.mxu0 %v1470_v51 }
 0x299   :  { %v2878_v55 = vadd.f32 %v1316_v54, %v3702_v9  ;;  %v1318_v56 = vpop.f32.mrb[47].mxu1  ;;  %1542 = vmatpush1.bf16.msra.mxu0 %v1469_v50  ;;  %v1405_v62 = vmax.f32 %v2876_v53, 0.0 }
 0x29a   :  { %v2879_v58 = vadd.f32 %v1318_v56, %v3705_v10  ;;  %v1406_v0 = vmax.f32 %v2877_v61, 0.0 }
 0x29b   :  { %v1407_v63 = vmax.f32 %v2878_v55, 0.0 }
 0x29c   :  { %v1408_v1 = vmax.f32 %v2879_v58, 0.0 }
 0x29d   :  { %v1471_v2 = vpack.c.bf16 %v1407_v63, %v1405_v62 }
 0x29e   :  { %v1472_v3 = vpack.c.bf16 %v1408_v1, %v1406_v0  ;;  %v1322_v5 = vpop.f32.mrb[48].mxu1  ;;  %v3076_v1 = vld [vmem:[%s4280_s11 + $0x4] ss:$8 sps:$4 sm:$0xff]  }
 0x29f   :  { %v2880_v6 = vadd.f32 %v1322_v5, %v3702_v9  ;;  %v1324_v7 = vpop.f32.mrb[49].mxu1  ;;  %v3077_v5 = vld [vmem:[%s4280_s11 + $0x10] ss:$8 sps:$4 sm:$0xff]  }
 0x2a0   :  { %v2881_v8 = vadd.f32 %v1324_v7, %v3705_v10  ;;  %v1326_v11 = vpop.f32.mrb[50].mxu1  ;;  %1543 = vmatprep.subr.bf16.mxu0 %v1472_v3  ;;  %v3079_v3 = vld [vmem:[%s4280_s11 + $0x14] ss:$8 sps:$4 sm:$0xff]   ;;  %v3067_v7 = vld [vmem:[%s4303_s23 + $0x10] ss:$8 sps:$4 sm:$0xff]  }
 0x2a1   :  { %v2882_v12 = vadd.f32 %v1326_v11, %v3702_v9  ;;  %v1328_v13 = vpop.f32.mrb[51].mxu1  ;;  %1544 = vmatpush1.bf16.msra.mxu0 %v1471_v2  ;;  %v1409_v15 = vmax.f32 %v2880_v6, 0.0  ;;  %v3062_v2 = vld [vmem:[%s4303_s23] ss:$8 sps:$4 sm:$0xff]   ;;  %v3082_v6 = vld [vmem:[%s4280_s11 + $0x24] ss:$8 sps:$4 sm:$0xff]  }
 0x2a2   :  { %v2883_v14 = vadd.f32 %v1328_v13, %v3705_v10  ;;  %v1410_v17 = vmax.f32 %v2881_v8, 0.0  ;;  %v3068_v8 = vld [vmem:[%s4303_s23 + $0x24] ss:$8 sps:$4 sm:$0xff]   ;;  %v3080_v11 = vld [vmem:[%s4280_s11 + $0x20] ss:$8 sps:$4 sm:$0xff]  }
 0x2a3   :  { %v1411_v16 = vmax.f32 %v2882_v12, 0.0  ;;  %v3085_v12 = vld [vmem:[%s4280_s11 + $0x34] ss:$8 sps:$4 sm:$0xff]   ;;  %v3083_v13 = vld [vmem:[%s4280_s11 + $0x30] ss:$8 sps:$4 sm:$0xff]  }
 0x2a4   :  { %v1412_v18 = vmax.f32 %v2883_v14, 0.0  ;;  %v3088_v14 = vld [vmem:[%s4280_s11 + $0x44] ss:$8 sps:$4 sm:$0xff]  }
 0x2a5   :  { %v1473_v19 = vpack.c.bf16 %v1411_v16, %v1409_v15  ;;  %v3070_v15 = vld [vmem:[%s4303_s23 + $0x20] ss:$8 sps:$4 sm:$0xff]   ;;  %v3071_v16 = vld [vmem:[%s4303_s23 + $0x34] ss:$8 sps:$4 sm:$0xff]  }
 0x2a6   :  { %v1474_v20 = vpack.c.bf16 %v1412_v18, %v1410_v17  ;;  %v1332_v21 = vpop.f32.mrb[52].mxu1  ;;  %v3086_v17 = vld [vmem:[%s4280_s11 + $0x40] ss:$8 sps:$4 sm:$0xff]   ;;  %v3091_v18 = vld [vmem:[%s4280_s11 + $0x54] ss:$8 sps:$4 sm:$0xff]  }
 0x2a7   :  { %v2884_v22 = vadd.f32 %v1332_v21, %v3702_v9  ;;  %v1334_v23 = vpop.f32.mrb[53].mxu1  ;;  %v3073_v21 = vld [vmem:[%s4303_s23 + $0x30] ss:$8 sps:$4 sm:$0xff]  }
 0x2a8   :  { %v2885_v24 = vadd.f32 %v1334_v23, %v3705_v10  ;;  %v1336_v25 = vpop.f32.mrb[54].mxu1  ;;  %1545 = vmatprep.subr.bf16.mxu0 %v1474_v20  ;;  %v3094_v20 = vld [vmem:[%s4280_s11 + $0x64] ss:$8 sps:$4 sm:$0xff]   ;;  %v3097_v23 = vld [vmem:[%s4280_s11 + $0x74] ss:$8 sps:$4 sm:$0xff]  }
 0x2a9   :  { %v2886_v26 = vadd.f32 %v1336_v25, %v3702_v9  ;;  %v1338_v27 = vpop.f32.mrb[55].mxu1  ;;  %1546 = vmatpush1.bf16.msra.mxu0 %v1473_v19  ;;  %v1413_v29 = vmax.f32 %v2884_v22, 0.0  ;;  %v3089_v19 = vld [vmem:[%s4280_s11 + $0x50] ss:$8 sps:$4 sm:$0xff]   ;;  %v3092_v22 = vld [vmem:[%s4280_s11 + $0x60] ss:$8 sps:$4 sm:$0xff]  }
 0x2aa   :  { %v2887_v28 = vadd.f32 %v1338_v27, %v3705_v10  ;;  %v1414_v31 = vmax.f32 %v2885_v24, 0.0  ;;  %v3095_v24 = vld [vmem:[%s4280_s11 + $0x70] ss:$8 sps:$4 sm:$0xff]   ;;  %v3100_v25 = vld [vmem:[%s4280_s11 + $0x84] ss:$8 sps:$4 sm:$0xff]  }
 0x2ab   :  { %v1415_v30 = vmax.f32 %v2886_v26, 0.0  ;;  %v3098_v26 = vld [vmem:[%s4280_s11 + $0x80] ss:$8 sps:$4 sm:$0xff]   ;;  %v3103_v27 = vld [vmem:[%s4280_s11 + $0x94] ss:$8 sps:$4 sm:$0xff]  }
 0x2ac   :  { %v1416_v32 = vmax.f32 %v2887_v28, 0.0  ;;  %v3101_v28 = vld [vmem:[%s4280_s11 + $0x90] ss:$8 sps:$4 sm:$0xff]  }
 0x2ad   :  { %v1475_v33 = vpack.c.bf16 %v1415_v30, %v1413_v29  ;;  %v3106_v29 = vld [vmem:[%s4280_s11 + $0xa4] ss:$8 sps:$4 sm:$0xff]   ;;  %v3104_v30 = vld [vmem:[%s4280_s11 + $0xa0] ss:$8 sps:$4 sm:$0xff]  }
 0x2ae   :  { %v1476_v34 = vpack.c.bf16 %v1416_v32, %v1414_v31  ;;  %v1342_v35 = vpop.f32.mrb[56].mxu1  ;;  %v3109_v31 = vld [vmem:[%s4280_s11 + $0xb4] ss:$8 sps:$4 sm:$0xff]   ;;  %v3107_v32 = vld [vmem:[%s4280_s11 + $0xb0] ss:$8 sps:$4 sm:$0xff]  }
 0x2af   :  { %v2888_v36 = vadd.f32 %v1342_v35, %v3702_v9  ;;  %v1344_v37 = vpop.f32.mrb[57].mxu1  ;;  %v3115_v35 = vld [vmem:[%s4280_s11 + $0xd4] ss:$8 sps:$4 sm:$0xff]  }
 0x2b0   :  { %v2889_v38 = vadd.f32 %v1344_v37, %v3705_v10  ;;  %v1346_v39 = vpop.f32.mrb[58].mxu1  ;;  %1547 = vmatprep.subr.bf16.mxu0 %v1476_v34  ;;  %v3110_v34 = vld [vmem:[%s4280_s11 + $0xc0] ss:$8 sps:$4 sm:$0xff]   ;;  %v3118_v37 = vld [vmem:[%s4280_s11 + $0xe4] ss:$8 sps:$4 sm:$0xff]  }
 0x2b1   :  { %v2890_v40 = vadd.f32 %v1346_v39, %v3702_v9  ;;  %v1348_v41 = vpop.f32.mrb[59].mxu1  ;;  %1548 = vmatpush1.bf16.msra.mxu0 %v1475_v33  ;;  %v1417_v43 = vmax.f32 %v2888_v36, 0.0  ;;  %v3112_v33 = vld [vmem:[%s4280_s11 + $0xc4] ss:$8 sps:$4 sm:$0xff]   ;;  %v3113_v36 = vld [vmem:[%s4280_s11 + $0xd0] ss:$8 sps:$4 sm:$0xff]  }
 0x2b2   :  { %v2891_v42 = vadd.f32 %v1348_v41, %v3705_v10  ;;  %v1418_v45 = vmax.f32 %v2889_v38, 0.0  ;;  %v3116_v38 = vld [vmem:[%s4280_s11 + $0xe0] ss:$8 sps:$4 sm:$0xff]   ;;  %v3121_v39 = vld [vmem:[%s4280_s11 + $0xf4] ss:$8 sps:$4 sm:$0xff]  }
 0x2b3   :  { %v1419_v44 = vmax.f32 %v2890_v40, 0.0  ;;  %v3119_v40 = vld [vmem:[%s4280_s11 + $0xf0] ss:$8 sps:$4 sm:$0xff]   ;;  %v3124_v41 = vld [vmem:[%s4282_s13 + $0x4] ss:$8 sps:$4 sm:$0xff]  }
 0x2b4   :  { %v1420_v46 = vmax.f32 %v2891_v42, 0.0 }
 0x2b5   :  { %v1477_v47 = vpack.c.bf16 %v1419_v44, %v1417_v43  ;;  %v1629_v43 = vld [vmem:[%s4304_s6] sm:$0xff]  ;;  %v1631_v44 = vld [vmem:[%s4304_s6 + $0x10] sm:$0xff] }
 0x2b6   :  { %v1478_v48 = vpack.c.bf16 %v1420_v46, %v1418_v45  ;;  %v1352_v49 = vpop.f32.mrb[60].mxu1  ;;  %v1630_v45 = vld [vmem:[%s4304_s6 + $0x8] sm:$0xff]  ;;  %v1632_v46 = vld [vmem:[%s4304_s6 + $0x18] sm:$0xff] }
 0x2b7   :  { %v2892_v50 = vadd.f32 %v1352_v49, %v3702_v9  ;;  %v1354_v51 = vpop.f32.mrb[61].mxu1 }
 0x2b8   :  { %v2893_v52 = vadd.f32 %v1354_v51, %v3705_v10  ;;  %v1356_v53 = vpop.f32.mrb[62].mxu1  ;;  %1549 = vmatprep.subr.bf16.mxu0 %v1478_v48 }
 0x2b9   :  { %v2894_v60 = vadd.f32 %v1356_v53, %v3702_v9  ;;  %v1358_v61 = vpop.f32.mrb[63].mxu1  ;;  %1550 = vmatpush1.bf16.msra.mxu0 %v1477_v47  ;;  %v1421_v55 = vmax.f32 %v2892_v50, 0.0  ;;  %v3065_v9 = vld [vmem:[%s4303_s23 + $0x14] ss:$8 sps:$4 sm:$0xff]  }
 0x2ba   :  { %v2895_v54 = vadd.f32 %v1358_v61, %v3705_v10  ;;  %v1422_v58 = vmax.f32 %v2893_v52, 0.0  ;;  %v3074_v10 = vld [vmem:[%s4280_s11] ss:$8 sps:$4 sm:$0xff]  }
 0x2bb   :  { %v1423_v56 = vmax.f32 %v2894_v60, 0.0 }
 0x2bc   :  { %v1424_v62 = vmax.f32 %v2895_v54, 0.0 }
 0x2bd   :  { %v1479_v63 = vpack.c.bf16 %v1423_v56, %v1421_v55 }
 0x2be   :  { %v1480_v0 = vpack.c.bf16 %v1424_v62, %v1422_v58 }
 0x2c0   :  { %1551 = vmatprep.subr.bf16.mxu0 %v1480_v0  ;;  %v1635_v0 = vld [vmem:[%s4304_s6 + $0x30] sm:$0xff] }
 0x2c1   :  { %1552 = vmatpush1.bf16.msra.mxu0 %v1479_v63  ;;  %v1633_v63 = vld [vmem:[%s4304_s6 + $0x20] sm:$0xff] }
 0x2c2   :  { %1916 = vmatprep.subr.bf16.mxu0 %v3076_v1  ;;  %v3122_v1 = vld [vmem:[%s4282_s13] ss:$8 sps:$4 sm:$0xff]  }
 0x2c3   :  { %v3898_v42 = vpop.permute.xlu0 %1653 }
 0x2c4   :  { %1554 = vmatmul.mubr.bf16.vlgmr.msra.gmra.mrb[64].mxu0 %v3062_v2  ;;  %v1656_v47 = vmul.f32 %v3898_v42, %v1629_v43  ;;  %v1658_v48 = vmul.f32 %v3898_v42, %v1631_v44  ;;  %v1657_v50 = vmul.f32 %v3898_v42, %v1630_v45  ;;  %v1659_v51 = vmul.f32 %v3898_v42, %v1632_v46  ;;  %v1634_v2 = vld [vmem:[%s4304_s6 + $0x28] sm:$0xff]  ;;  %v1641_v45 = vld [vmem:[%s4304_s6 + $0x60] sm:$0xff]  ;;  %v1643_v46 = vld [vmem:[%s4304_s6 + $0x70] sm:$0xff] }
 0x2c5   :  { %1563 = vmatprep.mubr.bf16.mxu0 %v3065_v9  ;;  %1917 = vmatpush1.bf16.msra.mxu0 %v3074_v10  ;;  %v1636_v9 = vld [vmem:[%s4304_s6 + $0x38] sm:$0xff] }
 0x2c6   :  { %1918 = vmatprep.subr.bf16.mxu0 %v3079_v3  ;;  %v3127_v10 = vld [vmem:[%s4282_s13 + $0x14] ss:$8 sps:$4 sm:$0xff]  }
 0x2c9   :  { %1919 = vmatpush1.bf16.msra.mxu0 %v3077_v5  ;;  %v1660_v5 = vmul.f32 %v3898_v42, %v1633_v63 }
 0x2ca   :  { %1920 = vmatprep.subr.bf16.mxu0 %v3082_v6 }
 0x2cc   :  { %1564 = vmatmul.mubr.bf16.gmra.mrb[68].mxu0 %v3067_v7  ;;  %v1662_v7 = vmul.f32 %v3898_v42, %v1635_v0  ;;  %v3142_v0 = vld [vmem:[%s4282_s13 + $0x64] ss:$8 sps:$4 sm:$0xff]  }
 0x2cd   :  { %1573 = vmatprep.mubr.bf16.mxu0 %v3068_v8  ;;  %1921 = vmatpush1.bf16.msra.mxu0 %v3080_v11  ;;  %v1661_v8 = vmul.f32 %v3898_v42, %v1634_v2 }
 0x2ce   :  { %1922 = vmatprep.subr.bf16.mxu0 %v3085_v12  ;;  %v1663_v12 = vmul.f32 %v3898_v42, %v1636_v9 }
 0x2d1   :  { %1923 = vmatpush1.bf16.msra.mxu0 %v3083_v13  ;;  %v3125_v13 = vld [vmem:[%s4282_s13 + $0x10] ss:$8 sps:$4 sm:$0xff]  }
 0x2d2   :  { %1924 = vmatprep.subr.bf16.mxu0 %v3088_v14 }
 0x2d4   :  { %1574 = vmatmul.mubr.bf16.gmra.mrb[72].mxu0 %v3070_v15 }
 0x2d5   :  { %1583 = vmatprep.mubr.bf16.mxu0 %v3071_v16  ;;  %1925 = vmatpush1.bf16.msra.mxu0 %v3086_v17  ;;  %v3130_v17 = vld [vmem:[%s4282_s13 + $0x24] ss:$8 sps:$4 sm:$0xff]  }
 0x2d6   :  { %1926 = vmatprep.subr.bf16.mxu0 %v3091_v18 }
 0x2d9   :  { %1927 = vmatpush1.bf16.msra.mxu0 %v3089_v19 }
 0x2da   :  { %1928 = vmatprep.subr.bf16.mxu0 %v3094_v20 }
 0x2dc   :  { %1584 = vmatmul.mubr.bf16.gmra.mrb[76].mxu0 %v3073_v21 }
 0x2dd   :  { %1929 = vmatpush1.bf16.msra.mxu0 %v3092_v22  ;;  %v1637_v22 = vld [vmem:[%s4304_s6 + $0x40] sm:$0xff] }
 0x2de   :  { %1930 = vmatprep.subr.bf16.mxu0 %v3097_v23  ;;  %v1639_v23 = vld [vmem:[%s4304_s6 + $0x50] sm:$0xff] }
 0x2e1   :  { %1931 = vmatpush1.bf16.msra.mxu0 %v3095_v24  ;;  %v3128_v24 = vld [vmem:[%s4282_s13 + $0x20] ss:$8 sps:$4 sm:$0xff]  }
 0x2e2   :  { %1932 = vmatprep.subr.bf16.mxu0 %v3100_v25  ;;  %v1638_v25 = vld [vmem:[%s4304_s6 + $0x48] sm:$0xff] }
 0x2e5   :  { %1933 = vmatpush1.bf16.msra.mxu0 %v3098_v26  ;;  %v1640_v26 = vld [vmem:[%s4304_s6 + $0x58] sm:$0xff] }
 0x2e6   :  { %1934 = vmatprep.subr.bf16.mxu0 %v3103_v27  ;;  %v3133_v27 = vld [vmem:[%s4282_s13 + $0x34] ss:$8 sps:$4 sm:$0xff]  }
 0x2e9   :  { %1935 = vmatpush1.bf16.msra.mxu0 %v3101_v28 }
 0x2ea   :  { %1936 = vmatprep.subr.bf16.mxu0 %v3106_v29  ;;  %v1664_v29 = vmul.f32 %v3898_v42, %v1637_v22  ;;  %v3169_v22 = vld [vmem:[%s4282_s13 + $0xf4] ss:$8 sps:$4 sm:$0xff]  }
 0x2ed   :  { %1937 = vmatpush1.bf16.msra.mxu0 %v3104_v30 }
 0x2ee   :  { %1938 = vmatprep.subr.bf16.mxu0 %v3109_v31  ;;  %v1666_v31 = vmul.f32 %v3898_v42, %v1639_v23  ;;  %v3167_v23 = vld [vmem:[%s4282_s13 + $0xf0] ss:$8 sps:$4 sm:$0xff]  }
 0x2f1   :  { %1939 = vmatpush1.bf16.msra.mxu0 %v3107_v32  ;;  %v1665_v32 = vmul.f32 %v3898_v42, %v1638_v25 }
 0x2f2   :  { %1940 = vmatprep.subr.bf16.mxu0 %v3112_v33 }
 0x2f5   :  { %1941 = vmatpush1.bf16.msra.mxu0 %v3110_v34  ;;  %v1667_v34 = vmul.f32 %v3898_v42, %v1640_v26 }
 0x2f6   :  { %1942 = vmatprep.subr.bf16.mxu0 %v3115_v35  ;;  %v3131_v35 = vld [vmem:[%s4282_s13 + $0x30] ss:$8 sps:$4 sm:$0xff]  }
 0x2f9   :  { %1943 = vmatpush1.bf16.msra.mxu0 %v3113_v36 }
 0x2fa   :  { %1944 = vmatprep.subr.bf16.mxu0 %v3118_v37 }
 0x2fd   :  { %1945 = vmatpush1.bf16.msra.mxu0 %v3116_v38 }
 0x2fe   :  { %1946 = vmatprep.subr.bf16.mxu0 %v3121_v39  ;;  %v3136_v39 = vld [vmem:[%s4282_s13 + $0x44] ss:$8 sps:$4 sm:$0xff]  }
 0x301   :  { %1947 = vmatpush1.bf16.msra.mxu0 %v3119_v40 }
 0x302   :  { %2217 = vmatprep.subr.bf16.mxu0 %v3124_v41 }
 0x397   :  { %v1555_v49 = vpop.f32.mrb[64].mxu0 }
 0x398   :  { %v1557_v52 = vpop.f32.mrb[65].mxu0  ;;  %v1688_v60 = vadd.f32 %v1656_v47, %v1555_v49  ;;  %v3134_v47 = vld [vmem:[%s4282_s13 + $0x40] ss:$8 sps:$4 sm:$0xff]   ;;  %v1644_v49 = vld [vmem:[%s4304_s6 + $0x78] sm:$0xff] }
 0x399   :  { %v1559_v53 = vpop.f32.mrb[66].mxu0  ;;  %v1689_v55 = vadd.f32 %v1657_v50, %v1557_v52  ;;  %v3139_v50 = vld [vmem:[%s4282_s13 + $0x54] ss:$8 sps:$4 sm:$0xff]   ;;  %v1668_v52 = vmul.f32 %v3898_v42, %v1641_v45 }
 0x39a   :  { %v1690_v61 = vadd.f32 %v1658_v48, %v1559_v53  ;;  %v1561_v54 = vpop.f32.mrb[67].mxu0  ;;  %v1642_v48 = vld [vmem:[%s4304_s6 + $0x68] sm:$0xff] }
 0x39b   :  { %v1691_v56 = vadd.f32 %v1659_v51, %v1561_v54 }
 0x39c   :  { %v1704_v58 = vpack.c.bf16 %v1690_v61, %v1688_v60  ;;  %v1670_v60 = vmul.f32 %v3898_v42, %v1643_v46  ;;  %v1669_v61 = vmul.f32 %v3898_v42, %v1642_v48 }
 0x39d   :  { %v1705_v62 = vpack.c.bf16 %v1691_v56, %v1689_v55  ;;  %v1671_v55 = vmul.f32 %v3898_v42, %v1644_v49  ;;  %v3137_v56 = vld [vmem:[%s4282_s13 + $0x50] ss:$8 sps:$4 sm:$0xff]   ;;  %v3140_v42 = vld [vmem:[%s4282_s13 + $0x60] ss:$8 sps:$4 sm:$0xff]  }
 0x39f   :  { %v1565_v3 = vpop.f32.mrb[68].mxu0  ;;  %1948 = vmatprep.mubr.bf16.mxu0 %v1705_v62 }
 0x3a0   :  { %v1567_v6 = vpop.f32.mrb[69].mxu0  ;;  %1949 = vmatmul.mubr.bf16.vlgmr.msra.gmra.mrb[80].mxu0 %v1704_v58  ;;  %v1692_v14 = vadd.f32 %v1660_v5, %v1565_v3  ;;  %v3145_v3 = vld [vmem:[%s4282_s13 + $0x74] ss:$8 sps:$4 sm:$0xff]   ;;  %v3143_v5 = vld [vmem:[%s4282_s13 + $0x70] ss:$8 sps:$4 sm:$0xff]  }
 0x3a1   :  { %v1569_v11 = vpop.f32.mrb[70].mxu0  ;;  %2218 = vmatpush1.bf16.msra.mxu0 %v3122_v1  ;;  %v1693_v18 = vadd.f32 %v1661_v8, %v1567_v6  ;;  %v3148_v6 = vld [vmem:[%s4282_s13 + $0x84] ss:$8 sps:$4 sm:$0xff]   ;;  %v3151_v8 = vld [vmem:[%s4282_s13 + $0x94] ss:$8 sps:$4 sm:$0xff]  }
 0x3a2   :  { %v1694_v15 = vadd.f32 %v1662_v7, %v1569_v11  ;;  %v1571_v16 = vpop.f32.mrb[71].mxu0  ;;  %2219 = vmatprep.subr.bf16.mxu0 %v3127_v10  ;;  %v3146_v7 = vld [vmem:[%s4282_s13 + $0x80] ss:$8 sps:$4 sm:$0xff]   ;;  %v3149_v11 = vld [vmem:[%s4282_s13 + $0x90] ss:$8 sps:$4 sm:$0xff]  }
 0x3a3   :  { %v1695_v19 = vadd.f32 %v1663_v12, %v1571_v16  ;;  %v3154_v12 = vld [vmem:[%s4282_s13 + $0xa4] ss:$8 sps:$4 sm:$0xff]  }
 0x3a4   :  { %v1706_v20 = vpack.c.bf16 %v1694_v15, %v1692_v14  ;;  %v3157_v14 = vld [vmem:[%s4282_s13 + $0xb4] ss:$8 sps:$4 sm:$0xff]   ;;  %v3155_v15 = vld [vmem:[%s4282_s13 + $0xb0] ss:$8 sps:$4 sm:$0xff]   ;;  %v3160_v16 = vld [vmem:[%s4282_s13 + $0xc4] ss:$8 sps:$4 sm:$0xff]  }
 0x3a5   :  { %v1707_v21 = vpack.c.bf16 %v1695_v19, %v1693_v18  ;;  %2220 = vmatpush1.bf16.msra.mxu0 %v3125_v13  ;;  %v3152_v13 = vld [vmem:[%s4282_s13 + $0xa0] ss:$8 sps:$4 sm:$0xff]   ;;  %v3163_v18 = vld [vmem:[%s4282_s13 + $0xd4] ss:$8 sps:$4 sm:$0xff]   ;;  %v3161_v19 = vld [vmem:[%s4282_s13 + $0xd0] ss:$8 sps:$4 sm:$0xff]  }
 0x3a6   :  { %2221 = vmatprep.subr.bf16.mxu0 %v3130_v17  ;;  %v3158_v17 = vld [vmem:[%s4282_s13 + $0xc0] ss:$8 sps:$4 sm:$0xff]  }
 0x3a7   :  { %v1575_v28 = vpop.f32.mrb[72].mxu0  ;;  %1958 = vmatprep.mubr.bf16.mxu0 %v1707_v21  ;;  %v3164_v21 = vld [vmem:[%s4282_s13 + $0xe0] ss:$8 sps:$4 sm:$0xff]  }
 0x3a8   :  { %v1577_v30 = vpop.f32.mrb[73].mxu0  ;;  %1959 = vmatmul.mubr.bf16.gmra.mrb[84].mxu0 %v1706_v20  ;;  %v1696_v36 = vadd.f32 %v1664_v29, %v1575_v28  ;;  %v3166_v20 = vld [vmem:[%s4282_s13 + $0xe4] ss:$8 sps:$4 sm:$0xff]  }
 0x3a9   :  { %v1579_v33 = vpop.f32.mrb[74].mxu0  ;;  %2222 = vmatpush1.bf16.msra.mxu0 %v3128_v24  ;;  %v1697_v40 = vadd.f32 %v1665_v32, %v1577_v30  ;;  %v1744_v24 = vld [vmem:[%s4281_s12] sm:$0x3] }
 0x3aa   :  { %v1698_v37 = vadd.f32 %v1666_v31, %v1579_v33  ;;  %v1581_v38 = vpop.f32.mrb[75].mxu0  ;;  %2223 = vmatprep.subr.bf16.mxu0 %v3133_v27  ;;  %v1749_v25 = vrot.slane %v1744_v24, %v3520_v57  ;;  %v1753_v26 = vrot.slane %v1744_v24, %v3525_v59 }
 0x3ab   :  { %v1699_v41 = vadd.f32 %v1667_v34, %v1581_v38 }
 0x3ac   :  { %v1708_v43 = vpack.c.bf16 %v1698_v37, %v1696_v36 }
 0x3ad   :  { %v1709_v44 = vpack.c.bf16 %v1699_v41, %v1697_v40  ;;  %2224 = vmatpush1.bf16.msra.mxu0 %v3131_v35 }
 0x3ae   :  { %2225 = vmatprep.subr.bf16.mxu0 %v3136_v39 }
 0x3af   :  { %v1585_v51 = vpop.f32.mrb[76].mxu0  ;;  %1968 = vmatprep.mubr.bf16.mxu0 %v1709_v44 }
 0x3b0   :  { %v1587_v53 = vpop.f32.mrb[77].mxu0  ;;  %1969 = vmatmul.mubr.bf16.gmra.mrb[88].mxu0 %v1708_v43  ;;  %v1700_v58 = vadd.f32 %v1668_v52, %v1585_v51 }
 0x3b1   :  { %v1589_v54 = vpop.f32.mrb[78].mxu0  ;;  %2226 = vmatpush1.bf16.msra.mxu0 %v3134_v47  ;;  %v1701_v1 = vadd.f32 %v1669_v61, %v1587_v53 }
 0x3b2   :  { %v1702_v62 = vadd.f32 %v1670_v60, %v1589_v54  ;;  %v1591_v63 = vpop.f32.mrb[79].mxu0  ;;  %2227 = vmatprep.subr.bf16.mxu0 %v3139_v50 }
 0x3b3   :  { %v1703_v2 = vadd.f32 %v1671_v55, %v1591_v63 }
 0x3b4   :  { %v1710_v9 = vpack.c.bf16 %v1702_v62, %v1700_v58 }
 0x3b5   :  { %v1711_v10 = vpack.c.bf16 %v1703_v2, %v1701_v1  ;;  %2228 = vmatpush1.bf16.msra.mxu0 %v3137_v56 }
 0x3b6   :  { %2229 = vmatprep.subr.bf16.mxu0 %v3142_v0 }
 0x3b7   :  { %1978 = vmatprep.mubr.bf16.mxu0 %v1711_v10 }
 0x3b8   :  { %1979 = vmatmul.mubr.bf16.gmra.mrb[92].mxu0 %v1710_v9 }
 0x3b9   :  { %2230 = vmatpush1.bf16.msra.mxu0 %v3140_v42 }
 0x3ba   :  { %2231 = vmatprep.subr.bf16.mxu0 %v3145_v3 }
 0x3bd   :  { %2232 = vmatpush1.bf16.msra.mxu0 %v3143_v5 }
 0x3be   :  { %2233 = vmatprep.subr.bf16.mxu0 %v3148_v6 }
 0x3c1   :  { %2234 = vmatpush1.bf16.msra.mxu0 %v3146_v7 }
 0x3c2   :  { %2235 = vmatprep.subr.bf16.mxu0 %v3151_v8 }
 0x3c5   :  { %2236 = vmatpush1.bf16.msra.mxu0 %v3149_v11 }
 0x3c6   :  { %2237 = vmatprep.subr.bf16.mxu0 %v3154_v12 }
 0x3c9   :  { %2238 = vmatpush1.bf16.msra.mxu0 %v3152_v13 }
 0x3ca   :  { %2239 = vmatprep.subr.bf16.mxu0 %v3157_v14 }
 0x3cd   :  { %2240 = vmatpush1.bf16.msra.mxu0 %v3155_v15 }
 0x3ce   :  { %2241 = vmatprep.subr.bf16.mxu0 %v3160_v16 }
 0x3d1   :  { %2242 = vmatpush1.bf16.msra.mxu0 %v3158_v17 }
 0x3d2   :  { %2243 = vmatprep.subr.bf16.mxu0 %v3163_v18 }
 0x3d5   :  { %2244 = vmatpush1.bf16.msra.mxu0 %v3161_v19 }
 0x3d6   :  { %2245 = vmatprep.subr.bf16.mxu0 %v3166_v20 }
 0x3d9   :  { %2246 = vmatpush1.bf16.msra.mxu0 %v3164_v21 }
 0x3da   :  { %2247 = vmatprep.subr.bf16.mxu0 %v3169_v22  ;;  %v2045_v22 = vld [vmem:[%s4283_s14] sm:$0x3] }
 0x3db   :  { %v2054_v24 = vrot.slane %v2045_v22, %v3525_v59 }
 0x3dd   :  { %2248 = vmatpush1.bf16.msra.mxu0 %v3167_v23  ;;  %v2050_v23 = vrot.slane %v2045_v22, %v3520_v57 }
 0x473   :  { %v1950_v27 = vpop.f32.mrb[80].mxu0 }
 0x474   :  { %v1951_v28 = vadd.f32 %v1950_v27, %v1749_v25  ;;  %v1952_v29 = vpop.f32.mrb[81].mxu0 }
 0x475   :  { %v1953_v30 = vadd.f32 %v1952_v29, %v1753_v26  ;;  %v1954_v31 = vpop.f32.mrb[82].mxu0 }
 0x476   :  { %v1955_v32 = vadd.f32 %v1954_v31, %v1749_v25  ;;  %v1956_v33 = vpop.f32.mrb[83].mxu0  ;;  %v1989_v35 = vmax.f32 %v1951_v28, 0.0 }
 0x477   :  { %v1957_v34 = vadd.f32 %v1956_v33, %v1753_v26  ;;  %v1990_v37 = vmax.f32 %v1953_v30, 0.0 }
 0x478   :  { %v1991_v36 = vmax.f32 %v1955_v32, 0.0 }
 0x479   :  { %v1992_v38 = vmax.f32 %v1957_v34, 0.0 }
 0x47a   :  { %v2005_v39 = vpack.c.bf16 %v1991_v36, %v1989_v35 }
 0x47b   :  { %v2006_v40 = vpack.c.bf16 %v1992_v38, %v1990_v37  ;;  %v1960_v41 = vpop.f32.mrb[84].mxu0 }
 0x47c   :  { %v1961_v43 = vadd.f32 %v1960_v41, %v1749_v25  ;;  %v1962_v44 = vpop.f32.mrb[85].mxu0 }
 0x47d   :  { %v1963_v45 = vadd.f32 %v1962_v44, %v1753_v26  ;;  %v1964_v46 = vpop.f32.mrb[86].mxu0  ;;  %2249 = vmatprep.mubr.bf16.mxu0 %v2006_v40 }
 0x47e   :  { %v1965_v47 = vadd.f32 %v1964_v46, %v1749_v25  ;;  %v1966_v48 = vpop.f32.mrb[87].mxu0  ;;  %2250 = vmatmul.mubr.bf16.vlgmr.msra.gmra.mrb[96].mxu0 %v2005_v39  ;;  %v1993_v50 = vmax.f32 %v1961_v43, 0.0 }
 0x47f   :  { %v1967_v49 = vadd.f32 %v1966_v48, %v1753_v26  ;;  %v1994_v52 = vmax.f32 %v1963_v45, 0.0 }
 0x480   :  { %v1995_v51 = vmax.f32 %v1965_v47, 0.0 }
 0x481   :  { %v1996_v53 = vmax.f32 %v1967_v49, 0.0 }
 0x482   :  { %v2007_v60 = vpack.c.bf16 %v1995_v51, %v1993_v50 }
 0x483   :  { %v2008_v61 = vpack.c.bf16 %v1996_v53, %v1994_v52  ;;  %v1970_v54 = vpop.f32.mrb[88].mxu0 }
 0x484   :  { %v1971_v55 = vadd.f32 %v1970_v54, %v1749_v25  ;;  %v1972_v56 = vpop.f32.mrb[89].mxu0 }
 0x485   :  { %v1973_v58 = vadd.f32 %v1972_v56, %v1753_v26  ;;  %v1974_v62 = vpop.f32.mrb[90].mxu0  ;;  %2259 = vmatprep.mubr.bf16.mxu0 %v2008_v61 }
 0x486   :  { %v1975_v63 = vadd.f32 %v1974_v62, %v1749_v25  ;;  %v1976_v0 = vpop.f32.mrb[91].mxu0  ;;  %2260 = vmatmul.mubr.bf16.gmra.mrb[100].mxu0 %v2007_v60  ;;  %v1997_v2 = vmax.f32 %v1971_v55, 0.0 }
 0x487   :  { %v1977_v1 = vadd.f32 %v1976_v0, %v1753_v26  ;;  %v1998_v10 = vmax.f32 %v1973_v58, 0.0 }
 0x488   :  { %v1999_v9 = vmax.f32 %v1975_v63, 0.0 }
 0x489   :  { %v2000_v42 = vmax.f32 %v1977_v1, 0.0 }
 0x48a   :  { %v2009_v3 = vpack.c.bf16 %v1999_v9, %v1997_v2 }
 0x48b   :  { %v2010_v5 = vpack.c.bf16 %v2000_v42, %v1998_v10  ;;  %v1980_v6 = vpop.f32.mrb[92].mxu0 }
 0x48c   :  { %v1981_v7 = vadd.f32 %v1980_v6, %v1749_v25  ;;  %v1982_v8 = vpop.f32.mrb[93].mxu0 }
 0x48d   :  { %v1983_v11 = vadd.f32 %v1982_v8, %v1753_v26  ;;  %v1984_v12 = vpop.f32.mrb[94].mxu0  ;;  %2269 = vmatprep.mubr.bf16.mxu0 %v2010_v5 }
 0x48e   :  { %v1985_v13 = vadd.f32 %v1984_v12, %v1749_v25  ;;  %v1986_v14 = vpop.f32.mrb[95].mxu0  ;;  %2270 = vmatmul.mubr.bf16.gmra.mrb[104].mxu0 %v2009_v3  ;;  %v2001_v16 = vmax.f32 %v1981_v7, 0.0 }
 0x48f   :  { %v1987_v15 = vadd.f32 %v1986_v14, %v1753_v26  ;;  %v2002_v18 = vmax.f32 %v1983_v11, 0.0 }
 0x490   :  { %v2003_v17 = vmax.f32 %v1985_v13, 0.0 }
 0x491   :  { %v2004_v19 = vmax.f32 %v1987_v15, 0.0 }
 0x492   :  { %v2011_v20 = vpack.c.bf16 %v2003_v17, %v2001_v16 }
 0x493   :  { %v2012_v21 = vpack.c.bf16 %v2004_v19, %v2002_v18 }
 0x495   :  { %2279 = vmatprep.mubr.bf16.mxu0 %v2012_v21 }
 0x496   :  { %2280 = vmatmul.mubr.bf16.gmra.mrb[108].mxu0 %v2011_v20 }
 0x497   :  { %2578 = vmatprep.mubr.bf16.mxu0 %v3222_v4 }
 0x551   :  { %v2251_v25 = vpop.f32.mrb[96].mxu0 }
 0x552   :  { %v4068_v26 = vadd.f32 %v2251_v25, %v2050_v23  ;;  %v2253_v27 = vpop.f32.mrb[97].mxu0 }
 0x553   :  { %v4070_v28 = vadd.f32 %v2253_v27, %v2054_v24  ;;  %v2255_v29 = vpop.f32.mrb[98].mxu0 }
 0x554   :  { %v4072_v30 = vadd.f32 %v2255_v29, %v2050_v23  ;;  %v2257_v31 = vpop.f32.mrb[99].mxu0  ;;  %v2290_v4 = vmax.f32 %v4068_v26, 0.0 }
 0x555   :  { %v4074_v32 = vadd.f32 %v2257_v31, %v2054_v24  ;;  %v2291_v34 = vmax.f32 %v4070_v28, 0.0 }
 0x556   :  { %v2292_v33 = vmax.f32 %v4072_v30, 0.0 }
 0x557   :  { %v2293_v35 = vmax.f32 %v4074_v32, 0.0 }
 0x558   :  { %v2306_v36 = vadd.f32 %v2292_v33, %v2290_v4 }
 0x559   :  { %v2319_v37 = vadd.f32 %v2293_v35, %v2291_v34  ;;  %v2261_v38 = vpop.f32.mrb[100].mxu0 }
 0x55a   :  { %v4088_v39 = vadd.f32 %v2261_v38, %v2050_v23  ;;  %v2263_v40 = vpop.f32.mrb[101].mxu0 }
 0x55b   :  { %v4090_v41 = vadd.f32 %v2263_v40, %v2054_v24  ;;  %v2265_v43 = vpop.f32.mrb[102].mxu0 }
 0x55c   :  { %v2294_v44 = vmax.f32 %v4088_v39, 0.0  ;;  %v2266_v45 = vadd.f32 %v2265_v43, %v2050_v23  ;;  %v2267_v46 = vpop.f32.mrb[103].mxu0 }
 0x55d   :  { %v2295_v47 = vmax.f32 %v4090_v41, 0.0  ;;  %v4094_v48 = vadd.f32 %v2267_v46, %v2054_v24 }
 0x55e   :  { %v2307_v49 = vadd.f32 %v2306_v36, %v2294_v44  ;;  %v2296_v50 = vmax.f32 %v2266_v45, 0.0 }
 0x55f   :  { %v2320_v51 = vadd.f32 %v2319_v37, %v2295_v47  ;;  %v2297_v52 = vmax.f32 %v4094_v48, 0.0 }
 0x560   :  { %v2308_v53 = vadd.f32 %v2307_v49, %v2296_v50 }
 0x561   :  { %v2321_v60 = vadd.f32 %v2320_v51, %v2297_v52  ;;  %v2271_v61 = vpop.f32.mrb[104].mxu0 }
 0x562   :  { %v2272_v54 = vadd.f32 %v2271_v61, %v2050_v23  ;;  %v2273_v55 = vpop.f32.mrb[105].mxu0 }
 0x563   :  { %v2274_v56 = vadd.f32 %v2273_v55, %v2054_v24  ;;  %v2275_v58 = vpop.f32.mrb[106].mxu0 }
 0x564   :  { %v2298_v62 = vmax.f32 %v2272_v54, 0.0  ;;  %v2276_v63 = vadd.f32 %v2275_v58, %v2050_v23  ;;  %v2277_v0 = vpop.f32.mrb[107].mxu0 }
 0x565   :  { %v2299_v1 = vmax.f32 %v2274_v56, 0.0  ;;  %v2278_v2 = vadd.f32 %v2277_v0, %v2054_v24 }
 0x566   :  { %v2309_v9 = vadd.f32 %v2308_v53, %v2298_v62  ;;  %v2300_v10 = vmax.f32 %v2276_v63, 0.0 }
 0x567   :  { %v2322_v42 = vadd.f32 %v2321_v60, %v2299_v1  ;;  %v2301_v3 = vmax.f32 %v2278_v2, 0.0 }
 0x568   :  { %v2310_v5 = vadd.f32 %v2309_v9, %v2300_v10 }
 0x569   :  { %v2323_v6 = vadd.f32 %v2322_v42, %v2301_v3  ;;  %v2281_v7 = vpop.f32.mrb[108].mxu0 }
 0x56a   :  { %v2282_v8 = vadd.f32 %v2281_v7, %v2050_v23  ;;  %v2283_v11 = vpop.f32.mrb[109].mxu0 }
 0x56b   :  { %v2284_v12 = vadd.f32 %v2283_v11, %v2054_v24  ;;  %v2285_v13 = vpop.f32.mrb[110].mxu0 }
 0x56c   :  { %v2302_v14 = vmax.f32 %v2282_v8, 0.0  ;;  %v2286_v15 = vadd.f32 %v2285_v13, %v2050_v23  ;;  %v2287_v16 = vpop.f32.mrb[111].mxu0 }
 0x56d   :  { %v2303_v17 = vmax.f32 %v2284_v12, 0.0  ;;  %v2288_v18 = vadd.f32 %v2287_v16, %v2054_v24 }
 0x56e   :  { %v2311_v19 = vadd.f32 %v2310_v5, %v2302_v14  ;;  %v2304_v20 = vmax.f32 %v2286_v15, 0.0 }
 0x56f   :  { %v2324_v21 = vadd.f32 %v2323_v6, %v2303_v17  ;;  %v2305_v22 = vmax.f32 %v2288_v18, 0.0 }
 0x570   :  { %v2312_v25 = vadd.f32 %v2311_v19, %v2304_v20 }
 0x571   :  { %v2325_v27 = vadd.f32 %v2324_v21, %v2305_v22 }
 0x572   :  { %v2313_v29 = vrot.slane %v2312_v25, 4 }
 0x573   :  { %v2326_v31 = vrot.slane %v2325_v27, 4 }
 0x574   :  { %v2314_v36 = vadd.f32 %v2313_v29, %v2312_v25 }
 0x575   :  { %v2327_v37 = vadd.f32 %v2326_v31, %v2325_v27 }
 0x576   :  { %v2315_v38 = vrot.slane %v2314_v36, 2 }
 0x577   :  { %v2328_v39 = vrot.slane %v2327_v37, 2 }
 0x578   :  { %v2316_v40 = vadd.f32 %v2315_v38, %v2314_v36 }
 0x579   :  { %v2329_v43 = vadd.f32 %v2328_v39, %v2327_v37 }
 0x57a   :  { %v2317_v45 = vrot.slane %v2316_v40, 1 }
 0x57b   :  { %v2330_v46 = vrot.slane %v2329_v43, 1 }
 0x57c   :  { %v2318_v23 = vadd.f32 %v2317_v45, %v2316_v40 }
 0x57d   :  { %v2331_v49 = vadd.f32 %v2330_v46, %v2329_v43 }
 0x57e   :  { %v2332_v51 = vmul.f32 0.015625, %v2318_v23 }
 0x57f   :  { %v2333_v24 = vmul.f32 0.015625, %v2331_v49 }
 0x580   :  { %v4103_v53 = vsub.f32 %v2290_v4, %v2332_v51  ;;  %v4107_v60 = vsub.f32 %v2292_v33, %v2332_v51  ;;  %v4109_v61 = vsub.f32 %v2294_v44, %v2332_v51  ;;  %v4111_v54 = vsub.f32 %v2296_v50, %v2332_v51 }
 0x581   :  { %v4113_v55 = vsub.f32 %v2298_v62, %v2332_v51  ;;  %v4115_v56 = vsub.f32 %v2300_v10, %v2332_v51  ;;  %v4117_v58 = vsub.f32 %v2302_v14, %v2332_v51  ;;  %v4119_v63 = vsub.f32 %v2304_v20, %v2332_v51 }
 0x582   :  { %v2350_v26 = vmul.f32 %v4103_v53, %v4103_v53  ;;  %v2352_v30 = vmul.f32 %v4107_v60, %v4107_v60  ;;  %v2354_v4 = vmul.f32 %v4109_v61, %v4109_v61  ;;  %v2356_v33 = vmul.f32 %v4111_v54, %v4111_v54 }
 0x583   :  { %v4131_v50 = vsub.f32 %v2291_v34, %v2333_v24  ;;  %v4135_v62 = vsub.f32 %v2293_v35, %v2333_v24  ;;  %v4139_v0 = vsub.f32 %v2295_v47, %v2333_v24  ;;  %v4143_v2 = vsub.f32 %v2297_v52, %v2333_v24 }
 0x584   :  { %v2366_v44 = vadd.f32 %v2352_v30, %v2350_v26  ;;  %v4145_v9 = vsub.f32 %v2299_v1, %v2333_v24  ;;  %v4147_v10 = vsub.f32 %v2301_v3, %v2333_v24  ;;  %v4149_v42 = vsub.f32 %v2303_v17, %v2333_v24  ;;  %v2398_v26 = vld [vmem:[%s4285_s16] sm:$0x3] }
 0x585   :  { %v4151_v34 = vsub.f32 %v2305_v22, %v2333_v24  ;;  %v2351_v32 = vmul.f32 %v4131_v50, %v4131_v50  ;;  %v2353_v35 = vmul.f32 %v4135_v62, %v4135_v62  ;;  %v2358_v41 = vmul.f32 %v4113_v55, %v4113_v55  ;;  %v2442_v30 = vld [vmem:[%s4286_s17] sm:$0x3] }
 0x586   :  { %v2367_v28 = vadd.f32 %v2366_v44, %v2354_v4  ;;  %v2355_v48 = vmul.f32 %v4139_v0, %v4139_v0  ;;  %v2360_v1 = vmul.f32 %v4115_v56, %v4115_v56  ;;  %v2357_v5 = vmul.f32 %v4143_v2, %v4143_v2 }
 0x587   :  { %v2379_v52 = vadd.f32 %v2353_v35, %v2351_v32  ;;  %v2362_v7 = vmul.f32 %v4117_v58, %v4117_v58  ;;  %v2359_v11 = vmul.f32 %v4145_v9, %v4145_v9  ;;  %v2364_v13 = vmul.f32 %v4119_v63, %v4119_v63 }
 0x588   :  { %v2368_v47 = vadd.f32 %v2367_v28, %v2356_v33  ;;  %v2361_v15 = vmul.f32 %v4147_v10, %v4147_v10  ;;  %v2363_v18 = vmul.f32 %v4149_v42, %v4149_v42  ;;  %v2365_v21 = vmul.f32 %v4151_v34, %v4151_v34 }
 0x589   :  { %v2380_v6 = vadd.f32 %v2379_v52, %v2355_v48  ;;  %v2419_v4 = vrot.slane %v2398_v26, %v3520_v57  ;;  %v4185_v44 = vrot.slane %v2442_v30, %v3520_v57  ;;  %v4188_v28 = vrot.slane %v2398_v26, %v3525_v59 }
 0x58a   :  { %v2369_v3 = vadd.f32 %v2368_v47, %v2358_v41  ;;  %v4191_v32 = vrot.slane %v2442_v30, %v3525_v59 }
 0x58b   :  { %v2381_v12 = vadd.f32 %v2380_v6, %v2357_v5 }
 0x58c   :  { %v2370_v8 = vadd.f32 %v2369_v3, %v2360_v1 }
 0x58d   :  { %v2382_v16 = vadd.f32 %v2381_v12, %v2359_v11 }
 0x58e   :  { %v2371_v14 = vadd.f32 %v2370_v8, %v2362_v7 }
 0x58f   :  { %v2383_v19 = vadd.f32 %v2382_v16, %v2361_v15 }
 0x590   :  { %v2372_v17 = vadd.f32 %v2371_v14, %v2364_v13 }
 0x591   :  { %v2384_v22 = vadd.f32 %v2383_v19, %v2363_v18 }
 0x592   :  { %v2373_v20 = vrot.slane %v2372_v17, 4 }
 0x593   :  { %v2385_v27 = vadd.f32 %v2384_v22, %v2365_v21 }
 0x594   :  { %v2374_v25 = vadd.f32 %v2373_v20, %v2372_v17 }
 0x595   :  { %v2386_v31 = vrot.slane %v2385_v27, 4 }
 0x596   :  { %v2375_v29 = vrot.slane %v2374_v25, 2 }
 0x597   :  { %v2387_v37 = vadd.f32 %v2386_v31, %v2385_v27 }
 0x598   :  { %v2376_v36 = vadd.f32 %v2375_v29, %v2374_v25 }
 0x599   :  { %v2388_v39 = vrot.slane %v2387_v37, 2 }
 0x59a   :  { %v2377_v38 = vrot.slane %v2376_v36, 1 }
 0x59b   :  { %v2389_v43 = vadd.f32 %v2388_v39, %v2387_v37 }
 0x59c   :  { %v2378_v40 = vadd.f32 %v2377_v38, %v2376_v36 }
 0x59d   :  { %v2390_v46 = vrot.slane %v2389_v43, 1 }
 0x59e   :  { %v2392_v45 = vmul.f32 0.015625, %v2378_v40 }
 0x59f   :  { %v2391_v49 = vadd.f32 %v2390_v46, %v2389_v43 }
 0x5a0   :  { %v2394_v23 = vadd.f32 1e-05, %v2392_v45 }
 0x5a1   :  { %v2393_v51 = vmul.f32 0.015625, %v2391_v49 }
 0x5a2   :  { %3170 = vrsqrt.f32 %v2394_v23 }
 0x5a3   :  { %v2395_v24 = vadd.f32 1e-05, %v2393_v51 }
 0x5a5   :  { %3172 = vrsqrt.f32 %v2395_v24 }
 0x5ac   :  { %v3171_v33 = vpop.eup %3170 }
 0x5ad   :  { %v2411_v35 = vmul.f32 %v3171_v33, %v4117_v58  ;;  %v2413_v41 = vmul.f32 %v3171_v33, %v4119_v63  ;;  %v2399_v47 = vmul.f32 %v3171_v33, %v4103_v53  ;;  %v2401_v48 = vmul.f32 %v3171_v33, %v4107_v60 }
 0x5ae   :  { %v2403_v52 = vmul.f32 %v3171_v33, %v4109_v61  ;;  %v2405_v1 = vmul.f32 %v3171_v33, %v4111_v54  ;;  %v2407_v57 = vmul.f32 %v3171_v33, %v4113_v55  ;;  %v2409_v3 = vmul.f32 %v3171_v33, %v4115_v56 }
 0x5af   :  { %v2440_v5 = vmul.f32 %v2419_v4, %v2413_v41  ;;  %v2426_v6 = vmul.f32 %v2419_v4, %v2399_v47  ;;  %v2428_v59 = vmul.f32 %v2419_v4, %v2401_v48  ;;  %v2438_v7 = vmul.f32 %v2419_v4, %v2411_v35  ;;  %v3173_v8 = vpop.eup %3172 }
 0x5b0   :  { %v2430_v58 = vmul.f32 %v2419_v4, %v2403_v52  ;;  %v2432_v11 = vmul.f32 %v2419_v4, %v2405_v1  ;;  %v2434_v63 = vmul.f32 %v2419_v4, %v2407_v57  ;;  %v2436_v12 = vmul.f32 %v2419_v4, %v2409_v3 }
 0x5b1   :  { %v4202_v53 = vadd.f32 %v4185_v44, %v2440_v5  ;;  %v2414_v60 = vmul.f32 %v3173_v8, %v4151_v34  ;;  %v2400_v61 = vmul.f32 %v3173_v8, %v4131_v50  ;;  %v2402_v54 = vmul.f32 %v3173_v8, %v4135_v62 }
 0x5b2   :  { %v2454_v55 = vadd.f32 %v4185_v44, %v2426_v6  ;;  %v2456_v56 = vadd.f32 %v4185_v44, %v2428_v59  ;;  %v2404_v13 = vmul.f32 %v3173_v8, %v4139_v0  ;;  %v2406_v14 = vmul.f32 %v3173_v8, %v4143_v2 }
 0x5b3   :  { %2492 = vst [vmem:[#allocation4 + $0x70] sm:$0xff] %v4202_v53  ;;  %v2441_v15 = vmul.f32 %v4188_v28, %v2414_v60  ;;  %v2427_v16 = vmul.f32 %v4188_v28, %v2400_v61  ;;  %v2429_v34 = vmul.f32 %v4188_v28, %v2402_v54  ;;  %v2458_v50 = vadd.f32 %v4185_v44, %v2430_v58 }
 0x5b4   :  { %v2470_v17 = vpack.c.bf16 %v2456_v56, %v2454_v55  ;;  %2478 = vst [vmem:[#allocation4] sm:$0xff] %v2454_v55  ;;  %2480 = vst [vmem:[#allocation4 + $0x10] sm:$0xff] %v2456_v56  ;;  %v2431_v62 = vmul.f32 %v4188_v28, %v2404_v13  ;;  %v2433_v18 = vmul.f32 %v4188_v28, %v2406_v14 }
 0x5b5   :  { %v2460_v0 = vadd.f32 %v4185_v44, %v2432_v11  ;;  %v2455_v2 = vadd.f32 %v4191_v32, %v2427_v16  ;;  %v2457_v19 = vadd.f32 %v4191_v32, %v2429_v34  ;;  %2482 = vst [vmem:[#allocation4 + $0x20] sm:$0xff] %v2458_v50  ;;  %v2408_v20 = vmul.f32 %v3173_v8, %v4145_v9 }
 0x5b6   :  { %v2410_v21 = vmul.f32 %v3173_v8, %v4147_v10  ;;  %v2459_v22 = vadd.f32 %v4191_v32, %v2431_v62  ;;  %v2461_v25 = vadd.f32 %v4191_v32, %v2433_v18  ;;  %v2462_v29 = vadd.f32 %v4185_v44, %v2434_v63 }
 0x5b7   :  { %v2472_v27 = vpack.c.bf16 %v2460_v0, %v2458_v50  ;;  %2484 = vst [vmem:[#allocation4 + $0x30] sm:$0xff] %v2460_v0  ;;  %v2471_v31 = vpack.c.bf16 %v2457_v19, %v2455_v2  ;;  %2479 = vst [vmem:[#allocation4 + $0x8] sm:$0xff] %v2455_v2  ;;  %v2824_v36 = vpack.c.bf16 %v2455_v2, %v2454_v55 }
 0x5b8   :  { %2481 = vst [vmem:[#allocation4 + $0x18] sm:$0xff] %v2457_v19  ;;  %v2825_v37 = vpack.c.bf16 %v2457_v19, %v2456_v56  ;;  %v2435_v38 = vmul.f32 %v4188_v28, %v2408_v20  ;;  %v2473_v39 = vpack.c.bf16 %v2461_v25, %v2459_v22  ;;  %2483 = vst [vmem:[#allocation4 + $0x28] sm:$0xff] %v2459_v22 }
 0x5b9   :  { %2485 = vst [vmem:[#allocation4 + $0x38] sm:$0xff] %v2461_v25  ;;  %v2826_v9 = vpack.c.bf16 %v2459_v22, %v2458_v50  ;;  %v2827_v10 = vpack.c.bf16 %v2461_v25, %v2460_v0  ;;  %v2437_v40 = vmul.f32 %v4188_v28, %v2410_v21  ;;  %2486 = vst [vmem:[#allocation4 + $0x40] sm:$0xff] %v2462_v29  ;;  %2546 = vmatprep.subr.bf16.mxu0 %v2471_v31 }
 0x5ba   :  { %2534 = vst [vmem:[#allocation6] sm:$0xff] %v2824_v36  ;;  %2535 = vst [vmem:[#allocation6 + $0x8] sm:$0xff] %v2825_v37  ;;  %v2463_v43 = vadd.f32 %v4191_v32, %v2435_v38  ;;  %v2464_v45 = vadd.f32 %v4185_v44, %v2436_v12  ;;  %v2412_v46 = vmul.f32 %v3173_v8, %v4149_v42  ;;  %2547 = vmatpush1.bf16.msra.mxu0 %v2470_v17 }
 0x5bb   :  { %v2469_v23 = vadd.f32 %v4191_v32, %v2441_v15  ;;  %2536 = vst [vmem:[#allocation6 + $0x10] sm:$0xff] %v2826_v9  ;;  %2537 = vst [vmem:[#allocation6 + $0x18] sm:$0xff] %v2827_v10  ;;  %v2465_v49 = vadd.f32 %v4191_v32, %v2437_v40  ;;  %v2466_v51 = vadd.f32 %v4185_v44, %v2438_v7  ;;  %2548 = vmatprep.subr.bf16.mxu0 %v2473_v39 }
 0x5bc   :  { %2487 = vst [vmem:[#allocation4 + $0x48] sm:$0xff] %v2463_v43  ;;  %v2474_v24 = vpack.c.bf16 %v2464_v45, %v2462_v29  ;;  %2488 = vst [vmem:[#allocation4 + $0x50] sm:$0xff] %v2464_v45  ;;  %v2828_v26 = vpack.c.bf16 %v2463_v43, %v2462_v29  ;;  %v2439_v30 = vmul.f32 %v4188_v28, %v2412_v46  ;;  %v2542_v28 = vld [vmem:[%s4274_s5] sm:$0x3] }
 0x5bd   :  { %2493 = vst [vmem:[#allocation4 + $0x78] sm:$0xff] %v2469_v23  ;;  %v2831_v4 = vpack.c.bf16 %v2469_v23, %v4202_v53  ;;  %v2475_v42 = vpack.c.bf16 %v2465_v49, %v2463_v43  ;;  %2489 = vst [vmem:[#allocation4 + $0x58] sm:$0xff] %v2465_v49  ;;  %v2829_v33 = vpack.c.bf16 %v2465_v49, %v2464_v45 }
 0x5be   :  { %v2476_v35 = vpack.c.bf16 %v4202_v53, %v2466_v51  ;;  %2490 = vst [vmem:[#allocation4 + $0x60] sm:$0xff] %v2466_v51  ;;  %2538 = vst [vmem:[#allocation6 + $0x20] sm:$0xff] %v2828_v26  ;;  %v2467_v41 = vadd.f32 %v4191_v32, %v2439_v30  ;;  %2549 = vmatpush1.bf16.msra.mxu0 %v2472_v27 }
 0x5bf   :  { %2541 = vst [vmem:[#allocation6 + $0x38] sm:$0xff] %v2831_v4  ;;  %2539 = vst [vmem:[#allocation6 + $0x28] sm:$0xff] %v2829_v33  ;;  %2550 = vmatprep.subr.bf16.mxu0 %v2475_v42 }
 0x5c0   :  { %v2477_v44 = vpack.c.bf16 %v2469_v23, %v2467_v41  ;;  %2491 = vst [vmem:[#allocation4 + $0x68] sm:$0xff] %v2467_v41  ;;  %v2830_v47 = vpack.c.bf16 %v2467_v41, %v2466_v51 }
 0x5c2   :  { %2540 = vst [vmem:[#allocation6 + $0x30] sm:$0xff] %v2830_v47  ;;  %2551 = vmatpush1.bf16.msra.mxu0 %v2474_v24 }
 0x5c3   :  { %2552 = vmatprep.subr.bf16.mxu0 %v2477_v44 }
 0x5c6   :  { %2553 = vmatpush1.bf16.msra.mxu0 %v2476_v35 }
 0x5c9   :  { %2823 = vmatmul.mubr.msk.bf16.vlgmr.msra.gmra.mrb[112].mxu0 %vm1119_vm2, %v2542_v28 }
 0x5ca   :  { %3185 = shalt.err (!%p3182_p4)
}
 0x5cb   :  { %s3186_s1 = scalar_lea.hbm %s4287_s18, 2048 }
 0x5cc   :  { %p3187_p5 = scmp.ne.s32.totalorder %s4287_s18, %s3186_s1  ;;  %p3190_p6 = scmp.lt.u32.totalorder %s3186_s1, %s4287_s18 }
 0x5ce   :  { %p3192_p7 = pnand %p3190_p6, %p3187_p5 }
 0x5d0   :  { %3195 = shalt.err (!%p3192_p7)
}
 0x5d1   :  { %s3224_s10 = smov 256   ;;  %s3225_s24 = smov 16  }
 0x5d2   :  { %2611 = dma.vmem_to_hbm [thread:$0]  %s2606_s29, 2048, %s4287_s18, [#allocation5], %s3224_s10, %s3224_s10, %s3225_s24  }
 0x5d3   :  { %s3226_s15 = smov [#allocation6]  }
 0x5d4   :  { %s2617_s8 = sshll.u32 %s3226_s15, 4  ;;  %s2618_s8 = int_to_ptr.vmem [resolvable:$true] %s2617_s8 }
 0x5d5   :  { %s3196_s11 = scalar_lea.vmem %s2618_s8, 1024  ;;  %p3201_p9 = scmp.lt.s32.totalorder %s2618_s8, %s2618_s8 }
 0x5d6   :  { %p3197_p8 = scmp.ne.s32.totalorder %s2618_s8, %s3196_s11  ;;  %p3202_p10 = scmp.lt.s32.totalorder %s3196_s11, %s3196_s11 }
 0x5d8   :  { %p3203_p11 = por %p3202_p10, %p3201_p9 }
 0x5da   :  { %p3204_p12 = pnand %p3203_p11, %p3197_p8 }
 0x5dc   :  { %3207 = shalt.err (!%p3204_p12)
}
 0x5dd   :  { %s3208_s27 = scalar_lea.hbm %s4288_s19, 1024 }
 0x5de   :  { %p3209_p13 = scmp.ne.s32.totalorder %s4288_s19, %s3208_s27  ;;  %p3212_p0 = scmp.lt.u32.totalorder %s3208_s27, %s4288_s19 }
 0x5e0   :  { %p3214_p1 = pnand %p3212_p0, %p3209_p13 }
 0x5e2   :  { %3217 = shalt.err (!%p3214_p1)
}
 0x5e3   :  { %s3227_s6 = smov 128   ;;  %s3228_s23 = smov 8   ;;  %v2591_v32 = vpop.permute.xlu0 %2590 }
 0x5e4   :  { %2623 = dma.vmem_to_hbm [thread:$0]  %s2618_s8, 1024, %s4288_s19, [#allocation7], %s3227_s6, %s3227_s6, %s3228_s23  }
 0x69c   :  { %v2580_v48 = vpop.f32.mrb[112].mxu0 }
 0x69d   :  { %v2593_v52 = vmul.f32 %v2591_v32, %v2580_v48  ;;  %v2582_v1 = vpop.f32.mrb[113].mxu0 }
 0x69e   :  { %v2594_v57 = vmul.f32 %v2591_v32, %v2582_v1  ;;  %v2584_v3 = vpop.f32.mrb[114].mxu0 }
 0x69f   :  { %v2585_v5 = vpop.f32.mrb[115].mxu0 }
 0x6a0   :  { %v2597_v6 = vcombine.low %v2593_v52, %v2594_v57 }
 0x6a2   :  { %2599 = vst [vmem:[%s4289_s20] sm:$0xff] %v2597_v6 }
 0x6a3   :  { %3218 = dma.done.wait [#allocation5], 2048  }
 0x6a4   :  { %3219 = vsyncadd [#allocation5], 4294965248 }
 0x6a5   :  { %3220 = dma.done.wait [#allocation7], 1024  }
 0x6a6   :  { %3221 = vsyncadd [#allocation7], 4294966272 }
 0x6a7   :  { %2634 = vsyncpa [#allocation5], 1 }
 0x6a8   :  { %2635 = vsyncpa [#allocation7], 1 }

</bundles_post_ra>
